<compile_context>
chip_gen: v7x
topology: tpu7x:2x2x1
jax: 0.10.0
libtpu: 0.0.40
codegen_flags: <defaults>
</compile_context>

<pallas_src>
import functools

import numpy as np

import jax
import jax.numpy as jnp
from jax.experimental import pallas as pl
from jax.experimental.pallas import tpu as pltpu

_BN_EPS = 1e-5
_LEAKY_SLOPE = 0.01  # nn.LeakyReLU() default negative_slope


def _round_up(a, b):
    return (a + b - 1) // b * b


def _vmem_limit_bytes():
    try:
        cap = int(pltpu.get_tpu_info().vmem_capacity_bytes)
    except Exception:
        cap = 128 * 1024 * 1024
    # Leave headroom: half of physical, capped, never below the scoped default.
    return max(32 * 1024 * 1024, min(cap // 2, 96 * 1024 * 1024))


_VMEM_LIMIT = _vmem_limit_bytes()


def _apply_act(y, act):
    if act == "leaky":
        return jnp.where(y >= 0, y, _LEAKY_SLOPE * y)
    if act == "sigmoid":
        # sigmoid(y) = 0.5*(tanh(y/2)+1): numerically stable, EUP slot.
        return 0.5 * (jnp.tanh(0.5 * y) + 1.0)
    return y


def _build_tap_matrix(x_ref, shifts, nout):
    """In-VMEM im2col (transposed): (K*K*Cin, Ho*Wpad) from static lane slices."""
    xv = x_ref[0]                                   # (Cin, Lpad) bf16
    taps = [xv[:, s:s + nout] for s in shifts]      # each (Cin, Nout)
    if len(taps) == 1:
        return taps[0]
    return jnp.concatenate(taps, axis=0)            # (K*K*Cin, Nout)


def _conv_act_kernel(x_ref, w_ref, y_ref, *, shifts, nout, act):
    """One image per grid step: single deep bf16 matmul + fused activation."""
    rhs = _build_tap_matrix(x_ref, shifts, nout)
    y = jnp.dot(w_ref[...], rhs, preferred_element_type=jnp.float32)
    y_ref[0] = _apply_act(y, act).astype(y_ref.dtype)


def _conv_stats_kernel(x_ref, w_ref, mask_ref, y_ref, sum_ref, sq_ref, *,
                       shifts, nout):
    """Conv + per-image masked per-channel sum/sumsq for training-mode BN."""
    rhs = _build_tap_matrix(x_ref, shifts, nout)
    y = jnp.dot(w_ref[...], rhs, preferred_element_type=jnp.float32)
    ym = y * mask_ref[...]                           # zero out halo / strided-away cols
    sum_ref[0] = jnp.sum(ym, axis=1, keepdims=True)  # (Cout, 1)
    sq_ref[0] = jnp.sum(ym * ym, axis=1, keepdims=True)
    y_ref[0] = y.astype(y_ref.dtype)                 # un-normalized conv output


def _normact_kernel(y_ref, sc_ref, sh_ref, o_ref, *, act):
    """Elementwise BN (scale/shift) + activation on the stored conv output."""
    y = y_ref[0].astype(jnp.float32)                 # (Cout, Nout)
    yn = y * sc_ref[...] + sh_ref[...]               # (Cout, 1) broadcasts over lanes
    o_ref[0] = _apply_act(yn, act).astype(o_ref.dtype)


def _compiler_params():
    return pltpu.CompilerParams(dimension_semantics=("parallel",),
                                vmem_limit_bytes=_VMEM_LIMIT)


def conv2d_bn_act(x_nchw, w_mat, *, ksize, stride=1, use_bn=False, act=None,
                  out_dtype=jnp.bfloat16):
    """Conv2d(bias=False, padding=k//2) [+ training BN] [+ act], NCHW in/out."""
    n, cin, h, w = x_nchw.shape
    cout, kkc = w_mat.shape
    assert kkc == ksize * ksize * cin, (w_mat.shape, ksize, cin)
    p = ksize // 2
    hp, wp = h + 2 * p, w + 2 * p
    ho, wo = h, w                         # stride-1 'same' output; subsampled below
    nout = ho * wp                        # computed lanes per image (incl. halo cols)
    lneed = hp * wp + ksize - 1           # max source lane any tap slice touches
    lpad = _round_up(lneed, 128)
    shifts = tuple(dy * wp + dx for dy in range(ksize) for dx in range(ksize))

    # Cheap spatial zero-pad only (no K*K im2col materialization in HBM).
    xpad = jnp.pad(x_nchw.astype(jnp.bfloat16),
                   ((0, 0), (0, 0), (p, p), (p, p)))
    xflat = xpad.reshape(n, cin, hp * wp)
    if lpad > hp * wp:
        xflat = jnp.pad(xflat, ((0, 0), (0, 0), (0, lpad - hp * wp)))

    x_spec = pl.BlockSpec((1, cin, lpad), lambda i: (i, 0, 0))
    w_spec = pl.BlockSpec((cout, kkc), lambda i: (0, 0))
    y_spec = pl.BlockSpec((1, cout, nout), lambda i: (i, 0, 0))

    if not use_bn:
        kernel = functools.partial(_conv_act_kernel, shifts=shifts, nout=nout,
                                   act=act)
        out = pl.pallas_call(
            kernel,
            out_shape=jax.ShapeDtypeStruct((n, cout, nout), out_dtype),
            grid_spec=pltpu.PrefetchScalarGridSpec(
                num_scalar_prefetch=0, grid=(n,),
                in_specs=[x_spec, w_spec],
                out_specs=y_spec),
            compiler_params=_compiler_params(),
        )(xflat, w_mat)
    else:
        # Valid-position mask: drops the halo columns and, for stride-2 layers,
        # the positions the strided conv would not produce, so the BN batch
        # statistics match PyTorch exactly.
        mvec = np.zeros((1, nout), np.float32)
        for r in range(0, ho, stride):
            for c in range(0, wo, stride):
                mvec[0, r * wp + c] = 1.0
        mask = jnp.asarray(mvec)
        m_spec = pl.BlockSpec((1, nout), lambda i: (0, 0))
        s_spec = pl.BlockSpec((1, cout, 1), lambda i: (i, 0, 0))

        kernel = functools.partial(_conv_stats_kernel, shifts=shifts, nout=nout)
        y, psum, psq = pl.pallas_call(
            kernel,
            out_shape=(jax.ShapeDtypeStruct((n, cout, nout), jnp.bfloat16),
                       jax.ShapeDtypeStruct((n, cout, 1), jnp.float32),
                       jax.ShapeDtypeStruct((n, cout, 1), jnp.float32)),
            grid_spec=pltpu.PrefetchScalarGridSpec(
                num_scalar_prefetch=0, grid=(n,),
                in_specs=[x_spec, w_spec, m_spec],
                out_specs=[y_spec, s_spec, s_spec]),
            compiler_params=_compiler_params(),
        )(xflat, w_mat, mask)

        # Tiny cross-image reduction -> exact per-batch training-mode BN stats.
        cnt = float(n * ((ho + stride - 1) // stride)
                    * ((wo + stride - 1) // stride))
        mean = jnp.sum(psum[:, :, 0], axis=0) / cnt
        var = jnp.maximum(jnp.sum(psq[:, :, 0], axis=0) / cnt - mean * mean, 0.0)
        scale = jax.lax.rsqrt(var + _BN_EPS)
        shift = -mean * scale
        scale = scale.reshape(cout, 1).astype(jnp.float32)
        shift = shift.reshape(cout, 1).astype(jnp.float32)

        out = pl.pallas_call(
            functools.partial(_normact_kernel, act=act),
            out_shape=jax.ShapeDtypeStruct((n, cout, nout), out_dtype),
            grid_spec=pltpu.PrefetchScalarGridSpec(
                num_scalar_prefetch=0, grid=(n,),
                in_specs=[y_spec,
                          pl.BlockSpec((cout, 1), lambda i: (0, 0)),
                          pl.BlockSpec((cout, 1), lambda i: (0, 0))],
                out_specs=y_spec),
            compiler_params=_compiler_params(),
        )(y, scale, shift)

    out = out.reshape(n, cout, ho, wp)[:, :, :, :wo]
    if stride > 1:
        # TODO(synk): fold the stride into the kernel's tap indexing instead of
        # computing the full stride-1 output and subsampling here.
        out = out[:, :, ::stride, ::stride]
    return out


def upsample2x(x_nchw):
    # nn.Upsample(scale_factor=2), default mode='nearest'.
    # TODO(synk): fold the nearest-neighbor repeat into the next conv kernel's
    # input indexing to avoid the 4x HBM round trip of the upsampled activation.
    return jnp.repeat(jnp.repeat(x_nchw, 2, axis=2), 2, axis=3)


def pack_conv_weight(w_oihw):
    """(Cout, Cin, KH, KW) -> (Cout, KH*KW*Cin) bf16, matching the kernel's
    in-VMEM tap ordering (dy-major, then dx, then ci fastest)."""
    cout, cin, kh, kw = w_oihw.shape
    return (jnp.transpose(w_oihw, (0, 2, 3, 1))
            .reshape(cout, kh * kw * cin).astype(jnp.bfloat16))


def init_params(key, fn_list, dsamp, k_list, diameter):
    def conv_w(k, cout, cin, ksize):
        fan_in = cin * ksize * ksize
        w = (jax.random.normal(k, (cout, cin, ksize, ksize), jnp.float32)
             / jnp.sqrt(jnp.float32(fan_in)))
        return pack_conv_weight(w)

    keys = iter(jax.random.split(key, 64))
    params = {}
    params["conv_in"] = conv_w(next(keys), diameter, 3, 3)
    for i in range(dsamp):
        params[f"down_1_{i}"] = conv_w(next(keys), diameter, diameter, 3)
        params[f"down_2_{i}"] = conv_w(next(keys), diameter, diameter, 3)
        for j in (1, 2, 3):
            params[f"level_{j}_{i}"] = conv_w(next(keys), diameter, diameter, 3)
    params["upout"] = conv_w(next(keys), fn_list[0], diameter, 3)
    for i in range(len(fn_list) - 1):
        params[f"conv_{i}"] = conv_w(next(keys), fn_list[i + 1], fn_list[i],
                                     k_list[i])
    params["conv_out"] = conv_w(next(keys), 3, fn_list[-1], 1)
    # BatchNorm affine params are at their PyTorch defaults (weight=1, bias=0)
    # and are folded into the normalize kernel; bn_out is unused in forward.
    return params


def generative_chimney_forward(params, x_nchw, *, fn_list, dsamp, k_list):
    x = conv2d_bn_act(x_nchw, params["conv_in"], ksize=3, use_bn=False, act=None)
    for i in range(dsamp):
        x = conv2d_bn_act(x, params[f"down_1_{i}"], ksize=3, stride=1,
                          use_bn=True, act="leaky")
        x = conv2d_bn_act(x, params[f"down_2_{i}"], ksize=3, stride=2,
                          use_bn=True, act="leaky")
    for i in range(dsamp):
        x = upsample2x(x)
        for j in (1, 2, 3):
            x = conv2d_bn_act(x, params[f"level_{j}_{i}"], ksize=3,
                              use_bn=True, act="leaky")
    x = conv2d_bn_act(x, params["upout"], ksize=3, use_bn=False, act="leaky")
    for i in range(len(fn_list) - 1):
        x = conv2d_bn_act(x, params[f"conv_{i}"], ksize=k_list[i],
                          use_bn=True, act="leaky")
    x = conv2d_bn_act(x, params["conv_out"], ksize=1, use_bn=False,
                      act="sigmoid", out_dtype=jnp.float32)
    return x  # NCHW, same as the PyTorch module


if __name__ == "__main__":
    # Small shapes consistent with the module: 3-channel 16x16 images.
    fn_list = [16, 16]
    dsamp = 3
    diameter = 32
    k_list = [3] * (len(fn_list) - 1)

    key = jax.random.PRNGKey(0)
    pkey, xkey = jax.random.split(key)
    params = init_params(pkey, fn_list, dsamp, k_list, diameter)
    x = jax.random.normal(xkey, (2, 3, 16, 16), jnp.float32)

    fwd = jax.jit(functools.partial(generative_chimney_forward,
                                    fn_list=fn_list, dsamp=dsamp,
                                    k_list=k_list))
    y = fwd(params, x)
    jax.block_until_ready(y)
    assert y.shape == (2, 3, 16, 16), y.shape
    assert bool(jnp.all(jnp.isfinite(y)))
    assert bool(jnp.all((y >= 0.0) & (y <= 1.0)))  # sigmoid output range
    print("KERNEL_OK")
</pallas_src>

<mosaic_0001>
module attributes {stable_mosaic.version = 11 : i64} {
  func.func @_conv_act_kernel(%arg0: i32, %arg1: memref<1x3x384xbf16, #tpu.memory_space<vmem>>, %arg2: memref<32x27xbf16, #tpu.memory_space<vmem>>, %arg3: memref<1x32x288xbf16, #tpu.memory_space<vmem>>) attributes {dimension_semantics = [#tpu.dimension_semantics<parallel>], iteration_bounds = array<i64: 2>, scalar_prefetch = 0 : i64, scratch_operands = 0 : i64, tpu.core_type = #tpu.core_type<tc>, window_params = [{transform_indices = @transform_0, window_bounds = array<i64: 1, 3, 384>}, {pipeline_mode = #tpu.pipeline_mode<synchronous>, transform_indices = @transform_1, window_bounds = array<i64: 32, 27>}, {transform_indices = @transform_2, window_bounds = array<i64: 1, 32, 288>}]} {
    %c0 = arith.constant 0 : index
    %c0_0 = arith.constant 0 : index
    %c0_1 = arith.constant 0 : index
    %0 = vector.load %arg1[%c0, %c0_0, %c0_1] : memref<1x3x384xbf16, #tpu.memory_space<vmem>>, vector<1x3x384xbf16>
    %1 = vector.shape_cast %0 : vector<1x3x384xbf16> to vector<3x384xbf16>
    %2 = vector.extract_strided_slice %1 {offsets = [0, 0], sizes = [3, 288], strides = [1, 1]} : vector<3x384xbf16> to vector<3x288xbf16>
    %3 = vector.extract_strided_slice %1 {offsets = [0, 1], sizes = [3, 288], strides = [1, 1]} : vector<3x384xbf16> to vector<3x288xbf16>
    %4 = vector.extract_strided_slice %1 {offsets = [0, 2], sizes = [3, 288], strides = [1, 1]} : vector<3x384xbf16> to vector<3x288xbf16>
    %5 = vector.extract_strided_slice %1 {offsets = [0, 18], sizes = [3, 288], strides = [1, 1]} : vector<3x384xbf16> to vector<3x288xbf16>
    %6 = vector.extract_strided_slice %1 {offsets = [0, 19], sizes = [3, 288], strides = [1, 1]} : vector<3x384xbf16> to vector<3x288xbf16>
    %7 = vector.extract_strided_slice %1 {offsets = [0, 20], sizes = [3, 288], strides = [1, 1]} : vector<3x384xbf16> to vector<3x288xbf16>
    %8 = vector.extract_strided_slice %1 {offsets = [0, 36], sizes = [3, 288], strides = [1, 1]} : vector<3x384xbf16> to vector<3x288xbf16>
    %9 = vector.extract_strided_slice %1 {offsets = [0, 37], sizes = [3, 288], strides = [1, 1]} : vector<3x384xbf16> to vector<3x288xbf16>
    %10 = vector.extract_strided_slice %1 {offsets = [0, 38], sizes = [3, 288], strides = [1, 1]} : vector<3x384xbf16> to vector<3x288xbf16>
    %11 = tpu.concatenate %2, %3, %4, %5, %6, %7, %8, %9, %10 in 0 : vector<3x288xbf16>, vector<3x288xbf16>, vector<3x288xbf16>, vector<3x288xbf16>, vector<3x288xbf16>, vector<3x288xbf16>, vector<3x288xbf16>, vector<3x288xbf16>, vector<3x288xbf16> -> vector<27x288xbf16>
    %c0_2 = arith.constant 0 : index
    %c0_3 = arith.constant 0 : index
    %12 = vector.load %arg2[%c0_2, %c0_3] : memref<32x27xbf16, #tpu.memory_space<vmem>>, vector<32x27xbf16>
    %cst = arith.constant dense<0.000000e+00> : vector<32x288xf32>
    %13 = tpu.matmul %12, %11, %cst {dimension_numbers = #tpu.dot_dimension_numbers<[1], [0], [0], [1], [0, 0, 1, 1], [], []>} : vector<32x27xbf16>, vector<27x288xbf16>, vector<32x288xf32> -> vector<32x288xf32>
    %14 = arith.truncf %13 : vector<32x288xf32> to vector<32x288xbf16>
    %c0_4 = arith.constant 0 : index
    %c0_5 = arith.constant 0 : index
    %c0_6 = arith.constant 0 : index
    %15 = vector.load %arg3[%c0_4, %c0_5, %c0_6] : memref<1x32x288xbf16, #tpu.memory_space<vmem>>, vector<1x32x288xbf16>
    %16 = vector.shape_cast %15 : vector<1x32x288xbf16> to vector<32x288xbf16>
    %17 = vector.shape_cast %14 : vector<32x288xbf16> to vector<1x32x288xbf16>
    tpu.vector_store %arg3[%c0_4, %c0_5, %c0_6], %17 {strides = array<i32>} : memref<1x32x288xbf16, #tpu.memory_space<vmem>>, vector<1x32x288xbf16>,
    return
  }
  func.func @transform_0(%arg0: i32) -> (i32, i32, i32) {
    %c0_i32 = arith.constant 0 : i32
    %c0_i32_0 = arith.constant 0 : i32
    %c0_i32_1 = arith.constant 0 : i32
    return %arg0, %c0_i32, %c0_i32_0 : i32, i32, i32
  }
  func.func @transform_1(%arg0: i32) -> (i32, i32) {
    %c0_i32 = arith.constant 0 : i32
    %c0_i32_0 = arith.constant 0 : i32
    %c0_i32_1 = arith.constant 0 : i32
    return %c0_i32, %c0_i32_0 : i32, i32
  }
  func.func @transform_2(%arg0: i32) -> (i32, i32, i32) {
    %c0_i32 = arith.constant 0 : i32
    %c0_i32_0 = arith.constant 0 : i32
    %c0_i32_1 = arith.constant 0 : i32
    return %arg0, %c0_i32, %c0_i32_0 : i32, i32, i32
  }
}

module attributes {stable_mosaic.version = 11 : i64} {
  func.func @_conv_stats_kernel(%arg0: i32, %arg1: memref<1x32x384xbf16, #tpu.memory_space<vmem>>, %arg2: memref<32x288xbf16, #tpu.memory_space<vmem>>, %arg3: memref<1x288xf32, #tpu.memory_space<vmem>>, %arg4: memref<1x32x288xbf16, #tpu.memory_space<vmem>>, %arg5: memref<1x32x1xf32, #tpu.memory_space<vmem>>, %arg6: memref<1x32x1xf32, #tpu.memory_space<vmem>>) attributes {dimension_semantics = [#tpu.dimension_semantics<parallel>], iteration_bounds = array<i64: 2>, scalar_prefetch = 0 : i64, scratch_operands = 0 : i64, tpu.core_type = #tpu.core_type<tc>, window_params = [{transform_indices = @transform_0, window_bounds = array<i64: 1, 32, 384>}, {pipeline_mode = #tpu.pipeline_mode<synchronous>, transform_indices = @transform_1, window_bounds = array<i64: 32, 288>}, {pipeline_mode = #tpu.pipeline_mode<synchronous>, transform_indices = @transform_2, window_bounds = array<i64: 1, 288>}, {transform_indices = @transform_3, window_bounds = array<i64: 1, 32, 288>}, {transform_indices = @transform_4, window_bounds = array<i64: 1, 32, 1>}, {transform_indices = @transform_5, window_bounds = array<i64: 1, 32, 1>}]} {
    %c0 = arith.constant 0 : index
    %c0_0 = arith.constant 0 : index
    %c0_1 = arith.constant 0 : index
    %0 = vector.load %arg1[%c0, %c0_0, %c0_1] : memref<1x32x384xbf16, #tpu.memory_space<vmem>>, vector<1x32x384xbf16>
    %1 = vector.shape_cast %0 : vector<1x32x384xbf16> to vector<32x384xbf16>
    %2 = vector.extract_strided_slice %1 {offsets = [0, 0], sizes = [32, 288], strides = [1, 1]} : vector<32x384xbf16> to vector<32x288xbf16>
    %3 = vector.extract_strided_slice %1 {offsets = [0, 1], sizes = [32, 288], strides = [1, 1]} : vector<32x384xbf16> to vector<32x288xbf16>
    %4 = vector.extract_strided_slice %1 {offsets = [0, 2], sizes = [32, 288], strides = [1, 1]} : vector<32x384xbf16> to vector<32x288xbf16>
    %5 = vector.extract_strided_slice %1 {offsets = [0, 18], sizes = [32, 288], strides = [1, 1]} : vector<32x384xbf16> to vector<32x288xbf16>
    %6 = vector.extract_strided_slice %1 {offsets = [0, 19], sizes = [32, 288], strides = [1, 1]} : vector<32x384xbf16> to vector<32x288xbf16>
    %7 = vector.extract_strided_slice %1 {offsets = [0, 20], sizes = [32, 288], strides = [1, 1]} : vector<32x384xbf16> to vector<32x288xbf16>
    %8 = vector.extract_strided_slice %1 {offsets = [0, 36], sizes = [32, 288], strides = [1, 1]} : vector<32x384xbf16> to vector<32x288xbf16>
    %9 = vector.extract_strided_slice %1 {offsets = [0, 37], sizes = [32, 288], strides = [1, 1]} : vector<32x384xbf16> to vector<32x288xbf16>
    %10 = vector.extract_strided_slice %1 {offsets = [0, 38], sizes = [32, 288], strides = [1, 1]} : vector<32x384xbf16> to vector<32x288xbf16>
    %11 = tpu.concatenate %2, %3, %4, %5, %6, %7, %8, %9, %10 in 0 : vector<32x288xbf16>, vector<32x288xbf16>, vector<32x288xbf16>, vector<32x288xbf16>, vector<32x288xbf16>, vector<32x288xbf16>, vector<32x288xbf16>, vector<32x288xbf16>, vector<32x288xbf16> -> vector<288x288xbf16>
    %c0_2 = arith.constant 0 : index
    %c0_3 = arith.constant 0 : index
    %12 = vector.load %arg2[%c0_2, %c0_3] : memref<32x288xbf16, #tpu.memory_space<vmem>>, vector<32x288xbf16>
    %cst = arith.constant dense<0.000000e+00> : vector<32x288xf32>
    %13 = tpu.matmul %12, %11, %cst {dimension_numbers = #tpu.dot_dimension_numbers<[1], [0], [0], [1], [0, 0, 1, 1], [], []>} : vector<32x288xbf16>, vector<288x288xbf16>, vector<32x288xf32> -> vector<32x288xf32>
    %c0_4 = arith.constant 0 : index
    %c0_5 = arith.constant 0 : index
    %14 = vector.load %arg3[%c0_4, %c0_5] : memref<1x288xf32, #tpu.memory_space<vmem>>, vector<1x288xf32>
    %15 = vector.broadcast %14 : vector<1x288xf32> to vector<32x288xf32>
    %16 = arith.mulf %13, %15 : vector<32x288xf32>
    %cst_6 = arith.constant dense<0.000000e+00> : vector<32xf32>
    %17 = vector.multi_reduction <add>, %16, %cst_6 [1] : vector<32x288xf32> to vector<32xf32>
    %18 = vector.shape_cast %17 : vector<32xf32> to vector<32x1xf32>
    %c0_7 = arith.constant 0 : index
    %c0_8 = arith.constant 0 : index
    %c0_9 = arith.constant 0 : index
    %19 = vector.load %arg5[%c0_7, %c0_8, %c0_9] : memref<1x32x1xf32, #tpu.memory_space<vmem>>, vector<1x32x1xf32>
    %20 = vector.shape_cast %19 : vector<1x32x1xf32> to vector<32x1xf32>
    %21 = vector.shape_cast %18 : vector<32x1xf32> to vector<1x32x1xf32>
    tpu.vector_store %arg5[%c0_7, %c0_8, %c0_9], %21 {strides = array<i32>} : memref<1x32x1xf32, #tpu.memory_space<vmem>>, vector<1x32x1xf32>,
    %22 = arith.mulf %16, %16 : vector<32x288xf32>
    %cst_10 = arith.constant dense<0.000000e+00> : vector<32xf32>
    %23 = vector.multi_reduction <add>, %22, %cst_10 [1] : vector<32x288xf32> to vector<32xf32>
    %24 = vector.shape_cast %23 : vector<32xf32> to vector<32x1xf32>
    %c0_11 = arith.constant 0 : index
    %c0_12 = arith.constant 0 : index
    %c0_13 = arith.constant 0 : index
    %25 = vector.load %arg6[%c0_11, %c0_12, %c0_13] : memref<1x32x1xf32, #tpu.memory_space<vmem>>, vector<1x32x1xf32>
    %26 = vector.shape_cast %25 : vector<1x32x1xf32> to vector<32x1xf32>
    %27 = vector.shape_cast %24 : vector<32x1xf32> to vector<1x32x1xf32>
    tpu.vector_store %arg6[%c0_11, %c0_12, %c0_13], %27 {strides = array<i32>} : memref<1x32x1xf32, #tpu.memory_space<vmem>>, vector<1x32x1xf32>,
    %28 = arith.truncf %13 : vector<32x288xf32> to vector<32x288xbf16>
    %c0_14 = arith.constant 0 : index
    %c0_15 = arith.constant 0 : index
    %c0_16 = arith.constant 0 : index
    %29 = vector.load %arg4[%c0_14, %c0_15, %c0_16] : memref<1x32x288xbf16, #tpu.memory_space<vmem>>, vector<1x32x288xbf16>
    %30 = vector.shape_cast %29 : vector<1x32x288xbf16> to vector<32x288xbf16>
    %31 = vector.shape_cast %28 : vector<32x288xbf16> to vector<1x32x288xbf16>
    tpu.vector_store %arg4[%c0_14, %c0_15, %c0_16], %31 {strides = array<i32>} : memref<1x32x288xbf16, #tpu.memory_space<vmem>>, vector<1x32x288xbf16>,
    return
  }
  func.func @transform_0(%arg0: i32) -> (i32, i32, i32) {
    %c0_i32 = arith.constant 0 : i32
    %c0_i32_0 = arith.constant 0 : i32
    %c0_i32_1 = arith.constant 0 : i32
    return %arg0, %c0_i32, %c0_i32_0 : i32, i32, i32
  }
  func.func @transform_1(%arg0: i32) -> (i32, i32) {
    %c0_i32 = arith.constant 0 : i32
    %c0_i32_0 = arith.constant 0 : i32
    %c0_i32_1 = arith.constant 0 : i32
    return %c0_i32, %c0_i32_0 : i32, i32
  }
  func.func @transform_2(%arg0: i32) -> (i32, i32) {
    %c0_i32 = arith.constant 0 : i32
    %c0_i32_0 = arith.constant 0 : i32
    %c0_i32_1 = arith.constant 0 : i32
    return %c0_i32, %c0_i32_0 : i32, i32
  }
  func.func @transform_3(%arg0: i32) -> (i32, i32, i32) {
    %c0_i32 = arith.constant 0 : i32
    %c0_i32_0 = arith.constant 0 : i32
    %c0_i32_1 = arith.constant 0 : i32
    return %arg0, %c0_i32, %c0_i32_0 : i32, i32, i32
  }
  func.func @transform_4(%arg0: i32) -> (i32, i32, i32) {
    %c0_i32 = arith.constant 0 : i32
    %c0_i32_0 = arith.constant 0 : i32
    %c0_i32_1 = arith.constant 0 : i32
    return %arg0, %c0_i32, %c0_i32_0 : i32, i32, i32
  }
  func.func @transform_5(%arg0: i32) -> (i32, i32, i32) {
    %c0_i32 = arith.constant 0 : i32
    %c0_i32_0 = arith.constant 0 : i32
    %c0_i32_1 = arith.constant 0 : i32
    return %arg0, %c0_i32, %c0_i32_0 : i32, i32, i32
  }
}

module attributes {stable_mosaic.version = 11 : i64} {
  func.func @_normact_kernel(%arg0: i32, %arg1: memref<1x32x288xbf16, #tpu.memory_space<vmem>>, %arg2: memref<32x1xf32, #tpu.memory_space<vmem>>, %arg3: memref<32x1xf32, #tpu.memory_space<vmem>>, %arg4: memref<1x32x288xbf16, #tpu.memory_space<vmem>>) attributes {dimension_semantics = [#tpu.dimension_semantics<parallel>], iteration_bounds = array<i64: 2>, scalar_prefetch = 0 : i64, scratch_operands = 0 : i64, tpu.core_type = #tpu.core_type<tc>, window_params = [{transform_indices = @transform_0, window_bounds = array<i64: 1, 32, 288>}, {pipeline_mode = #tpu.pipeline_mode<synchronous>, transform_indices = @transform_1, window_bounds = array<i64: 32, 1>}, {pipeline_mode = #tpu.pipeline_mode<synchronous>, transform_indices = @transform_2, window_bounds = array<i64: 32, 1>}, {transform_indices = @transform_3, window_bounds = array<i64: 1, 32, 288>}]} {
    %c0 = arith.constant 0 : index
    %c0_0 = arith.constant 0 : index
    %c0_1 = arith.constant 0 : index
    %0 = vector.load %arg1[%c0, %c0_0, %c0_1] : memref<1x32x288xbf16, #tpu.memory_space<vmem>>, vector<1x32x288xbf16>
    %1 = vector.shape_cast %0 : vector<1x32x288xbf16> to vector<32x288xbf16>
    %2 = arith.extf %1 : vector<32x288xbf16> to vector<32x288xf32>
    %c0_2 = arith.constant 0 : index
    %c0_3 = arith.constant 0 : index
    %3 = vector.load %arg2[%c0_2, %c0_3] : memref<32x1xf32, #tpu.memory_space<vmem>>, vector<32x1xf32>
    %4 = vector.broadcast %3 : vector<32x1xf32> to vector<32x288xf32>
    %5 = arith.mulf %2, %4 : vector<32x288xf32>
    %c0_4 = arith.constant 0 : index
    %c0_5 = arith.constant 0 : index
    %6 = vector.load %arg3[%c0_4, %c0_5] : memref<32x1xf32, #tpu.memory_space<vmem>>, vector<32x1xf32>
    %7 = vector.broadcast %6 : vector<32x1xf32> to vector<32x288xf32>
    %8 = arith.addf %5, %7 : vector<32x288xf32>
    %cst = arith.constant 0.000000e+00 : f32
    %9 = vector.broadcast %cst : f32 to vector<32x288xf32>
    %10 = arith.cmpf oge, %8, %9 : vector<32x288xf32>
    %cst_6 = arith.constant 0.00999999977 : f32
    %11 = vector.broadcast %cst_6 : f32 to vector<32x288xf32>
    %12 = arith.mulf %11, %8 : vector<32x288xf32>
    %13 = arith.select %10, %8, %12 : vector<32x288xi1>, vector<32x288xf32>
    %14 = arith.truncf %13 : vector<32x288xf32> to vector<32x288xbf16>
    %c0_7 = arith.constant 0 : index
    %c0_8 = arith.constant 0 : index
    %c0_9 = arith.constant 0 : index
    %15 = vector.load %arg4[%c0_7, %c0_8, %c0_9] : memref<1x32x288xbf16, #tpu.memory_space<vmem>>, vector<1x32x288xbf16>
    %16 = vector.shape_cast %15 : vector<1x32x288xbf16> to vector<32x288xbf16>
    %17 = vector.shape_cast %14 : vector<32x288xbf16> to vector<1x32x288xbf16>
    tpu.vector_store %arg4[%c0_7, %c0_8, %c0_9], %17 {strides = array<i32>} : memref<1x32x288xbf16, #tpu.memory_space<vmem>>, vector<1x32x288xbf16>,
    return
  }
  func.func @transform_0(%arg0: i32) -> (i32, i32, i32) {
    %c0_i32 = arith.constant 0 : i32
    %c0_i32_0 = arith.constant 0 : i32
    %c0_i32_1 = arith.constant 0 : i32
    return %arg0, %c0_i32, %c0_i32_0 : i32, i32, i32
  }
  func.func @transform_1(%arg0: i32) -> (i32, i32) {
    %c0_i32 = arith.constant 0 : i32
    %c0_i32_0 = arith.constant 0 : i32
    %c0_i32_1 = arith.constant 0 : i32
    return %c0_i32, %c0_i32_0 : i32, i32
  }
  func.func @transform_2(%arg0: i32) -> (i32, i32) {
    %c0_i32 = arith.constant 0 : i32
    %c0_i32_0 = arith.constant 0 : i32
    %c0_i32_1 = arith.constant 0 : i32
    return %c0_i32, %c0_i32_0 : i32, i32
  }
  func.func @transform_3(%arg0: i32) -> (i32, i32, i32) {
    %c0_i32 = arith.constant 0 : i32
    %c0_i32_0 = arith.constant 0 : i32
    %c0_i32_1 = arith.constant 0 : i32
    return %arg0, %c0_i32, %c0_i32_0 : i32, i32, i32
  }
}

module attributes {stable_mosaic.version = 11 : i64} {
  func.func @_normact_kernel(%arg0: i32, %arg1: memref<1x32x80xbf16, #tpu.memory_space<vmem>>, %arg2: memref<32x1xf32, #tpu.memory_space<vmem>>, %arg3: memref<32x1xf32, #tpu.memory_space<vmem>>, %arg4: memref<1x32x80xbf16, #tpu.memory_space<vmem>>) attributes {dimension_semantics = [#tpu.dimension_semantics<parallel>], iteration_bounds = array<i64: 2>, scalar_prefetch = 0 : i64, scratch_operands = 0 : i64, tpu.core_type = #tpu.core_type<tc>, window_params = [{transform_indices = @transform_0, window_bounds = array<i64: 1, 32, 80>}, {pipeline_mode = #tpu.pipeline_mode<synchronous>, transform_indices = @transform_1, window_bounds = array<i64: 32, 1>}, {pipeline_mode = #tpu.pipeline_mode<synchronous>, transform_indices = @transform_2, window_bounds = array<i64: 32, 1>}, {transform_indices = @transform_3, window_bounds = array<i64: 1, 32, 80>}]} {
    %c0 = arith.constant 0 : index
    %c0_0 = arith.constant 0 : index
    %c0_1 = arith.constant 0 : index
    %0 = vector.load %arg1[%c0, %c0_0, %c0_1] : memref<1x32x80xbf16, #tpu.memory_space<vmem>>, vector<1x32x80xbf16>
    %1 = vector.shape_cast %0 : vector<1x32x80xbf16> to vector<32x80xbf16>
    %2 = arith.extf %1 : vector<32x80xbf16> to vector<32x80xf32>
    %c0_2 = arith.constant 0 : index
    %c0_3 = arith.constant 0 : index
    %3 = vector.load %arg2[%c0_2, %c0_3] : memref<32x1xf32, #tpu.memory_space<vmem>>, vector<32x1xf32>
    %4 = vector.broadcast %3 : vector<32x1xf32> to vector<32x80xf32>
    %5 = arith.mulf %2, %4 : vector<32x80xf32>
    %c0_4 = arith.constant 0 : index
    %c0_5 = arith.constant 0 : index
    %6 = vector.load %arg3[%c0_4, %c0_5] : memref<32x1xf32, #tpu.memory_space<vmem>>, vector<32x1xf32>
    %7 = vector.broadcast %6 : vector<32x1xf32> to vector<32x80xf32>
    %8 = arith.addf %5, %7 : vector<32x80xf32>
    %cst = arith.constant 0.000000e+00 : f32
    %9 = vector.broadcast %cst : f32 to vector<32x80xf32>
    %10 = arith.cmpf oge, %8, %9 : vector<32x80xf32>
    %cst_6 = arith.constant 0.00999999977 : f32
    %11 = vector.broadcast %cst_6 : f32 to vector<32x80xf32>
    %12 = arith.mulf %11, %8 : vector<32x80xf32>
    %13 = arith.select %10, %8, %12 : vector<32x80xi1>, vector<32x80xf32>
    %14 = arith.truncf %13 : vector<32x80xf32> to vector<32x80xbf16>
    %c0_7 = arith.constant 0 : index
    %c0_8 = arith.constant 0 : index
    %c0_9 = arith.constant 0 : index
    %15 = vector.load %arg4[%c0_7, %c0_8, %c0_9] : memref<1x32x80xbf16, #tpu.memory_space<vmem>>, vector<1x32x80xbf16>
    %16 = vector.shape_cast %15 : vector<1x32x80xbf16> to vector<32x80xbf16>
    %17 = vector.shape_cast %14 : vector<32x80xbf16> to vector<1x32x80xbf16>
    tpu.vector_store %arg4[%c0_7, %c0_8, %c0_9], %17 {strides = array<i32>} : memref<1x32x80xbf16, #tpu.memory_space<vmem>>, vector<1x32x80xbf16>,
    return
  }
  func.func @transform_0(%arg0: i32) -> (i32, i32, i32) {
    %c0_i32 = arith.constant 0 : i32
    %c0_i32_0 = arith.constant 0 : i32
    %c0_i32_1 = arith.constant 0 : i32
    return %arg0, %c0_i32, %c0_i32_0 : i32, i32, i32
  }
  func.func @transform_1(%arg0: i32) -> (i32, i32) {
    %c0_i32 = arith.constant 0 : i32
    %c0_i32_0 = arith.constant 0 : i32
    %c0_i32_1 = arith.constant 0 : i32
    return %c0_i32, %c0_i32_0 : i32, i32
  }
  func.func @transform_2(%arg0: i32) -> (i32, i32) {
    %c0_i32 = arith.constant 0 : i32
    %c0_i32_0 = arith.constant 0 : i32
    %c0_i32_1 = arith.constant 0 : i32
    return %c0_i32, %c0_i32_0 : i32, i32
  }
  func.func @transform_3(%arg0: i32) -> (i32, i32, i32) {
    %c0_i32 = arith.constant 0 : i32
    %c0_i32_0 = arith.constant 0 : i32
    %c0_i32_1 = arith.constant 0 : i32
    return %arg0, %c0_i32, %c0_i32_0 : i32, i32, i32
  }
}

module attributes {stable_mosaic.version = 11 : i64} {
  func.func @_conv_stats_kernel(%arg0: i32, %arg1: memref<1x32x128xbf16, #tpu.memory_space<vmem>>, %arg2: memref<32x288xbf16, #tpu.memory_space<vmem>>, %arg3: memref<1x80xf32, #tpu.memory_space<vmem>>, %arg4: memref<1x32x80xbf16, #tpu.memory_space<vmem>>, %arg5: memref<1x32x1xf32, #tpu.memory_space<vmem>>, %arg6: memref<1x32x1xf32, #tpu.memory_space<vmem>>) attributes {dimension_semantics = [#tpu.dimension_semantics<parallel>], iteration_bounds = array<i64: 2>, scalar_prefetch = 0 : i64, scratch_operands = 0 : i64, tpu.core_type = #tpu.core_type<tc>, window_params = [{transform_indices = @transform_0, window_bounds = array<i64: 1, 32, 128>}, {pipeline_mode = #tpu.pipeline_mode<synchronous>, transform_indices = @transform_1, window_bounds = array<i64: 32, 288>}, {pipeline_mode = #tpu.pipeline_mode<synchronous>, transform_indices = @transform_2, window_bounds = array<i64: 1, 80>}, {transform_indices = @transform_3, window_bounds = array<i64: 1, 32, 80>}, {transform_indices = @transform_4, window_bounds = array<i64: 1, 32, 1>}, {transform_indices = @transform_5, window_bounds = array<i64: 1, 32, 1>}]} {
    %c0 = arith.constant 0 : index
    %c0_0 = arith.constant 0 : index
    %c0_1 = arith.constant 0 : index
    %0 = vector.load %arg1[%c0, %c0_0, %c0_1] : memref<1x32x128xbf16, #tpu.memory_space<vmem>>, vector<1x32x128xbf16>
    %1 = vector.shape_cast %0 : vector<1x32x128xbf16> to vector<32x128xbf16>
    %2 = vector.extract_strided_slice %1 {offsets = [0, 0], sizes = [32, 80], strides = [1, 1]} : vector<32x128xbf16> to vector<32x80xbf16>
    %3 = vector.extract_strided_slice %1 {offsets = [0, 1], sizes = [32, 80], strides = [1, 1]} : vector<32x128xbf16> to vector<32x80xbf16>
    %4 = vector.extract_strided_slice %1 {offsets = [0, 2], sizes = [32, 80], strides = [1, 1]} : vector<32x128xbf16> to vector<32x80xbf16>
    %5 = vector.extract_strided_slice %1 {offsets = [0, 10], sizes = [32, 80], strides = [1, 1]} : vector<32x128xbf16> to vector<32x80xbf16>
    %6 = vector.extract_strided_slice %1 {offsets = [0, 11], sizes = [32, 80], strides = [1, 1]} : vector<32x128xbf16> to vector<32x80xbf16>
    %7 = vector.extract_strided_slice %1 {offsets = [0, 12], sizes = [32, 80], strides = [1, 1]} : vector<32x128xbf16> to vector<32x80xbf16>
    %8 = vector.extract_strided_slice %1 {offsets = [0, 20], sizes = [32, 80], strides = [1, 1]} : vector<32x128xbf16> to vector<32x80xbf16>
    %9 = vector.extract_strided_slice %1 {offsets = [0, 21], sizes = [32, 80], strides = [1, 1]} : vector<32x128xbf16> to vector<32x80xbf16>
    %10 = vector.extract_strided_slice %1 {offsets = [0, 22], sizes = [32, 80], strides = [1, 1]} : vector<32x128xbf16> to vector<32x80xbf16>
    %11 = tpu.concatenate %2, %3, %4, %5, %6, %7, %8, %9, %10 in 0 : vector<32x80xbf16>, vector<32x80xbf16>, vector<32x80xbf16>, vector<32x80xbf16>, vector<32x80xbf16>, vector<32x80xbf16>, vector<32x80xbf16>, vector<32x80xbf16>, vector<32x80xbf16> -> vector<288x80xbf16>
    %c0_2 = arith.constant 0 : index
    %c0_3 = arith.constant 0 : index
    %12 = vector.load %arg2[%c0_2, %c0_3] : memref<32x288xbf16, #tpu.memory_space<vmem>>, vector<32x288xbf16>
    %cst = arith.constant dense<0.000000e+00> : vector<32x80xf32>
    %13 = tpu.matmul %12, %11, %cst {dimension_numbers = #tpu.dot_dimension_numbers<[1], [0], [0], [1], [0, 0, 1, 1], [], []>} : vector<32x288xbf16>, vector<288x80xbf16>, vector<32x80xf32> -> vector<32x80xf32>
    %c0_4 = arith.constant 0 : index
    %c0_5 = arith.constant 0 : index
    %14 = vector.load %arg3[%c0_4, %c0_5] : memref<1x80xf32, #tpu.memory_space<vmem>>, vector<1x80xf32>
    %15 = vector.broadcast %14 : vector<1x80xf32> to vector<32x80xf32>
    %16 = arith.mulf %13, %15 : vector<32x80xf32>
    %cst_6 = arith.constant dense<0.000000e+00> : vector<32xf32>
    %17 = vector.multi_reduction <add>, %16, %cst_6 [1] : vector<32x80xf32> to vector<32xf32>
    %18 = vector.shape_cast %17 : vector<32xf32> to vector<32x1xf32>
    %c0_7 = arith.constant 0 : index
    %c0_8 = arith.constant 0 : index
    %c0_9 = arith.constant 0 : index
    %19 = vector.load %arg5[%c0_7, %c0_8, %c0_9] : memref<1x32x1xf32, #tpu.memory_space<vmem>>, vector<1x32x1xf32>
    %20 = vector.shape_cast %19 : vector<1x32x1xf32> to vector<32x1xf32>
    %21 = vector.shape_cast %18 : vector<32x1xf32> to vector<1x32x1xf32>
    tpu.vector_store %arg5[%c0_7, %c0_8, %c0_9], %21 {strides = array<i32>} : memref<1x32x1xf32, #tpu.memory_space<vmem>>, vector<1x32x1xf32>,
    %22 = arith.mulf %16, %16 : vector<32x80xf32>
    %cst_10 = arith.constant dense<0.000000e+00> : vector<32xf32>
    %23 = vector.multi_reduction <add>, %22, %cst_10 [1] : vector<32x80xf32> to vector<32xf32>
    %24 = vector.shape_cast %23 : vector<32xf32> to vector<32x1xf32>
    %c0_11 = arith.constant 0 : index
    %c0_12 = arith.constant 0 : index
    %c0_13 = arith.constant 0 : index
    %25 = vector.load %arg6[%c0_11, %c0_12, %c0_13] : memref<1x32x1xf32, #tpu.memory_space<vmem>>, vector<1x32x1xf32>
    %26 = vector.shape_cast %25 : vector<1x32x1xf32> to vector<32x1xf32>
    %27 = vector.shape_cast %24 : vector<32x1xf32> to vector<1x32x1xf32>
    tpu.vector_store %arg6[%c0_11, %c0_12, %c0_13], %27 {strides = array<i32>} : memref<1x32x1xf32, #tpu.memory_space<vmem>>, vector<1x32x1xf32>,
    %28 = arith.truncf %13 : vector<32x80xf32> to vector<32x80xbf16>
    %c0_14 = arith.constant 0 : index
    %c0_15 = arith.constant 0 : index
    %c0_16 = arith.constant 0 : index
    %29 = vector.load %arg4[%c0_14, %c0_15, %c0_16] : memref<1x32x80xbf16, #tpu.memory_space<vmem>>, vector<1x32x80xbf16>
    %30 = vector.shape_cast %29 : vector<1x32x80xbf16> to vector<32x80xbf16>
    %31 = vector.shape_cast %28 : vector<32x80xbf16> to vector<1x32x80xbf16>
    tpu.vector_store %arg4[%c0_14, %c0_15, %c0_16], %31 {strides = array<i32>} : memref<1x32x80xbf16, #tpu.memory_space<vmem>>, vector<1x32x80xbf16>,
    return
  }
  func.func @transform_0(%arg0: i32) -> (i32, i32, i32) {
    %c0_i32 = arith.constant 0 : i32
    %c0_i32_0 = arith.constant 0 : i32
    %c0_i32_1 = arith.constant 0 : i32
    return %arg0, %c0_i32, %c0_i32_0 : i32, i32, i32
  }
  func.func @transform_1(%arg0: i32) -> (i32, i32) {
    %c0_i32 = arith.constant 0 : i32
    %c0_i32_0 = arith.constant 0 : i32
    %c0_i32_1 = arith.constant 0 : i32
    return %c0_i32, %c0_i32_0 : i32, i32
  }
  func.func @transform_2(%arg0: i32) -> (i32, i32) {
    %c0_i32 = arith.constant 0 : i32
    %c0_i32_0 = arith.constant 0 : i32
    %c0_i32_1 = arith.constant 0 : i32
    return %c0_i32, %c0_i32_0 : i32, i32
  }
  func.func @transform_3(%arg0: i32) -> (i32, i32, i32) {
    %c0_i32 = arith.constant 0 : i32
    %c0_i32_0 = arith.constant 0 : i32
    %c0_i32_1 = arith.constant 0 : i32
    return %arg0, %c0_i32, %c0_i32_0 : i32, i32, i32
  }
  func.func @transform_4(%arg0: i32) -> (i32, i32, i32) {
    %c0_i32 = arith.constant 0 : i32
    %c0_i32_0 = arith.constant 0 : i32
    %c0_i32_1 = arith.constant 0 : i32
    return %arg0, %c0_i32, %c0_i32_0 : i32, i32, i32
  }
  func.func @transform_5(%arg0: i32) -> (i32, i32, i32) {
    %c0_i32 = arith.constant 0 : i32
    %c0_i32_0 = arith.constant 0 : i32
    %c0_i32_1 = arith.constant 0 : i32
    return %arg0, %c0_i32, %c0_i32_0 : i32, i32, i32
  }
}

module attributes {stable_mosaic.version = 11 : i64} {
  func.func @_conv_stats_kernel(%arg0: i32, %arg1: memref<1x32x128xbf16, #tpu.memory_space<vmem>>, %arg2: memref<32x288xbf16, #tpu.memory_space<vmem>>, %arg3: memref<1x24xf32, #tpu.memory_space<vmem>>, %arg4: memref<1x32x24xbf16, #tpu.memory_space<vmem>>, %arg5: memref<1x32x1xf32, #tpu.memory_space<vmem>>, %arg6: memref<1x32x1xf32, #tpu.memory_space<vmem>>) attributes {dimension_semantics = [#tpu.dimension_semantics<parallel>], iteration_bounds = array<i64: 2>, scalar_prefetch = 0 : i64, scratch_operands = 0 : i64, tpu.core_type = #tpu.core_type<tc>, window_params = [{transform_indices = @transform_0, window_bounds = array<i64: 1, 32, 128>}, {pipeline_mode = #tpu.pipeline_mode<synchronous>, transform_indices = @transform_1, window_bounds = array<i64: 32, 288>}, {pipeline_mode = #tpu.pipeline_mode<synchronous>, transform_indices = @transform_2, window_bounds = array<i64: 1, 24>}, {transform_indices = @transform_3, window_bounds = array<i64: 1, 32, 24>}, {transform_indices = @transform_4, window_bounds = array<i64: 1, 32, 1>}, {transform_indices = @transform_5, window_bounds = array<i64: 1, 32, 1>}]} {
    %c0 = arith.constant 0 : index
    %c0_0 = arith.constant 0 : index
    %c0_1 = arith.constant 0 : index
    %0 = vector.load %arg1[%c0, %c0_0, %c0_1] : memref<1x32x128xbf16, #tpu.memory_space<vmem>>, vector<1x32x128xbf16>
    %1 = vector.shape_cast %0 : vector<1x32x128xbf16> to vector<32x128xbf16>
    %2 = vector.extract_strided_slice %1 {offsets = [0, 0], sizes = [32, 24], strides = [1, 1]} : vector<32x128xbf16> to vector<32x24xbf16>
    %3 = vector.extract_strided_slice %1 {offsets = [0, 1], sizes = [32, 24], strides = [1, 1]} : vector<32x128xbf16> to vector<32x24xbf16>
    %4 = vector.extract_strided_slice %1 {offsets = [0, 2], sizes = [32, 24], strides = [1, 1]} : vector<32x128xbf16> to vector<32x24xbf16>
    %5 = vector.extract_strided_slice %1 {offsets = [0, 6], sizes = [32, 24], strides = [1, 1]} : vector<32x128xbf16> to vector<32x24xbf16>
    %6 = vector.extract_strided_slice %1 {offsets = [0, 7], sizes = [32, 24], strides = [1, 1]} : vector<32x128xbf16> to vector<32x24xbf16>
    %7 = vector.extract_strided_slice %1 {offsets = [0, 8], sizes = [32, 24], strides = [1, 1]} : vector<32x128xbf16> to vector<32x24xbf16>
    %8 = vector.extract_strided_slice %1 {offsets = [0, 12], sizes = [32, 24], strides = [1, 1]} : vector<32x128xbf16> to vector<32x24xbf16>
    %9 = vector.extract_strided_slice %1 {offsets = [0, 13], sizes = [32, 24], strides = [1, 1]} : vector<32x128xbf16> to vector<32x24xbf16>
    %10 = vector.extract_strided_slice %1 {offsets = [0, 14], sizes = [32, 24], strides = [1, 1]} : vector<32x128xbf16> to vector<32x24xbf16>
    %11 = tpu.concatenate %2, %3, %4, %5, %6, %7, %8, %9, %10 in 0 : vector<32x24xbf16>, vector<32x24xbf16>, vector<32x24xbf16>, vector<32x24xbf16>, vector<32x24xbf16>, vector<32x24xbf16>, vector<32x24xbf16>, vector<32x24xbf16>, vector<32x24xbf16> -> vector<288x24xbf16>
    %c0_2 = arith.constant 0 : index
    %c0_3 = arith.constant 0 : index
    %12 = vector.load %arg2[%c0_2, %c0_3] : memref<32x288xbf16, #tpu.memory_space<vmem>>, vector<32x288xbf16>
    %cst = arith.constant dense<0.000000e+00> : vector<32x24xf32>
    %13 = tpu.matmul %12, %11, %cst {dimension_numbers = #tpu.dot_dimension_numbers<[1], [0], [0], [1], [0, 0, 1, 1], [], []>} : vector<32x288xbf16>, vector<288x24xbf16>, vector<32x24xf32> -> vector<32x24xf32>
    %c0_4 = arith.constant 0 : index
    %c0_5 = arith.constant 0 : index
    %14 = vector.load %arg3[%c0_4, %c0_5] : memref<1x24xf32, #tpu.memory_space<vmem>>, vector<1x24xf32>
    %15 = vector.broadcast %14 : vector<1x24xf32> to vector<32x24xf32>
    %16 = arith.mulf %13, %15 : vector<32x24xf32>
    %cst_6 = arith.constant dense<0.000000e+00> : vector<32xf32>
    %17 = vector.multi_reduction <add>, %16, %cst_6 [1] : vector<32x24xf32> to vector<32xf32>
    %18 = vector.shape_cast %17 : vector<32xf32> to vector<32x1xf32>
    %c0_7 = arith.constant 0 : index
    %c0_8 = arith.constant 0 : index
    %c0_9 = arith.constant 0 : index
    %19 = vector.load %arg5[%c0_7, %c0_8, %c0_9] : memref<1x32x1xf32, #tpu.memory_space<vmem>>, vector<1x32x1xf32>
    %20 = vector.shape_cast %19 : vector<1x32x1xf32> to vector<32x1xf32>
    %21 = vector.shape_cast %18 : vector<32x1xf32> to vector<1x32x1xf32>
    tpu.vector_store %arg5[%c0_7, %c0_8, %c0_9], %21 {strides = array<i32>} : memref<1x32x1xf32, #tpu.memory_space<vmem>>, vector<1x32x1xf32>,
    %22 = arith.mulf %16, %16 : vector<32x24xf32>
    %cst_10 = arith.constant dense<0.000000e+00> : vector<32xf32>
    %23 = vector.multi_reduction <add>, %22, %cst_10 [1] : vector<32x24xf32> to vector<32xf32>
    %24 = vector.shape_cast %23 : vector<32xf32> to vector<32x1xf32>
    %c0_11 = arith.constant 0 : index
    %c0_12 = arith.constant 0 : index
    %c0_13 = arith.constant 0 : index
    %25 = vector.load %arg6[%c0_11, %c0_12, %c0_13] : memref<1x32x1xf32, #tpu.memory_space<vmem>>, vector<1x32x1xf32>
    %26 = vector.shape_cast %25 : vector<1x32x1xf32> to vector<32x1xf32>
    %27 = vector.shape_cast %24 : vector<32x1xf32> to vector<1x32x1xf32>
    tpu.vector_store %arg6[%c0_11, %c0_12, %c0_13], %27 {strides = array<i32>} : memref<1x32x1xf32, #tpu.memory_space<vmem>>, vector<1x32x1xf32>,
    %28 = arith.truncf %13 : vector<32x24xf32> to vector<32x24xbf16>
    %c0_14 = arith.constant 0 : index
    %c0_15 = arith.constant 0 : index
    %c0_16 = arith.constant 0 : index
    %29 = vector.load %arg4[%c0_14, %c0_15, %c0_16] : memref<1x32x24xbf16, #tpu.memory_space<vmem>>, vector<1x32x24xbf16>
    %30 = vector.shape_cast %29 : vector<1x32x24xbf16> to vector<32x24xbf16>
    %31 = vector.shape_cast %28 : vector<32x24xbf16> to vector<1x32x24xbf16>
    tpu.vector_store %arg4[%c0_14, %c0_15, %c0_16], %31 {strides = array<i32>} : memref<1x32x24xbf16, #tpu.memory_space<vmem>>, vector<1x32x24xbf16>,
    return
  }
  func.func @transform_0(%arg0: i32) -> (i32, i32, i32) {
    %c0_i32 = arith.constant 0 : i32
    %c0_i32_0 = arith.constant 0 : i32
    %c0_i32_1 = arith.constant 0 : i32
    return %arg0, %c0_i32, %c0_i32_0 : i32, i32, i32
  }
  func.func @transform_1(%arg0: i32) -> (i32, i32) {
    %c0_i32 = arith.constant 0 : i32
    %c0_i32_0 = arith.constant 0 : i32
    %c0_i32_1 = arith.constant 0 : i32
    return %c0_i32, %c0_i32_0 : i32, i32
  }
  func.func @transform_2(%arg0: i32) -> (i32, i32) {
    %c0_i32 = arith.constant 0 : i32
    %c0_i32_0 = arith.constant 0 : i32
    %c0_i32_1 = arith.constant 0 : i32
    return %c0_i32, %c0_i32_0 : i32, i32
  }
  func.func @transform_3(%arg0: i32) -> (i32, i32, i32) {
    %c0_i32 = arith.constant 0 : i32
    %c0_i32_0 = arith.constant 0 : i32
    %c0_i32_1 = arith.constant 0 : i32
    return %arg0, %c0_i32, %c0_i32_0 : i32, i32, i32
  }
  func.func @transform_4(%arg0: i32) -> (i32, i32, i32) {
    %c0_i32 = arith.constant 0 : i32
    %c0_i32_0 = arith.constant 0 : i32
    %c0_i32_1 = arith.constant 0 : i32
    return %arg0, %c0_i32, %c0_i32_0 : i32, i32, i32
  }
  func.func @transform_5(%arg0: i32) -> (i32, i32, i32) {
    %c0_i32 = arith.constant 0 : i32
    %c0_i32_0 = arith.constant 0 : i32
    %c0_i32_1 = arith.constant 0 : i32
    return %arg0, %c0_i32, %c0_i32_0 : i32, i32, i32
  }
}

module attributes {stable_mosaic.version = 11 : i64} {
  func.func @_normact_kernel(%arg0: i32, %arg1: memref<1x32x24xbf16, #tpu.memory_space<vmem>>, %arg2: memref<32x1xf32, #tpu.memory_space<vmem>>, %arg3: memref<32x1xf32, #tpu.memory_space<vmem>>, %arg4: memref<1x32x24xbf16, #tpu.memory_space<vmem>>) attributes {dimension_semantics = [#tpu.dimension_semantics<parallel>], iteration_bounds = array<i64: 2>, scalar_prefetch = 0 : i64, scratch_operands = 0 : i64, tpu.core_type = #tpu.core_type<tc>, window_params = [{transform_indices = @transform_0, window_bounds = array<i64: 1, 32, 24>}, {pipeline_mode = #tpu.pipeline_mode<synchronous>, transform_indices = @transform_1, window_bounds = array<i64: 32, 1>}, {pipeline_mode = #tpu.pipeline_mode<synchronous>, transform_indices = @transform_2, window_bounds = array<i64: 32, 1>}, {transform_indices = @transform_3, window_bounds = array<i64: 1, 32, 24>}]} {
    %c0 = arith.constant 0 : index
    %c0_0 = arith.constant 0 : index
    %c0_1 = arith.constant 0 : index
    %0 = vector.load %arg1[%c0, %c0_0, %c0_1] : memref<1x32x24xbf16, #tpu.memory_space<vmem>>, vector<1x32x24xbf16>
    %1 = vector.shape_cast %0 : vector<1x32x24xbf16> to vector<32x24xbf16>
    %2 = arith.extf %1 : vector<32x24xbf16> to vector<32x24xf32>
    %c0_2 = arith.constant 0 : index
    %c0_3 = arith.constant 0 : index
    %3 = vector.load %arg2[%c0_2, %c0_3] : memref<32x1xf32, #tpu.memory_space<vmem>>, vector<32x1xf32>
    %4 = vector.broadcast %3 : vector<32x1xf32> to vector<32x24xf32>
    %5 = arith.mulf %2, %4 : vector<32x24xf32>
    %c0_4 = arith.constant 0 : index
    %c0_5 = arith.constant 0 : index
    %6 = vector.load %arg3[%c0_4, %c0_5] : memref<32x1xf32, #tpu.memory_space<vmem>>, vector<32x1xf32>
    %7 = vector.broadcast %6 : vector<32x1xf32> to vector<32x24xf32>
    %8 = arith.addf %5, %7 : vector<32x24xf32>
    %cst = arith.constant 0.000000e+00 : f32
    %9 = vector.broadcast %cst : f32 to vector<32x24xf32>
    %10 = arith.cmpf oge, %8, %9 : vector<32x24xf32>
    %cst_6 = arith.constant 0.00999999977 : f32
    %11 = vector.broadcast %cst_6 : f32 to vector<32x24xf32>
    %12 = arith.mulf %11, %8 : vector<32x24xf32>
    %13 = arith.select %10, %8, %12 : vector<32x24xi1>, vector<32x24xf32>
    %14 = arith.truncf %13 : vector<32x24xf32> to vector<32x24xbf16>
    %c0_7 = arith.constant 0 : index
    %c0_8 = arith.constant 0 : index
    %c0_9 = arith.constant 0 : index
    %15 = vector.load %arg4[%c0_7, %c0_8, %c0_9] : memref<1x32x24xbf16, #tpu.memory_space<vmem>>, vector<1x32x24xbf16>
    %16 = vector.shape_cast %15 : vector<1x32x24xbf16> to vector<32x24xbf16>
    %17 = vector.shape_cast %14 : vector<32x24xbf16> to vector<1x32x24xbf16>
    tpu.vector_store %arg4[%c0_7, %c0_8, %c0_9], %17 {strides = array<i32>} : memref<1x32x24xbf16, #tpu.memory_space<vmem>>, vector<1x32x24xbf16>,
    return
  }
  func.func @transform_0(%arg0: i32) -> (i32, i32, i32) {
    %c0_i32 = arith.constant 0 : i32
    %c0_i32_0 = arith.constant 0 : i32
    %c0_i32_1 = arith.constant 0 : i32
    return %arg0, %c0_i32, %c0_i32_0 : i32, i32, i32
  }
  func.func @transform_1(%arg0: i32) -> (i32, i32) {
    %c0_i32 = arith.constant 0 : i32
    %c0_i32_0 = arith.constant 0 : i32
    %c0_i32_1 = arith.constant 0 : i32
    return %c0_i32, %c0_i32_0 : i32, i32
  }
  func.func @transform_2(%arg0: i32) -> (i32, i32) {
    %c0_i32 = arith.constant 0 : i32
    %c0_i32_0 = arith.constant 0 : i32
    %c0_i32_1 = arith.constant 0 : i32
    return %c0_i32, %c0_i32_0 : i32, i32
  }
  func.func @transform_3(%arg0: i32) -> (i32, i32, i32) {
    %c0_i32 = arith.constant 0 : i32
    %c0_i32_0 = arith.constant 0 : i32
    %c0_i32_1 = arith.constant 0 : i32
    return %arg0, %c0_i32, %c0_i32_0 : i32, i32, i32
  }
}

module attributes {stable_mosaic.version = 11 : i64} {
  func.func @_conv_act_kernel(%arg0: i32, %arg1: memref<1x32x384xbf16, #tpu.memory_space<vmem>>, %arg2: memref<16x288xbf16, #tpu.memory_space<vmem>>, %arg3: memref<1x16x288xbf16, #tpu.memory_space<vmem>>) attributes {dimension_semantics = [#tpu.dimension_semantics<parallel>], iteration_bounds = array<i64: 2>, scalar_prefetch = 0 : i64, scratch_operands = 0 : i64, tpu.core_type = #tpu.core_type<tc>, window_params = [{transform_indices = @transform_0, window_bounds = array<i64: 1, 32, 384>}, {pipeline_mode = #tpu.pipeline_mode<synchronous>, transform_indices = @transform_1, window_bounds = array<i64: 16, 288>}, {transform_indices = @transform_2, window_bounds = array<i64: 1, 16, 288>}]} {
    %c0 = arith.constant 0 : index
    %c0_0 = arith.constant 0 : index
    %c0_1 = arith.constant 0 : index
    %0 = vector.load %arg1[%c0, %c0_0, %c0_1] : memref<1x32x384xbf16, #tpu.memory_space<vmem>>, vector<1x32x384xbf16>
    %1 = vector.shape_cast %0 : vector<1x32x384xbf16> to vector<32x384xbf16>
    %2 = vector.extract_strided_slice %1 {offsets = [0, 0], sizes = [32, 288], strides = [1, 1]} : vector<32x384xbf16> to vector<32x288xbf16>
    %3 = vector.extract_strided_slice %1 {offsets = [0, 1], sizes = [32, 288], strides = [1, 1]} : vector<32x384xbf16> to vector<32x288xbf16>
    %4 = vector.extract_strided_slice %1 {offsets = [0, 2], sizes = [32, 288], strides = [1, 1]} : vector<32x384xbf16> to vector<32x288xbf16>
    %5 = vector.extract_strided_slice %1 {offsets = [0, 18], sizes = [32, 288], strides = [1, 1]} : vector<32x384xbf16> to vector<32x288xbf16>
    %6 = vector.extract_strided_slice %1 {offsets = [0, 19], sizes = [32, 288], strides = [1, 1]} : vector<32x384xbf16> to vector<32x288xbf16>
    %7 = vector.extract_strided_slice %1 {offsets = [0, 20], sizes = [32, 288], strides = [1, 1]} : vector<32x384xbf16> to vector<32x288xbf16>
    %8 = vector.extract_strided_slice %1 {offsets = [0, 36], sizes = [32, 288], strides = [1, 1]} : vector<32x384xbf16> to vector<32x288xbf16>
    %9 = vector.extract_strided_slice %1 {offsets = [0, 37], sizes = [32, 288], strides = [1, 1]} : vector<32x384xbf16> to vector<32x288xbf16>
    %10 = vector.extract_strided_slice %1 {offsets = [0, 38], sizes = [32, 288], strides = [1, 1]} : vector<32x384xbf16> to vector<32x288xbf16>
    %11 = tpu.concatenate %2, %3, %4, %5, %6, %7, %8, %9, %10 in 0 : vector<32x288xbf16>, vector<32x288xbf16>, vector<32x288xbf16>, vector<32x288xbf16>, vector<32x288xbf16>, vector<32x288xbf16>, vector<32x288xbf16>, vector<32x288xbf16>, vector<32x288xbf16> -> vector<288x288xbf16>
    %c0_2 = arith.constant 0 : index
    %c0_3 = arith.constant 0 : index
    %12 = vector.load %arg2[%c0_2, %c0_3] : memref<16x288xbf16, #tpu.memory_space<vmem>>, vector<16x288xbf16>
    %cst = arith.constant dense<0.000000e+00> : vector<16x288xf32>
    %13 = tpu.matmul %12, %11, %cst {dimension_numbers = #tpu.dot_dimension_numbers<[1], [0], [0], [1], [0, 0, 1, 1], [], []>} : vector<16x288xbf16>, vector<288x288xbf16>, vector<16x288xf32> -> vector<16x288xf32>
    %cst_4 = arith.constant 0.000000e+00 : f32
    %14 = vector.broadcast %cst_4 : f32 to vector<16x288xf32>
    %15 = arith.cmpf oge, %13, %14 : vector<16x288xf32>
    %cst_5 = arith.constant 0.00999999977 : f32
    %16 = vector.broadcast %cst_5 : f32 to vector<16x288xf32>
    %17 = arith.mulf %16, %13 : vector<16x288xf32>
    %18 = arith.select %15, %13, %17 : vector<16x288xi1>, vector<16x288xf32>
    %19 = arith.truncf %18 : vector<16x288xf32> to vector<16x288xbf16>
    %c0_6 = arith.constant 0 : index
    %c0_7 = arith.constant 0 : index
    %c0_8 = arith.constant 0 : index
    %20 = vector.load %arg3[%c0_6, %c0_7, %c0_8] : memref<1x16x288xbf16, #tpu.memory_space<vmem>>, vector<1x16x288xbf16>
    %21 = vector.shape_cast %20 : vector<1x16x288xbf16> to vector<16x288xbf16>
    %22 = vector.shape_cast %19 : vector<16x288xbf16> to vector<1x16x288xbf16>
    tpu.vector_store %arg3[%c0_6, %c0_7, %c0_8], %22 {strides = array<i32>} : memref<1x16x288xbf16, #tpu.memory_space<vmem>>, vector<1x16x288xbf16>,
    return
  }
  func.func @transform_0(%arg0: i32) -> (i32, i32, i32) {
    %c0_i32 = arith.constant 0 : i32
    %c0_i32_0 = arith.constant 0 : i32
    %c0_i32_1 = arith.constant 0 : i32
    return %arg0, %c0_i32, %c0_i32_0 : i32, i32, i32
  }
  func.func @transform_1(%arg0: i32) -> (i32, i32) {
    %c0_i32 = arith.constant 0 : i32
    %c0_i32_0 = arith.constant 0 : i32
    %c0_i32_1 = arith.constant 0 : i32
    return %c0_i32, %c0_i32_0 : i32, i32
  }
  func.func @transform_2(%arg0: i32) -> (i32, i32, i32) {
    %c0_i32 = arith.constant 0 : i32
    %c0_i32_0 = arith.constant 0 : i32
    %c0_i32_1 = arith.constant 0 : i32
    return %arg0, %c0_i32, %c0_i32_0 : i32, i32, i32
  }
}

module attributes {stable_mosaic.version = 11 : i64} {
  func.func @_conv_act_kernel(%arg0: i32, %arg1: memref<1x16x256xbf16, #tpu.memory_space<vmem>>, %arg2: memref<3x16xbf16, #tpu.memory_space<vmem>>, %arg3: memref<1x3x256xf32, #tpu.memory_space<vmem>>) attributes {dimension_semantics = [#tpu.dimension_semantics<parallel>], iteration_bounds = array<i64: 2>, scalar_prefetch = 0 : i64, scratch_operands = 0 : i64, tpu.core_type = #tpu.core_type<tc>, window_params = [{transform_indices = @transform_0, window_bounds = array<i64: 1, 16, 256>}, {pipeline_mode = #tpu.pipeline_mode<synchronous>, transform_indices = @transform_1, window_bounds = array<i64: 3, 16>}, {transform_indices = @transform_2, window_bounds = array<i64: 1, 3, 256>}]} {
    %c0 = arith.constant 0 : index
    %c0_0 = arith.constant 0 : index
    %c0_1 = arith.constant 0 : index
    %0 = vector.load %arg1[%c0, %c0_0, %c0_1] : memref<1x16x256xbf16, #tpu.memory_space<vmem>>, vector<1x16x256xbf16>
    %1 = vector.shape_cast %0 : vector<1x16x256xbf16> to vector<16x256xbf16>
    %c0_2 = arith.constant 0 : index
    %c0_3 = arith.constant 0 : index
    %2 = vector.load %arg2[%c0_2, %c0_3] : memref<3x16xbf16, #tpu.memory_space<vmem>>, vector<3x16xbf16>
    %cst = arith.constant dense<0.000000e+00> : vector<3x256xf32>
    %3 = tpu.matmul %2, %1, %cst {dimension_numbers = #tpu.dot_dimension_numbers<[1], [0], [0], [1], [0, 0, 1, 1], [], []>} : vector<3x16xbf16>, vector<16x256xbf16>, vector<3x256xf32> -> vector<3x256xf32>
    %cst_4 = arith.constant 5.000000e-01 : f32
    %4 = vector.broadcast %cst_4 : f32 to vector<3x256xf32>
    %5 = arith.mulf %4, %3 : vector<3x256xf32>
    %6 = math.tanh %5 : vector<3x256xf32>
    %cst_5 = arith.constant 1.000000e+00 : f32
    %7 = vector.broadcast %cst_5 : f32 to vector<3x256xf32>
    %8 = arith.addf %6, %7 : vector<3x256xf32>
    %cst_6 = arith.constant 5.000000e-01 : f32
    %9 = vector.broadcast %cst_6 : f32 to vector<3x256xf32>
    %10 = arith.mulf %9, %8 : vector<3x256xf32>
    %c0_7 = arith.constant 0 : index
    %c0_8 = arith.constant 0 : index
    %c0_9 = arith.constant 0 : index
    %11 = vector.load %arg3[%c0_7, %c0_8, %c0_9] : memref<1x3x256xf32, #tpu.memory_space<vmem>>, vector<1x3x256xf32>
    %12 = vector.shape_cast %11 : vector<1x3x256xf32> to vector<3x256xf32>
    %13 = vector.shape_cast %10 : vector<3x256xf32> to vector<1x3x256xf32>
    tpu.vector_store %arg3[%c0_7, %c0_8, %c0_9], %13 {strides = array<i32>} : memref<1x3x256xf32, #tpu.memory_space<vmem>>, vector<1x3x256xf32>,
    return
  }
  func.func @transform_0(%arg0: i32) -> (i32, i32, i32) {
    %c0_i32 = arith.constant 0 : i32
    %c0_i32_0 = arith.constant 0 : i32
    %c0_i32_1 = arith.constant 0 : i32
    return %arg0, %c0_i32, %c0_i32_0 : i32, i32, i32
  }
  func.func @transform_1(%arg0: i32) -> (i32, i32) {
    %c0_i32 = arith.constant 0 : i32
    %c0_i32_0 = arith.constant 0 : i32
    %c0_i32_1 = arith.constant 0 : i32
    return %c0_i32, %c0_i32_0 : i32, i32
  }
  func.func @transform_2(%arg0: i32) -> (i32, i32, i32) {
    %c0_i32 = arith.constant 0 : i32
    %c0_i32_0 = arith.constant 0 : i32
    %c0_i32_1 = arith.constant 0 : i32
    return %arg0, %c0_i32, %c0_i32_0 : i32, i32, i32
  }
}

module attributes {stable_mosaic.version = 11 : i64} {
  func.func @_normact_kernel(%arg0: i32, %arg1: memref<1x16x288xbf16, #tpu.memory_space<vmem>>, %arg2: memref<16x1xf32, #tpu.memory_space<vmem>>, %arg3: memref<16x1xf32, #tpu.memory_space<vmem>>, %arg4: memref<1x16x288xbf16, #tpu.memory_space<vmem>>) attributes {dimension_semantics = [#tpu.dimension_semantics<parallel>], iteration_bounds = array<i64: 2>, scalar_prefetch = 0 : i64, scratch_operands = 0 : i64, tpu.core_type = #tpu.core_type<tc>, window_params = [{transform_indices = @transform_0, window_bounds = array<i64: 1, 16, 288>}, {pipeline_mode = #tpu.pipeline_mode<synchronous>, transform_indices = @transform_1, window_bounds = array<i64: 16, 1>}, {pipeline_mode = #tpu.pipeline_mode<synchronous>, transform_indices = @transform_2, window_bounds = array<i64: 16, 1>}, {transform_indices = @transform_3, window_bounds = array<i64: 1, 16, 288>}]} {
    %c0 = arith.constant 0 : index
    %c0_0 = arith.constant 0 : index
    %c0_1 = arith.constant 0 : index
    %0 = vector.load %arg1[%c0, %c0_0, %c0_1] : memref<1x16x288xbf16, #tpu.memory_space<vmem>>, vector<1x16x288xbf16>
    %1 = vector.shape_cast %0 : vector<1x16x288xbf16> to vector<16x288xbf16>
    %2 = arith.extf %1 : vector<16x288xbf16> to vector<16x288xf32>
    %c0_2 = arith.constant 0 : index
    %c0_3 = arith.constant 0 : index
    %3 = vector.load %arg2[%c0_2, %c0_3] : memref<16x1xf32, #tpu.memory_space<vmem>>, vector<16x1xf32>
    %4 = vector.broadcast %3 : vector<16x1xf32> to vector<16x288xf32>
    %5 = arith.mulf %2, %4 : vector<16x288xf32>
    %c0_4 = arith.constant 0 : index
    %c0_5 = arith.constant 0 : index
    %6 = vector.load %arg3[%c0_4, %c0_5] : memref<16x1xf32, #tpu.memory_space<vmem>>, vector<16x1xf32>
    %7 = vector.broadcast %6 : vector<16x1xf32> to vector<16x288xf32>
    %8 = arith.addf %5, %7 : vector<16x288xf32>
    %cst = arith.constant 0.000000e+00 : f32
    %9 = vector.broadcast %cst : f32 to vector<16x288xf32>
    %10 = arith.cmpf oge, %8, %9 : vector<16x288xf32>
    %cst_6 = arith.constant 0.00999999977 : f32
    %11 = vector.broadcast %cst_6 : f32 to vector<16x288xf32>
    %12 = arith.mulf %11, %8 : vector<16x288xf32>
    %13 = arith.select %10, %8, %12 : vector<16x288xi1>, vector<16x288xf32>
    %14 = arith.truncf %13 : vector<16x288xf32> to vector<16x288xbf16>
    %c0_7 = arith.constant 0 : index
    %c0_8 = arith.constant 0 : index
    %c0_9 = arith.constant 0 : index
    %15 = vector.load %arg4[%c0_7, %c0_8, %c0_9] : memref<1x16x288xbf16, #tpu.memory_space<vmem>>, vector<1x16x288xbf16>
    %16 = vector.shape_cast %15 : vector<1x16x288xbf16> to vector<16x288xbf16>
    %17 = vector.shape_cast %14 : vector<16x288xbf16> to vector<1x16x288xbf16>
    tpu.vector_store %arg4[%c0_7, %c0_8, %c0_9], %17 {strides = array<i32>} : memref<1x16x288xbf16, #tpu.memory_space<vmem>>, vector<1x16x288xbf16>,
    return
  }
  func.func @transform_0(%arg0: i32) -> (i32, i32, i32) {
    %c0_i32 = arith.constant 0 : i32
    %c0_i32_0 = arith.constant 0 : i32
    %c0_i32_1 = arith.constant 0 : i32
    return %arg0, %c0_i32, %c0_i32_0 : i32, i32, i32
  }
  func.func @transform_1(%arg0: i32) -> (i32, i32) {
    %c0_i32 = arith.constant 0 : i32
    %c0_i32_0 = arith.constant 0 : i32
    %c0_i32_1 = arith.constant 0 : i32
    return %c0_i32, %c0_i32_0 : i32, i32
  }
  func.func @transform_2(%arg0: i32) -> (i32, i32) {
    %c0_i32 = arith.constant 0 : i32
    %c0_i32_0 = arith.constant 0 : i32
    %c0_i32_1 = arith.constant 0 : i32
    return %c0_i32, %c0_i32_0 : i32, i32
  }
  func.func @transform_3(%arg0: i32) -> (i32, i32, i32) {
    %c0_i32 = arith.constant 0 : i32
    %c0_i32_0 = arith.constant 0 : i32
    %c0_i32_1 = arith.constant 0 : i32
    return %arg0, %c0_i32, %c0_i32_0 : i32, i32, i32
  }
}

module attributes {stable_mosaic.version = 11 : i64} {
  func.func @_conv_stats_kernel(%arg0: i32, %arg1: memref<1x16x384xbf16, #tpu.memory_space<vmem>>, %arg2: memref<16x144xbf16, #tpu.memory_space<vmem>>, %arg3: memref<1x288xf32, #tpu.memory_space<vmem>>, %arg4: memref<1x16x288xbf16, #tpu.memory_space<vmem>>, %arg5: memref<1x16x1xf32, #tpu.memory_space<vmem>>, %arg6: memref<1x16x1xf32, #tpu.memory_space<vmem>>) attributes {dimension_semantics = [#tpu.dimension_semantics<parallel>], iteration_bounds = array<i64: 2>, scalar_prefetch = 0 : i64, scratch_operands = 0 : i64, tpu.core_type = #tpu.core_type<tc>, window_params = [{transform_indices = @transform_0, window_bounds = array<i64: 1, 16, 384>}, {pipeline_mode = #tpu.pipeline_mode<synchronous>, transform_indices = @transform_1, window_bounds = array<i64: 16, 144>}, {pipeline_mode = #tpu.pipeline_mode<synchronous>, transform_indices = @transform_2, window_bounds = array<i64: 1, 288>}, {transform_indices = @transform_3, window_bounds = array<i64: 1, 16, 288>}, {transform_indices = @transform_4, window_bounds = array<i64: 1, 16, 1>}, {transform_indices = @transform_5, window_bounds = array<i64: 1, 16, 1>}]} {
    %c0 = arith.constant 0 : index
    %c0_0 = arith.constant 0 : index
    %c0_1 = arith.constant 0 : index
    %0 = vector.load %arg1[%c0, %c0_0, %c0_1] : memref<1x16x384xbf16, #tpu.memory_space<vmem>>, vector<1x16x384xbf16>
    %1 = vector.shape_cast %0 : vector<1x16x384xbf16> to vector<16x384xbf16>
    %2 = vector.extract_strided_slice %1 {offsets = [0, 0], sizes = [16, 288], strides = [1, 1]} : vector<16x384xbf16> to vector<16x288xbf16>
    %3 = vector.extract_strided_slice %1 {offsets = [0, 1], sizes = [16, 288], strides = [1, 1]} : vector<16x384xbf16> to vector<16x288xbf16>
    %4 = vector.extract_strided_slice %1 {offsets = [0, 2], sizes = [16, 288], strides = [1, 1]} : vector<16x384xbf16> to vector<16x288xbf16>
    %5 = vector.extract_strided_slice %1 {offsets = [0, 18], sizes = [16, 288], strides = [1, 1]} : vector<16x384xbf16> to vector<16x288xbf16>
    %6 = vector.extract_strided_slice %1 {offsets = [0, 19], sizes = [16, 288], strides = [1, 1]} : vector<16x384xbf16> to vector<16x288xbf16>
    %7 = vector.extract_strided_slice %1 {offsets = [0, 20], sizes = [16, 288], strides = [1, 1]} : vector<16x384xbf16> to vector<16x288xbf16>
    %8 = vector.extract_strided_slice %1 {offsets = [0, 36], sizes = [16, 288], strides = [1, 1]} : vector<16x384xbf16> to vector<16x288xbf16>
    %9 = vector.extract_strided_slice %1 {offsets = [0, 37], sizes = [16, 288], strides = [1, 1]} : vector<16x384xbf16> to vector<16x288xbf16>
    %10 = vector.extract_strided_slice %1 {offsets = [0, 38], sizes = [16, 288], strides = [1, 1]} : vector<16x384xbf16> to vector<16x288xbf16>
    %11 = tpu.concatenate %2, %3, %4, %5, %6, %7, %8, %9, %10 in 0 : vector<16x288xbf16>, vector<16x288xbf16>, vector<16x288xbf16>, vector<16x288xbf16>, vector<16x288xbf16>, vector<16x288xbf16>, vector<16x288xbf16>, vector<16x288xbf16>, vector<16x288xbf16> -> vector<144x288xbf16>
    %c0_2 = arith.constant 0 : index
    %c0_3 = arith.constant 0 : index
    %12 = vector.load %arg2[%c0_2, %c0_3] : memref<16x144xbf16, #tpu.memory_space<vmem>>, vector<16x144xbf16>
    %cst = arith.constant dense<0.000000e+00> : vector<16x288xf32>
    %13 = tpu.matmul %12, %11, %cst {dimension_numbers = #tpu.dot_dimension_numbers<[1], [0], [0], [1], [0, 0, 1, 1], [], []>} : vector<16x144xbf16>, vector<144x288xbf16>, vector<16x288xf32> -> vector<16x288xf32>
    %c0_4 = arith.constant 0 : index
    %c0_5 = arith.constant 0 : index
    %14 = vector.load %arg3[%c0_4, %c0_5] : memref<1x288xf32, #tpu.memory_space<vmem>>, vector<1x288xf32>
    %15 = vector.broadcast %14 : vector<1x288xf32> to vector<16x288xf32>
    %16 = arith.mulf %13, %15 : vector<16x288xf32>
    %cst_6 = arith.constant dense<0.000000e+00> : vector<16xf32>
    %17 = vector.multi_reduction <add>, %16, %cst_6 [1] : vector<16x288xf32> to vector<16xf32>
    %18 = vector.shape_cast %17 : vector<16xf32> to vector<16x1xf32>
    %c0_7 = arith.constant 0 : index
    %c0_8 = arith.constant 0 : index
    %c0_9 = arith.constant 0 : index
    %19 = vector.load %arg5[%c0_7, %c0_8, %c0_9] : memref<1x16x1xf32, #tpu.memory_space<vmem>>, vector<1x16x1xf32>
    %20 = vector.shape_cast %19 : vector<1x16x1xf32> to vector<16x1xf32>
    %21 = vector.shape_cast %18 : vector<16x1xf32> to vector<1x16x1xf32>
    tpu.vector_store %arg5[%c0_7, %c0_8, %c0_9], %21 {strides = array<i32>} : memref<1x16x1xf32, #tpu.memory_space<vmem>>, vector<1x16x1xf32>,
    %22 = arith.mulf %16, %16 : vector<16x288xf32>
    %cst_10 = arith.constant dense<0.000000e+00> : vector<16xf32>
    %23 = vector.multi_reduction <add>, %22, %cst_10 [1] : vector<16x288xf32> to vector<16xf32>
    %24 = vector.shape_cast %23 : vector<16xf32> to vector<16x1xf32>
    %c0_11 = arith.constant 0 : index
    %c0_12 = arith.constant 0 : index
    %c0_13 = arith.constant 0 : index
    %25 = vector.load %arg6[%c0_11, %c0_12, %c0_13] : memref<1x16x1xf32, #tpu.memory_space<vmem>>, vector<1x16x1xf32>
    %26 = vector.shape_cast %25 : vector<1x16x1xf32> to vector<16x1xf32>
    %27 = vector.shape_cast %24 : vector<16x1xf32> to vector<1x16x1xf32>
    tpu.vector_store %arg6[%c0_11, %c0_12, %c0_13], %27 {strides = array<i32>} : memref<1x16x1xf32, #tpu.memory_space<vmem>>, vector<1x16x1xf32>,
    %28 = arith.truncf %13 : vector<16x288xf32> to vector<16x288xbf16>
    %c0_14 = arith.constant 0 : index
    %c0_15 = arith.constant 0 : index
    %c0_16 = arith.constant 0 : index
    %29 = vector.load %arg4[%c0_14, %c0_15, %c0_16] : memref<1x16x288xbf16, #tpu.memory_space<vmem>>, vector<1x16x288xbf16>
    %30 = vector.shape_cast %29 : vector<1x16x288xbf16> to vector<16x288xbf16>
    %31 = vector.shape_cast %28 : vector<16x288xbf16> to vector<1x16x288xbf16>
    tpu.vector_store %arg4[%c0_14, %c0_15, %c0_16], %31 {strides = array<i32>} : memref<1x16x288xbf16, #tpu.memory_space<vmem>>, vector<1x16x288xbf16>,
    return
  }
  func.func @transform_0(%arg0: i32) -> (i32, i32, i32) {
    %c0_i32 = arith.constant 0 : i32
    %c0_i32_0 = arith.constant 0 : i32
    %c0_i32_1 = arith.constant 0 : i32
    return %arg0, %c0_i32, %c0_i32_0 : i32, i32, i32
  }
  func.func @transform_1(%arg0: i32) -> (i32, i32) {
    %c0_i32 = arith.constant 0 : i32
    %c0_i32_0 = arith.constant 0 : i32
    %c0_i32_1 = arith.constant 0 : i32
    return %c0_i32, %c0_i32_0 : i32, i32
  }
  func.func @transform_2(%arg0: i32) -> (i32, i32) {
    %c0_i32 = arith.constant 0 : i32
    %c0_i32_0 = arith.constant 0 : i32
    %c0_i32_1 = arith.constant 0 : i32
    return %c0_i32, %c0_i32_0 : i32, i32
  }
  func.func @transform_3(%arg0: i32) -> (i32, i32, i32) {
    %c0_i32 = arith.constant 0 : i32
    %c0_i32_0 = arith.constant 0 : i32
    %c0_i32_1 = arith.constant 0 : i32
    return %arg0, %c0_i32, %c0_i32_0 : i32, i32, i32
  }
  func.func @transform_4(%arg0: i32) -> (i32, i32, i32) {
    %c0_i32 = arith.constant 0 : i32
    %c0_i32_0 = arith.constant 0 : i32
    %c0_i32_1 = arith.constant 0 : i32
    return %arg0, %c0_i32, %c0_i32_0 : i32, i32, i32
  }
  func.func @transform_5(%arg0: i32) -> (i32, i32, i32) {
    %c0_i32 = arith.constant 0 : i32
    %c0_i32_0 = arith.constant 0 : i32
    %c0_i32_1 = arith.constant 0 : i32
    return %arg0, %c0_i32, %c0_i32_0 : i32, i32, i32
  }
}

</mosaic_0001>

<bundles_post_ra>
// kernel: generative_chimney_forward.35
= control target key start
LH: loop header
LB: loop body
LE: loop exit
PB: predicated region body
PF: predicated region fallthrough
CT: control target
= control target key end

     0   :  { %7 = vsyncpa [#allocation3], 0  ;;  %s1325_s0 = inlined_call_operand.hbm [shape: bf16[2,3,384], index: 0, kind: input, shape index: {}]   ;;  %s1326_s1 = inlined_call_operand.hbm [shape: bf16[32,27], index: 1, kind: input, shape index: {}]   ;;  %s1327_s2 = inlined_call_operand.hbm [shape: bf16[2,32,288], index: 2, kind: output, shape index: {}]  }
   0x1   :  { %9 = vsyncpa [#allocation3 + $0x1], 0 }
   0x2   :  { %10 = vsyncpa [#allocation6], 0 }
   0x3   :  { %11 = vsyncpa [#allocation4], 0 }
   0x4   :  { %13 = vsyncpa [#allocation4 + $0x1], 0  ;;  %s998_s9 = smov 0   ;;  %s1000_s10 = smov 0  }
   0x5   :  { %s1002_s11 = smov 0   ;;  %s1004_s12 = smov 0  }
   0x6 LB: > { %s1019_s13 = sadd.s32 4294967295, %s963_s12   ;;  %s705_s14 = sadd.s32 4294967294, %s963_s12   ;;  %s963_s12 = sphi %s1004_s12, %s1355_s12   ;;  %s959_s11 = sphi %s1002_s11, %s1354_s11   ;;  %s955_s10 = sphi %s1000_s10, %s1353_s10   ;;  %s951_s9 = sphi %s998_s9, %s1352_s9  }
   0x7   : > { %p39_p0 = scmp.ne.s32.totalorder %s955_s10, %s951_s9  ;;  %p1328_p1 = scmp.eq.s32.totalorder %s1019_s13, 0 }
   0x8   : > { %p90_p3 = scmp.eq.s32.totalorder %s705_s14, 1  ;;  %p706_p5 = scmp.ge.s32.totalorder %s963_s12, 1 }
   0x9   : > { %p1028_p4 = por %p1328_p1, %p39_p0  ;;  %p97_p7 = scmp.lt.s32.totalorder %s963_s12, 3 }
   0xa   : > { %p1033_p6 = por %p90_p3, %p39_p0  ;;  %s965_s18 = smov [#allocation5]  }
   0xb   : > { %s1331_s15 = scalar_select %p1028_p4, 1, 0 }
   0xc   : > { %s1332_s16 = scalar_select %p1033_p6, 1, 0 }
   0xd   : > { %p1038_p8 = pnand %p706_p5, %p97_p7  ;;  %s109_s19 = sshll.u32 %s965_s18, 4  ;;  %s1042_s19 = int_to_ptr.vmem [resolvable:$true] %s109_s19 }
   0xe   : > { %s1054_s21 = sadd.s32 1, %s963_s12   ;;  %s26_s22 = sadd.s32 1, %s959_s11 }
   0xf   : > { %s1333_s17 = scalar_select %p1038_p8, 1, 0 }
  0x10   : > { %p762_p9 = pneg %p1038_p8  ;;  %s23_s23 = ssub.s32 %s963_s12, %s1054_s21 }
  0x11   : > { %s835_s26 = scalar_lea.hbm %s1326_s1, 256 }
  0x12   : > { %p1049_p11 = pnand %p762_p9, %p1328_p1  ;;  %p836_p12 = scmp.ne.s32.totalorder %s1326_s1, %s835_s26 }
  0x13   : > { %p842_p5 = scmp.lt.u32.totalorder %s835_s26, %s1326_s1 }
  0x14   : > { %p837_p13 = pneg %p1049_p11 }
  0x16   : > { %p838_p0 = pnand %p837_p13, %p836_p12 }
  0x18   : > { %p839_p3 = pneg %p838_p0 }
  0x1a   : > { %p844_p7 = pnand %p842_p5, %p839_p3 }
  0x1c   : > { %847 = shalt.err (!%p844_p7)
}
  0x1d   : > { %s848_s3 = scalar_lea.vmem %s1042_s19, 256  ;;  %p856_p2 = scmp.lt.s32.totalorder %s1042_s19, %s1042_s19 }
  0x1e   : > { %p849_p9 = scmp.ne.s32.totalorder %s1042_s19, %s848_s3  ;;  %p857_p6 = scmp.lt.s32.totalorder %s848_s3, %s848_s3 }
  0x20   : > { %p851_p10 = pnand %p849_p9, %p837_p13  ;;  %p858_p4 = por %p857_p6, %p856_p2 }
  0x22   : > { %p852_p1 = pneg %p851_p10 }
  0x24   : > { %p859_p8 = pnand %p858_p4, %p852_p1 }
  0x26   : > { %862 = shalt.err (!%p859_p8)
}
  0x27   : > { %s966_s4 = smov 64   ;;  %s967_s5 = smov 4  }
  0x28   : > { %765 = dma.hbm_to_vmem [thread:$0]  (!%p1049_p11), %s1326_s1, 256, %s1042_s19, [#allocation6], %s966_s4, %s966_s4, %s967_s5  }
  0x29   : > { %p24_p2 = scmp.eq.s32.totalorder %s23_s23, 0  ;;  %p33_p1 = scmp.ne.s32.totalorder %s959_s11, %s955_s10 }
  0x2a   : > { %p34_p4 = scmp.eq.s32.totalorder %s963_s12, 0  ;;  %p775_p6 = scmp.lt.s32.totalorder %s963_s12, 2 }
  0x2b   : > { %s1085_s8 = scalar_select %p24_p2, %s959_s11, %s26_s22  }
  0x2c   : > { %p35_p8 = por %p34_p4, %p33_p1  ;;  %p1335_p10 = scmp.eq.s32.totalorder %s1019_s13, 1 }
  0x2d   : > { %s123_s18 = sand.u32 1, %s959_s11   ;;  %s750_s24 = smul.u32 96, %s963_s12 }
  0x2e   : > { %p1089_p12 = por %p1335_p10, %p33_p1  ;;  %s749_s25 = smul.u32 6, %s123_s18 }
  0x2f   : > { %p1095_p13 = pnand %p775_p6, %p35_p8  ;;  %s1102_s22 = scalar_lea.hbm %s1325_s0, %s750_s24 }
  0x30   : > { %s127_s26 = scalar_lea.vmem [#allocation2], %s749_s25  ;;  %s124_s28 = scalar_lea.sflag [#allocation3], %s123_s18 }
  0x31   : > { %s135_s27 = sshll.u32 %s127_s26, 4  ;;  %s863_s29 = scalar_lea.hbm %s1102_s22, 96  ;;  %s1104_s27 = int_to_ptr.vmem [resolvable:$true] %s135_s27 }
  0x32   : > { %p864_p11 = scmp.ne.s32.totalorder %s1102_s22, %s863_s29  ;;  %p865_p0 = pneg %p1095_p13 }
  0x33   : > { %s868_s4 = scalar_lea.hbm %s1325_s0, 192  ;;  %p869_p7 = scmp.lt.u32.totalorder %s1102_s22, %s1325_s0 }
  0x34   : > { %p866_p3 = pnand %p865_p0, %p864_p11  ;;  %p870_p9 = scmp.lt.u32.totalorder %s868_s4, %s863_s29 }
  0x35   : > { %p872_p1 = scmp.lt.u32.totalorder %s863_s29, %s1102_s22 }
  0x36   : > { %p867_p5 = pneg %p866_p3  ;;  %p871_p2 = por %p870_p9, %p869_p7 }
  0x38   : > { %p873_p4 = por %p872_p1, %p871_p2 }
  0x3a   : > { %p874_p6 = pnand %p873_p4, %p867_p5 }
  0x3c   : > { %877 = shalt.err (!%p874_p6)
}
  0x3d   : > { %s878_s7 = scalar_lea.vmem %s1104_s27, 96  ;;  %s968_s18 = smov [#allocation2]  }
  0x3e   : > { %p879_p8 = scmp.ne.s32.totalorder %s1104_s27, %s878_s7  ;;  %s883_s24 = sshll.u32 %s968_s18, 4  ;;  %s884_s24 = int_to_ptr.vmem [resolvable:$false] %s883_s24 }
  0x3f   : > { %s885_s25 = scalar_lea.vmem %s884_s24, 192  ;;  %p886_p3 = scmp.lt.s32.totalorder %s1104_s27, %s884_s24 }
  0x40   : > { %p881_p10 = pnand %p879_p8, %p865_p0  ;;  %p887_p7 = scmp.lt.s32.totalorder %s885_s25, %s878_s7 }
  0x42   : > { %p882_p11 = pneg %p881_p10  ;;  %p888_p9 = por %p887_p7, %p886_p3 }
  0x44   : > { %p889_p2 = pnand %p888_p9, %p882_p11 }
  0x46   : > { %892 = shalt.err (!%p889_p2)
}
  0x47   : > { %769 = dma.hbm_to_vmem [thread:$0]  (!%p1095_p13), %s1102_s22, 96, %s1104_s27, %s124_s28  }
  0x48   : > { %p1338_p5 = scmp.ne.s32.totalorder %s1333_s17, 0 }
  0x49   : > { %s1134_s19 = sand.u32 (!%p1338_p5), 1, %s955_s10   ;;  %p1339_p0 = scmp.ne.s32.totalorder (!%p1338_p5), %s1331_s15, 0 }
  0x4a   : > { %144 = sbr.rel (%p1338_p5) target bundleno = 508 (0x1fc), region = 28  ;;  %s147_s26 = scalar_lea.sflag (!%p1338_p5), [#allocation3], %s1134_s19 }
  0x4b   : > { %s751_s23 = smul.u32 (!%p1338_p5), 6, %s1134_s19 }
  0x4d   : > { %s150_s29 = scalar_lea.vmem (!%p1338_p5), [#allocation2], %s751_s23 }
  0x51   : > { %938 = dma.done.wait (%p1339_p0), %s147_s26, 96  }
  0x52   : > { %940 = vsyncadd (%p1339_p0), %s147_s26, 4294967200  ;;  %p1340_p1 = scmp.eq.s32.totalorder %s1019_s13, 0 }
  0x54   : > { %942 = dma.done.wait (%p1340_p1), [#allocation6], 256   ;;  %p1341_p13 = pmov %p1340_p1 }
  0x55   : > { %v182_v0 = vlaneseq  ;;  %v969_v1 = vmov 1983009808   ;;  %v176_v6 = vld [vmem:[%s150_s29] sm:$0x3f]  ;;  %s970_s15 = smov 126   ;;  %s971_s17 = smov 109  }
  0x56   : > { %944 = vsyncadd (%p1341_p13), [#allocation6], 4294967040  ;;  %v180_v2 = vunpack.c.l.s4 %v969_v1  ;;  %v178_v8 = vcombine.high %v176_v6, %v176_v6  ;;  %v266_v9 = vcombine.low %v176_v6, %v176_v6  ;;  %s972_s20 = smov 110   ;;  %s973_s22 = smov 127   ;;  %v1189_v61 = vld [vmem:[#allocation5] sm:$0xff]   ;;  %v977_v62 = vmov 0  }
  0x57   : > { %v183_v3 = vshrl.u32 %v182_v0, 7  ;;  %s974_s27 = smov 108   ;;  %s975_s28 = smov 92   ;;  %489 = vmatprep.mubr.bf16.mxu0 %v977_v62  ;;  %vm441_vm0 = vcmask 220160   ;;  %vm354_vm1 = vcmask 1041408   ;;  %vm227_vm4 = vcmask 1039360  }
  0x58   : > { %v181_v4 = vunpack.c.0.s8 %v180_v2  ;;  %s976_s30 = smov 91   ;;  %s978_s3 = smov 90   ;;  %745 = vmatprep.mubr.msk.bf16.mxu1 %vm441_vm0, %v1189_v61  ;;  %vm355_vm2 = vsmask.f32 1280  ;;  %vm360_vm5 = vcmask 1042432   ;;  %vm373_vm6 = vcmask 1044480  }
  0x59   : > { %vm1197_vm3 = vmand %vm354_vm1, %vm355_vm2  ;;  %vm374_vm7 = vsmask.f32 4352  ;;  %vm242_vm8 = vcmask 1031168   ;;  %vm260_vm9 = vcmask 900096   ;;  %vm392_vm11 = vcmask 1047552   ;;  %s752_s4 = smul.u32 48, %s1134_s19 }
  0x5a   : > { %v184_v5 = vsub.s32 %v181_v4, %v183_v3  ;;  %vm1205_vm10 = vmand %vm373_vm6, %vm374_vm7  ;;  %vm393_vm12 = vsmask.f32 7424  ;;  %vm282_vm13 = vcmask 891904   ;;  %vm379_vm14 = vcmask 1045504   ;;  %s753_s7 = smul.u32 768, %s1019_s13  ;;  %s609_s23 = scalar_lea.sflag [#allocation4], %s1134_s19 }
  0x5b   : > { %vm303_vm15 = vcmask 883712   ;;  %vm1221_vm1 = vmand %vm392_vm11, %vm393_vm12  ;;  %vm320_vm2 = vcmask 752640   ;;  %vm398_vm7 = vcmask 1040384   ;;  %s174_s5 = scalar_lea.vmem [#allocation7], %s752_s4  ;;  %s980_s26 = smov [#allocation7]  }
  0x5c   : > { %v1146_v7 = vrot.slane %v176_v6, %v184_v5  ;;  %v1149_v11 = vrot.slane %v178_v8, %v184_v5  ;;  %v273_v16 = vrot.slane %v266_v9, %v184_v5  ;;  %s622_s6 = sshll.u32 %s174_s5, 4  ;;  %s1281_s25 = scalar_lea.hbm %s1327_s2, %s753_s7  ;;  %s1276_s6 = int_to_ptr.vmem [resolvable:$true] %s622_s6 }
  0x5d   : > { %s893_s13 = scalar_lea.vmem %s1276_s6, 768  ;;  %s897_s29 = sshll.u32 %s980_s26, 4  ;;  %s898_s29 = int_to_ptr.vmem [resolvable:$false] %s897_s29 }
  0x5e   : > { %v233_v10 = vrot.slane %v1146_v7, 5  ;;  %v1152_v12 = vshrl.u32 %v1146_v7, 16  ;;  %v1155_v13 = vshll.u32 %v1146_v7, 16  ;;  %v1159_v14 = vcombine.high %v1146_v7, %v1146_v7  ;;  %p894_p4 = scmp.ne.s32.totalorder %s1276_s6, %s893_s13  ;;  %p900_p10 = scmp.lt.s32.totalorder %s1276_s6, %s898_s29 }
  0x5f   : > { %v235_v15 = vrot.slane %v1149_v11, 5  ;;  %v214_v21 = vshrl.u32 %v1149_v11, 16  ;;  %v217_v22 = vshll.u32 %v1149_v11, 16  ;;  %v274_v40 = vcombine.low %v273_v16, %v273_v16 }
  0x60   : > { %236 = vrot.lane.b32.xlu1 %v233_v10, %s970_s15  ;;  %v245_v17 = vrot.slane %v1152_v12, 3  ;;  %v246_v18 = vrot.slane %v1155_v13, 4  ;;  %v1165_v19 = vshrl.u32 %v1159_v14, 16  ;;  %v209_v20 = vshll.u32 %v1159_v14, 16  ;;  %p895_p6 = pnand %p894_p4, %p1089_p12 }
  0x61   : > { %240 = vrot.lane.b32.xlu0 %v235_v15, %s970_s15  ;;  %v234_v26 = vrot.slane %v1159_v14, 5  ;;  %v200_v27 = vrot.slane %v1152_v12, 6  ;;  %v203_v28 = vrot.slane %v1155_v13, 7  ;;  %v216_v30 = vrot.slane %v214_v21, 6 }
  0x62   : > { %v247_v23 = vor.u32 %v246_v18, %v245_v17  ;;  %v208_v24 = vrot.slane %v1165_v19, 6  ;;  %v211_v25 = vrot.slane %v209_v20, 7  ;;  %v219_v31 = vrot.slane %v217_v22, 7  ;;  %p896_p8 = pneg %p895_p6 }
  0x63   : > { %v204_v32 = vor.u32 %v203_v28, %v200_v27  ;;  %v251_v33 = vrot.slane %v214_v21, 3  ;;  %v252_v34 = vrot.slane %v217_v22, 4  ;;  %v248_v36 = vrot.slane %v1165_v19, 3 }
  0x64   : > { %278 = vrot.lane.b32.xlu1 %v273_v16, %s971_s17  ;;  %v212_v29 = vor.u32 %v211_v25, %v208_v24  ;;  %v220_v35 = vor.u32 %v219_v31, %v216_v30  ;;  %v249_v37 = vrot.slane %v209_v20, 4  ;;  %v286_v41 = vrot.slane %v209_v20, 1 }
  0x65   : > { %254 = vrot.lane.b32.xlu0 %v247_v23, %s972_s20  ;;  %v253_v38 = vor.u32 %v252_v34, %v251_v33  ;;  %v275_v42 = vcombine.low %v1146_v7, %v1146_v7  ;;  %v287_v43 = vrot.slane %v217_v22, 1  ;;  %v312_v46 = vrot.slane %v1159_v14, 7 }
  0x66   : > { %v250_v39 = vor.u32 %v249_v37, %v248_v36  ;;  %v289_v44 = vor.u32 %v286_v41, %v1165_v19  ;;  %v285_v48 = vrot.slane %v1155_v13, 1  ;;  %v313_v49 = vrot.slane %v1149_v11, 7 }
  0x67   : > { %v826_v45 = vpack.i.bf16 %v287_v43, %v286_v41  ;;  %v290_v47 = vor.u32 %v287_v43, %v214_v21  ;;  %v311_v50 = vrot.slane %v1146_v7, 7  ;;  %v329_v51 = vrot.slane %v214_v21, 5 }
  0x68   : > { %238 = vrot.lane.b32.xlu1 %v234_v26, %s970_s15  ;;  %v330_v52 = vrot.slane %v217_v22, 6  ;;  %v288_v53 = vor.u32 %v285_v48, %v1152_v12  ;;  %v326_v54 = vrot.slane %v1165_v19, 5  ;;  %v327_v55 = vrot.slane %v209_v20, 6  ;;  %s899_s15 = scalar_lea.vmem %s898_s29, 1536 }
  0x69   : > { %223 = vrot.lane.b32.xlu0 %v212_v29, %s973_s22  ;;  %v323_v58 = vrot.slane %v1152_v12, 5  ;;  %v324_v59 = vrot.slane %v1155_v13, 6  ;;  %v344_v63 = vcombine.low %v1149_v11, %v1149_v11  ;;  %p901_p11 = scmp.lt.s32.totalorder %s899_s15, %s893_s13 }
  0x6a   : > { %v331_v56 = vor.u32 %v330_v52, %v329_v51  ;;  %v328_v57 = vor.u32 %v327_v55, %v326_v54 }
  0x6b   : > { %v325_v60 = vor.u32 %v324_v59, %v323_v58  ;;  %p902_p3 = por %p901_p11, %p900_p10 }
  0x6c   : > { %221 = vrot.lane.b32.xlu1 %v204_v32, %s973_s22 }
  0x6d   : > { %225 = vrot.lane.b32.xlu0 %v220_v35, %s973_s22  ;;  %p903_p7 = pnand %p902_p3, %p896_p8 }
  0x70   : > { %258 = vrot.lane.b32.xlu1 %v253_v38, %s972_s20 }
  0x71   : > { %256 = vrot.lane.b32.xlu0 %v250_v39, %s972_s20 }
  0x74   : > { %276 = vrot.lane.b32.xlu1 %v274_v40, %s971_s17 }
  0x75   : > { %280 = vrot.lane.b32.xlu0 %v275_v42, %s971_s17 }
  0x78   : > { %299 = vrot.lane.b32.xlu1 %v289_v44, %s974_s27 }
  0x79   : > { %827 = vrot.lane.b32.xlu0 %v826_v45, %s974_s27 }
  0x7c   : > { %316 = vrot.lane.b32.xlu1 %v312_v46, %s975_s28 }
  0x7d   : > { %301 = vrot.lane.b32.xlu0 %v290_v47, %s974_s27 }
  0x80   : > { %291 = vrot.lane.b32.xlu1 %v285_v48, %s974_s27 }
  0x81   : > { %318 = vrot.lane.b32.xlu0 %v313_v49, %s975_s28 }
  0x84   : > { %314 = vrot.lane.b32.xlu1 %v311_v50, %s975_s28 }
  0x85   : > { %297 = vrot.lane.b32.xlu0 %v288_v53, %s974_s27 }
  0x88   : > { %336 = vrot.lane.b32.xlu1 %v331_v56, %s976_s30  ;;  %v979_v56 = vmov 65535  }
  0x89   : > { %334 = vrot.lane.b32.xlu0 %v328_v57, %s976_s30  ;;  %v449_v57 = vsel %vm373_vm6, 4294967295, %v979_v56 }
  0x8c   : > { %347 = vrot.lane.b32.xlu1 %v1146_v7, %s978_s3 }
  0x8d   : > { %332 = vrot.lane.b32.xlu0 %v325_v60, %s976_s30 }
  0x90   : > { %345 = vrot.lane.b32.xlu1 %v275_v42, %s978_s3 }
  0x91   : > { %349 = vrot.lane.b32.xlu0 %v344_v63, %s978_s3 }
  0xd2   : > { %v237_v0 = vpop.permute.xlu1 %236 }
  0xd3   : > { %v241_v1 = vpop.permute.xlu0 %240 }
  0xd6   : > { %v279_v2 = vpop.permute.xlu1 %278 }
  0xd7   : > { %v255_v3 = vpop.permute.xlu0 %254 }
  0xda   : > { %v239_v4 = vpop.permute.xlu1 %238 }
  0xdb   : > { %v224_v5 = vpop.permute.xlu0 %223  ;;  %v244_v23 = vsel %vm242_vm8, %v239_v4, %v241_v1  ;;  %v243_v32 = vsel %vm242_vm8, %v237_v0, %v239_v4  ;;  %vm351_vm8 = vcmask 736256  }
  0xde   : > { %v222_v6 = vpop.permute.xlu1 %221 }
  0xdf   : > { %v226_v8 = vpop.permute.xlu0 %225  ;;  %v228_v18 = vsel %vm227_vm4, %v222_v6, %v224_v5  ;;  %v450_v6 = vsel %vm379_vm14, %v449_v57, 0 }
  0xe0   : > { %v359_v13 = vsel %vm1197_vm3, %v1149_v11, %v226_v8  ;;  %v229_v16 = vsel %vm227_vm4, %v224_v5, %v226_v8  ;;  %v357_v24 = vsel %vm1197_vm3, %v1146_v7, %v228_v18  ;;  %vm338_vm4 = vcmask 744448  }
  0xe1   : > { %v371_v20 = vsel %vm360_vm5, %v359_v13, %v241_v1  ;;  %v358_v11 = vsel %vm1197_vm3, %v1159_v14, %v229_v16  ;;  %v363_v35 = vsel %vm360_vm5, %v357_v24, %v243_v32  ;;  %vm412_vm3 = vsmask.f32 2304 }
  0xe2   : > { %v259_v9 = vpop.permute.xlu1 %258  ;;  %v367_v28 = vsel %vm360_vm5, %v358_v11, %v244_v23  ;;  %v834_v11 = vld [vmem:[#allocation5 + $0x8] sm:$0xff]  }
  0xe3   : > { %v257_v12 = vpop.permute.xlu0 %256  ;;  %v378_v25 = vsel %vm1205_vm10, %v371_v20, %v259_v9 }
  0xe4   : > { %v262_v22 = vsel %vm260_vm9, %v257_v12, %v259_v9  ;;  %v261_v29 = vsel %vm260_vm9, %v255_v3, %v257_v12  ;;  %vm1249_vm9 = vmand %vm360_vm5, %vm412_vm3  ;;  %vm600_vm5 = vcmask 257024  }
  0xe5   : > { %v377_v7 = vsel %vm1205_vm10, %v367_v28, %v262_v22  ;;  %v376_v39 = vsel %vm1205_vm10, %v363_v35, %v261_v29  ;;  %vm417_vm10 = vcmask 1043456  }
  0xe6   : > { %v277_v15 = vpop.permute.xlu1 %276 }
  0xe7   : > { %v281_v17 = vpop.permute.xlu0 %280  ;;  %v283_v40 = vsel %vm282_vm13, %v277_v15, %v279_v2 }
  0xe8   : > { %v284_v26 = vsel %vm282_vm13, %v279_v2, %v281_v17  ;;  %v390_v33 = vsel %vm379_vm14, %v378_v25, %v281_v17  ;;  %v382_v45 = vsel %vm379_vm14, %v376_v39, %v283_v40 }
  0xe9   : > { %v386_v38 = vsel %vm379_vm14, %v377_v7, %v284_v26 }
  0xea   : > { %v300_v21 = vpop.permute.xlu1 %299 }
  0xeb   : > { %v828_v27 = vpop.permute.xlu0 %827 }
  0xec   : > { %v830_v30 = vunpack.i.h.bf16 %v828_v27  ;;  %v829_v31 = vunpack.i.l.bf16 %v828_v27 }
  0xee   : > { %v317_v34 = vpop.permute.xlu1 %316  ;;  %v397_v36 = vsel %vm1221_vm1, %v390_v33, %v830_v30  ;;  %v305_v37 = vsel %vm303_vm15, %v829_v31, %v830_v30 }
  0xef   : > { %v302_v41 = vpop.permute.xlu0 %301  ;;  %741 = vmatprep.subr.bf16.mxu1 %v397_v36  ;;  %v396_v42 = vsel %vm1221_vm1, %v386_v38, %v305_v37 }
  0xf0   : > { %457 = vmatprep.subr.bf16.mxu0 %v396_v42  ;;  %742 = vmatpush3.bf16.msra.mxu1 %v397_v36  ;;  %v307_v3 = vsel %vm303_vm15, %v300_v21, %v302_v41 }
  0xf2   : > { %v292_v43 = vpop.permute.xlu1 %291 }
  0xf3   : > { %v304_v44 = vsel %vm303_vm15, %v292_v43, %v829_v31  ;;  %v319_v46 = vpop.permute.xlu0 %318 }
  0xf4   : > { %v395_v47 = vsel %vm1221_vm1, %v382_v45, %v304_v44  ;;  %v322_v58 = vsel %vm320_vm2, %v317_v34, %v319_v46  ;;  %v409_v4 = vsel %vm398_vm7, %v302_v41, %v319_v46 }
  0xf5   : > { %458 = vmatpush1.bf16.msra.mxu0 %v395_v47  ;;  %v405_v8 = vsel %vm398_vm7, %v307_v3, %v322_v58 }
  0xf6   : > { %v315_v48 = vpop.permute.xlu1 %314 }
  0xf7   : > { %v298_v49 = vpop.permute.xlu0 %297  ;;  %v321_v54 = vsel %vm320_vm2, %v315_v48, %v317_v34 }
  0xf8   : > { %v306_v52 = vsel %vm303_vm15, %v298_v49, %v300_v21 }
  0xf9   : > { %v401_v59 = vsel %vm398_vm7, %v306_v52, %v321_v54 }
  0xfa   : > { %v337_v50 = vpop.permute.xlu1 %336 }
  0xfb   : > { %v335_v51 = vpop.permute.xlu0 %334  ;;  %v416_v9 = vsel %vm1249_vm9, %v409_v4, %v337_v50 }
  0xfc   : > { %v340_v0 = vsel %vm338_vm4, %v335_v51, %v337_v50 }
  0xfd   : > { %v415_v12 = vsel %vm1249_vm9, %v405_v8, %v340_v0 }
  0xfe   : > { %v348_v53 = vpop.permute.xlu1 %347 }
  0xff   : > { %v333_v55 = vpop.permute.xlu0 %332 }
 0x100   : > { %v339_v63 = vsel %vm338_vm4, %v333_v55, %v335_v51 }
 0x101   : > { %v414_v1 = vsel %vm1249_vm9, %v401_v59, %v339_v63 }
 0x102   : > { %v346_v2 = vpop.permute.xlu1 %345 }
 0x103   : > { %v352_v5 = vsel %vm351_vm8, %v346_v2, %v348_v53  ;;  %v350_v10 = vpop.permute.xlu0 %349 }
 0x104   : > { %v420_v13 = vsel %vm417_vm10, %v414_v1, %v352_v5  ;;  %v353_v15 = vsel %vm351_vm8, %v348_v53, %v350_v10  ;;  %v426_v16 = vsel %vm417_vm10, %v416_v9, %v350_v10 }
 0x105   : > { %v423_v17 = vsel %vm417_vm10, %v415_v12, %v353_v15  ;;  %v455_v18 = vand.u32 %v450_v6, %v426_v16  ;;  %v451_v20 = vand.u32 %v450_v6, %v420_v13 }
 0x106   : > { %v453_v19 = vand.u32 %v450_v6, %v423_v17 }
 0x107   : > { %743 = vmatprep.subr.bf16.mxu1 %v455_v18 }
 0x108   : > { %459 = vmatprep.subr.bf16.mxu0 %v453_v19  ;;  %744 = vmatpush3.bf16.msra.mxu1 %v455_v18 }
 0x109   : > { %460 = vmatpush1.bf16.msra.mxu0 %v451_v20 }
 0x10b   : > { %746 = vmatmul.mubr.msk.bf16.vlgmr.msra.gmra.mrb[0].mxu1 %vm441_vm0, %v834_v11 }
 0x10c   : > { %714 = vmatmul.mubr.msk.bf16.vlgmr.msra.gmra.mrb[0].mxu0 %vm441_vm0, %v1189_v61 }
 0x10d   : > { %499 = vmatprep.mubr.bf16.mxu0 %v977_v62 }
 0x114   : > { %715 = vmatmul.mubr.msk.bf16.gmra.mrb[4].mxu0 %vm441_vm0, %v834_v11 }
 0x1de   : > { %v747_v21 = vpop.f32.mrb[0].mxu1 }
 0x1df   : > { %v491_v22 = vpop.f32.mrb[0].mxu0  ;;  %v734_v23 = vpack.c.bf16 %v747_v21, %v747_v21  ;;  %v544_v24 = vpop.f32.mrb[1].mxu1 }
 0x1e0   : > { %v493_v25 = vpop.f32.mrb[1].mxu0  ;;  %v730_v26 = vpack.c.bf16 %v544_v24, %v544_v24  ;;  %v748_v27 = vpop.f32.mrb[2].mxu1 }
 0x1e1   : > { %v729_v14 = vpack.c.bf16 %v493_v25, %v491_v22  ;;  %v495_v28 = vpop.f32.mrb[2].mxu0  ;;  %605 = vst.msk [vmem:[%s174_s5 + $0x20] sm:$0xf] %vm600_vm5, %v734_v23  ;;  %v736_v61 = vpack.c.bf16 %v748_v27, %v748_v27  ;;  %v547_v29 = vpop.f32.mrb[3].mxu1 }
 0x1e2   : > { %v497_v62 = vpop.f32.mrb[3].mxu0  ;;  %601 = vst.msk [vmem:[%s174_s5 + $0x8] sm:$0xf] %vm600_vm5, %v730_v26  ;;  %v732_v30 = vpack.c.bf16 %v547_v29, %v547_v29 }
 0x1e3   : > { %599 = vst [vmem:[%s174_s5] sm:$0xff] %v729_v14  ;;  %v731_v31 = vpack.c.bf16 %v497_v62, %v495_v28  ;;  %607 = vst.msk [vmem:[%s174_s5 + $0x2c] sm:$0xf] %vm600_vm5, %v736_v61 }
 0x1e4   : > { %603 = vst.msk [vmem:[%s174_s5 + $0x14] sm:$0xf] %vm600_vm5, %v732_v30 }
 0x1e5   : > { %602 = vst [vmem:[%s174_s5 + $0xc] sm:$0xff] %v731_v31 }
 0x1e7   : > { %v501_v32 = vpop.f32.mrb[4].mxu0 }
 0x1e8   : > { %v503_v7 = vpop.f32.mrb[5].mxu0 }
 0x1e9   : > { %v733_v33 = vpack.c.bf16 %v503_v7, %v501_v32  ;;  %v505_v34 = vpop.f32.mrb[6].mxu0 }
 0x1ea   : > { %v507_v35 = vpop.f32.mrb[7].mxu0 }
 0x1eb   : > { %604 = vst [vmem:[%s174_s5 + $0x18] sm:$0xff] %v733_v33  ;;  %v735_v36 = vpack.c.bf16 %v507_v35, %v505_v34 }
 0x1ed   : > { %606 = vst [vmem:[%s174_s5 + $0x24] sm:$0xff] %v735_v36 }
 0x1ee   : > { %906 = shalt.err (!%p903_p7)
}
 0x1ef   : > { %s907_s17 = scalar_lea.hbm %s1281_s25, 768  ;;  %s911_s27 = scalar_lea.hbm %s1327_s2, 1536 }
 0x1f0   : > { %p908_p9 = scmp.ne.s32.totalorder %s1281_s25, %s907_s17  ;;  %p912_p0 = scmp.lt.u32.totalorder %s1281_s25, %s1327_s2 }
 0x1f1   : > { %p913_p1 = scmp.lt.u32.totalorder %s911_s27, %s907_s17  ;;  %p915_p4 = scmp.lt.u32.totalorder %s907_s17, %s1281_s25 }
 0x1f2   : > { %p909_p2 = pnand %p908_p9, %p1089_p12 }
 0x1f3   : > { %p914_p13 = por %p913_p1, %p912_p0 }
 0x1f4   : > { %p910_p5 = pneg %p909_p2 }
 0x1f5   : > { %p916_p6 = por %p915_p4, %p914_p13 }
 0x1f7   : > { %p917_p8 = pnand %p916_p6, %p910_p5 }
 0x1f9   : > { %920 = shalt.err (!%p917_p8)
}
 0x1fa   : > { %s981_s3 = smov 192   ;;  %s982_s4 = smov 12  }
 0x1fb   : > { %760 = dma.vmem_to_hbm [thread:$0]  (%p1089_p12), %s1276_s6, 768, %s1281_s25, %s609_s23, %s981_s3, %s981_s3, %s982_s4  }
 0x1fc PF: > { %s637_s5 = sand.u32 1, %s951_s9   ;;  %p1350_p10 = scmp.ne.s32.totalorder %s1332_s16, 0 }
 0x1fd   : > { %p1351_p11 = scmp.ge.s32.totalorder %s963_s12, 2  ;;  %s638_s7 = scalar_lea.sflag [#allocation4], %s637_s5 }
 0x1ff   : > { %p771_p3 = pnand %p1351_p11, %p1350_p10 }
 0x201   : > { %946 = dma.done.wait (!%p771_p3), %s638_s7, 768  }
 0x202   : > { %948 = vsyncadd (!%p771_p3), %s638_s7, 4294966528  ;;  %p16_p7 = scmp.ge.s32.totalorder %s1054_s21, 4   ;;  %s1352_s9 = smov %s955_s10 }
 0x203   : > { %s1353_s10 = smov %s959_s11  ;;  %s1354_s11 = smov %s1085_s8 }
 0x204   : > { %s1355_s12 = smov %s1054_s21  ;;  %18 = sbr.rel (!%p16_p7) target bundleno = 6 (0x6), region = 77 }
 0x20b   :  { %643 = vsyncpa [#allocation3], 1 }
 0x20c   :  { %645 = vsyncpa [#allocation3 + $0x1], 1 }
 0x20d   :  { %646 = vsyncpa [#allocation6], 1 }
 0x20e   :  { %647 = vsyncpa [#allocation4], 1 }
 0x20f   :  { %649 = vsyncpa [#allocation4 + $0x1], 1 }

// kernel: generative_chimney_forward.36
= control target key start
LH: loop header
LB: loop body
LE: loop exit
PB: predicated region body
PF: predicated region fallthrough
CT: control target
= control target key end

     0   :  { %11 = vsyncpa [#allocation3], 0  ;;  %s2100_s0 = inlined_call_operand.hbm [shape: bf16[2,32,384], index: 0, kind: input, shape index: {}]   ;;  %s2101_s1 = inlined_call_operand.hbm [shape: bf16[32,288], index: 1, kind: input, shape index: {}]   ;;  %s2102_s2 = inlined_call_operand.hbm [shape: f32[1,288], index: 2, kind: input, shape index: {}]   ;;  %s2103_s3 = inlined_call_operand.hbm [shape: bf16[2,32,288], index: 3, kind: output, shape index: {0}]   ;;  %s2104_s4 = inlined_call_operand.hbm [shape: f32[2,32,1], index: 4, kind: output, shape index: {1}]   ;;  %s2105_s5 = inlined_call_operand.hbm [shape: f32[2,32,1], index: 5, kind: output, shape index: {2}]  }
   0x1   :  { %13 = vsyncpa [#allocation3 + $0x1], 0 }
   0x2   :  { %14 = vsyncpa [#allocation6], 0 }
   0x3   :  { %15 = vsyncpa [#allocation4], 0 }
   0x4   :  { %17 = vsyncpa [#allocation4 + $0x1], 0 }
   0x5   :  { %18 = vsyncpa [#allocation10], 0 }
   0x6   :  { %20 = vsyncpa [#allocation10 + $0x1], 0  ;;  %s1593_s18 = smov 0   ;;  %s1595_s19 = smov 0  }
   0x7   :  { %s1597_s20 = smov 0   ;;  %s1599_s21 = smov 0  }
   0x8 LB: > { %s1614_s22 = sadd.s32 4294967295, %s1540_s21   ;;  %s2107_s23 = sadd.s32 4294967294, %s1540_s21   ;;  %s1540_s21 = sphi %s1599_s21, %s2129_s21   ;;  %s1536_s20 = sphi %s1597_s20, %s2128_s20   ;;  %s1532_s19 = sphi %s1595_s19, %s2127_s19   ;;  %s1528_s18 = sphi %s1593_s18, %s2126_s18  }
   0x9   : > { %p46_p0 = scmp.ne.s32.totalorder %s1532_s19, %s1528_s18  ;;  %p2106_p1 = scmp.eq.s32.totalorder %s1614_s22, 0 }
   0xa   : > { %p118_p3 = scmp.eq.s32.totalorder %s2107_s23, 1  ;;  %p1111_p5 = scmp.ge.s32.totalorder %s1540_s21, 1 }
   0xb   : > { %p1625_p4 = por %p2106_p1, %p46_p0  ;;  %p177_p7 = scmp.lt.s32.totalorder %s1540_s21, 3 }
   0xc   : > { %p1630_p6 = por %p118_p3, %p46_p0  ;;  %s1542_s27 = smov [#allocation5]  }
   0xd   : > { %s2111_s24 = scalar_select %p1625_p4, 1, 0 }
   0xe   : > { %s2112_s25 = scalar_select %p1630_p6, 1, 0 }
   0xf   : > { %p1635_p8 = pnand %p1111_p5, %p177_p7  ;;  %s189_s28 = sshll.u32 %s1542_s27, 4  ;;  %s1639_s28 = int_to_ptr.vmem [resolvable:$true] %s189_s28 }
  0x10   : > { %s1543_s30 = smov [#allocation7]   ;;  %s1324_s9 = scalar_lea.hbm %s2101_s1, 768 }
  0x11   : > { %p1232_p9 = pneg %p1635_p8  ;;  %s203_s6 = sshll.u32 %s1543_s30, 4  ;;  %s1650_s6 = int_to_ptr.vmem [resolvable:$true] %s203_s6 }
  0x12   : > { %p1325_p12 = scmp.ne.s32.totalorder %s2101_s1, %s1324_s9  ;;  %p1331_p5 = scmp.lt.u32.totalorder %s1324_s9, %s2101_s1 }
  0x13   : > { %p1646_p11 = pnand %p1232_p9, %p2106_p1 }
  0x15   : > { %p1326_p13 = pneg %p1646_p11 }
  0x17   : > { %p1327_p0 = pnand %p1326_p13, %p1325_p12 }
  0x19   : > { %p1328_p3 = pneg %p1327_p0 }
  0x1b   : > { %p1333_p7 = pnand %p1331_p5, %p1328_p3 }
  0x1d   : > { %1336 = shalt.err (!%p1333_p7)
}
  0x1e   : > { %s1337_s14 = scalar_lea.vmem %s1639_s28, 768  ;;  %p1345_p2 = scmp.lt.s32.totalorder %s1639_s28, %s1639_s28 }
  0x1f   : > { %p1338_p9 = scmp.ne.s32.totalorder %s1639_s28, %s1337_s14  ;;  %p1346_p12 = scmp.lt.s32.totalorder %s1337_s14, %s1337_s14 }
  0x21   : > { %p1340_p10 = pnand %p1338_p9, %p1326_p13  ;;  %p1347_p0 = por %p1346_p12, %p1345_p2 }
  0x23   : > { %p1341_p1 = pneg %p1340_p10 }
  0x25   : > { %p1348_p6 = pnand %p1347_p0, %p1341_p1 }
  0x27   : > { %1351 = shalt.err (!%p1348_p6)
}
  0x28   : > { %s2108_s15 = smov 192   ;;  %s1545_s16 = smov 12  }
  0x29   : > { %1235 = dma.hbm_to_vmem [thread:$0]  (!%p1646_p11), %s2101_s1, 768, %s1639_s28, [#allocation6], %s2108_s15, %s2108_s15, %s1545_s16  }
  0x2a   : > { %s1352_s8 = scalar_lea.hbm %s2102_s2, 48 }
  0x2b   : > { %p1353_p1 = scmp.ne.s32.totalorder %s2102_s2, %s1352_s8  ;;  %p1359_p10 = scmp.lt.u32.totalorder %s1352_s8, %s2102_s2 }
  0x2d   : > { %p1355_p2 = pnand %p1353_p1, %p1326_p13 }
  0x2f   : > { %p1356_p6 = pneg %p1355_p2 }
  0x31   : > { %p1361_p3 = pnand %p1359_p10, %p1356_p6 }
  0x33   : > { %1364 = shalt.err (!%p1361_p3)
}
  0x34   : > { %s1365_s28 = scalar_lea.vmem %s1650_s6, 48  ;;  %s1372_s13 = scalar_lea.vmem %s1650_s6, 64 }
  0x35   : > { %p1366_p5 = scmp.ne.s32.totalorder %s1650_s6, %s1365_s28  ;;  %p1373_p12 = scmp.lt.s32.totalorder %s1650_s6, %s1650_s6 }
  0x36   : > { %p1374_p0 = scmp.lt.s32.totalorder %s1372_s13, %s1365_s28 }
  0x37   : > { %p1368_p7 = pnand %p1366_p5, %p1326_p13 }
  0x38   : > { %p1375_p1 = por %p1374_p0, %p1373_p12 }
  0x39   : > { %p1369_p9 = pneg %p1368_p7 }
  0x3b   : > { %p1376_p2 = pnand %p1375_p1, %p1369_p9 }
  0x3d   : > { %1379 = shalt.err (!%p1376_p2)
}
  0x3e   : > { %1238 = dma.hbm_to_vmem [thread:$0]  (!%p1646_p11), %s2102_s2, 48, %s1650_s6, [#allocation6]  }
  0x3f   : > { %s1709_s27 = sadd.s32 1, %s1540_s21   ;;  %s33_s29 = sadd.s32 1, %s1536_s20 }
  0x40   : > { %s30_s30 = ssub.s32 %s1540_s21, %s1709_s27  ;;  %p40_p13 = scmp.ne.s32.totalorder %s1536_s20, %s1532_s19 }
  0x41   : > { %p31_p6 = scmp.eq.s32.totalorder %s30_s30, 0  ;;  %p41_p10 = scmp.eq.s32.totalorder %s1540_s21, 0 }
  0x42   : > { %p2115_p3 = scmp.eq.s32.totalorder %s1614_s22, 1  ;;  %p1255_p7 = scmp.lt.s32.totalorder %s1540_s21, 2 }
  0x43   : > { %s1725_s8 = scalar_select %p31_p6, %s1536_s20, %s33_s29  }
  0x44   : > { %p1719_p5 = por %p2115_p3, %p40_p13  ;;  %p42_p9 = por %p41_p10, %p40_p13 }
  0x45   : > { %s214_s9 = sand.u32 1, %s1536_s20   ;;  %s1213_s6 = smul.u32 768, %s1540_s21 }
  0x46   : > { %s2116_s7 = scalar_select %p1719_p5, 1, 0 }
  0x47   : > { %s1212_s10 = smul.u32 48, %s214_s9  ;;  %p1729_p11 = pnand %p1255_p7, %p42_p9 }
  0x48   : > { %s1736_s13 = scalar_lea.hbm %s2100_s0, %s1213_s6  ;;  %s1740_s29 = scalar_lea.sflag [#allocation3], %s214_s9 }
  0x49   : > { %s218_s14 = scalar_lea.vmem [#allocation2], %s1212_s10  ;;  %s1380_s30 = scalar_lea.hbm %s1736_s13, 768 }
  0x4a   : > { %s225_s17 = sshll.u32 %s218_s14, 4  ;;  %p1381_p12 = scmp.ne.s32.totalorder %s1736_s13, %s1380_s30  ;;  %s1738_s17 = int_to_ptr.vmem [resolvable:$true] %s225_s17 }
  0x4b   : > { %p1382_p0 = pneg %p1729_p11  ;;  %s1385_s28 = scalar_lea.hbm %s2100_s0, 1536 }
  0x4c   : > { %p1386_p13 = scmp.lt.u32.totalorder %s1736_s13, %s2100_s0  ;;  %p1387_p6 = scmp.lt.u32.totalorder %s1385_s28, %s1380_s30 }
  0x4d   : > { %p1383_p1 = pnand %p1382_p0, %p1381_p12  ;;  %p1389_p3 = scmp.lt.u32.totalorder %s1380_s30, %s1736_s13 }
  0x4e   : > { %p1388_p10 = por %p1387_p6, %p1386_p13 }
  0x4f   : > { %p1384_p2 = pneg %p1383_p1 }
  0x50   : > { %p1390_p7 = por %p1389_p3, %p1388_p10 }
  0x52   : > { %p1391_p9 = pnand %p1390_p7, %p1384_p2 }
  0x54   : > { %1394 = shalt.err (!%p1391_p9)
}
  0x55   : > { %s1395_s9 = scalar_lea.vmem %s1738_s17, 768  ;;  %s1546_s10 = smov [#allocation2]  }
  0x56   : > { %p1396_p12 = scmp.ne.s32.totalorder %s1738_s17, %s1395_s9  ;;  %s1400_s14 = sshll.u32 %s1546_s10, 4  ;;  %s1401_s14 = int_to_ptr.vmem [resolvable:$false] %s1400_s14 }
  0x57   : > { %s1402_s23 = scalar_lea.vmem %s1401_s14, 1536  ;;  %p1403_p4 = scmp.lt.s32.totalorder %s1738_s17, %s1401_s14 }
  0x58   : > { %p1398_p1 = pnand %p1396_p12, %p1382_p0  ;;  %p1404_p13 = scmp.lt.s32.totalorder %s1402_s23, %s1395_s9 }
  0x5a   : > { %p1399_p5 = pneg %p1398_p1  ;;  %p1405_p6 = por %p1404_p13, %p1403_p4 }
  0x5c   : > { %p1406_p10 = pnand %p1405_p6, %p1399_p5 }
  0x5e   : > { %1409 = shalt.err (!%p1406_p10)
}
  0x5f   : > { %s2118_s15 = smov 192   ;;  %237 = sbr.rel (%p1635_p8) target bundleno = 741 (0x2e5), region = 32 }
  0x60   : > { %1242 = dma.hbm_to_vmem [thread:$0]  (!%p1729_p11), %s1736_s13, 768, %s1738_s17, %s1740_s29, %s2118_s15, %s2118_s15, %s1545_s16  }
  0x61   : > { %s1774_s30 = sand.u32 (!%p1635_p8), 1, %s1532_s19   ;;  %p2119_p4 = scmp.ne.s32.totalorder (!%p1635_p8), %s2111_s24, 0 }
  0x62   : > { %s1214_s6 = smul.u32 (!%p1635_p8), 48, %s1774_s30  ;;  %s240_s12 = scalar_lea.sflag (!%p1635_p8), [#allocation3], %s1774_s30 }
  0x64   : > { %s243_s11 = scalar_lea.vmem (!%p1635_p8), [#allocation2], %s1214_s6 }
  0x66   : > { %1511 = dma.done.wait (%p2119_p4), %s240_s12, 768  }
  0x67   : > { %1513 = vsyncadd (%p2119_p4), %s240_s12, 4294966528  ;;  %p2120_p5 = scmp.eq.s32.totalorder %s1614_s22, 0 }
  0x69   : > { %1515 = dma.done.wait (%p2120_p5), [#allocation6], 816   ;;  %p2121_p8 = pmov %p2120_p5 }
  0x6a   : > { %v1788_v0 = vld [vmem:[%s243_s11 + $0x4] ss:$12 sps:$4 sm:$0xff]   ;;  %v1790_v1 = vld [vmem:[%s243_s11] ss:$12 sps:$4 sm:$0xff]   ;;  %s1547_s26 = smov 127   ;;  %s1548_s24 = smov 126  }
  0x6b   : > { %1517 = vsyncadd (%p2121_p8), [#allocation6], 4294966480  ;;  %331 = vrot.lane.b32.xlu0 %v1788_v0, %s1547_s26  ;;  %v1793_v2 = vld [vmem:[%s243_s11 + $0x8] ss:$12 sps:$4 sm:$0xff]   ;;  %558 = vmatprep.subr.bf16.mxu0 %v1788_v0  ;;  %v1798_v4 = vld [vmem:[%s243_s11 + $0x20] ss:$12 sps:$4 sm:$0xff]  }
  0x6c   : > { %329 = vrot.lane.b32.xlu1 %v1790_v1, %s1547_s26  ;;  %v1312_v3 = vld [vmem:[%s243_s11 + $0x1c] ss:$12 sps:$4 sm:$0xff]   ;;  %559 = vmatpush1.bf16.msra.mxu0 %v1790_v1  ;;  %v1315_v5 = vld [vmem:[%s243_s11 + $0x18] ss:$12 sps:$4 sm:$0xff]   ;;  %s1549_s16 = smov 90   ;;  %v1550_v6 = vmov 0  }
  0x6d   : > { %560 = vmatprep.subr.bf16.mxu0 %v1312_v3  ;;  %643 = vmatprep.mubr.bf16.mxu1 %v1550_v6  ;;  %s1551_s13 = smov 110   ;;  %s1552_s17 = smov 109   ;;  %v1825_v7 = vld [vmem:[#allocation5 + $0x4] ss:$12 sps:$4 sm:$0xff]   ;;  %vm341_vm0 = vcmask 1039360   ;;  %vm364_vm1 = vcmask 1031168  }
  0x6e   : > { %s1553_s29 = smov 108   ;;  %s1554_s28 = smov 92   ;;  %590 = vmatprep.mubr.bf16.mxu0 %v1825_v7  ;;  %vm502_vm2 = vcmask 736256   ;;  %v1860_v38 = vld [vmem:[#allocation5 + $0x8] ss:$12 sps:$4 sm:$0xff]   ;;  %vm387_vm3 = vcmask 900096  }
  0x6f   : > { %333 = vrot.lane.b32.xlu0 %v1793_v2, %s1547_s26  ;;  %s1555_s9 = smov 91   ;;  %vm551_vm4 = vcmask 261120   ;;  %v1870_v45 = vld [vmem:[#allocation5 + $0x20] ss:$12 sps:$4 sm:$0xff]   ;;  %vm410_vm5 = vcmask 891904   ;;  %vm433_vm6 = vcmask 883712  }
  0x70   : > { %337 = vrot.lane.b32.xlu1 %v1312_v3, %s1547_s26  ;;  %561 = vmatpush1.bf16.msra.mxu0 %v1315_v5  ;;  %vm456_vm7 = vcmask 752640   ;;  %vm479_vm8 = vcmask 744448   ;;  %s1927_s10 = scalar_lea.vmem [#allocation8], %s1214_s6  ;;  %vm893_vm9 = vcmask 257024   ;;  %s1215_s23 = smul.u32 768, %s1614_s22 }
  0x71   : > { %s925_s14 = sshll.u32 %s1927_s10, 4  ;;  %s902_s11 = scalar_lea.sflag [#allocation4], %s1774_s30  ;;  %s1958_s14 = int_to_ptr.vmem [resolvable:$true] %s925_s14 }
  0x72   : > { %s1964_s12 = scalar_lea.hbm %s2103_s3, %s1215_s23  ;;  %p2122_p0 = scmp.ne.s32.totalorder %s2116_s7, 0 }
  0x73   : > { %339 = vrot.lane.b32.xlu0 %v1798_v4, %s1547_s26 }
  0x74   : > { %335 = vrot.lane.b32.xlu1 %v1315_v5, %s1547_s26  ;;  %s1410_s26 = scalar_lea.vmem %s1958_s14, 768 }
  0x75   : > { %p1411_p11 = scmp.ne.s32.totalorder %s1958_s14, %s1410_s26 }
  0x77   : > { %354 = vrot.lane.b32.xlu0 %v1788_v0, %s1548_s24  ;;  %p1412_p2 = pnand %p1411_p11, %p2122_p0 }
  0x78   : > { %356 = vrot.lane.b32.xlu1 %v1793_v2, %s1548_s24 }
  0x79   : > { %p1413_p3 = pneg %p1412_p2 }
  0x7b   : > { %352 = vrot.lane.b32.xlu0 %v1790_v1, %s1548_s24 }
  0x7c   : > { %492 = vrot.lane.b32.xlu1 %v1788_v0, %s1549_s16 }
  0x7f   : > { %494 = vrot.lane.b32.xlu0 %v1793_v2, %s1549_s16 }
  0x80   : > { %490 = vrot.lane.b32.xlu1 %v1790_v1, %s1549_s16 }
  0x83   : > { %360 = vrot.lane.b32.xlu0 %v1312_v3, %s1548_s24 }
  0x84   : > { %362 = vrot.lane.b32.xlu1 %v1798_v4, %s1548_s24 }
  0x87   : > { %358 = vrot.lane.b32.xlu0 %v1315_v5, %s1548_s24  ;;  %s1556_s24 = smov [#allocation8]  }
  0x88   : > { %498 = vrot.lane.b32.xlu1 %v1312_v3, %s1549_s16 }
  0x8b   : > { %500 = vrot.lane.b32.xlu0 %v1798_v4, %s1549_s16 }
  0x8c   : > { %496 = vrot.lane.b32.xlu1 %v1315_v5, %s1549_s16  ;;  %s1414_s16 = sshll.u32 %s1556_s24, 4  ;;  %s1415_s16 = int_to_ptr.vmem [resolvable:$false] %s1414_s16 }
  0x8d   : > { %p1417_p7 = scmp.lt.s32.totalorder %s1958_s14, %s1415_s16 }
  0x8f   : > { %377 = vrot.lane.b32.xlu0 %v1788_v0, %s1551_s13 }
  0x90   : > { %379 = vrot.lane.b32.xlu1 %v1793_v2, %s1551_s13 }
  0x93   : > { %375 = vrot.lane.b32.xlu0 %v1790_v1, %s1551_s13 }
  0x94   : > { %402 = vrot.lane.b32.xlu1 %v1793_v2, %s1552_s17 }
  0x97   : > { %383 = vrot.lane.b32.xlu0 %v1312_v3, %s1551_s13 }
  0x98   : > { %385 = vrot.lane.b32.xlu1 %v1798_v4, %s1551_s13 }
  0x9b   : > { %381 = vrot.lane.b32.xlu0 %v1315_v5, %s1551_s13  ;;  %s1416_s13 = scalar_lea.vmem %s1415_s16, 1536 }
  0x9c   : > { %408 = vrot.lane.b32.xlu1 %v1798_v4, %s1552_s17  ;;  %p1418_p9 = scmp.lt.s32.totalorder %s1416_s13, %s1410_s26 }
  0x9e   : > { %p1419_p12 = por %p1418_p9, %p1417_p7 }
  0x9f   : > { %400 = vrot.lane.b32.xlu0 %v1788_v0, %s1552_s17 }
  0xa0   : > { %398 = vrot.lane.b32.xlu1 %v1790_v1, %s1552_s17  ;;  %p1420_p1 = pnand %p1419_p12, %p1413_p3 }
  0xa3   : > { %425 = vrot.lane.b32.xlu0 %v1793_v2, %s1553_s29 }
  0xa4   : > { %406 = vrot.lane.b32.xlu1 %v1312_v3, %s1552_s17 }
  0xa7   : > { %404 = vrot.lane.b32.xlu0 %v1315_v5, %s1552_s17 }
  0xa8   : > { %431 = vrot.lane.b32.xlu1 %v1798_v4, %s1553_s29 }
  0xab   : > { %423 = vrot.lane.b32.xlu0 %v1788_v0, %s1553_s29 }
  0xac   : > { %421 = vrot.lane.b32.xlu1 %v1790_v1, %s1553_s29 }
  0xaf   : > { %448 = vrot.lane.b32.xlu0 %v1793_v2, %s1554_s28 }
  0xb0   : > { %429 = vrot.lane.b32.xlu1 %v1312_v3, %s1553_s29 }
  0xb3   : > { %427 = vrot.lane.b32.xlu0 %v1315_v5, %s1553_s29 }
  0xb4   : > { %454 = vrot.lane.b32.xlu1 %v1798_v4, %s1554_s28 }
  0xb7   : > { %446 = vrot.lane.b32.xlu0 %v1788_v0, %s1554_s28 }
  0xb8   : > { %444 = vrot.lane.b32.xlu1 %v1790_v1, %s1554_s28 }
  0xbb   : > { %471 = vrot.lane.b32.xlu0 %v1793_v2, %s1555_s9 }
  0xbc   : > { %452 = vrot.lane.b32.xlu1 %v1312_v3, %s1554_s28 }
  0xbf   : > { %450 = vrot.lane.b32.xlu0 %v1315_v5, %s1554_s28 }
  0xc0   : > { %477 = vrot.lane.b32.xlu1 %v1798_v4, %s1555_s9 }
  0xc3   : > { %469 = vrot.lane.b32.xlu0 %v1788_v0, %s1555_s9 }
  0xc4   : > { %467 = vrot.lane.b32.xlu1 %v1790_v1, %s1555_s9 }
  0xc7   : > { %475 = vrot.lane.b32.xlu0 %v1312_v3, %s1555_s9 }
  0xc8   : > { %473 = vrot.lane.b32.xlu1 %v1315_v5, %s1555_s9 }
  0xdd   : > { %v332_v8 = vpop.permute.xlu0 %331 }
  0xde   : > { %v330_v9 = vpop.permute.xlu1 %329 }
  0xdf   : > { %v342_v13 = vsel %vm341_vm0, %v330_v9, %v332_v8 }
  0xe1   : > { %v1834_v10 = vpop.permute.xlu0 %333 }
  0xe2   : > { %v338_v11 = vpop.permute.xlu1 %337  ;;  %v343_v12 = vsel %vm341_vm0, %v332_v8, %v1834_v10 }
  0xe3   : > { %562 = vmatprep.subr.bf16.mxu0 %v343_v12 }
  0xe4   : > { %563 = vmatpush1.bf16.msra.mxu0 %v342_v13 }
  0xe5   : > { %v1837_v14 = vpop.permute.xlu0 %339 }
  0xe6   : > { %v336_v15 = vpop.permute.xlu1 %335  ;;  %v345_v16 = vsel %vm341_vm0, %v338_v11, %v1837_v14 }
  0xe7   : > { %564 = vmatprep.subr.bf16.mxu0 %v345_v16  ;;  %v344_v17 = vsel %vm341_vm0, %v336_v15, %v338_v11 }
  0xe8   : > { %565 = vmatpush1.bf16.msra.mxu0 %v344_v17 }
  0xe9   : > { %v355_v18 = vpop.permute.xlu0 %354 }
  0xea   : > { %v1840_v19 = vpop.permute.xlu1 %356 }
  0xeb   : > { %v366_v20 = vsel %vm364_vm1, %v355_v18, %v1840_v19 }
  0xec   : > { %566 = vmatprep.subr.bf16.mxu0 %v366_v20  ;;  %v1321_v20 = vld [vmem:[#allocation5 + $0x1c] ss:$12 sps:$4 sm:$0xff]  }
  0xed   : > { %v353_v21 = vpop.permute.xlu0 %352 }
  0xee   : > { %v493_v22 = vpop.permute.xlu1 %492  ;;  %v365_v23 = vsel %vm364_vm1, %v353_v21, %v355_v18  ;;  %v1318_v18 = vld [vmem:[#allocation5] ss:$12 sps:$4 sm:$0xff]  }
  0xef   : > { %567 = vmatpush1.bf16.msra.mxu0 %v365_v23 }
  0xf1   : > { %v1845_v24 = vpop.permute.xlu0 %494 }
  0xf2   : > { %v491_v25 = vpop.permute.xlu1 %490  ;;  %v504_v26 = vsel %vm502_vm2, %v493_v22, %v1845_v24 }
  0xf3   : > { %611 = vmatprep.subr.bf16.mxu1 %v504_v26  ;;  %v503_v27 = vsel %vm502_vm2, %v491_v25, %v493_v22 }
  0xf4   : > { %612 = vmatpush1.bf16.msra.mxu1 %v503_v27 }
  0xf5   : > { %v361_v28 = vpop.permute.xlu0 %360 }
  0xf6   : > { %v1850_v29 = vpop.permute.xlu1 %362 }
  0xf7   : > { %v368_v30 = vsel %vm364_vm1, %v361_v28, %v1850_v29 }
  0xf8   : > { %568 = vmatprep.subr.bf16.mxu0 %v368_v30 }
  0xf9   : > { %v359_v31 = vpop.permute.xlu0 %358 }
  0xfa   : > { %v499_v32 = vpop.permute.xlu1 %498  ;;  %v367_v33 = vsel %vm364_vm1, %v359_v31, %v361_v28 }
  0xfb   : > { %569 = vmatpush1.bf16.msra.mxu0 %v367_v33 }
  0xfd   : > { %v1855_v34 = vpop.permute.xlu0 %500 }
  0xfe   : > { %v497_v35 = vpop.permute.xlu1 %496  ;;  %v506_v36 = vsel %vm502_vm2, %v499_v32, %v1855_v34 }
  0xff   : > { %613 = vmatprep.subr.bf16.mxu1 %v506_v36  ;;  %v505_v37 = vsel %vm502_vm2, %v497_v35, %v499_v32 }
 0x100   : > { %614 = vmatpush1.bf16.msra.mxu1 %v505_v37  ;;  %v764_v37 = vlaneseq }
 0x101   : > { %v378_v39 = vpop.permute.xlu0 %377 }
 0x102   : > { %v1862_v40 = vpop.permute.xlu1 %379 }
 0x103   : > { %v389_v41 = vsel %vm387_vm3, %v378_v39, %v1862_v40  ;;  %1133 = vmatmul.mubr.msk.bf16.vlgmr.msra.gmra.mrb[0].mxu1 %vm551_vm4, %v1860_v38 }
 0x104   : > { %570 = vmatprep.subr.bf16.mxu0 %v389_v41  ;;  %653 = vmatprep.mubr.bf16.mxu1 %v1550_v6 }
 0x105   : > { %v376_v42 = vpop.permute.xlu0 %375 }
 0x106   : > { %v403_v43 = vpop.permute.xlu1 %402  ;;  %v388_v44 = vsel %vm387_vm3, %v376_v42, %v378_v39  ;;  %v765_v39 = vshrl.u32 %v764_v37, 7 }
 0x107   : > { %1164 = vmatprep.subr.bf16.mxu1 %v403_v43  ;;  %571 = vmatpush1.bf16.msra.mxu0 %v388_v44 }
 0x108   : > { %1165 = vmatpush3.bf16.msra.mxu1 %v1793_v2  ;;  %v766_v44 = vsub.s32 0, %v765_v39 }
 0x109   : > { %v384_v46 = vpop.permute.xlu0 %383 }
 0x10a   : > { %v1873_v47 = vpop.permute.xlu1 %385 }
 0x10b   : > { %v391_v48 = vsel %vm387_vm3, %v384_v46, %v1873_v47  ;;  %1134 = vmatmul.mubr.msk.bf16.gmra.mrb[4].mxu1 %vm551_vm4, %v1870_v45 }
 0x10c   : > { %572 = vmatprep.subr.bf16.mxu0 %v391_v48  ;;  %696 = vmatprep.mubr.bf16.mxu1 %v1825_v7 }
 0x10d   : > { %v382_v49 = vpop.permute.xlu0 %381 }
 0x10e   : > { %v409_v50 = vpop.permute.xlu1 %408  ;;  %v390_v51 = vsel %vm387_vm3, %v382_v49, %v384_v46  ;;  %v762_v46 = vld [vmem:[#allocation7] sm:$0x7] }
 0x10f   : > { %1166 = vmatprep.subr.bf16.mxu1 %v409_v50  ;;  %573 = vmatpush1.bf16.msra.mxu0 %v390_v51  ;;  %v1918_v48 = vrot.slane %v762_v46, %v766_v44 }
 0x110   : > { %1167 = vmatpush3.bf16.msra.mxu1 %v1798_v4 }
 0x111   : > { %v401_v52 = vpop.permute.xlu0 %400 }
 0x112   : > { %v399_v53 = vpop.permute.xlu1 %398  ;;  %v412_v54 = vsel %vm410_vm5, %v401_v52, %v403_v43 }
 0x113   : > { %574 = vmatprep.subr.bf16.mxu0 %v412_v54  ;;  %v411_v55 = vsel %vm410_vm5, %v399_v53, %v401_v52 }
 0x114   : > { %575 = vmatpush1.bf16.msra.mxu0 %v411_v55 }
 0x115   : > { %v426_v56 = vpop.permute.xlu0 %425 }
 0x116   : > { %v407_v57 = vpop.permute.xlu1 %406  ;;  %1168 = vmatprep.subr.bf16.mxu1 %v426_v56 }
 0x117   : > { %v414_v58 = vsel %vm410_vm5, %v407_v57, %v409_v50  ;;  %1169 = vmatpush3.bf16.msra.mxu1 %v1834_v10 }
 0x118   : > { %576 = vmatprep.subr.bf16.mxu0 %v414_v58 }
 0x119   : > { %v405_v59 = vpop.permute.xlu0 %404 }
 0x11a   : > { %v432_v60 = vpop.permute.xlu1 %431  ;;  %v413_v61 = vsel %vm410_vm5, %v405_v59, %v407_v57 }
 0x11b   : > { %1170 = vmatprep.subr.bf16.mxu1 %v432_v60  ;;  %577 = vmatpush1.bf16.msra.mxu0 %v413_v61 }
 0x11c   : > { %1171 = vmatpush3.bf16.msra.mxu1 %v1837_v14 }
 0x11d   : > { %v424_v62 = vpop.permute.xlu0 %423 }
 0x11e   : > { %v422_v63 = vpop.permute.xlu1 %421  ;;  %v435_v0 = vsel %vm433_vm6, %v424_v62, %v426_v56 }
 0x11f   : > { %578 = vmatprep.subr.bf16.mxu0 %v435_v0  ;;  %v434_v1 = vsel %vm433_vm6, %v422_v63, %v424_v62  ;;  %v774_v63 = vsub.s32 2, %v765_v39 }
 0x120   : > { %579 = vmatpush1.bf16.msra.mxu0 %v434_v1 }
 0x121   : > { %v449_v2 = vpop.permute.xlu0 %448 }
 0x122   : > { %v430_v3 = vpop.permute.xlu1 %429  ;;  %1172 = vmatprep.subr.bf16.mxu1 %v449_v2 }
 0x123   : > { %v437_v4 = vsel %vm433_vm6, %v430_v3, %v432_v60  ;;  %1173 = vmatpush3.bf16.msra.mxu1 %v1840_v19 }
 0x124   : > { %580 = vmatprep.subr.bf16.mxu0 %v437_v4 }
 0x125   : > { %v428_v5 = vpop.permute.xlu0 %427 }
 0x126   : > { %v455_v6 = vpop.permute.xlu1 %454  ;;  %v436_v7 = vsel %vm433_vm6, %v428_v5, %v430_v3 }
 0x127   : > { %1174 = vmatprep.subr.bf16.mxu1 %v455_v6  ;;  %581 = vmatpush1.bf16.msra.mxu0 %v436_v7 }
 0x128   : > { %1175 = vmatpush3.bf16.msra.mxu1 %v1850_v29  ;;  %v1323_v29 = vld [vmem:[#allocation5 + $0x18] ss:$12 sps:$4 sm:$0xff]  }
 0x129   : > { %v447_v8 = vpop.permute.xlu0 %446 }
 0x12a   : > { %v445_v9 = vpop.permute.xlu1 %444  ;;  %v458_v10 = vsel %vm456_vm7, %v447_v8, %v449_v2 }
 0x12b   : > { %582 = vmatprep.subr.bf16.mxu0 %v458_v10  ;;  %v457_v11 = vsel %vm456_vm7, %v445_v9, %v447_v8 }
 0x12c   : > { %583 = vmatpush1.bf16.msra.mxu0 %v457_v11  ;;  %v775_v11 = vrot.slane %v762_v46, %v774_v63 }
 0x12d   : > { %v472_v12 = vpop.permute.xlu0 %471 }
 0x12e   : > { %v453_v13 = vpop.permute.xlu1 %452  ;;  %1176 = vmatprep.subr.bf16.mxu1 %v472_v12 }
 0x12f   : > { %v460_v14 = vsel %vm456_vm7, %v453_v13, %v455_v6  ;;  %1177 = vmatpush3.bf16.msra.mxu1 %v1862_v40 }
 0x130   : > { %584 = vmatprep.subr.bf16.mxu0 %v460_v14 }
 0x131   : > { %v451_v15 = vpop.permute.xlu0 %450 }
 0x132   : > { %v478_v16 = vpop.permute.xlu1 %477  ;;  %v459_v17 = vsel %vm456_vm7, %v451_v15, %v453_v13 }
 0x133   : > { %1178 = vmatprep.subr.bf16.mxu1 %v478_v16  ;;  %585 = vmatpush1.bf16.msra.mxu0 %v459_v17 }
 0x134   : > { %1179 = vmatpush3.bf16.msra.mxu1 %v1873_v47  ;;  %v770_v47 = vsub.s32 1, %v765_v39 }
 0x135   : > { %1196 = vmatprep.subr.bf16.mxu1 %v1845_v24  ;;  %v470_v19 = vpop.permute.xlu0 %469 }
 0x136   : > { %v468_v21 = vpop.permute.xlu1 %467  ;;  %v481_v22 = vsel %vm479_vm8, %v470_v19, %v472_v12  ;;  %v1920_v51 = vrot.slane %v762_v46, %v770_v47 }
 0x137   : > { %697 = vmatmul.mubr.bf16.vlgmr.msra.gmra.mrb[8].mxu1 %v1318_v18  ;;  %586 = vmatprep.subr.bf16.mxu0 %v481_v22  ;;  %v480_v23 = vsel %vm479_vm8, %v468_v21, %v470_v19 }
 0x138   : > { %1197 = vmatpush3.bf16.msra.mxu1 %v1845_v24  ;;  %587 = vmatpush1.bf16.msra.mxu0 %v480_v23 }
 0x139   : > { %1198 = vmatprep.subr.bf16.mxu1 %v1855_v34  ;;  %v476_v25 = vpop.permute.xlu0 %475  ;;  %704 = vmatprep.mubr.bf16.mxu1 %v1321_v20 }
 0x13a   : > { %v474_v26 = vpop.permute.xlu1 %473  ;;  %v483_v27 = vsel %vm479_vm8, %v476_v25, %v478_v16 }
 0x13b   : > { %588 = vmatprep.subr.bf16.mxu0 %v483_v27  ;;  %v482_v28 = vsel %vm479_vm8, %v474_v26, %v476_v25 }
 0x13c   : > { %1199 = vmatpush3.bf16.msra.mxu1 %v1855_v34  ;;  %589 = vmatpush1.bf16.msra.mxu0 %v482_v28 }
 0x13f   : > { %705 = vmatmul.mubr.bf16.gmra.mrb[12].mxu1 %v1323_v29  ;;  %591 = vmatmul.mubr.bf16.vlgmr.msra.gmra.mrb[0].mxu0 %v1318_v18 }
 0x140   : > { %1200 = vmatprep.mubr.msk.bf16.mxu1 %vm551_vm4, %v1860_v38  ;;  %600 = vmatprep.mubr.bf16.mxu0 %v1321_v20 }
 0x147   : > { %1201 = vmatmul.mubr.msk.bf16.vlgmr.msra.gmra.mrb[16].mxu1 %vm551_vm4, %v1870_v45  ;;  %601 = vmatmul.mubr.bf16.gmra.mrb[4].mxu0 %v1323_v29 }
 0x1d6   : > { %v645_v24 = vpop.f32.mrb[0].mxu1 }
 0x1d7   : > { %v647_v30 = vpop.f32.mrb[1].mxu1 }
 0x1d8   : > { %v649_v31 = vpop.f32.mrb[2].mxu1 }
 0x1d9   : > { %v651_v32 = vpop.f32.mrb[3].mxu1 }
 0x1de   : > { %v655_v33 = vpop.f32.mrb[4].mxu1 }
 0x1df   : > { %v657_v35 = vpop.f32.mrb[5].mxu1 }
 0x1e0   : > { %v1912_v36 = vpop.f32.mrb[6].mxu1 }
 0x1e1   : > { %v1914_v34 = vpop.f32.mrb[7].mxu1 }
 0x20a   : > { %v1180_v40 = vpop.f32.mrb[8].mxu1 }
 0x20b   : > { %v1181_v41 = vpop.f32.mrb[9].mxu1 }
 0x20c   : > { %v1182_v38 = vadd.f32 %v1181_v41, %v1180_v40  ;;  %v1183_v42 = vpop.f32.mrb[10].mxu1 }
 0x20d   : > { %v1184_v43 = vpop.f32.mrb[11].mxu1 }
 0x20e   : > { %v1916_v45 = vadd.f32 %v1184_v43, %v1183_v42 }
 0x212   : > { %v1186_v49 = vpop.f32.mrb[12].mxu1  ;;  %v592_v50 = vpop.f32.mrb[0].mxu0 }
 0x213   : > { %v646_v52 = vadd.f32 %v645_v24, %v592_v50  ;;  %v1187_v53 = vpop.f32.mrb[13].mxu1  ;;  %v594_v54 = vpop.f32.mrb[1].mxu0 }
 0x214   : > { %v1188_v55 = vadd.f32 %v1187_v53, %v1186_v49  ;;  %v648_v56 = vadd.f32 %v647_v30, %v594_v54  ;;  %v1189_v57 = vpop.f32.mrb[14].mxu1  ;;  %v596_v58 = vpop.f32.mrb[2].mxu0 }
 0x215   : > { %v779_v59 = vmul.f32 %v1918_v48, %v646_v52  ;;  %v650_v60 = vadd.f32 %v649_v31, %v596_v58  ;;  %v1190_v61 = vpop.f32.mrb[15].mxu1  ;;  %v598_v62 = vpop.f32.mrb[3].mxu0 }
 0x216   : > { %v780_v0 = vmul.f32 %v1920_v51, %v648_v56  ;;  %v1154_v1 = vpack.c.bf16 %v648_v56, %v646_v52  ;;  %v1191_v2 = vadd.f32 %v1190_v61, %v1189_v57  ;;  %v652_v3 = vadd.f32 %v651_v32, %v598_v62 }
 0x217   : > { %v816_v4 = vmul.f32 %v779_v59, %v779_v59  ;;  %v782_v5 = vmul.f32 %v1918_v48, %v650_v60 }
 0x218   : > { %v817_v6 = vmul.f32 %v780_v0, %v780_v0  ;;  %892 = vst [vmem:[%s1927_s10] sm:$0xff] %v1154_v1  ;;  %v783_v7 = vmul.f32 %v1920_v51, %v652_v3  ;;  %v1156_v8 = vpack.c.bf16 %v652_v3, %v650_v60  ;;  %v791_v9 = vadd.f32 %v780_v0, %v779_v59 }
 0x219   : > { %v819_v10 = vmul.f32 %v782_v5, %v782_v5 }
 0x21a   : > { %v820_v12 = vmul.f32 %v783_v7, %v783_v7  ;;  %895 = vst [vmem:[%s1927_s10 + $0xc] sm:$0xff] %v1156_v8  ;;  %v1202_v13 = vpop.f32.mrb[16].mxu1  ;;  %v602_v14 = vpop.f32.mrb[4].mxu0  ;;  %v796_v15 = vadd.f32 %v783_v7, %v782_v5  ;;  %v828_v16 = vadd.f32 %v817_v6, %v816_v4 }
 0x21b   : > { %v756_v17 = vadd.f32 %v1202_v13, %v1188_v55  ;;  %v656_v18 = vadd.f32 %v655_v33, %v602_v14  ;;  %v747_v19 = vpop.f32.mrb[17].mxu1  ;;  %v604_v20 = vpop.f32.mrb[5].mxu0 }
 0x21c   : > { %v748_v21 = vadd.f32 %v1182_v38, %v747_v19  ;;  %v658_v22 = vadd.f32 %v657_v35, %v604_v20  ;;  %v1203_v23 = vpop.f32.mrb[18].mxu1  ;;  %v606_v25 = vpop.f32.mrb[6].mxu0  ;;  %v833_v26 = vadd.f32 %v820_v12, %v819_v10 }
 0x21d   : > { %v787_v27 = vmul.f32 %v775_v11, %v756_v17  ;;  %v1159_v28 = vpack.c.bf16 %v756_v17, %v756_v17  ;;  %v785_v29 = vmul.f32 %v1918_v48, %v656_v18  ;;  %v759_v24 = vadd.f32 %v1203_v23, %v1191_v2  ;;  %v750_v30 = vpop.f32.mrb[19].mxu1  ;;  %v608_v31 = vpop.f32.mrb[7].mxu0 }
 0x21e   : > { %v781_v32 = vmul.f32 %v775_v11, %v748_v21  ;;  %v1155_v33 = vpack.c.bf16 %v748_v21, %v748_v21  ;;  %v786_v37 = vmul.f32 %v1920_v51, %v658_v22  ;;  %v1158_v39 = vpack.c.bf16 %v658_v22, %v656_v18 }
 0x21f   : > { %898 = vst.msk [vmem:[%s1927_s10 + $0x20] sm:$0xf] %vm893_vm9, %v1159_v28  ;;  %v822_v35 = vmul.f32 %v785_v29, %v785_v29  ;;  %v790_v40 = vmul.f32 %v775_v11, %v759_v24  ;;  %v1161_v41 = vpack.c.bf16 %v759_v24, %v759_v24  ;;  %v660_v38 = vadd.f32 %v1912_v36, %v606_v25 }
 0x220   : > { %894 = vst.msk [vmem:[%s1927_s10 + $0x8] sm:$0xf] %vm893_vm9, %v1155_v33  ;;  %v823_v42 = vmul.f32 %v786_v37, %v786_v37  ;;  %897 = vst [vmem:[%s1927_s10 + $0x18] sm:$0xff] %v1158_v39  ;;  %v751_v43 = vadd.f32 %v1916_v45, %v750_v30  ;;  %v662_v44 = vadd.f32 %v1914_v34, %v608_v31  ;;  %v792_v46 = vsel %vm551_vm4, %v781_v32, 0.0 }
 0x221   : > { %900 = vst.msk [vmem:[%s1927_s10 + $0x2c] sm:$0xf] %vm893_vm9, %v1161_v41  ;;  %v788_v47 = vmul.f32 %v1918_v48, %v660_v38  ;;  %v793_v49 = vadd.f32 %v792_v46, %v791_v9  ;;  %v818_v50 = vmul.f32 %v781_v32, %v781_v32  ;;  %v801_v52 = vadd.f32 %v786_v37, %v785_v29 }
 0x222   : > { %v784_v36 = vmul.f32 %v775_v11, %v751_v43  ;;  %v1157_v53 = vpack.c.bf16 %v751_v43, %v751_v43  ;;  %v789_v54 = vmul.f32 %v1920_v51, %v662_v44  ;;  %v1160_v55 = vpack.c.bf16 %v662_v44, %v660_v38 }
 0x223   : > { %v825_v56 = vmul.f32 %v788_v47, %v788_v47  ;;  %794 = vadd.xlane.f32.xlu0 %v793_v49  ;;  %v829_v34 = vsel %vm551_vm4, %v818_v50, 0.0  ;;  %v802_v45 = vsel %vm551_vm4, %v787_v27, 0.0  ;;  %v824_v57 = vmul.f32 %v787_v27, %v787_v27 }
 0x224   : > { %896 = vst.msk [vmem:[%s1927_s10 + $0x14] sm:$0xf] %vm893_vm9, %v1157_v53  ;;  %v826_v58 = vmul.f32 %v789_v54, %v789_v54  ;;  %899 = vst [vmem:[%s1927_s10 + $0x24] sm:$0xff] %v1160_v55  ;;  %v797_v48 = vsel %vm551_vm4, %v784_v36, 0.0  ;;  %v821_v59 = vmul.f32 %v784_v36, %v784_v36  ;;  %v830_v60 = vadd.f32 %v829_v34, %v828_v16 }
 0x225   : > { %v798_v61 = vadd.f32 %v797_v48, %v796_v15  ;;  %v803_v62 = vadd.f32 %v802_v45, %v801_v52  ;;  %v838_v63 = vadd.f32 %v823_v42, %v822_v35  ;;  %v839_v0 = vsel %vm551_vm4, %v824_v57, 0.0 }
 0x226   : > { %v834_v51 = vsel %vm551_vm4, %v821_v59, 0.0  ;;  %v806_v1 = vadd.f32 %v789_v54, %v788_v47  ;;  %v827_v2 = vmul.f32 %v790_v40, %v790_v40  ;;  %v807_v5 = vsel %vm551_vm4, %v790_v40, 0.0 }
 0x227   : > { %799 = vadd.xlane.f32.xlu1 %v798_v61  ;;  %v835_v3 = vadd.f32 %v834_v51, %v833_v26  ;;  %v840_v4 = vadd.f32 %v839_v0, %v838_v63  ;;  %v843_v6 = vadd.f32 %v826_v58, %v825_v56 }
 0x228   : > { %v808_v7 = vadd.f32 %v807_v5, %v806_v1  ;;  %v844_v8 = vsel %vm551_vm4, %v827_v2, 0.0 }
 0x229   : > { %836 = vadd.xlane.f32.xlu0 %v835_v3  ;;  %v845_v9 = vadd.f32 %v844_v8, %v843_v6 }
 0x22b   : > { %831 = vadd.xlane.f32.xlu1 %v830_v60 }
 0x22d   : > { %804 = vadd.xlane.f32.xlu0 %v803_v62 }
 0x22f   : > { %841 = vadd.xlane.f32.xlu1 %v840_v4 }
 0x231   : > { %809 = vadd.xlane.f32.xlu0 %v808_v7 }
 0x235   : > { %846 = vadd.xlane.f32.xlu0 %v845_v9 }
 0x236   : > { %1423 = shalt.err (!%p1420_p1)
}
 0x237   : > { %s1424_s17 = scalar_lea.hbm %s1964_s12, 768  ;;  %s1428_s9 = scalar_lea.hbm %s2103_s3, 1536 }
 0x238   : > { %p1425_p13 = scmp.ne.s32.totalorder %s1964_s12, %s1424_s17  ;;  %p1429_p4 = scmp.lt.u32.totalorder %s1964_s12, %s2103_s3 }
 0x239   : > { %p1430_p5 = scmp.lt.u32.totalorder %s1428_s9, %s1424_s17  ;;  %p1432_p11 = scmp.lt.u32.totalorder %s1424_s17, %s1964_s12 }
 0x23a   : > { %p1426_p6 = pnand %p1425_p13, %p2122_p0 }
 0x23b   : > { %p1431_p8 = por %p1430_p5, %p1429_p4 }
 0x23c   : > { %p1427_p10 = pneg %p1426_p6 }
 0x23d   : > { %p1433_p2 = por %p1432_p11, %p1431_p8 }
 0x23f   : > { %p1434_p3 = pnand %p1433_p2, %p1427_p10 }
 0x241   : > { %1437 = shalt.err (!%p1434_p3)
}
 0x242   : > { %s1557_s15 = smov 192   ;;  %s1558_s6 = smov 12   ;;  %vm811_vm10 = vcmask 7168  }
 0x243   : > { %1226 = dma.vmem_to_hbm [thread:$0]  (%p2122_p0), %s1958_s14, 768, %s1964_s12, %s902_s11, %s1557_s15, %s1557_s15, %s1558_s6  }
 0x244   : > { %s1119_s26 = sshll.u32 %s1774_s30, 5  ;;  %s906_s30 = sand.u32 1, %s1614_s22  }
 0x245   : > { %s280_s24 = scalar_lea.vmem [#allocation9], %s1119_s26  ;;  %s1993_s16 = scalar_lea.vmem [#allocation11], %s1119_s26 }
 0x246   : > { %s941_s14 = sshll.u32 %s280_s24, 4  ;;  %s1162_s12 = sshll.u32 %s1614_s22, 9  ;;  %s2001_s14 = int_to_ptr.vmem [resolvable:$true] %s941_s14 }
 0x247   : > { %s2009_s17 = scalar_lea.hbm %s2104_s4, %s1162_s12  ;;  %s957_s29 = sshll.u32 %s1993_s16, 4  ;;  %s2044_s29 = int_to_ptr.vmem [resolvable:$true] %s957_s29 }
 0x248   : > { %s2015_s28 = scalar_lea.sflag [#allocation10], %s906_s30  ;;  %s1438_s9 = scalar_lea.vmem %s2001_s14, 512 }
 0x249   : > { %p1439_p7 = scmp.ne.s32.totalorder %s2001_s14, %s1438_s9  ;;  %s1559_s10 = smov [#allocation9]  }
 0x24a   : > { %s1442_s23 = sshll.u32 %s1559_s10, 4  ;;  %s1443_s23 = int_to_ptr.vmem [resolvable:$false] %s1442_s23 }
 0x24b   : > { %p1440_p9 = pnand %p1439_p7, %p2122_p0  ;;  %s1444_s15 = scalar_lea.vmem %s1443_s23, 1024 }
 0x24c   : > { %p1445_p1 = scmp.lt.s32.totalorder %s2001_s14, %s1443_s23  ;;  %p1446_p13 = scmp.lt.s32.totalorder %s1444_s15, %s1438_s9 }
 0x24d   : > { %p1441_p12 = pneg %p1440_p9 }
 0x24e   : > { %p1447_p6 = por %p1446_p13, %p1445_p1 }
 0x250   : > { %p1448_p10 = pnand %p1447_p6, %p1441_p12 }
 0x2b0   : > { %v795_v10 = vpop.xlane.xlu0 %794 }
 0x2b1   : > { %812 = vst.msk [vmem:[%s280_s24] sm:$0xff] %vm811_vm10, %v795_v10 }
 0x2b4   : > { %v800_v11 = vpop.xlane.xlu1 %799 }
 0x2b5   : > { %813 = vst.msk [vmem:[%s280_s24 + $0x8] sm:$0xff] %vm811_vm10, %v800_v11 }
 0x2b6   : > { %v837_v12 = vpop.xlane.xlu0 %836 }
 0x2b7   : > { %849 = vst.msk [vmem:[%s1993_s16 + $0x8] sm:$0xff] %vm811_vm10, %v837_v12 }
 0x2b8   : > { %v832_v13 = vpop.xlane.xlu1 %831 }
 0x2b9   : > { %848 = vst.msk [vmem:[%s1993_s16] sm:$0xff] %vm811_vm10, %v832_v13 }
 0x2ba   : > { %v805_v14 = vpop.xlane.xlu0 %804 }
 0x2bb   : > { %814 = vst.msk [vmem:[%s280_s24 + $0x10] sm:$0xff] %vm811_vm10, %v805_v14 }
 0x2bc   : > { %v842_v15 = vpop.xlane.xlu1 %841 }
 0x2bd   : > { %850 = vst.msk [vmem:[%s1993_s16 + $0x10] sm:$0xff] %vm811_vm10, %v842_v15 }
 0x2be   : > { %v810_v16 = vpop.xlane.xlu0 %809 }
 0x2bf   : > { %815 = vst.msk [vmem:[%s280_s24 + $0x18] sm:$0xff] %vm811_vm10, %v810_v16 }
 0x2c0   : > { %1451 = shalt.err (!%p1448_p10)
}
 0x2c1   : > { %s1452_s6 = scalar_lea.hbm %s2009_s17, 512  ;;  %s1456_s30 = scalar_lea.hbm %s2104_s4, 1024 }
 0x2c2   : > { %p1453_p4 = scmp.ne.s32.totalorder %s2009_s17, %s1452_s6  ;;  %p1457_p11 = scmp.lt.u32.totalorder %s2009_s17, %s2104_s4 }
 0x2c3   : > { %p1458_p2 = scmp.lt.u32.totalorder %s1456_s30, %s1452_s6  ;;  %p1460_p7 = scmp.lt.u32.totalorder %s1452_s6, %s2009_s17 }
 0x2c4   : > { %p1454_p5 = pnand %p1453_p4, %p2122_p0 }
 0x2c5   : > { %p1459_p3 = por %p1458_p2, %p1457_p11 }
 0x2c6   : > { %p1455_p8 = pneg %p1454_p5 }
 0x2c7   : > { %p1461_p9 = por %p1460_p7, %p1459_p3 }
 0x2c9   : > { %p1462_p12 = pnand %p1461_p9, %p1455_p8 }
 0x2cb   : > { %1465 = shalt.err (!%p1462_p12)
}
 0x2cc   : > { %s1560_s9 = smov 128   ;;  %s1561_s10 = smov 8   ;;  %v847_v17 = vpop.xlane.xlu0 %846 }
 0x2cd   : > { %1227 = dma.vmem_to_hbm [thread:$0]  (%p2122_p0), %s2001_s14, 512, %s2009_s17, %s2015_s28, %s1560_s9, %s1560_s9, %s1561_s10  }
 0x2ce   : > { %s2051_s6 = scalar_lea.hbm %s2105_s5, %s1162_s12  ;;  %851 = vst.msk [vmem:[%s1993_s16 + $0x18] sm:$0xff] %vm811_vm10, %v847_v17  ;;  %s1466_s26 = scalar_lea.vmem %s2044_s29, 512 }
 0x2cf   : > { %p1467_p1 = scmp.ne.s32.totalorder %s2044_s29, %s1466_s26  ;;  %s1562_s14 = smov [#allocation11]  }
 0x2d0   : > { %s1470_s17 = sshll.u32 %s1562_s14, 4  ;;  %s1471_s17 = int_to_ptr.vmem [resolvable:$false] %s1470_s17 }
 0x2d1   : > { %p1468_p13 = pnand %p1467_p1, %p2122_p0  ;;  %s1472_s22 = scalar_lea.vmem %s1471_s17, 1024 }
 0x2d2   : > { %p1473_p10 = scmp.lt.s32.totalorder %s2044_s29, %s1471_s17  ;;  %p1474_p4 = scmp.lt.s32.totalorder %s1472_s22, %s1466_s26 }
 0x2d3   : > { %p1469_p6 = pneg %p1468_p13 }
 0x2d4   : > { %p1475_p5 = por %p1474_p4, %p1473_p10 }
 0x2d6   : > { %p1476_p8 = pnand %p1475_p5, %p1469_p6 }
 0x2d8   : > { %1479 = shalt.err (!%p1476_p8)
}
 0x2d9   : > { %s1480_s16 = scalar_lea.hbm %s2051_s6, 512  ;;  %s1484_s30 = scalar_lea.hbm %s2105_s5, 1024 }
 0x2da   : > { %p1481_p11 = scmp.ne.s32.totalorder %s2051_s6, %s1480_s16  ;;  %p1485_p7 = scmp.lt.u32.totalorder %s2051_s6, %s2105_s5 }
 0x2db   : > { %p1486_p9 = scmp.lt.u32.totalorder %s1484_s30, %s1480_s16  ;;  %p1488_p1 = scmp.lt.u32.totalorder %s1480_s16, %s2051_s6 }
 0x2dc   : > { %p1482_p2 = pnand %p1481_p11, %p2122_p0 }
 0x2dd   : > { %p1487_p12 = por %p1486_p9, %p1485_p7 }
 0x2de   : > { %p1483_p3 = pneg %p1482_p2 }
 0x2df   : > { %p1489_p13 = por %p1488_p1, %p1487_p12 }
 0x2e1   : > { %p1490_p6 = pnand %p1489_p13, %p1483_p3 }
 0x2e3   : > { %1493 = shalt.err (!%p1490_p6)
}
 0x2e4   : > { %1228 = dma.vmem_to_hbm [thread:$0]  (%p2122_p0), %s2044_s29, 512, %s2051_s6, %s2015_s28, %s1560_s9, %s1560_s9, %s1561_s10  }
 0x2e5 PF: > { %s972_s23 = sand.u32 1, %s1528_s18   ;;  %p2123_p10 = scmp.ne.s32.totalorder %s2112_s25, 0 }
 0x2e6   : > { %p2124_p4 = scmp.ge.s32.totalorder %s1540_s21, 2  ;;  %s973_s15 = scalar_lea.sflag [#allocation4], %s972_s23 }
 0x2e8   : > { %p1244_p5 = pnand %p2124_p4, %p2123_p10 }
 0x2ea   : > { %1519 = dma.done.wait (!%p1244_p5), %s973_s15, 768  }
 0x2eb   : > { %1521 = vsyncadd (!%p1244_p5), %s973_s15, 4294966528  ;;  %s2125_s7 = sadd.s32 4294967294, %s1540_s21  }
 0x2ec   : > { %s981_s26 = sand.u32 1, %s2125_s7  }
 0x2ed   : > { %s982_s14 = scalar_lea.sflag [#allocation10], %s981_s26 }
 0x2ee   : > { %1523 = dma.done.wait (!%p1244_p5), %s982_s14, 1024  }
 0x2ef   : > { %1525 = vsyncadd (!%p1244_p5), %s982_s14, 4294966272  ;;  %p23_p0 = scmp.ge.s32.totalorder %s1709_s27, 4   ;;  %s2126_s18 = smov %s1532_s19 }
 0x2f0   : > { %s2127_s19 = smov %s1536_s20  ;;  %s2128_s20 = smov %s1725_s8 }
 0x2f1   : > { %s2129_s21 = smov %s1709_s27  ;;  %25 = sbr.rel (!%p23_p0) target bundleno = 8 (0x8), region = 117 }
 0x2f8   :  { %996 = vsyncpa [#allocation3], 1 }
 0x2f9   :  { %998 = vsyncpa [#allocation3 + $0x1], 1 }
 0x2fa   :  { %999 = vsyncpa [#allocation6], 1 }
 0x2fb   :  { %1000 = vsyncpa [#allocation4], 1 }
 0x2fc   :  { %1002 = vsyncpa [#allocation4 + $0x1], 1 }
 0x2fd   :  { %1003 = vsyncpa [#allocation10], 1 }
 0x2fe   :  { %1005 = vsyncpa [#allocation10 + $0x1], 1 }

// kernel: generative_chimney_forward.37
= control target key start
LH: loop header
LB: loop body
LE: loop exit
PB: predicated region body
PF: predicated region fallthrough
CT: control target
= control target key end

     0   :  { %8 = vsyncpa [#allocation3], 0  ;;  %s1059_s0 = inlined_call_operand.hbm [shape: bf16[2,32,288], index: 0, kind: input, shape index: {}]   ;;  %s1060_s1 = inlined_call_operand.hbm [shape: f32[32,1], index: 1, kind: input, shape index: {}]   ;;  %s1061_s2 = inlined_call_operand.hbm [shape: f32[32,1], index: 2, kind: input, shape index: {}]   ;;  %s1062_s3 = inlined_call_operand.hbm [shape: bf16[2,32,288], index: 3, kind: output, shape index: {}]  }
   0x1   :  { %10 = vsyncpa [#allocation3 + $0x1], 0 }
   0x2   :  { %11 = vsyncpa [#allocation6], 0 }
   0x3   :  { %12 = vsyncpa [#allocation4], 0 }
   0x4   :  { %14 = vsyncpa [#allocation4 + $0x1], 0  ;;  %s798_s12 = smov 0   ;;  %s800_s13 = smov 0  }
   0x5   :  { %s802_s14 = smov 0   ;;  %s804_s15 = smov 0  }
   0x6 LB: > { %s819_s16 = sadd.s32 4294967295, %s765_s15   ;;  %s501_s17 = sadd.s32 4294967294, %s765_s15   ;;  %s765_s15 = sphi %s804_s15, %s1082_s15   ;;  %s761_s14 = sphi %s802_s14, %s1081_s14   ;;  %s757_s13 = sphi %s800_s13, %s1080_s13   ;;  %s753_s12 = sphi %s798_s12, %s1079_s12  }
   0x7   : > { %p40_p0 = scmp.ne.s32.totalorder %s757_s13, %s753_s12  ;;  %p1063_p1 = scmp.eq.s32.totalorder %s819_s16, 0 }
   0x8   : > { %p112_p3 = scmp.eq.s32.totalorder %s501_s17, 1  ;;  %p502_p5 = scmp.ge.s32.totalorder %s765_s15, 1 }
   0x9   : > { %p828_p4 = por %p1063_p1, %p40_p0  ;;  %p119_p7 = scmp.lt.s32.totalorder %s765_s15, 3 }
   0xa   : > { %p833_p6 = por %p112_p3, %p40_p0  ;;  %s767_s21 = smov [#allocation5]  }
   0xb   : > { %s1066_s18 = scalar_select %p828_p4, 1, 0 }
   0xc   : > { %s1067_s19 = scalar_select %p833_p6, 1, 0 }
   0xd   : > { %p838_p8 = pnand %p502_p5, %p119_p7  ;;  %s131_s22 = sshll.u32 %s767_s21, 4  ;;  %s842_s22 = int_to_ptr.vmem [resolvable:$true] %s131_s22 }
   0xe   : > { %s768_s24 = smov [#allocation7]   ;;  %s609_s28 = scalar_lea.hbm %s1060_s1, 512 }
   0xf   : > { %p545_p9 = pneg %p838_p8  ;;  %s144_s25 = sshll.u32 %s768_s24, 4  ;;  %s853_s25 = int_to_ptr.vmem [resolvable:$true] %s144_s25 }
  0x10   : > { %p610_p12 = scmp.ne.s32.totalorder %s1060_s1, %s609_s28  ;;  %p616_p5 = scmp.lt.u32.totalorder %s609_s28, %s1060_s1 }
  0x11   : > { %p849_p11 = pnand %p545_p9, %p1063_p1 }
  0x13   : > { %p611_p13 = pneg %p849_p11 }
  0x15   : > { %p612_p0 = pnand %p611_p13, %p610_p12 }
  0x17   : > { %p613_p3 = pneg %p612_p0 }
  0x19   : > { %p618_p7 = pnand %p616_p5, %p613_p3 }
  0x1b   : > { %621 = shalt.err (!%p618_p7)
}
  0x1c   : > { %s622_s6 = scalar_lea.vmem %s842_s22, 512  ;;  %p630_p2 = scmp.lt.s32.totalorder %s842_s22, %s842_s22 }
  0x1d   : > { %p623_p9 = scmp.ne.s32.totalorder %s842_s22, %s622_s6  ;;  %p631_p12 = scmp.lt.s32.totalorder %s622_s6, %s622_s6 }
  0x1f   : > { %p625_p10 = pnand %p623_p9, %p611_p13  ;;  %p632_p0 = por %p631_p12, %p630_p2 }
  0x21   : > { %p626_p1 = pneg %p625_p10 }
  0x23   : > { %p633_p6 = pnand %p632_p0, %p626_p1 }
  0x25   : > { %636 = shalt.err (!%p633_p6)
}
  0x26   : > { %s769_s7 = smov 128   ;;  %s770_s8 = smov 8  }
  0x27   : > { %548 = dma.hbm_to_vmem [thread:$0]  (!%p849_p11), %s1060_s1, 512, %s842_s22, [#allocation6], %s769_s7, %s769_s7, %s770_s8  }
  0x28   : > { %s637_s21 = scalar_lea.hbm %s1061_s2, 512 }
  0x29   : > { %p638_p2 = scmp.ne.s32.totalorder %s1061_s2, %s637_s21  ;;  %p644_p10 = scmp.lt.u32.totalorder %s637_s21, %s1061_s2 }
  0x2b   : > { %p640_p1 = pnand %p638_p2, %p611_p13 }
  0x2d   : > { %p641_p6 = pneg %p640_p1 }
  0x2f   : > { %p646_p3 = pnand %p644_p10, %p641_p6 }
  0x31   : > { %649 = shalt.err (!%p646_p3)
}
  0x32   : > { %s650_s22 = scalar_lea.vmem %s853_s25, 512  ;;  %p658_p12 = scmp.lt.s32.totalorder %s853_s25, %s853_s25 }
  0x33   : > { %p651_p5 = scmp.ne.s32.totalorder %s853_s25, %s650_s22  ;;  %p659_p0 = scmp.lt.s32.totalorder %s650_s22, %s650_s22 }
  0x35   : > { %p653_p7 = pnand %p651_p5, %p611_p13  ;;  %p660_p2 = por %p659_p0, %p658_p12 }
  0x37   : > { %p654_p9 = pneg %p653_p7 }
  0x39   : > { %p661_p1 = pnand %p660_p2, %p654_p9 }
  0x3b   : > { %664 = shalt.err (!%p661_p1)
}
  0x3c   : > { %551 = dma.hbm_to_vmem [thread:$0]  (!%p849_p11), %s1061_s2, 512, %s853_s25, [#allocation6], %s769_s7, %s769_s7, %s770_s8  }
  0x3d   : > { %s908_s4 = sadd.s32 1, %s765_s15   ;;  %s27_s23 = sadd.s32 1, %s761_s14 }
  0x3e   : > { %s24_s5 = ssub.s32 %s765_s15, %s908_s4  ;;  %p34_p13 = scmp.ne.s32.totalorder %s761_s14, %s757_s13 }
  0x3f   : > { %p25_p6 = scmp.eq.s32.totalorder %s24_s5, 0  ;;  %p35_p10 = scmp.eq.s32.totalorder %s765_s15, 0 }
  0x40   : > { %p1070_p3 = scmp.eq.s32.totalorder %s819_s16, 1  ;;  %p562_p7 = scmp.lt.s32.totalorder %s765_s15, 2 }
  0x41   : > { %s924_s9 = scalar_select %p25_p6, %s761_s14, %s27_s23  }
  0x42   : > { %p918_p5 = por %p1070_p3, %p34_p13  ;;  %p36_p9 = por %p35_p10, %p34_p13 }
  0x43   : > { %s158_s10 = sand.u32 1, %s761_s14   ;;  %s530_s25 = smul.u32 768, %s765_s15 }
  0x44   : > { %s1071_s6 = scalar_select %p918_p5, 1, 0 }
  0x45   : > { %s529_s11 = smul.u32 48, %s158_s10  ;;  %p928_p11 = pnand %p562_p7, %p36_p9 }
  0x46   : > { %s935_s21 = scalar_lea.hbm %s1059_s0, %s530_s25  ;;  %s939_s27 = scalar_lea.sflag [#allocation3], %s158_s10 }
  0x47   : > { %s162_s24 = scalar_lea.vmem [#allocation2], %s529_s11  ;;  %s665_s28 = scalar_lea.hbm %s935_s21, 768 }
  0x48   : > { %s169_s26 = sshll.u32 %s162_s24, 4  ;;  %p666_p12 = scmp.ne.s32.totalorder %s935_s21, %s665_s28  ;;  %s937_s26 = int_to_ptr.vmem [resolvable:$true] %s169_s26 }
  0x49   : > { %p667_p0 = pneg %p928_p11  ;;  %s670_s30 = scalar_lea.hbm %s1059_s0, 1536 }
  0x4a   : > { %p671_p13 = scmp.lt.u32.totalorder %s935_s21, %s1059_s0  ;;  %p672_p6 = scmp.lt.u32.totalorder %s670_s30, %s665_s28 }
  0x4b   : > { %p668_p2 = pnand %p667_p0, %p666_p12  ;;  %p674_p3 = scmp.lt.u32.totalorder %s665_s28, %s935_s21 }
  0x4c   : > { %p673_p10 = por %p672_p6, %p671_p13 }
  0x4d   : > { %p669_p1 = pneg %p668_p2 }
  0x4e   : > { %p675_p7 = por %p674_p3, %p673_p10 }
  0x50   : > { %p676_p9 = pnand %p675_p7, %p669_p1 }
  0x52   : > { %679 = shalt.err (!%p676_p9)
}
  0x53   : > { %s680_s10 = scalar_lea.vmem %s937_s26, 768  ;;  %s771_s11 = smov [#allocation2]  }
  0x54   : > { %p681_p12 = scmp.ne.s32.totalorder %s937_s26, %s680_s10  ;;  %s685_s25 = sshll.u32 %s771_s11, 4  ;;  %s686_s25 = int_to_ptr.vmem [resolvable:$false] %s685_s25 }
  0x55   : > { %s687_s8 = scalar_lea.vmem %s686_s25, 1536  ;;  %p688_p4 = scmp.lt.s32.totalorder %s937_s26, %s686_s25 }
  0x56   : > { %p683_p2 = pnand %p681_p12, %p667_p0  ;;  %p689_p13 = scmp.lt.s32.totalorder %s687_s8, %s680_s10 }
  0x58   : > { %p684_p5 = pneg %p683_p2  ;;  %p690_p6 = por %p689_p13, %p688_p4 }
  0x5a   : > { %p691_p10 = pnand %p690_p6, %p684_p5 }
  0x5c   : > { %694 = shalt.err (!%p691_p10)
}
  0x5d   : > { %s772_s17 = smov 192   ;;  %s773_s24 = smov 12  }
  0x5e   : > { %555 = dma.hbm_to_vmem [thread:$0]  (!%p928_p11), %s935_s21, 768, %s937_s26, %s939_s27, %s772_s17, %s772_s17, %s773_s24  }
  0x5f   : > { %181 = sbr.rel (%p838_p8) target bundleno = 277 (0x115), region = 32  ;;  %s970_s28 = sand.u32 (!%p838_p8), 1, %s757_s13  }
  0x60   : > { %s531_s22 = smul.u32 (!%p838_p8), 48, %s970_s28  ;;  %s184_s29 = scalar_lea.sflag (!%p838_p8), [#allocation3], %s970_s28 }
  0x61   : > { %p1073_p4 = scmp.ne.s32.totalorder (!%p838_p8), %s1066_s18, 0 }
  0x62   : > { %s976_s30 = scalar_lea.vmem (!%p838_p8), [#allocation2], %s531_s22 }
  0x66   : > { %740 = dma.done.wait (%p1073_p4), %s184_s29, 768  }
  0x67   : > { %742 = vsyncadd (%p1073_p4), %s184_s29, 4294966528  ;;  %p1074_p5 = scmp.eq.s32.totalorder %s819_s16, 0 }
  0x69   : > { %744 = dma.done.wait (%p1074_p5), [#allocation6], 1024   ;;  %p1075_p8 = pmov %p1074_p5 }
  0x6a   : > { %v774_v0 = vmov 0   ;;  %v240_v1 = vld [vmem:[#allocation5 + $0x10] sm:$0xff]  ;;  %v238_v2 = vld [vmem:[#allocation5] sm:$0xff]  ;;  %v241_v3 = vld [vmem:[#allocation5 + $0x18] sm:$0xff]  ;;  %vm387_vm0 = vcmask 257024   ;;  %s994_s18 = scalar_lea.vmem [#allocation8], %s531_s22 }
  0x6b   : > { %746 = vsyncadd (%p1075_p8), [#allocation6], 4294966272  ;;  %608 = vset.pattern.permute.xlu1 %v774_v0  ;;  %607 = vset.pattern.permute.xlu0 %v774_v0  ;;  %v239_v4 = vld [vmem:[#allocation5 + $0x8] sm:$0xff]  ;;  %v274_v6 = vld [vmem:[#allocation7] sm:$0xff]  ;;  %s532_s20 = smul.u32 768, %s819_s16  ;;  %s409_s7 = sshll.u32 %s994_s18, 4  ;;  %s1012_s7 = int_to_ptr.vmem [resolvable:$true] %s409_s7 }
  0x6c   : > { %254 = vperm.xlu1 %608, %v240_v1   ;;  %244 = vperm.xlu0 %607, %v238_v2   ;;  %v275_v5 = vld [vmem:[#allocation7 + $0x8] sm:$0xff]  ;;  %v277_v7 = vld [vmem:[#allocation7 + $0x18] sm:$0xff]  ;;  %v276_v8 = vld [vmem:[#allocation7 + $0x10] sm:$0xff]  ;;  %s396_s27 = scalar_lea.sflag [#allocation4], %s970_s28  ;;  %s695_s23 = scalar_lea.vmem %s1012_s7, 768 }
  0x6d   : > { %v222_v9 = vld [vmem:[%s976_s30 + $0x18] sm:$0xff]  ;;  %v218_v12 = vld [vmem:[%s976_s30] sm:$0xff]  ;;  %v225_v13 = vld [vmem:[%s976_s30 + $0x14] ss:$24 sps:$4 sm:$0xff]   ;;  %s1010_s16 = scalar_lea.hbm %s1062_s3, %s532_s20  ;;  %p696_p11 = scmp.ne.s32.totalorder %s1012_s7, %s695_s23 }
  0x6e   : > { %v220_v14 = vld [vmem:[%s976_s30 + $0xc] sm:$0xff]  ;;  %v223_v15 = vld [vmem:[%s976_s30 + $0x8] ss:$24 sps:$4 sm:$0xff]   ;;  %v232_v17 = vunpack.c.l.bf16 %v222_v9  ;;  %v233_v18 = vunpack.c.h.bf16 %v222_v9  ;;  %v226_v19 = vunpack.c.l.bf16 %v218_v12  ;;  %v231_v22 = vunpack.c.l.bf16 %v225_v13  ;;  %p1076_p0 = scmp.ne.s32.totalorder %s1071_s6, 0  ;;  %s775_s5 = smov [#allocation8]  }
  0x6f   : > { %v224_v16 = vld [vmem:[%s976_s30 + $0x24] sm:$0xff]  ;;  %v229_v20 = vunpack.c.l.bf16 %v220_v14  ;;  %v230_v21 = vunpack.c.h.bf16 %v220_v14  ;;  %v234_v23 = vunpack.c.h.bf16 %v223_v15  ;;  %v227_v24 = vunpack.c.h.bf16 %v218_v12  ;;  %s699_s10 = sshll.u32 %s775_s5, 4  ;;  %s700_s10 = int_to_ptr.vmem [resolvable:$false] %s699_s10 }
  0x70   : > { %259 = vperm.xlu1 %608, %v241_v3   ;;  %249 = vperm.xlu0 %607, %v239_v4   ;;  %v228_v25 = vunpack.c.l.bf16 %v223_v15  ;;  %v235_v27 = vunpack.c.l.bf16 %v224_v16  ;;  %v236_v29 = vunpack.c.h.bf16 %v224_v16  ;;  %v237_v32 = vunpack.c.h.bf16 %v225_v13  ;;  %p697_p1 = pnand %p696_p11, %p1076_p0  ;;  %s701_s11 = scalar_lea.vmem %s700_s10, 1536 }
  0x71   : > { %p702_p7 = scmp.lt.s32.totalorder %s1012_s7, %s700_s10  ;;  %p703_p9 = scmp.lt.s32.totalorder %s701_s11, %s695_s23 }
  0x72   : > { %p698_p3 = pneg %p697_p1 }
  0x73   : > { %p704_p12 = por %p703_p9, %p702_p7 }
  0x74   : > { %285 = vperm.xlu1 %608, %v275_v5   ;;  %280 = vperm.xlu0 %607, %v274_v6  }
  0x75   : > { %p705_p2 = pnand %p704_p12, %p698_p3 }
  0x78   : > { %295 = vperm.xlu1 %608, %v277_v7   ;;  %290 = vperm.xlu0 %607, %v276_v8  }
  0xeb   : > { %v255_v10 = vpop.permute.xlu1 %254  ;;  %v245_v11 = vpop.permute.xlu0 %244 }
  0xec   : > { %v268_v30 = vmul.f32 %v255_v10, %v232_v17  ;;  %v269_v31 = vmul.f32 %v255_v10, %v233_v18  ;;  %v262_v33 = vmul.f32 %v245_v11, %v226_v19  ;;  %v270_v37 = vmul.f32 %v255_v10, %v234_v23 }
  0xed   : > { %v263_v38 = vmul.f32 %v245_v11, %v227_v24  ;;  %v264_v39 = vmul.f32 %v245_v11, %v228_v25 }
  0xef   : > { %v260_v26 = vpop.permute.xlu1 %259  ;;  %v250_v28 = vpop.permute.xlu0 %249 }
  0xf0   : > { %v265_v34 = vmul.f32 %v250_v28, %v229_v20  ;;  %v266_v35 = vmul.f32 %v250_v28, %v230_v21  ;;  %v267_v36 = vmul.f32 %v250_v28, %v231_v22  ;;  %v271_v40 = vmul.f32 %v260_v26, %v235_v27 }
  0xf1   : > { %v272_v47 = vmul.f32 %v260_v26, %v236_v29  ;;  %v273_v48 = vmul.f32 %v260_v26, %v237_v32 }
  0xf3   : > { %v286_v41 = vpop.permute.xlu1 %285  ;;  %v281_v42 = vpop.permute.xlu0 %280 }
  0xf4   : > { %v301_v43 = vadd.f32 %v286_v41, %v265_v34  ;;  %v302_v44 = vadd.f32 %v286_v41, %v266_v35  ;;  %v303_v45 = vadd.f32 %v286_v41, %v267_v36  ;;  %v298_v46 = vadd.f32 %v281_v42, %v262_v33 }
  0xf5   : > { %v299_v49 = vadd.f32 %v281_v42, %v263_v38  ;;  %v300_v50 = vadd.f32 %v281_v42, %v264_v39 }
  0xf6   : > { %vm313_vm1 = vcmp.ge.f32.partialorder %v301_v43, 0.0  ;;  %vm314_vm2 = vcmp.ge.f32.partialorder %v302_v44, 0.0  ;;  %vm315_vm3 = vcmp.ge.f32.partialorder %v303_v45, 0.0  ;;  %v325_v51 = vmul.f32 0.01, %v301_v43 }
  0xf7   : > { %v326_v52 = vmul.f32 0.01, %v302_v44  ;;  %v327_v53 = vmul.f32 0.01, %v303_v45  ;;  %vm310_vm4 = vcmp.ge.f32.partialorder %v298_v46, 0.0  ;;  %vm311_vm5 = vcmp.ge.f32.partialorder %v299_v49, 0.0  ;;  %v296_v54 = vpop.permute.xlu1 %295  ;;  %v291_v62 = vpop.permute.xlu0 %290 }
  0xf8   : > { %v337_v55 = vsel %vm313_vm1, %v301_v43, %v325_v51  ;;  %vm312_vm6 = vcmp.ge.f32.partialorder %v300_v50, 0.0  ;;  %v322_v56 = vmul.f32 0.01, %v298_v46  ;;  %v323_v57 = vmul.f32 0.01, %v299_v49 }
  0xf9   : > { %v338_v58 = vsel %vm314_vm2, %v302_v44, %v326_v52  ;;  %v339_v59 = vsel %vm315_vm3, %v303_v45, %v327_v53  ;;  %v324_v60 = vmul.f32 0.01, %v300_v50  ;;  %v307_v61 = vadd.f32 %v296_v54, %v271_v40 }
  0xfa   : > { %v523_v63 = vpack.c.bf16 %v338_v58, %v337_v55  ;;  %v524_v0 = vpack.c.bf16 %v339_v59, %v339_v59  ;;  %v334_v1 = vsel %vm310_vm4, %v298_v46, %v322_v56  ;;  %v335_v2 = vsel %vm311_vm5, %v299_v49, %v323_v57 }
  0xfb   : > { %v336_v3 = vsel %vm312_vm6, %v300_v50, %v324_v60  ;;  %v521_v4 = vpack.c.bf16 %v335_v2, %v334_v1  ;;  %v308_v5 = vadd.f32 %v296_v54, %v272_v47  ;;  %v309_v6 = vadd.f32 %v296_v54, %v273_v48 }
  0xfc   : > { %389 = vst [vmem:[%s994_s18 + $0xc] sm:$0xff] %v523_v63  ;;  %390 = vst.msk [vmem:[%s994_s18 + $0x14] sm:$0xf] %vm387_vm0, %v524_v0  ;;  %v522_v7 = vpack.c.bf16 %v336_v3, %v336_v3  ;;  %vm319_vm7 = vcmp.ge.f32.partialorder %v307_v61, 0.0  ;;  %v331_v8 = vmul.f32 0.01, %v307_v61  ;;  %v304_v9 = vadd.f32 %v291_v62, %v268_v30 }
  0xfd   : > { %386 = vst [vmem:[%s994_s18] sm:$0xff] %v521_v4  ;;  %vm320_vm8 = vcmp.ge.f32.partialorder %v308_v5, 0.0  ;;  %vm321_vm9 = vcmp.ge.f32.partialorder %v309_v6, 0.0  ;;  %v332_v10 = vmul.f32 0.01, %v308_v5  ;;  %v333_v11 = vmul.f32 0.01, %v309_v6 }
  0xfe   : > { %388 = vst.msk [vmem:[%s994_s18 + $0x8] sm:$0xf] %vm387_vm0, %v522_v7  ;;  %v343_v12 = vsel %vm319_vm7, %v307_v61, %v331_v8  ;;  %v305_v13 = vadd.f32 %v291_v62, %v269_v31  ;;  %v306_v14 = vadd.f32 %v291_v62, %v270_v37  ;;  %vm316_vm10 = vcmp.ge.f32.partialorder %v304_v9, 0.0 }
  0xff   : > { %v344_v15 = vsel %vm320_vm8, %v308_v5, %v332_v10  ;;  %v345_v16 = vsel %vm321_vm9, %v309_v6, %v333_v11  ;;  %v328_v17 = vmul.f32 0.01, %v304_v9 }
 0x100   : > { %v527_v18 = vpack.c.bf16 %v344_v15, %v343_v12  ;;  %v528_v19 = vpack.c.bf16 %v345_v16, %v345_v16  ;;  %vm317_vm11 = vcmp.ge.f32.partialorder %v305_v13, 0.0  ;;  %vm318_vm12 = vcmp.ge.f32.partialorder %v306_v14, 0.0 }
 0x101   : > { %v329_v20 = vmul.f32 0.01, %v305_v13  ;;  %v330_v21 = vmul.f32 0.01, %v306_v14  ;;  %v340_v22 = vsel %vm316_vm10, %v304_v9, %v328_v17 }
 0x102   : > { %393 = vst [vmem:[%s994_s18 + $0x24] sm:$0xff] %v527_v18  ;;  %394 = vst.msk [vmem:[%s994_s18 + $0x2c] sm:$0xf] %vm387_vm0, %v528_v19 }
 0x103   : > { %v341_v23 = vsel %vm317_vm11, %v305_v13, %v329_v20  ;;  %v342_v24 = vsel %vm318_vm12, %v306_v14, %v330_v21 }
 0x104   : > { %v525_v25 = vpack.c.bf16 %v341_v23, %v340_v22  ;;  %v526_v26 = vpack.c.bf16 %v342_v24, %v342_v24 }
 0x106   : > { %391 = vst [vmem:[%s994_s18 + $0x18] sm:$0xff] %v525_v25  ;;  %392 = vst.msk [vmem:[%s994_s18 + $0x20] sm:$0xf] %vm387_vm0, %v526_v26 }
 0x107   : > { %708 = shalt.err (!%p705_p2)
}
 0x108   : > { %s709_s25 = scalar_lea.hbm %s1010_s16, 768  ;;  %s713_s24 = scalar_lea.hbm %s1062_s3, 1536 }
 0x109   : > { %p710_p13 = scmp.ne.s32.totalorder %s1010_s16, %s709_s25  ;;  %p714_p4 = scmp.lt.u32.totalorder %s1010_s16, %s1062_s3 }
 0x10a   : > { %p715_p5 = scmp.lt.u32.totalorder %s713_s24, %s709_s25  ;;  %p717_p11 = scmp.lt.u32.totalorder %s709_s25, %s1010_s16 }
 0x10b   : > { %p711_p6 = pnand %p710_p13, %p1076_p0 }
 0x10c   : > { %p716_p8 = por %p715_p5, %p714_p4 }
 0x10d   : > { %p712_p10 = pneg %p711_p6 }
 0x10e   : > { %p718_p1 = por %p717_p11, %p716_p8 }
 0x110   : > { %p719_p3 = pnand %p718_p1, %p712_p10 }
 0x112   : > { %722 = shalt.err (!%p719_p3)
}
 0x113   : > { %s776_s30 = smov 192   ;;  %s777_s18 = smov 12  }
 0x114   : > { %543 = dma.vmem_to_hbm [thread:$0]  (%p1076_p0), %s1012_s7, 768, %s1010_s16, %s396_s27, %s776_s30, %s776_s30, %s777_s18  }
 0x115 PF: > { %s424_s20 = sand.u32 1, %s753_s12   ;;  %p1077_p7 = scmp.ne.s32.totalorder %s1067_s19, 0 }
 0x116   : > { %p1078_p9 = scmp.ge.s32.totalorder %s765_s15, 2  ;;  %s425_s21 = scalar_lea.sflag [#allocation4], %s424_s20 }
 0x118   : > { %p557_p12 = pnand %p1078_p9, %p1077_p7 }
 0x11a   : > { %748 = dma.done.wait (!%p557_p12), %s425_s21, 768  }
 0x11b   : > { %750 = vsyncadd (!%p557_p12), %s425_s21, 4294966528  ;;  %p17_p2 = scmp.ge.s32.totalorder %s908_s4, 4   ;;  %s1079_s12 = smov %s757_s13 }
 0x11c   : > { %s1080_s13 = smov %s761_s14  ;;  %s1081_s14 = smov %s924_s9 }
 0x11d   : > { %s1082_s15 = smov %s908_s4  ;;  %19 = sbr.rel (!%p17_p2) target bundleno = 6 (0x6), region = 85 }
 0x124   :  { %430 = vsyncpa [#allocation3], 1 }
 0x125   :  { %432 = vsyncpa [#allocation3 + $0x1], 1 }
 0x126   :  { %433 = vsyncpa [#allocation6], 1 }
 0x127   :  { %434 = vsyncpa [#allocation4], 1 }
 0x128   :  { %436 = vsyncpa [#allocation4 + $0x1], 1 }

// kernel: generative_chimney_forward.41
= control target key start
LH: loop header
LB: loop body
LE: loop exit
PB: predicated region body
PF: predicated region fallthrough
CT: control target
= control target key end

     0   :  { %8 = vsyncpa [#allocation3], 0  ;;  %s965_s0 = inlined_call_operand.hbm [shape: bf16[2,32,80], index: 0, kind: input, shape index: {}]   ;;  %s966_s1 = inlined_call_operand.hbm [shape: f32[32,1], index: 1, kind: input, shape index: {}]   ;;  %s967_s2 = inlined_call_operand.hbm [shape: f32[32,1], index: 2, kind: input, shape index: {}]   ;;  %s968_s3 = inlined_call_operand.hbm [shape: bf16[2,32,80], index: 3, kind: output, shape index: {}]  }
   0x1   :  { %10 = vsyncpa [#allocation3 + $0x1], 0 }
   0x2   :  { %11 = vsyncpa [#allocation6], 0 }
   0x3   :  { %12 = vsyncpa [#allocation4], 0 }
   0x4   :  { %14 = vsyncpa [#allocation4 + $0x1], 0  ;;  %s723_s12 = smov 0   ;;  %s725_s13 = smov 0  }
   0x5   :  { %s727_s14 = smov 0   ;;  %s729_s15 = smov 0  }
   0x6 LB: > { %s744_s16 = sadd.s32 4294967295, %s690_s15   ;;  %s421_s17 = sadd.s32 4294967294, %s690_s15   ;;  %s690_s15 = sphi %s729_s15, %s988_s15   ;;  %s686_s14 = sphi %s727_s14, %s987_s14   ;;  %s682_s13 = sphi %s725_s13, %s986_s13   ;;  %s678_s12 = sphi %s723_s12, %s985_s12  }
   0x7   : > { %p40_p0 = scmp.ne.s32.totalorder %s682_s13, %s678_s12  ;;  %p969_p1 = scmp.eq.s32.totalorder %s744_s16, 0 }
   0x8   : > { %p112_p3 = scmp.eq.s32.totalorder %s421_s17, 1  ;;  %p422_p5 = scmp.ge.s32.totalorder %s690_s15, 1 }
   0x9   : > { %p753_p4 = por %p969_p1, %p40_p0  ;;  %p119_p7 = scmp.lt.s32.totalorder %s690_s15, 3 }
   0xa   : > { %p758_p6 = por %p112_p3, %p40_p0  ;;  %s692_s21 = smov [#allocation5]  }
   0xb   : > { %s972_s18 = scalar_select %p753_p4, 1, 0 }
   0xc   : > { %s973_s19 = scalar_select %p758_p6, 1, 0 }
   0xd   : > { %p763_p8 = pnand %p422_p5, %p119_p7  ;;  %s131_s22 = sshll.u32 %s692_s21, 4  ;;  %s767_s22 = int_to_ptr.vmem [resolvable:$true] %s131_s22 }
   0xe   : > { %s693_s24 = smov [#allocation7]   ;;  %s534_s28 = scalar_lea.hbm %s966_s1, 512 }
   0xf   : > { %p470_p9 = pneg %p763_p8  ;;  %s144_s25 = sshll.u32 %s693_s24, 4  ;;  %s778_s25 = int_to_ptr.vmem [resolvable:$true] %s144_s25 }
  0x10   : > { %p535_p12 = scmp.ne.s32.totalorder %s966_s1, %s534_s28  ;;  %p541_p5 = scmp.lt.u32.totalorder %s534_s28, %s966_s1 }
  0x11   : > { %p774_p11 = pnand %p470_p9, %p969_p1 }
  0x13   : > { %p536_p13 = pneg %p774_p11 }
  0x15   : > { %p537_p0 = pnand %p536_p13, %p535_p12 }
  0x17   : > { %p538_p3 = pneg %p537_p0 }
  0x19   : > { %p543_p7 = pnand %p541_p5, %p538_p3 }
  0x1b   : > { %546 = shalt.err (!%p543_p7)
}
  0x1c   : > { %s547_s6 = scalar_lea.vmem %s767_s22, 512  ;;  %p555_p2 = scmp.lt.s32.totalorder %s767_s22, %s767_s22 }
  0x1d   : > { %p548_p9 = scmp.ne.s32.totalorder %s767_s22, %s547_s6  ;;  %p556_p12 = scmp.lt.s32.totalorder %s547_s6, %s547_s6 }
  0x1f   : > { %p550_p10 = pnand %p548_p9, %p536_p13  ;;  %p557_p0 = por %p556_p12, %p555_p2 }
  0x21   : > { %p551_p1 = pneg %p550_p10 }
  0x23   : > { %p558_p6 = pnand %p557_p0, %p551_p1 }
  0x25   : > { %561 = shalt.err (!%p558_p6)
}
  0x26   : > { %s694_s7 = smov 128   ;;  %s695_s8 = smov 8  }
  0x27   : > { %473 = dma.hbm_to_vmem [thread:$0]  (!%p774_p11), %s966_s1, 512, %s767_s22, [#allocation6], %s694_s7, %s694_s7, %s695_s8  }
  0x28   : > { %s562_s21 = scalar_lea.hbm %s967_s2, 512 }
  0x29   : > { %p563_p2 = scmp.ne.s32.totalorder %s967_s2, %s562_s21  ;;  %p569_p10 = scmp.lt.u32.totalorder %s562_s21, %s967_s2 }
  0x2b   : > { %p565_p1 = pnand %p563_p2, %p536_p13 }
  0x2d   : > { %p566_p6 = pneg %p565_p1 }
  0x2f   : > { %p571_p3 = pnand %p569_p10, %p566_p6 }
  0x31   : > { %574 = shalt.err (!%p571_p3)
}
  0x32   : > { %s575_s22 = scalar_lea.vmem %s778_s25, 512  ;;  %p583_p12 = scmp.lt.s32.totalorder %s778_s25, %s778_s25 }
  0x33   : > { %p576_p5 = scmp.ne.s32.totalorder %s778_s25, %s575_s22  ;;  %p584_p0 = scmp.lt.s32.totalorder %s575_s22, %s575_s22 }
  0x35   : > { %p578_p7 = pnand %p576_p5, %p536_p13  ;;  %p585_p2 = por %p584_p0, %p583_p12 }
  0x37   : > { %p579_p9 = pneg %p578_p7 }
  0x39   : > { %p586_p1 = pnand %p585_p2, %p579_p9 }
  0x3b   : > { %589 = shalt.err (!%p586_p1)
}
  0x3c   : > { %476 = dma.hbm_to_vmem [thread:$0]  (!%p774_p11), %s967_s2, 512, %s778_s25, [#allocation6], %s694_s7, %s694_s7, %s695_s8  }
  0x3d   : > { %s833_s4 = sadd.s32 1, %s690_s15   ;;  %s27_s23 = sadd.s32 1, %s686_s14 }
  0x3e   : > { %s24_s5 = ssub.s32 %s690_s15, %s833_s4  ;;  %p34_p13 = scmp.ne.s32.totalorder %s686_s14, %s682_s13 }
  0x3f   : > { %p25_p6 = scmp.eq.s32.totalorder %s24_s5, 0  ;;  %p35_p10 = scmp.eq.s32.totalorder %s690_s15, 0 }
  0x40   : > { %p976_p3 = scmp.eq.s32.totalorder %s744_s16, 1  ;;  %p487_p7 = scmp.lt.s32.totalorder %s690_s15, 2 }
  0x41   : > { %s849_s9 = scalar_select %p25_p6, %s686_s14, %s27_s23  }
  0x42   : > { %p843_p5 = por %p976_p3, %p34_p13  ;;  %p36_p9 = por %p35_p10, %p34_p13 }
  0x43   : > { %s158_s10 = sand.u32 1, %s686_s14   ;;  %s443_s25 = sshll.u32 %s690_s15, 8 }
  0x44   : > { %s977_s6 = scalar_select %p843_p5, 1, 0 }
  0x45   : > { %s426_s11 = sshll.u32 %s158_s10, 4  ;;  %s856_s17 = scalar_lea.hbm %s965_s0, %s443_s25 }
  0x46   : > { %s162_s21 = scalar_lea.vmem [#allocation2], %s426_s11  ;;  %p860_p11 = pnand %p487_p7, %p36_p9 }
  0x47   : > { %s169_s24 = sshll.u32 %s162_s21, 4  ;;  %s864_s27 = scalar_lea.sflag [#allocation3], %s158_s10  ;;  %s858_s24 = int_to_ptr.vmem [resolvable:$true] %s169_s24 }
  0x48   : > { %s590_s28 = scalar_lea.hbm %s856_s17, 256  ;;  %p592_p0 = pneg %p860_p11 }
  0x49   : > { %p591_p12 = scmp.ne.s32.totalorder %s856_s17, %s590_s28  ;;  %s595_s30 = scalar_lea.hbm %s965_s0, 512 }
  0x4a   : > { %p596_p13 = scmp.lt.u32.totalorder %s856_s17, %s965_s0  ;;  %p597_p6 = scmp.lt.u32.totalorder %s595_s30, %s590_s28 }
  0x4b   : > { %p593_p2 = pnand %p592_p0, %p591_p12  ;;  %p599_p3 = scmp.lt.u32.totalorder %s590_s28, %s856_s17 }
  0x4c   : > { %p598_p10 = por %p597_p6, %p596_p13 }
  0x4d   : > { %p594_p1 = pneg %p593_p2 }
  0x4e   : > { %p600_p7 = por %p599_p3, %p598_p10 }
  0x50   : > { %p601_p9 = pnand %p600_p7, %p594_p1 }
  0x52   : > { %604 = shalt.err (!%p601_p9)
}
  0x53   : > { %s605_s10 = scalar_lea.vmem %s858_s24, 256  ;;  %s696_s11 = smov [#allocation2]  }
  0x54   : > { %p606_p12 = scmp.ne.s32.totalorder %s858_s24, %s605_s10  ;;  %s610_s25 = sshll.u32 %s696_s11, 4  ;;  %s611_s25 = int_to_ptr.vmem [resolvable:$false] %s610_s25 }
  0x55   : > { %s612_s7 = scalar_lea.vmem %s611_s25, 512  ;;  %p613_p4 = scmp.lt.s32.totalorder %s858_s24, %s611_s25 }
  0x56   : > { %p608_p2 = pnand %p606_p12, %p592_p0  ;;  %p614_p13 = scmp.lt.s32.totalorder %s612_s7, %s605_s10 }
  0x58   : > { %p609_p5 = pneg %p608_p2  ;;  %p615_p6 = por %p614_p13, %p613_p4 }
  0x5a   : > { %p616_p10 = pnand %p615_p6, %p609_p5 }
  0x5c   : > { %619 = shalt.err (!%p616_p10)
}
  0x5d   : > { %s697_s8 = smov 64   ;;  %s698_s21 = smov 4  }
  0x5e   : > { %480 = dma.hbm_to_vmem [thread:$0]  (!%p860_p11), %s856_s17, 256, %s858_s24, %s864_s27, %s697_s8, %s697_s8, %s698_s21  }
  0x5f   : > { %181 = sbr.rel (%p763_p8) target bundleno = 270 (0x10e), region = 32  ;;  %s895_s28 = sand.u32 (!%p763_p8), 1, %s682_s13  }
  0x60   : > { %s430_s22 = sshll.u32 (!%p763_p8), %s895_s28, 4  ;;  %s184_s29 = scalar_lea.sflag (!%p763_p8), [#allocation3], %s895_s28 }
  0x61   : > { %s187_s30 = scalar_lea.vmem (!%p763_p8), [#allocation2], %s430_s22  ;;  %p979_p4 = scmp.ne.s32.totalorder (!%p763_p8), %s972_s18, 0 }
  0x66   : > { %665 = dma.done.wait (%p979_p4), %s184_s29, 256  }
  0x67   : > { %667 = vsyncadd (%p979_p4), %s184_s29, 4294967040  ;;  %p980_p5 = scmp.eq.s32.totalorder %s744_s16, 0 }
  0x69   : > { %669 = dma.done.wait (%p980_p5), [#allocation6], 1024   ;;  %p981_p8 = pmov %p980_p5 }
  0x6a   : > { %v699_v0 = vmov 0   ;;  %v228_v1 = vld [vmem:[#allocation5 + $0x10] sm:$0xff]  ;;  %v226_v2 = vld [vmem:[#allocation5] sm:$0xff]  ;;  %v229_v3 = vld [vmem:[#allocation5 + $0x18] sm:$0xff]  ;;  %vm310_vm2 = vcmask 650240   ;;  %s448_s18 = sshll.u32 %s744_s16, 8 }
  0x6b   : > { %671 = vsyncadd (%p981_p8), [#allocation6], 4294966272  ;;  %533 = vset.pattern.permute.xlu1 %v699_v0  ;;  %532 = vset.pattern.permute.xlu0 %v699_v0  ;;  %v227_v4 = vld [vmem:[#allocation5 + $0x8] sm:$0xff]  ;;  %v254_v6 = vld [vmem:[#allocation7] sm:$0xff]  ;;  %s217_s20 = scalar_lea.vmem [#allocation8], %s430_s22  ;;  %s917_s27 = scalar_lea.hbm %s968_s3, %s448_s18 }
  0x6c   : > { %242 = vperm.xlu1 %533, %v228_v1   ;;  %232 = vperm.xlu0 %532, %v226_v2   ;;  %v255_v5 = vld [vmem:[#allocation7 + $0x8] sm:$0xff]  ;;  %v257_v7 = vld [vmem:[#allocation7 + $0x18] sm:$0xff]  ;;  %v256_v8 = vld [vmem:[#allocation7 + $0x10] sm:$0xff]  ;;  %s329_s17 = sshll.u32 %s217_s20, 4  ;;  %s316_s16 = scalar_lea.sflag [#allocation4], %s895_s28  ;;  %s919_s17 = int_to_ptr.vmem [resolvable:$true] %s329_s17 }
  0x6d   : > { %v450_v11 = vld [vmem:[%s187_s30] sm:$0xff]   ;;  %v457_v12 = vld [vmem:[%s187_s30 + $0x8] sm:$0xff]   ;;  %s620_s23 = scalar_lea.vmem %s919_s17, 256  ;;  %p982_p0 = scmp.ne.s32.totalorder %s977_s6, 0 }
  0x6e   : > { %v451_v13 = vunpack.c.l.bf16 %v450_v11  ;;  %v452_v14 = vunpack.c.h.bf16 %v450_v11  ;;  %v455_v17 = vunpack.c.l.bf16 %v457_v12  ;;  %v456_v18 = vunpack.c.h.bf16 %v457_v12  ;;  %p621_p11 = scmp.ne.s32.totalorder %s919_s17, %s620_s23  ;;  %s700_s5 = smov [#allocation8]  }
  0x6f   : > { %s624_s10 = sshll.u32 %s700_s5, 4  ;;  %s625_s10 = int_to_ptr.vmem [resolvable:$false] %s624_s10 }
  0x70   : > { %247 = vperm.xlu1 %533, %v229_v3   ;;  %237 = vperm.xlu0 %532, %v227_v4   ;;  %p622_p1 = pnand %p621_p11, %p982_p0  ;;  %s626_s11 = scalar_lea.vmem %s625_s10, 512 }
  0x71   : > { %p627_p7 = scmp.lt.s32.totalorder %s919_s17, %s625_s10  ;;  %p628_p9 = scmp.lt.s32.totalorder %s626_s11, %s620_s23 }
  0x72   : > { %p623_p3 = pneg %p622_p1 }
  0x73   : > { %p629_p12 = por %p628_p9, %p627_p7 }
  0x74   : > { %265 = vperm.xlu1 %533, %v255_v5   ;;  %260 = vperm.xlu0 %532, %v254_v6  }
  0x75   : > { %p630_p2 = pnand %p629_p12, %p623_p3 }
  0x78   : > { %275 = vperm.xlu1 %533, %v257_v7   ;;  %270 = vperm.xlu0 %532, %v256_v8  }
  0xeb   : > { %v243_v9 = vpop.permute.xlu1 %242  ;;  %v233_v10 = vpop.permute.xlu0 %232 }
  0xec   : > { %v250_v19 = vmul.f32 %v451_v13, %v233_v10  ;;  %v252_v25 = vmul.f32 %v455_v17, %v243_v9 }
  0xef   : > { %v248_v15 = vpop.permute.xlu1 %247  ;;  %v238_v16 = vpop.permute.xlu0 %237 }
  0xf0   : > { %v251_v20 = vmul.f32 %v452_v14, %v238_v16  ;;  %v253_v26 = vmul.f32 %v456_v18, %v248_v15 }
  0xf3   : > { %v266_v21 = vpop.permute.xlu1 %265  ;;  %v261_v22 = vpop.permute.xlu0 %260 }
  0xf4   : > { %v279_v23 = vadd.f32 %v266_v21, %v251_v20  ;;  %v278_v24 = vadd.f32 %v261_v22, %v250_v19 }
  0xf6   : > { %vm283_vm0 = vcmp.ge.f32.partialorder %v279_v23, 0.0  ;;  %v287_v27 = vmul.f32 0.01, %v279_v23  ;;  %vm282_vm1 = vcmp.ge.f32.partialorder %v278_v24, 0.0  ;;  %v286_v28 = vmul.f32 0.01, %v278_v24 }
  0xf7   : > { %v276_v29 = vpop.permute.xlu1 %275  ;;  %v271_v30 = vpop.permute.xlu0 %270 }
  0xf8   : > { %v291_v31 = vsel %vm283_vm0, %v279_v23, %v287_v27  ;;  %v290_v32 = vsel %vm282_vm1, %v278_v24, %v286_v28  ;;  %v281_v33 = vadd.f32 %v276_v29, %v253_v26  ;;  %v280_v34 = vadd.f32 %v271_v30, %v252_v25 }
  0xf9   : > { %v445_v35 = vpack.c.bf16 %v291_v31, %v291_v31  ;;  %v444_v36 = vpack.c.bf16 %v290_v32, %v290_v32 }
  0xfa   : > { %vm285_vm3 = vcmp.ge.f32.partialorder %v281_v33, 0.0  ;;  %v289_v37 = vmul.f32 0.01, %v281_v33  ;;  %vm284_vm4 = vcmp.ge.f32.partialorder %v280_v34, 0.0  ;;  %v288_v38 = vmul.f32 0.01, %v280_v34 }
  0xfb   : > { %312 = vst.msk [vmem:[%s217_s20 + $0x4] sm:$0xf] %vm310_vm2, %v445_v35  ;;  %311 = vst.msk [vmem:[%s217_s20] sm:$0xf] %vm310_vm2, %v444_v36 }
  0xfc   : > { %v293_v39 = vsel %vm285_vm3, %v281_v33, %v289_v37  ;;  %v292_v40 = vsel %vm284_vm4, %v280_v34, %v288_v38 }
  0xfd   : > { %v447_v41 = vpack.c.bf16 %v293_v39, %v293_v39  ;;  %v446_v42 = vpack.c.bf16 %v292_v40, %v292_v40 }
  0xff   : > { %314 = vst.msk [vmem:[%s217_s20 + $0xc] sm:$0xf] %vm310_vm2, %v447_v41  ;;  %313 = vst.msk [vmem:[%s217_s20 + $0x8] sm:$0xf] %vm310_vm2, %v446_v42 }
 0x100   : > { %633 = shalt.err (!%p630_p2)
}
 0x101   : > { %s634_s25 = scalar_lea.hbm %s917_s27, 256  ;;  %s638_s21 = scalar_lea.hbm %s968_s3, 512 }
 0x102   : > { %p635_p13 = scmp.ne.s32.totalorder %s917_s27, %s634_s25  ;;  %p639_p4 = scmp.lt.u32.totalorder %s917_s27, %s968_s3 }
 0x103   : > { %p640_p5 = scmp.lt.u32.totalorder %s638_s21, %s634_s25  ;;  %p642_p11 = scmp.lt.u32.totalorder %s634_s25, %s917_s27 }
 0x104   : > { %p636_p6 = pnand %p635_p13, %p982_p0 }
 0x105   : > { %p641_p8 = por %p640_p5, %p639_p4 }
 0x106   : > { %p637_p10 = pneg %p636_p6 }
 0x107   : > { %p643_p1 = por %p642_p11, %p641_p8 }
 0x109   : > { %p644_p3 = pnand %p643_p1, %p637_p10 }
 0x10b   : > { %647 = shalt.err (!%p644_p3)
}
 0x10c   : > { %s701_s30 = smov 64   ;;  %s702_s18 = smov 4  }
 0x10d   : > { %468 = dma.vmem_to_hbm [thread:$0]  (%p982_p0), %s919_s17, 256, %s917_s27, %s316_s16, %s701_s30, %s701_s30, %s702_s18  }
 0x10e PF: > { %s344_s20 = sand.u32 1, %s678_s12   ;;  %p983_p7 = scmp.ne.s32.totalorder %s973_s19, 0 }
 0x10f   : > { %p984_p9 = scmp.ge.s32.totalorder %s690_s15, 2  ;;  %s345_s24 = scalar_lea.sflag [#allocation4], %s344_s20 }
 0x111   : > { %p482_p12 = pnand %p984_p9, %p983_p7 }
 0x113   : > { %673 = dma.done.wait (!%p482_p12), %s345_s24, 256  }
 0x114   : > { %675 = vsyncadd (!%p482_p12), %s345_s24, 4294967040  ;;  %p17_p2 = scmp.ge.s32.totalorder %s833_s4, 4   ;;  %s985_s12 = smov %s682_s13 }
 0x115   : > { %s986_s13 = smov %s686_s14  ;;  %s987_s14 = smov %s849_s9 }
 0x116   : > { %s988_s15 = smov %s833_s4  ;;  %19 = sbr.rel (!%p17_p2) target bundleno = 6 (0x6), region = 85 }
 0x11d   :  { %350 = vsyncpa [#allocation3], 1 }
 0x11e   :  { %352 = vsyncpa [#allocation3 + $0x1], 1 }
 0x11f   :  { %353 = vsyncpa [#allocation6], 1 }
 0x120   :  { %354 = vsyncpa [#allocation4], 1 }
 0x121   :  { %356 = vsyncpa [#allocation4 + $0x1], 1 }

// kernel: generative_chimney_forward.40
= control target key start
LH: loop header
LB: loop body
LE: loop exit
PB: predicated region body
PF: predicated region fallthrough
CT: control target
= control target key end

     0   :  { %11 = vsyncpa [#allocation3], 0  ;;  %s1591_s0 = inlined_call_operand.hbm [shape: bf16[2,32,128], index: 0, kind: input, shape index: {}]   ;;  %s1592_s1 = inlined_call_operand.hbm [shape: bf16[32,288], index: 1, kind: input, shape index: {}]   ;;  %s1593_s2 = inlined_call_operand.hbm [shape: f32[1,80], index: 2, kind: input, shape index: {}]   ;;  %s1594_s3 = inlined_call_operand.hbm [shape: bf16[2,32,80], index: 3, kind: output, shape index: {0}]   ;;  %s1595_s4 = inlined_call_operand.hbm [shape: f32[2,32,1], index: 4, kind: output, shape index: {1}]   ;;  %s1596_s5 = inlined_call_operand.hbm [shape: f32[2,32,1], index: 5, kind: output, shape index: {2}]  }
   0x1   :  { %13 = vsyncpa [#allocation3 + $0x1], 0 }
   0x2   :  { %14 = vsyncpa [#allocation6], 0 }
   0x3   :  { %15 = vsyncpa [#allocation4], 0 }
   0x4   :  { %17 = vsyncpa [#allocation4 + $0x1], 0 }
   0x5   :  { %18 = vsyncpa [#allocation10], 0 }
   0x6   :  { %20 = vsyncpa [#allocation10 + $0x1], 0  ;;  %s1237_s18 = smov 0   ;;  %s1239_s19 = smov 0  }
   0x7   :  { %s1241_s20 = smov 0   ;;  %s1243_s21 = smov 0  }
   0x8 LB: > { %s1258_s22 = sadd.s32 4294967295, %s1183_s21   ;;  %s775_s23 = sadd.s32 4294967294, %s1183_s21   ;;  %s1183_s21 = sphi %s1243_s21, %s1616_s21   ;;  %s1179_s20 = sphi %s1241_s20, %s1615_s20   ;;  %s1175_s19 = sphi %s1239_s19, %s1614_s19   ;;  %s1171_s18 = sphi %s1237_s18, %s1613_s18  }
   0x9   : > { %p46_p0 = scmp.ne.s32.totalorder %s1175_s19, %s1171_s18  ;;  %p1597_p1 = scmp.eq.s32.totalorder %s1258_s22, 0 }
   0xa   : > { %p118_p3 = scmp.eq.s32.totalorder %s775_s23, 1  ;;  %p776_p5 = scmp.ge.s32.totalorder %s1183_s21, 1 }
   0xb   : > { %p1269_p4 = por %p1597_p1, %p46_p0  ;;  %p177_p7 = scmp.lt.s32.totalorder %s1183_s21, 3 }
   0xc   : > { %p1274_p6 = por %p118_p3, %p46_p0  ;;  %s1185_s27 = smov [#allocation5]  }
   0xd   : > { %s1600_s24 = scalar_select %p1269_p4, 1, 0 }
   0xe   : > { %s1601_s25 = scalar_select %p1274_p6, 1, 0 }
   0xf   : > { %p1279_p8 = pnand %p776_p5, %p177_p7  ;;  %s189_s28 = sshll.u32 %s1185_s27, 4  ;;  %s1283_s28 = int_to_ptr.vmem [resolvable:$true] %s189_s28 }
  0x10   : > { %s1186_s30 = smov [#allocation7]   ;;  %s967_s9 = scalar_lea.hbm %s1592_s1, 768 }
  0x11   : > { %p880_p9 = pneg %p1279_p8  ;;  %s203_s6 = sshll.u32 %s1186_s30, 4  ;;  %s1294_s6 = int_to_ptr.vmem [resolvable:$true] %s203_s6 }
  0x12   : > { %p968_p12 = scmp.ne.s32.totalorder %s1592_s1, %s967_s9  ;;  %p974_p5 = scmp.lt.u32.totalorder %s967_s9, %s1592_s1 }
  0x13   : > { %p1290_p11 = pnand %p880_p9, %p1597_p1 }
  0x15   : > { %p969_p13 = pneg %p1290_p11 }
  0x17   : > { %p970_p0 = pnand %p969_p13, %p968_p12 }
  0x19   : > { %p971_p3 = pneg %p970_p0 }
  0x1b   : > { %p976_p7 = pnand %p974_p5, %p971_p3 }
  0x1d   : > { %979 = shalt.err (!%p976_p7)
}
  0x1e   : > { %s980_s14 = scalar_lea.vmem %s1283_s28, 768  ;;  %p988_p2 = scmp.lt.s32.totalorder %s1283_s28, %s1283_s28 }
  0x1f   : > { %p981_p9 = scmp.ne.s32.totalorder %s1283_s28, %s980_s14  ;;  %p989_p12 = scmp.lt.s32.totalorder %s980_s14, %s980_s14 }
  0x21   : > { %p983_p10 = pnand %p981_p9, %p969_p13  ;;  %p990_p0 = por %p989_p12, %p988_p2 }
  0x23   : > { %p984_p1 = pneg %p983_p10 }
  0x25   : > { %p991_p6 = pnand %p990_p0, %p984_p1 }
  0x27   : > { %994 = shalt.err (!%p991_p6)
}
  0x28   : > { %s1187_s15 = smov 192   ;;  %s1188_s16 = smov 12  }
  0x29   : > { %883 = dma.hbm_to_vmem [thread:$0]  (!%p1290_p11), %s1592_s1, 768, %s1283_s28, [#allocation6], %s1187_s15, %s1187_s15, %s1188_s16  }
  0x2a   : > { %s995_s8 = scalar_lea.hbm %s1593_s2, 16 }
  0x2b   : > { %p996_p2 = scmp.ne.s32.totalorder %s1593_s2, %s995_s8  ;;  %p1002_p10 = scmp.lt.u32.totalorder %s995_s8, %s1593_s2 }
  0x2d   : > { %p998_p1 = pnand %p996_p2, %p969_p13 }
  0x2f   : > { %p999_p6 = pneg %p998_p1 }
  0x31   : > { %p1004_p3 = pnand %p1002_p10, %p999_p6 }
  0x33   : > { %1007 = shalt.err (!%p1004_p3)
}
  0x34   : > { %s1008_s28 = scalar_lea.vmem %s1294_s6, 16  ;;  %s1015_s13 = scalar_lea.vmem %s1294_s6, 32 }
  0x35   : > { %p1009_p5 = scmp.ne.s32.totalorder %s1294_s6, %s1008_s28  ;;  %p1016_p12 = scmp.lt.s32.totalorder %s1294_s6, %s1294_s6 }
  0x36   : > { %p1017_p0 = scmp.lt.s32.totalorder %s1015_s13, %s1008_s28 }
  0x37   : > { %p1011_p7 = pnand %p1009_p5, %p969_p13 }
  0x38   : > { %p1018_p2 = por %p1017_p0, %p1016_p12 }
  0x39   : > { %p1012_p9 = pneg %p1011_p7 }
  0x3b   : > { %p1019_p1 = pnand %p1018_p2, %p1012_p9 }
  0x3d   : > { %1022 = shalt.err (!%p1019_p1)
}
  0x3e   : > { %886 = dma.hbm_to_vmem [thread:$0]  (!%p1290_p11), %s1593_s2, 16, %s1294_s6, [#allocation6]  }
  0x3f   : > { %s1350_s16 = sadd.s32 1, %s1183_s21   ;;  %s33_s29 = sadd.s32 1, %s1179_s20 }
  0x40   : > { %s30_s17 = ssub.s32 %s1183_s21, %s1350_s16  ;;  %p40_p13 = scmp.ne.s32.totalorder %s1179_s20, %s1175_s19 }
  0x41   : > { %p31_p6 = scmp.eq.s32.totalorder %s30_s17, 0  ;;  %p41_p10 = scmp.eq.s32.totalorder %s1183_s21, 0 }
  0x42   : > { %p1604_p3 = scmp.eq.s32.totalorder %s1258_s22, 1  ;;  %p903_p7 = scmp.lt.s32.totalorder %s1183_s21, 2 }
  0x43   : > { %s1366_s30 = scalar_select %p31_p6, %s1179_s20, %s33_s29  }
  0x44   : > { %p1360_p5 = por %p1604_p3, %p40_p13  ;;  %p42_p9 = por %p41_p10, %p40_p13 }
  0x45   : > { %s214_s7 = sand.u32 1, %s1179_s20   ;;  %s816_s6 = sshll.u32 %s1183_s21, 8 }
  0x46   : > { %s1605_s27 = scalar_select %p1360_p5, 1, 0 }
  0x47   : > { %s780_s8 = sshll.u32 %s214_s7, 4  ;;  %s1373_s11 = scalar_lea.hbm %s1591_s0, %s816_s6 }
  0x48   : > { %s218_s12 = scalar_lea.vmem [#allocation2], %s780_s8  ;;  %p1377_p11 = pnand %p903_p7, %p42_p9 }
  0x49   : > { %s225_s28 = sshll.u32 %s218_s12, 4  ;;  %s1381_s14 = scalar_lea.sflag [#allocation3], %s214_s7  ;;  %s1375_s28 = int_to_ptr.vmem [resolvable:$true] %s225_s28 }
  0x4a   : > { %s1023_s15 = scalar_lea.hbm %s1373_s11, 256  ;;  %p1025_p0 = pneg %p1377_p11 }
  0x4b   : > { %p1024_p12 = scmp.ne.s32.totalorder %s1373_s11, %s1023_s15  ;;  %s1028_s8 = scalar_lea.hbm %s1591_s0, 512 }
  0x4c   : > { %p1029_p13 = scmp.lt.u32.totalorder %s1373_s11, %s1591_s0  ;;  %p1030_p6 = scmp.lt.u32.totalorder %s1028_s8, %s1023_s15 }
  0x4d   : > { %p1026_p2 = pnand %p1025_p0, %p1024_p12  ;;  %p1032_p3 = scmp.lt.u32.totalorder %s1023_s15, %s1373_s11 }
  0x4e   : > { %p1031_p10 = por %p1030_p6, %p1029_p13 }
  0x4f   : > { %p1027_p1 = pneg %p1026_p2 }
  0x50   : > { %p1033_p7 = por %p1032_p3, %p1031_p10 }
  0x52   : > { %p1034_p9 = pnand %p1033_p7, %p1027_p1 }
  0x54   : > { %1037 = shalt.err (!%p1034_p9)
}
  0x55   : > { %s1038_s7 = scalar_lea.vmem %s1375_s28, 256  ;;  %s1189_s10 = smov [#allocation2]  }
  0x56   : > { %p1039_p12 = scmp.ne.s32.totalorder %s1375_s28, %s1038_s7  ;;  %s1043_s12 = sshll.u32 %s1189_s10, 4  ;;  %s1044_s12 = int_to_ptr.vmem [resolvable:$false] %s1043_s12 }
  0x57   : > { %s1045_s29 = scalar_lea.vmem %s1044_s12, 512  ;;  %p1046_p4 = scmp.lt.s32.totalorder %s1375_s28, %s1044_s12 }
  0x58   : > { %p1041_p2 = pnand %p1039_p12, %p1025_p0  ;;  %p1047_p13 = scmp.lt.s32.totalorder %s1045_s29, %s1038_s7 }
  0x5a   : > { %p1042_p5 = pneg %p1041_p2  ;;  %p1048_p6 = por %p1047_p13, %p1046_p4 }
  0x5c   : > { %p1049_p10 = pnand %p1048_p6, %p1042_p5 }
  0x5e   : > { %1052 = shalt.err (!%p1049_p10)
}
  0x5f   : > { %s1190_s15 = smov 64   ;;  %s1191_s17 = smov 4  }
  0x60   : > { %890 = dma.hbm_to_vmem [thread:$0]  (!%p1377_p11), %s1373_s11, 256, %s1375_s28, %s1381_s14, %s1190_s15, %s1190_s15, %s1191_s17  }
  0x61   : > { %237 = sbr.rel (%p1279_p8) target bundleno = 670 (0x29e), region = 32  ;;  %s1412_s8 = sand.u32 (!%p1279_p8), 1, %s1175_s19  }
  0x62   : > { %s784_s6 = sshll.u32 (!%p1279_p8), %s1412_s8, 4  ;;  %s240_s9 = scalar_lea.sflag (!%p1279_p8), [#allocation3], %s1412_s8 }
  0x63   : > { %s243_s7 = scalar_lea.vmem (!%p1279_p8), [#allocation2], %s784_s6  ;;  %p1607_p4 = scmp.ne.s32.totalorder (!%p1279_p8), %s1600_s24, 0 }
  0x68   : > { %1154 = dma.done.wait (%p1607_p4), %s240_s9, 256  }
  0x69   : > { %1156 = vsyncadd (%p1607_p4), %s240_s9, 4294967040  ;;  %p1608_p5 = scmp.eq.s32.totalorder %s1258_s22, 0 }
  0x6b   : > { %1158 = dma.done.wait (%p1608_p5), [#allocation6], 784   ;;  %p1609_p8 = pmov %p1608_p5 }
  0x6c   : > { %v957_v0 = vld [vmem:[%s243_s7] sm:$0xff]   ;;  %v958_v1 = vld [vmem:[%s243_s7 + $0x8] sm:$0xff]   ;;  %s1192_s26 = smov 117   ;;  %s1193_s11 = smov 116   ;;  %vm391_vm0 = vcmask 261120   ;;  %vm561_vm1 = vcmask 650240  }
  0x6d   : > { %1160 = vsyncadd (%p1609_p8), [#allocation6], 4294966512  ;;  %323 = vrot.lane.b32.xlu0 %v957_v0, %s1192_s26  ;;  %329 = vrot.lane.b32.xlu1 %v957_v0, %s1193_s11  ;;  %s1194_s28 = smov 127   ;;  %s1195_s13 = smov 108   ;;  %v961_v2 = vld [vmem:[#allocation5 + $0x4] ss:$12 sps:$4 sm:$0xff]  }
  0x6e   : > { %s1196_s24 = smov 126   ;;  %430 = vmatprep.mubr.bf16.mxu0 %v961_v2  ;;  %s1197_s14 = smov 107   ;;  %v962_v3 = vld [vmem:[#allocation5 + $0x8] ss:$12 sps:$4 sm:$0xff]   ;;  %v959_v20 = vld [vmem:[#allocation5] ss:$12 sps:$4 sm:$0xff]  }
  0x6f   : > { %s1198_s10 = smov 118   ;;  %860 = vmatprep.mubr.msk.bf16.mxu1 %vm391_vm0, %v962_v3  ;;  %s1199_s12 = smov 106   ;;  %v964_v21 = vld [vmem:[#allocation5 + $0x1c] ss:$12 sps:$4 sm:$0xff]   ;;  %v963_v22 = vld [vmem:[#allocation5 + $0x20] ss:$12 sps:$4 sm:$0xff]  }
  0x70   : > { %v966_v23 = vld [vmem:[#allocation5 + $0x18] ss:$12 sps:$4 sm:$0xff]   ;;  %v800_v32 = vld [vmem:[#allocation7] ss:$0 sm:$0xff]  ;;  %vm507_vm2 = vcmask 654336   ;;  %s1430_s29 = scalar_lea.vmem [#allocation8], %s784_s6 }
  0x71   : > { %325 = vrot.lane.b32.xlu0 %v958_v1, %s1192_s26  ;;  %305 = vrot.lane.b32.xlu1 %v957_v0, %s1194_s28  ;;  %s590_s15 = sshll.u32 %s1430_s29, 4  ;;  %s821_s17 = sshll.u32 %s1258_s22, 8  ;;  %s1449_s15 = int_to_ptr.vmem [resolvable:$true] %s590_s15 }
  0x72   : > { %s1455_s7 = scalar_lea.hbm %s1594_s3, %s821_s17  ;;  %s567_s26 = scalar_lea.sflag [#allocation4], %s1412_s8 }
  0x73   : > { %p1610_p0 = scmp.ne.s32.totalorder %s1605_s27, 0 }
  0x75   : > { %331 = vrot.lane.b32.xlu0 %v958_v1, %s1193_s11  ;;  %307 = vrot.lane.b32.xlu1 %v958_v1, %s1194_s28  ;;  %s1053_s11 = scalar_lea.vmem %s1449_s15, 256  ;;  %s1200_s28 = smov [#allocation8]  }
  0x76   : > { %p1054_p11 = scmp.ne.s32.totalorder %s1449_s15, %s1053_s11 }
  0x78   : > { %p1055_p1 = pnand %p1054_p11, %p1610_p0 }
  0x79   : > { %335 = vrot.lane.b32.xlu0 %v957_v0, %s1195_s13  ;;  %311 = vrot.lane.b32.xlu1 %v957_v0, %s1196_s24 }
  0x7a   : > { %p1056_p3 = pneg %p1055_p1 }
  0x7d   : > { %337 = vrot.lane.b32.xlu0 %v958_v1, %s1195_s13  ;;  %313 = vrot.lane.b32.xlu1 %v958_v1, %s1196_s24  ;;  %s1057_s13 = sshll.u32 %s1200_s28, 4  ;;  %s1058_s13 = int_to_ptr.vmem [resolvable:$false] %s1057_s13 }
  0x7e   : > { %s1059_s24 = scalar_lea.vmem %s1058_s13, 512  ;;  %p1060_p7 = scmp.lt.s32.totalorder %s1449_s15, %s1058_s13 }
  0x7f   : > { %p1061_p9 = scmp.lt.s32.totalorder %s1059_s24, %s1053_s11 }
  0x81   : > { %341 = vrot.lane.b32.xlu0 %v957_v0, %s1197_s14  ;;  %317 = vrot.lane.b32.xlu1 %v957_v0, %s1198_s10  ;;  %p1062_p12 = por %p1061_p9, %p1060_p7 }
  0x83   : > { %p1063_p2 = pnand %p1062_p12, %p1056_p3 }
  0x85   : > { %343 = vrot.lane.b32.xlu0 %v958_v1, %s1197_s14  ;;  %319 = vrot.lane.b32.xlu1 %v958_v1, %s1198_s10 }
  0x89   : > { %347 = vrot.lane.b32.xlu0 %v957_v0, %s1199_s12  ;;  %349 = vrot.lane.b32.xlu1 %v958_v1, %s1199_s12 }
  0xdf   : > { %v324_v4 = vpop.permute.xlu0 %323  ;;  %v330_v5 = vpop.permute.xlu1 %329 }
  0xe0   : > { %824 = vmatprep.subr.bf16.mxu0 %v324_v4 }
  0xe1   : > { %825 = vmatpush3.bf16.msra.mxu0 %v957_v0 }
  0xe3   : > { %v326_v6 = vpop.permute.xlu0 %325  ;;  %v306_v7 = vpop.permute.xlu1 %305 }
  0xe4   : > { %826 = vmatprep.subr.bf16.mxu0 %v326_v6 }
  0xe5   : > { %827 = vmatpush3.bf16.msra.mxu0 %v958_v1 }
  0xe6   : > { %828 = vmatprep.subr.bf16.mxu0 %v330_v5 }
  0xe7   : > { %v332_v8 = vpop.permute.xlu0 %331  ;;  %v308_v9 = vpop.permute.xlu1 %307 }
  0xe9   : > { %829 = vmatpush3.bf16.msra.mxu0 %v306_v7 }
  0xea   : > { %830 = vmatprep.subr.bf16.mxu0 %v332_v8 }
  0xeb   : > { %v336_v10 = vpop.permute.xlu0 %335  ;;  %v312_v11 = vpop.permute.xlu1 %311 }
  0xed   : > { %831 = vmatpush3.bf16.msra.mxu0 %v308_v9 }
  0xee   : > { %832 = vmatprep.subr.bf16.mxu0 %v336_v10 }
  0xef   : > { %v338_v12 = vpop.permute.xlu0 %337  ;;  %v314_v13 = vpop.permute.xlu1 %313 }
  0xf1   : > { %833 = vmatpush3.bf16.msra.mxu0 %v312_v11 }
  0xf2   : > { %834 = vmatprep.subr.bf16.mxu0 %v338_v12 }
  0xf3   : > { %v342_v14 = vpop.permute.xlu0 %341  ;;  %v318_v15 = vpop.permute.xlu1 %317 }
  0xf5   : > { %835 = vmatpush3.bf16.msra.mxu0 %v314_v13 }
  0xf6   : > { %836 = vmatprep.subr.bf16.mxu0 %v342_v14 }
  0xf7   : > { %v344_v16 = vpop.permute.xlu0 %343  ;;  %v320_v17 = vpop.permute.xlu1 %319 }
  0xf9   : > { %837 = vmatpush3.bf16.msra.mxu0 %v318_v15 }
  0xfa   : > { %838 = vmatprep.subr.bf16.mxu0 %v344_v16 }
  0xfb   : > { %v348_v18 = vpop.permute.xlu0 %347  ;;  %v350_v19 = vpop.permute.xlu1 %349 }
  0xfc   : > { %856 = vmatprep.subr.bf16.mxu1 %v348_v18 }
  0xfd   : > { %839 = vmatpush3.bf16.msra.mxu0 %v320_v17  ;;  %857 = vmatpush3.bf16.msra.mxu1 %v348_v18 }
  0xfe   : > { %858 = vmatprep.subr.bf16.mxu1 %v350_v19 }
 0x100   : > { %431 = vmatmul.mubr.bf16.vlgmr.msra.gmra.mrb[0].mxu0 %v959_v20 }
 0x101   : > { %859 = vmatpush3.bf16.msra.mxu1 %v350_v19  ;;  %438 = vmatprep.mubr.bf16.mxu0 %v964_v21 }
 0x104   : > { %861 = vmatmul.mubr.msk.bf16.vlgmr.msra.gmra.mrb[0].mxu1 %vm391_vm0, %v963_v22 }
 0x108   : > { %439 = vmatmul.mubr.bf16.gmra.mrb[4].mxu0 %v966_v23 }
 0x1d3   : > { %v840_v24 = vpop.f32.mrb[0].mxu0 }
 0x1d4   : > { %v841_v25 = vpop.f32.mrb[1].mxu0 }
 0x1d5   : > { %v842_v26 = vadd.f32 %v841_v25, %v840_v24  ;;  %v843_v27 = vpop.f32.mrb[2].mxu0 }
 0x1d6   : > { %v844_v28 = vpop.f32.mrb[3].mxu0 }
 0x1d7   : > { %v845_v29 = vadd.f32 %v844_v28, %v843_v27  ;;  %v862_v30 = vpop.f32.mrb[0].mxu1 }
 0x1d8   : > { %v481_v31 = vpop.f32.mrb[1].mxu1 }
 0x1d9   : > { %v482_v33 = vadd.f32 %v842_v26, %v481_v31  ;;  %v863_v34 = vpop.f32.mrb[2].mxu1 }
 0x1da   : > { %v484_v35 = vpop.f32.mrb[3].mxu1 }
 0x1db   : > { %v817_v36 = vpack.c.bf16 %v482_v33, %v482_v33  ;;  %v485_v37 = vadd.f32 %v845_v29, %v484_v35  ;;  %v846_v38 = vpop.f32.mrb[4].mxu0  ;;  %v503_v39 = vmul.f32 %v800_v32, %v482_v33 }
 0x1dc   : > { %v847_v40 = vpop.f32.mrb[5].mxu0 }
 0x1dd   : > { %562 = vst.msk [vmem:[%s1430_s29] sm:$0xf] %vm561_vm1, %v817_v36  ;;  %v818_v41 = vpack.c.bf16 %v485_v37, %v485_v37  ;;  %v848_v42 = vadd.f32 %v847_v40, %v846_v38  ;;  %v849_v43 = vpop.f32.mrb[6].mxu0  ;;  %v508_v44 = vsel %vm507_vm2, %v503_v39, 0.0  ;;  %v504_v45 = vmul.f32 %v800_v32, %v485_v37 }
 0x1de   : > { %v850_v46 = vpop.f32.mrb[7].mxu0  ;;  %509 = vadd.xlane.f32.xlu0 %v508_v44  ;;  %v525_v47 = vmul.f32 %v503_v39, %v503_v39 }
 0x1df   : > { %563 = vst.msk [vmem:[%s1430_s29 + $0x4] sm:$0xf] %vm561_vm1, %v818_v41  ;;  %v490_v48 = vadd.f32 %v862_v30, %v848_v42  ;;  %v851_v49 = vadd.f32 %v850_v46, %v849_v43  ;;  %v511_v50 = vsel %vm507_vm2, %v504_v45, 0.0  ;;  %v526_v51 = vmul.f32 %v504_v45, %v504_v45 }
 0x1e0   : > { %512 = vadd.xlane.f32.xlu1 %v511_v50  ;;  %v529_v57 = vsel %vm507_vm2, %v525_v47, 0.0 }
 0x1e1   : > { %v819_v52 = vpack.c.bf16 %v490_v48, %v490_v48  ;;  %v493_v53 = vadd.f32 %v863_v34, %v851_v49  ;;  %v532_v54 = vsel %vm507_vm2, %v526_v51, 0.0  ;;  %v505_v55 = vmul.f32 %v800_v32, %v490_v48 }
 0x1e2   : > { %533 = vadd.xlane.f32.xlu0 %v532_v54 }
 0x1e3   : > { %564 = vst.msk [vmem:[%s1430_s29 + $0x8] sm:$0xf] %vm561_vm1, %v819_v52  ;;  %v820_v56 = vpack.c.bf16 %v493_v53, %v493_v53  ;;  %v527_v58 = vmul.f32 %v505_v55, %v505_v55  ;;  %v514_v59 = vsel %vm507_vm2, %v505_v55, 0.0  ;;  %v506_v60 = vmul.f32 %v800_v32, %v493_v53 }
 0x1e4   : > { %530 = vadd.xlane.f32.xlu1 %v529_v57 }
 0x1e5   : > { %565 = vst.msk [vmem:[%s1430_s29 + $0xc] sm:$0xf] %vm561_vm1, %v820_v56  ;;  %v535_v61 = vsel %vm507_vm2, %v527_v58, 0.0  ;;  %v517_v62 = vsel %vm507_vm2, %v506_v60, 0.0  ;;  %v528_v63 = vmul.f32 %v506_v60, %v506_v60 }
 0x1e6   : > { %515 = vadd.xlane.f32.xlu0 %v514_v59 }
 0x1e7   : > { %v538_v0 = vsel %vm507_vm2, %v528_v63, 0.0 }
 0x1e8   : > { %536 = vadd.xlane.f32.xlu1 %v535_v61 }
 0x1ea   : > { %518 = vadd.xlane.f32.xlu0 %v517_v62 }
 0x1ee   : > { %539 = vadd.xlane.f32.xlu0 %v538_v0 }
 0x1ef   : > { %1066 = shalt.err (!%p1063_p2)
}
 0x1f0   : > { %s1067_s14 = scalar_lea.hbm %s1455_s7, 256  ;;  %s1071_s29 = scalar_lea.hbm %s1594_s3, 512 }
 0x1f1   : > { %p1068_p13 = scmp.ne.s32.totalorder %s1455_s7, %s1067_s14  ;;  %p1072_p4 = scmp.lt.u32.totalorder %s1455_s7, %s1594_s3 }
 0x1f2   : > { %p1073_p5 = scmp.lt.u32.totalorder %s1071_s29, %s1067_s14  ;;  %p1075_p11 = scmp.lt.u32.totalorder %s1067_s14, %s1455_s7 }
 0x1f3   : > { %p1069_p6 = pnand %p1068_p13, %p1610_p0 }
 0x1f4   : > { %p1074_p8 = por %p1073_p5, %p1072_p4 }
 0x1f5   : > { %p1070_p10 = pneg %p1069_p6 }
 0x1f6   : > { %p1076_p1 = por %p1075_p11, %p1074_p8 }
 0x1f8   : > { %p1077_p3 = pnand %p1076_p1, %p1070_p10 }
 0x1fa   : > { %1080 = shalt.err (!%p1077_p3)
}
 0x1fb   : > { %s1201_s9 = smov 64   ;;  %s1202_s11 = smov 4   ;;  %vm520_vm3 = vcmask 7168  }
 0x1fc   : > { %874 = dma.vmem_to_hbm [thread:$0]  (%p1610_p0), %s1449_s15, 256, %s1455_s7, %s567_s26, %s1201_s9, %s1201_s9, %s1202_s11  }
 0x1fd   : > { %s788_s28 = sshll.u32 %s1412_s8, 5  ;;  %s571_s8 = sand.u32 1, %s1258_s22  }
 0x1fe   : > { %s280_s13 = scalar_lea.vmem [#allocation9], %s788_s28  ;;  %s1484_s24 = scalar_lea.vmem [#allocation11], %s788_s28 }
 0x1ff   : > { %s606_s15 = sshll.u32 %s280_s13, 4  ;;  %s822_s7 = sshll.u32 %s1258_s22, 9  ;;  %s1492_s15 = int_to_ptr.vmem [resolvable:$true] %s606_s15 }
 0x200   : > { %s1500_s10 = scalar_lea.hbm %s1595_s4, %s822_s7  ;;  %s622_s12 = sshll.u32 %s1484_s24, 4  ;;  %s1535_s12 = int_to_ptr.vmem [resolvable:$true] %s622_s12 }
 0x201   : > { %s1506_s29 = scalar_lea.sflag [#allocation10], %s571_s8  ;;  %s1081_s17 = scalar_lea.vmem %s1492_s15, 512 }
 0x202   : > { %p1082_p7 = scmp.ne.s32.totalorder %s1492_s15, %s1081_s17  ;;  %s1203_s6 = smov [#allocation9]  }
 0x203   : > { %s1085_s9 = sshll.u32 %s1203_s6, 4  ;;  %s1086_s9 = int_to_ptr.vmem [resolvable:$false] %s1085_s9 }
 0x204   : > { %p1083_p9 = pnand %p1082_p7, %p1610_p0  ;;  %s1087_s11 = scalar_lea.vmem %s1086_s9, 1024 }
 0x205   : > { %p1088_p2 = scmp.lt.s32.totalorder %s1492_s15, %s1086_s9  ;;  %p1089_p13 = scmp.lt.s32.totalorder %s1087_s11, %s1081_s17 }
 0x206   : > { %p1084_p12 = pneg %p1083_p9 }
 0x207   : > { %p1090_p6 = por %p1089_p13, %p1088_p2 }
 0x209   : > { %p1091_p10 = pnand %p1090_p6, %p1084_p12 }
 0x26b   : > { %v510_v1 = vpop.xlane.xlu0 %509 }
 0x26c   : > { %521 = vst.msk [vmem:[%s280_s13] sm:$0xff] %vm520_vm3, %v510_v1 }
 0x26d   : > { %v513_v2 = vpop.xlane.xlu1 %512 }
 0x26e   : > { %522 = vst.msk [vmem:[%s280_s13 + $0x8] sm:$0xff] %vm520_vm3, %v513_v2 }
 0x26f   : > { %v534_v3 = vpop.xlane.xlu0 %533 }
 0x270   : > { %542 = vst.msk [vmem:[%s1484_s24 + $0x8] sm:$0xff] %vm520_vm3, %v534_v3 }
 0x271   : > { %v531_v4 = vpop.xlane.xlu1 %530 }
 0x272   : > { %541 = vst.msk [vmem:[%s1484_s24] sm:$0xff] %vm520_vm3, %v531_v4 }
 0x273   : > { %v516_v5 = vpop.xlane.xlu0 %515 }
 0x274   : > { %523 = vst.msk [vmem:[%s280_s13 + $0x10] sm:$0xff] %vm520_vm3, %v516_v5 }
 0x275   : > { %v537_v6 = vpop.xlane.xlu1 %536 }
 0x276   : > { %543 = vst.msk [vmem:[%s1484_s24 + $0x10] sm:$0xff] %vm520_vm3, %v537_v6 }
 0x277   : > { %v519_v7 = vpop.xlane.xlu0 %518 }
 0x278   : > { %524 = vst.msk [vmem:[%s280_s13 + $0x18] sm:$0xff] %vm520_vm3, %v519_v7 }
 0x279   : > { %1094 = shalt.err (!%p1091_p10)
}
 0x27a   : > { %s1095_s28 = scalar_lea.hbm %s1500_s10, 512  ;;  %s1099_s26 = scalar_lea.hbm %s1595_s4, 1024 }
 0x27b   : > { %p1096_p4 = scmp.ne.s32.totalorder %s1500_s10, %s1095_s28  ;;  %p1100_p11 = scmp.lt.u32.totalorder %s1500_s10, %s1595_s4 }
 0x27c   : > { %p1101_p1 = scmp.lt.u32.totalorder %s1099_s26, %s1095_s28  ;;  %p1103_p7 = scmp.lt.u32.totalorder %s1095_s28, %s1500_s10 }
 0x27d   : > { %p1097_p5 = pnand %p1096_p4, %p1610_p0 }
 0x27e   : > { %p1102_p3 = por %p1101_p1, %p1100_p11 }
 0x27f   : > { %p1098_p8 = pneg %p1097_p5 }
 0x280   : > { %p1104_p9 = por %p1103_p7, %p1102_p3 }
 0x282   : > { %p1105_p12 = pnand %p1104_p9, %p1098_p8 }
 0x284   : > { %1108 = shalt.err (!%p1105_p12)
}
 0x285   : > { %s1204_s17 = smov 128   ;;  %s1205_s9 = smov 8   ;;  %v540_v8 = vpop.xlane.xlu0 %539 }
 0x286   : > { %875 = dma.vmem_to_hbm [thread:$0]  (%p1610_p0), %s1492_s15, 512, %s1500_s10, %s1506_s29, %s1204_s17, %s1204_s17, %s1205_s9  }
 0x287   : > { %s1542_s13 = scalar_lea.hbm %s1596_s5, %s822_s7  ;;  %544 = vst.msk [vmem:[%s1484_s24 + $0x18] sm:$0xff] %vm520_vm3, %v540_v8  ;;  %s1109_s8 = scalar_lea.vmem %s1535_s12, 512 }
 0x288   : > { %p1110_p2 = scmp.ne.s32.totalorder %s1535_s12, %s1109_s8  ;;  %s1206_s15 = smov [#allocation11]  }
 0x289   : > { %s1113_s10 = sshll.u32 %s1206_s15, 4  ;;  %s1114_s10 = int_to_ptr.vmem [resolvable:$false] %s1113_s10 }
 0x28a   : > { %p1111_p13 = pnand %p1110_p2, %p1610_p0  ;;  %s1115_s22 = scalar_lea.vmem %s1114_s10, 1024 }
 0x28b   : > { %p1116_p10 = scmp.lt.s32.totalorder %s1535_s12, %s1114_s10  ;;  %p1117_p4 = scmp.lt.s32.totalorder %s1115_s22, %s1109_s8 }
 0x28c   : > { %p1112_p6 = pneg %p1111_p13 }
 0x28d   : > { %p1118_p5 = por %p1117_p4, %p1116_p10 }
 0x28f   : > { %p1119_p8 = pnand %p1118_p5, %p1112_p6 }
 0x291   : > { %1122 = shalt.err (!%p1119_p8)
}
 0x292   : > { %s1123_s24 = scalar_lea.hbm %s1542_s13, 512  ;;  %s1127_s14 = scalar_lea.hbm %s1596_s5, 1024 }
 0x293   : > { %p1124_p11 = scmp.ne.s32.totalorder %s1542_s13, %s1123_s24  ;;  %p1128_p7 = scmp.lt.u32.totalorder %s1542_s13, %s1596_s5 }
 0x294   : > { %p1129_p9 = scmp.lt.u32.totalorder %s1127_s14, %s1123_s24  ;;  %p1131_p2 = scmp.lt.u32.totalorder %s1123_s24, %s1542_s13 }
 0x295   : > { %p1125_p1 = pnand %p1124_p11, %p1610_p0 }
 0x296   : > { %p1130_p12 = por %p1129_p9, %p1128_p7 }
 0x297   : > { %p1126_p3 = pneg %p1125_p1 }
 0x298   : > { %p1132_p13 = por %p1131_p2, %p1130_p12 }
 0x29a   : > { %p1133_p6 = pnand %p1132_p13, %p1126_p3 }
 0x29c   : > { %1136 = shalt.err (!%p1133_p6)
}
 0x29d   : > { %876 = dma.vmem_to_hbm [thread:$0]  (%p1610_p0), %s1535_s12, 512, %s1542_s13, %s1506_s29, %s1204_s17, %s1204_s17, %s1205_s9  }
 0x29e PF: > { %s637_s28 = sand.u32 1, %s1171_s18   ;;  %p1611_p10 = scmp.ne.s32.totalorder %s1601_s25, 0 }
 0x29f   : > { %p1612_p4 = scmp.ge.s32.totalorder %s1183_s21, 2  ;;  %s638_s8 = scalar_lea.sflag [#allocation4], %s637_s28 }
 0x2a1   : > { %p892_p5 = pnand %p1612_p4, %p1611_p10 }
 0x2a3   : > { %1162 = dma.done.wait (!%p892_p5), %s638_s8, 256  }
 0x2a4   : > { %1164 = vsyncadd (!%p892_p5), %s638_s8, 4294967040  ;;  %s646_s27 = sand.u32 1, %s775_s23  }
 0x2a5   : > { %s647_s15 = scalar_lea.sflag [#allocation10], %s646_s27 }
 0x2a6   : > { %1166 = dma.done.wait (!%p892_p5), %s647_s15, 1024  }
 0x2a7   : > { %1168 = vsyncadd (!%p892_p5), %s647_s15, 4294966272  ;;  %p23_p0 = scmp.ge.s32.totalorder %s1350_s16, 4   ;;  %s1613_s18 = smov %s1175_s19 }
 0x2a8   : > { %s1614_s19 = smov %s1179_s20  ;;  %s1615_s20 = smov %s1366_s30 }
 0x2a9   : > { %s1616_s21 = smov %s1350_s16  ;;  %25 = sbr.rel (!%p23_p0) target bundleno = 8 (0x8), region = 117 }
 0x2b0   :  { %661 = vsyncpa [#allocation3], 1 }
 0x2b1   :  { %663 = vsyncpa [#allocation3 + $0x1], 1 }
 0x2b2   :  { %664 = vsyncpa [#allocation6], 1 }
 0x2b3   :  { %665 = vsyncpa [#allocation4], 1 }
 0x2b4   :  { %667 = vsyncpa [#allocation4 + $0x1], 1 }
 0x2b5   :  { %668 = vsyncpa [#allocation10], 1 }
 0x2b6   :  { %670 = vsyncpa [#allocation10 + $0x1], 1 }

// kernel: generative_chimney_forward.44
= control target key start
LH: loop header
LB: loop body
LE: loop exit
PB: predicated region body
PF: predicated region fallthrough
CT: control target
= control target key end

     0   :  { %11 = vsyncpa [#allocation3], 0  ;;  %s1591_s0 = inlined_call_operand.hbm [shape: bf16[2,32,128], index: 0, kind: input, shape index: {}]   ;;  %s1592_s1 = inlined_call_operand.hbm [shape: bf16[32,288], index: 1, kind: input, shape index: {}]   ;;  %s1593_s2 = inlined_call_operand.hbm [shape: f32[1,24], index: 2, kind: input, shape index: {}]   ;;  %s1594_s3 = inlined_call_operand.hbm [shape: bf16[2,32,24], index: 3, kind: output, shape index: {0}]   ;;  %s1595_s4 = inlined_call_operand.hbm [shape: f32[2,32,1], index: 4, kind: output, shape index: {1}]   ;;  %s1596_s5 = inlined_call_operand.hbm [shape: f32[2,32,1], index: 5, kind: output, shape index: {2}]  }
   0x1   :  { %13 = vsyncpa [#allocation3 + $0x1], 0 }
   0x2   :  { %14 = vsyncpa [#allocation6], 0 }
   0x3   :  { %15 = vsyncpa [#allocation4], 0 }
   0x4   :  { %17 = vsyncpa [#allocation4 + $0x1], 0 }
   0x5   :  { %18 = vsyncpa [#allocation10], 0 }
   0x6   :  { %20 = vsyncpa [#allocation10 + $0x1], 0  ;;  %s1237_s18 = smov 0   ;;  %s1239_s19 = smov 0  }
   0x7   :  { %s1241_s20 = smov 0   ;;  %s1243_s21 = smov 0  }
   0x8 LB: > { %s1258_s22 = sadd.s32 4294967295, %s1183_s21   ;;  %s775_s23 = sadd.s32 4294967294, %s1183_s21   ;;  %s1183_s21 = sphi %s1243_s21, %s1616_s21   ;;  %s1179_s20 = sphi %s1241_s20, %s1615_s20   ;;  %s1175_s19 = sphi %s1239_s19, %s1614_s19   ;;  %s1171_s18 = sphi %s1237_s18, %s1613_s18  }
   0x9   : > { %p46_p0 = scmp.ne.s32.totalorder %s1175_s19, %s1171_s18  ;;  %p1597_p1 = scmp.eq.s32.totalorder %s1258_s22, 0 }
   0xa   : > { %p118_p3 = scmp.eq.s32.totalorder %s775_s23, 1  ;;  %p776_p5 = scmp.ge.s32.totalorder %s1183_s21, 1 }
   0xb   : > { %p1269_p4 = por %p1597_p1, %p46_p0  ;;  %p177_p7 = scmp.lt.s32.totalorder %s1183_s21, 3 }
   0xc   : > { %p1274_p6 = por %p118_p3, %p46_p0  ;;  %s1185_s27 = smov [#allocation5]  }
   0xd   : > { %s1600_s24 = scalar_select %p1269_p4, 1, 0 }
   0xe   : > { %s1601_s25 = scalar_select %p1274_p6, 1, 0 }
   0xf   : > { %p1279_p8 = pnand %p776_p5, %p177_p7  ;;  %s189_s28 = sshll.u32 %s1185_s27, 4  ;;  %s1283_s28 = int_to_ptr.vmem [resolvable:$true] %s189_s28 }
  0x10   : > { %s1186_s30 = smov [#allocation7]   ;;  %s967_s9 = scalar_lea.hbm %s1592_s1, 768 }
  0x11   : > { %p880_p9 = pneg %p1279_p8  ;;  %s203_s6 = sshll.u32 %s1186_s30, 4  ;;  %s1294_s6 = int_to_ptr.vmem [resolvable:$true] %s203_s6 }
  0x12   : > { %p968_p12 = scmp.ne.s32.totalorder %s1592_s1, %s967_s9  ;;  %p974_p5 = scmp.lt.u32.totalorder %s967_s9, %s1592_s1 }
  0x13   : > { %p1290_p11 = pnand %p880_p9, %p1597_p1 }
  0x15   : > { %p969_p13 = pneg %p1290_p11 }
  0x17   : > { %p970_p0 = pnand %p969_p13, %p968_p12 }
  0x19   : > { %p971_p3 = pneg %p970_p0 }
  0x1b   : > { %p976_p7 = pnand %p974_p5, %p971_p3 }
  0x1d   : > { %979 = shalt.err (!%p976_p7)
}
  0x1e   : > { %s980_s14 = scalar_lea.vmem %s1283_s28, 768  ;;  %p988_p2 = scmp.lt.s32.totalorder %s1283_s28, %s1283_s28 }
  0x1f   : > { %p981_p9 = scmp.ne.s32.totalorder %s1283_s28, %s980_s14  ;;  %p989_p12 = scmp.lt.s32.totalorder %s980_s14, %s980_s14 }
  0x21   : > { %p983_p10 = pnand %p981_p9, %p969_p13  ;;  %p990_p0 = por %p989_p12, %p988_p2 }
  0x23   : > { %p984_p1 = pneg %p983_p10 }
  0x25   : > { %p991_p6 = pnand %p990_p0, %p984_p1 }
  0x27   : > { %994 = shalt.err (!%p991_p6)
}
  0x28   : > { %s1187_s15 = smov 192   ;;  %s1188_s16 = smov 12  }
  0x29   : > { %883 = dma.hbm_to_vmem [thread:$0]  (!%p1290_p11), %s1592_s1, 768, %s1283_s28, [#allocation6], %s1187_s15, %s1187_s15, %s1188_s16  }
  0x2a   : > { %s995_s8 = scalar_lea.hbm %s1593_s2, 16 }
  0x2b   : > { %p996_p2 = scmp.ne.s32.totalorder %s1593_s2, %s995_s8  ;;  %p1002_p10 = scmp.lt.u32.totalorder %s995_s8, %s1593_s2 }
  0x2d   : > { %p998_p1 = pnand %p996_p2, %p969_p13 }
  0x2f   : > { %p999_p6 = pneg %p998_p1 }
  0x31   : > { %p1004_p3 = pnand %p1002_p10, %p999_p6 }
  0x33   : > { %1007 = shalt.err (!%p1004_p3)
}
  0x34   : > { %s1008_s28 = scalar_lea.vmem %s1294_s6, 16  ;;  %s1015_s13 = scalar_lea.vmem %s1294_s6, 32 }
  0x35   : > { %p1009_p5 = scmp.ne.s32.totalorder %s1294_s6, %s1008_s28  ;;  %p1016_p12 = scmp.lt.s32.totalorder %s1294_s6, %s1294_s6 }
  0x36   : > { %p1017_p0 = scmp.lt.s32.totalorder %s1015_s13, %s1008_s28 }
  0x37   : > { %p1011_p7 = pnand %p1009_p5, %p969_p13 }
  0x38   : > { %p1018_p2 = por %p1017_p0, %p1016_p12 }
  0x39   : > { %p1012_p9 = pneg %p1011_p7 }
  0x3b   : > { %p1019_p1 = pnand %p1018_p2, %p1012_p9 }
  0x3d   : > { %1022 = shalt.err (!%p1019_p1)
}
  0x3e   : > { %886 = dma.hbm_to_vmem [thread:$0]  (!%p1290_p11), %s1593_s2, 16, %s1294_s6, [#allocation6]  }
  0x3f   : > { %s1350_s16 = sadd.s32 1, %s1183_s21   ;;  %s33_s29 = sadd.s32 1, %s1179_s20 }
  0x40   : > { %s30_s17 = ssub.s32 %s1183_s21, %s1350_s16  ;;  %p40_p13 = scmp.ne.s32.totalorder %s1179_s20, %s1175_s19 }
  0x41   : > { %p31_p6 = scmp.eq.s32.totalorder %s30_s17, 0  ;;  %p41_p10 = scmp.eq.s32.totalorder %s1183_s21, 0 }
  0x42   : > { %p1604_p3 = scmp.eq.s32.totalorder %s1258_s22, 1  ;;  %p903_p7 = scmp.lt.s32.totalorder %s1183_s21, 2 }
  0x43   : > { %s1366_s30 = scalar_select %p31_p6, %s1179_s20, %s33_s29  }
  0x44   : > { %p1360_p5 = por %p1604_p3, %p40_p13  ;;  %p42_p9 = por %p41_p10, %p40_p13 }
  0x45   : > { %s214_s7 = sand.u32 1, %s1179_s20   ;;  %s816_s6 = sshll.u32 %s1183_s21, 8 }
  0x46   : > { %s1605_s27 = scalar_select %p1360_p5, 1, 0 }
  0x47   : > { %s780_s8 = sshll.u32 %s214_s7, 4  ;;  %s1373_s11 = scalar_lea.hbm %s1591_s0, %s816_s6 }
  0x48   : > { %s218_s12 = scalar_lea.vmem [#allocation2], %s780_s8  ;;  %p1377_p11 = pnand %p903_p7, %p42_p9 }
  0x49   : > { %s225_s28 = sshll.u32 %s218_s12, 4  ;;  %s1381_s14 = scalar_lea.sflag [#allocation3], %s214_s7  ;;  %s1375_s28 = int_to_ptr.vmem [resolvable:$true] %s225_s28 }
  0x4a   : > { %s1023_s15 = scalar_lea.hbm %s1373_s11, 256  ;;  %p1025_p0 = pneg %p1377_p11 }
  0x4b   : > { %p1024_p12 = scmp.ne.s32.totalorder %s1373_s11, %s1023_s15  ;;  %s1028_s8 = scalar_lea.hbm %s1591_s0, 512 }
  0x4c   : > { %p1029_p13 = scmp.lt.u32.totalorder %s1373_s11, %s1591_s0  ;;  %p1030_p6 = scmp.lt.u32.totalorder %s1028_s8, %s1023_s15 }
  0x4d   : > { %p1026_p2 = pnand %p1025_p0, %p1024_p12  ;;  %p1032_p3 = scmp.lt.u32.totalorder %s1023_s15, %s1373_s11 }
  0x4e   : > { %p1031_p10 = por %p1030_p6, %p1029_p13 }
  0x4f   : > { %p1027_p1 = pneg %p1026_p2 }
  0x50   : > { %p1033_p7 = por %p1032_p3, %p1031_p10 }
  0x52   : > { %p1034_p9 = pnand %p1033_p7, %p1027_p1 }
  0x54   : > { %1037 = shalt.err (!%p1034_p9)
}
  0x55   : > { %s1038_s7 = scalar_lea.vmem %s1375_s28, 256  ;;  %s1189_s10 = smov [#allocation2]  }
  0x56   : > { %p1039_p12 = scmp.ne.s32.totalorder %s1375_s28, %s1038_s7  ;;  %s1043_s12 = sshll.u32 %s1189_s10, 4  ;;  %s1044_s12 = int_to_ptr.vmem [resolvable:$false] %s1043_s12 }
  0x57   : > { %s1045_s29 = scalar_lea.vmem %s1044_s12, 512  ;;  %p1046_p4 = scmp.lt.s32.totalorder %s1375_s28, %s1044_s12 }
  0x58   : > { %p1041_p2 = pnand %p1039_p12, %p1025_p0  ;;  %p1047_p13 = scmp.lt.s32.totalorder %s1045_s29, %s1038_s7 }
  0x5a   : > { %p1042_p5 = pneg %p1041_p2  ;;  %p1048_p6 = por %p1047_p13, %p1046_p4 }
  0x5c   : > { %p1049_p10 = pnand %p1048_p6, %p1042_p5 }
  0x5e   : > { %1052 = shalt.err (!%p1049_p10)
}
  0x5f   : > { %s1190_s15 = smov 64   ;;  %s1191_s17 = smov 4  }
  0x60   : > { %890 = dma.hbm_to_vmem [thread:$0]  (!%p1377_p11), %s1373_s11, 256, %s1375_s28, %s1381_s14, %s1190_s15, %s1190_s15, %s1191_s17  }
  0x61   : > { %237 = sbr.rel (%p1279_p8) target bundleno = 670 (0x29e), region = 32  ;;  %s1412_s8 = sand.u32 (!%p1279_p8), 1, %s1175_s19  }
  0x62   : > { %s784_s6 = sshll.u32 (!%p1279_p8), %s1412_s8, 4  ;;  %s240_s9 = scalar_lea.sflag (!%p1279_p8), [#allocation3], %s1412_s8 }
  0x63   : > { %s243_s7 = scalar_lea.vmem (!%p1279_p8), [#allocation2], %s784_s6  ;;  %p1607_p4 = scmp.ne.s32.totalorder (!%p1279_p8), %s1600_s24, 0 }
  0x68   : > { %1154 = dma.done.wait (%p1607_p4), %s240_s9, 256  }
  0x69   : > { %1156 = vsyncadd (%p1607_p4), %s240_s9, 4294967040  ;;  %p1608_p5 = scmp.eq.s32.totalorder %s1258_s22, 0 }
  0x6b   : > { %1158 = dma.done.wait (%p1608_p5), [#allocation6], 784   ;;  %p1609_p8 = pmov %p1608_p5 }
  0x6c   : > { %v957_v0 = vld [vmem:[%s243_s7] sm:$0xff]   ;;  %v958_v1 = vld [vmem:[%s243_s7 + $0x8] sm:$0xff]   ;;  %s1192_s26 = smov 121   ;;  %s1193_s11 = smov 120   ;;  %vm391_vm0 = vcmask 261120   ;;  %vm561_vm1 = vcmask 191488  }
  0x6d   : > { %1160 = vsyncadd (%p1609_p8), [#allocation6], 4294966512  ;;  %323 = vrot.lane.b32.xlu0 %v957_v0, %s1192_s26  ;;  %329 = vrot.lane.b32.xlu1 %v957_v0, %s1193_s11  ;;  %s1194_s28 = smov 127   ;;  %s1195_s13 = smov 116   ;;  %v961_v2 = vld [vmem:[#allocation5 + $0x4] ss:$12 sps:$4 sm:$0xff]  }
  0x6e   : > { %s1196_s24 = smov 126   ;;  %430 = vmatprep.mubr.bf16.mxu0 %v961_v2  ;;  %s1197_s14 = smov 115   ;;  %v962_v3 = vld [vmem:[#allocation5 + $0x8] ss:$12 sps:$4 sm:$0xff]   ;;  %v959_v20 = vld [vmem:[#allocation5] ss:$12 sps:$4 sm:$0xff]  }
  0x6f   : > { %s1198_s10 = smov 122   ;;  %860 = vmatprep.mubr.msk.bf16.mxu1 %vm391_vm0, %v962_v3  ;;  %s1199_s12 = smov 114   ;;  %v964_v21 = vld [vmem:[#allocation5 + $0x1c] ss:$12 sps:$4 sm:$0xff]   ;;  %v963_v22 = vld [vmem:[#allocation5 + $0x20] ss:$12 sps:$4 sm:$0xff]  }
  0x70   : > { %v966_v23 = vld [vmem:[#allocation5 + $0x18] ss:$12 sps:$4 sm:$0xff]   ;;  %v800_v32 = vld [vmem:[#allocation7] ss:$0 sm:$0xff]  ;;  %vm507_vm2 = vcmask 195584   ;;  %s1430_s29 = scalar_lea.vmem [#allocation8], %s784_s6 }
  0x71   : > { %325 = vrot.lane.b32.xlu0 %v958_v1, %s1192_s26  ;;  %305 = vrot.lane.b32.xlu1 %v957_v0, %s1194_s28  ;;  %s590_s15 = sshll.u32 %s1430_s29, 4  ;;  %s821_s17 = sshll.u32 %s1258_s22, 8  ;;  %s1449_s15 = int_to_ptr.vmem [resolvable:$true] %s590_s15 }
  0x72   : > { %s1455_s7 = scalar_lea.hbm %s1594_s3, %s821_s17  ;;  %s567_s26 = scalar_lea.sflag [#allocation4], %s1412_s8 }
  0x73   : > { %p1610_p0 = scmp.ne.s32.totalorder %s1605_s27, 0 }
  0x75   : > { %331 = vrot.lane.b32.xlu0 %v958_v1, %s1193_s11  ;;  %307 = vrot.lane.b32.xlu1 %v958_v1, %s1194_s28  ;;  %s1053_s11 = scalar_lea.vmem %s1449_s15, 256  ;;  %s1200_s28 = smov [#allocation8]  }
  0x76   : > { %p1054_p11 = scmp.ne.s32.totalorder %s1449_s15, %s1053_s11 }
  0x78   : > { %p1055_p1 = pnand %p1054_p11, %p1610_p0 }
  0x79   : > { %335 = vrot.lane.b32.xlu0 %v957_v0, %s1195_s13  ;;  %311 = vrot.lane.b32.xlu1 %v957_v0, %s1196_s24 }
  0x7a   : > { %p1056_p3 = pneg %p1055_p1 }
  0x7d   : > { %337 = vrot.lane.b32.xlu0 %v958_v1, %s1195_s13  ;;  %313 = vrot.lane.b32.xlu1 %v958_v1, %s1196_s24  ;;  %s1057_s13 = sshll.u32 %s1200_s28, 4  ;;  %s1058_s13 = int_to_ptr.vmem [resolvable:$false] %s1057_s13 }
  0x7e   : > { %s1059_s24 = scalar_lea.vmem %s1058_s13, 512  ;;  %p1060_p7 = scmp.lt.s32.totalorder %s1449_s15, %s1058_s13 }
  0x7f   : > { %p1061_p9 = scmp.lt.s32.totalorder %s1059_s24, %s1053_s11 }
  0x81   : > { %341 = vrot.lane.b32.xlu0 %v957_v0, %s1197_s14  ;;  %317 = vrot.lane.b32.xlu1 %v957_v0, %s1198_s10  ;;  %p1062_p12 = por %p1061_p9, %p1060_p7 }
  0x83   : > { %p1063_p2 = pnand %p1062_p12, %p1056_p3 }
  0x85   : > { %343 = vrot.lane.b32.xlu0 %v958_v1, %s1197_s14  ;;  %319 = vrot.lane.b32.xlu1 %v958_v1, %s1198_s10 }
  0x89   : > { %347 = vrot.lane.b32.xlu0 %v957_v0, %s1199_s12  ;;  %349 = vrot.lane.b32.xlu1 %v958_v1, %s1199_s12 }
  0xdf   : > { %v324_v4 = vpop.permute.xlu0 %323  ;;  %v330_v5 = vpop.permute.xlu1 %329 }
  0xe0   : > { %824 = vmatprep.subr.bf16.mxu0 %v324_v4 }
  0xe1   : > { %825 = vmatpush3.bf16.msra.mxu0 %v957_v0 }
  0xe3   : > { %v326_v6 = vpop.permute.xlu0 %325  ;;  %v306_v7 = vpop.permute.xlu1 %305 }
  0xe4   : > { %826 = vmatprep.subr.bf16.mxu0 %v326_v6 }
  0xe5   : > { %827 = vmatpush3.bf16.msra.mxu0 %v958_v1 }
  0xe6   : > { %828 = vmatprep.subr.bf16.mxu0 %v330_v5 }
  0xe7   : > { %v332_v8 = vpop.permute.xlu0 %331  ;;  %v308_v9 = vpop.permute.xlu1 %307 }
  0xe9   : > { %829 = vmatpush3.bf16.msra.mxu0 %v306_v7 }
  0xea   : > { %830 = vmatprep.subr.bf16.mxu0 %v332_v8 }
  0xeb   : > { %v336_v10 = vpop.permute.xlu0 %335  ;;  %v312_v11 = vpop.permute.xlu1 %311 }
  0xed   : > { %831 = vmatpush3.bf16.msra.mxu0 %v308_v9 }
  0xee   : > { %832 = vmatprep.subr.bf16.mxu0 %v336_v10 }
  0xef   : > { %v338_v12 = vpop.permute.xlu0 %337  ;;  %v314_v13 = vpop.permute.xlu1 %313 }
  0xf1   : > { %833 = vmatpush3.bf16.msra.mxu0 %v312_v11 }
  0xf2   : > { %834 = vmatprep.subr.bf16.mxu0 %v338_v12 }
  0xf3   : > { %v342_v14 = vpop.permute.xlu0 %341  ;;  %v318_v15 = vpop.permute.xlu1 %317 }
  0xf5   : > { %835 = vmatpush3.bf16.msra.mxu0 %v314_v13 }
  0xf6   : > { %836 = vmatprep.subr.bf16.mxu0 %v342_v14 }
  0xf7   : > { %v344_v16 = vpop.permute.xlu0 %343  ;;  %v320_v17 = vpop.permute.xlu1 %319 }
  0xf9   : > { %837 = vmatpush3.bf16.msra.mxu0 %v318_v15 }
  0xfa   : > { %838 = vmatprep.subr.bf16.mxu0 %v344_v16 }
  0xfb   : > { %v348_v18 = vpop.permute.xlu0 %347  ;;  %v350_v19 = vpop.permute.xlu1 %349 }
  0xfc   : > { %856 = vmatprep.subr.bf16.mxu1 %v348_v18 }
  0xfd   : > { %839 = vmatpush3.bf16.msra.mxu0 %v320_v17  ;;  %857 = vmatpush3.bf16.msra.mxu1 %v348_v18 }
  0xfe   : > { %858 = vmatprep.subr.bf16.mxu1 %v350_v19 }
 0x100   : > { %431 = vmatmul.mubr.bf16.vlgmr.msra.gmra.mrb[0].mxu0 %v959_v20 }
 0x101   : > { %859 = vmatpush3.bf16.msra.mxu1 %v350_v19  ;;  %438 = vmatprep.mubr.bf16.mxu0 %v964_v21 }
 0x104   : > { %861 = vmatmul.mubr.msk.bf16.vlgmr.msra.gmra.mrb[0].mxu1 %vm391_vm0, %v963_v22 }
 0x108   : > { %439 = vmatmul.mubr.bf16.gmra.mrb[4].mxu0 %v966_v23 }
 0x1d3   : > { %v840_v24 = vpop.f32.mrb[0].mxu0 }
 0x1d4   : > { %v841_v25 = vpop.f32.mrb[1].mxu0 }
 0x1d5   : > { %v842_v26 = vadd.f32 %v841_v25, %v840_v24  ;;  %v843_v27 = vpop.f32.mrb[2].mxu0 }
 0x1d6   : > { %v844_v28 = vpop.f32.mrb[3].mxu0 }
 0x1d7   : > { %v845_v29 = vadd.f32 %v844_v28, %v843_v27  ;;  %v862_v30 = vpop.f32.mrb[0].mxu1 }
 0x1d8   : > { %v481_v31 = vpop.f32.mrb[1].mxu1 }
 0x1d9   : > { %v482_v33 = vadd.f32 %v842_v26, %v481_v31  ;;  %v863_v34 = vpop.f32.mrb[2].mxu1 }
 0x1da   : > { %v484_v35 = vpop.f32.mrb[3].mxu1 }
 0x1db   : > { %v817_v36 = vpack.c.bf16 %v482_v33, %v482_v33  ;;  %v485_v37 = vadd.f32 %v845_v29, %v484_v35  ;;  %v846_v38 = vpop.f32.mrb[4].mxu0  ;;  %v503_v39 = vmul.f32 %v800_v32, %v482_v33 }
 0x1dc   : > { %v847_v40 = vpop.f32.mrb[5].mxu0 }
 0x1dd   : > { %562 = vst.msk [vmem:[%s1430_s29] sm:$0xf] %vm561_vm1, %v817_v36  ;;  %v818_v41 = vpack.c.bf16 %v485_v37, %v485_v37  ;;  %v848_v42 = vadd.f32 %v847_v40, %v846_v38  ;;  %v849_v43 = vpop.f32.mrb[6].mxu0  ;;  %v508_v44 = vsel %vm507_vm2, %v503_v39, 0.0  ;;  %v504_v45 = vmul.f32 %v800_v32, %v485_v37 }
 0x1de   : > { %v850_v46 = vpop.f32.mrb[7].mxu0  ;;  %509 = vadd.xlane.f32.xlu0 %v508_v44  ;;  %v525_v47 = vmul.f32 %v503_v39, %v503_v39 }
 0x1df   : > { %563 = vst.msk [vmem:[%s1430_s29 + $0x4] sm:$0xf] %vm561_vm1, %v818_v41  ;;  %v490_v48 = vadd.f32 %v862_v30, %v848_v42  ;;  %v851_v49 = vadd.f32 %v850_v46, %v849_v43  ;;  %v511_v50 = vsel %vm507_vm2, %v504_v45, 0.0  ;;  %v526_v51 = vmul.f32 %v504_v45, %v504_v45 }
 0x1e0   : > { %512 = vadd.xlane.f32.xlu1 %v511_v50  ;;  %v529_v57 = vsel %vm507_vm2, %v525_v47, 0.0 }
 0x1e1   : > { %v819_v52 = vpack.c.bf16 %v490_v48, %v490_v48  ;;  %v493_v53 = vadd.f32 %v863_v34, %v851_v49  ;;  %v532_v54 = vsel %vm507_vm2, %v526_v51, 0.0  ;;  %v505_v55 = vmul.f32 %v800_v32, %v490_v48 }
 0x1e2   : > { %533 = vadd.xlane.f32.xlu0 %v532_v54 }
 0x1e3   : > { %564 = vst.msk [vmem:[%s1430_s29 + $0x8] sm:$0xf] %vm561_vm1, %v819_v52  ;;  %v820_v56 = vpack.c.bf16 %v493_v53, %v493_v53  ;;  %v527_v58 = vmul.f32 %v505_v55, %v505_v55  ;;  %v514_v59 = vsel %vm507_vm2, %v505_v55, 0.0  ;;  %v506_v60 = vmul.f32 %v800_v32, %v493_v53 }
 0x1e4   : > { %530 = vadd.xlane.f32.xlu1 %v529_v57 }
 0x1e5   : > { %565 = vst.msk [vmem:[%s1430_s29 + $0xc] sm:$0xf] %vm561_vm1, %v820_v56  ;;  %v535_v61 = vsel %vm507_vm2, %v527_v58, 0.0  ;;  %v517_v62 = vsel %vm507_vm2, %v506_v60, 0.0  ;;  %v528_v63 = vmul.f32 %v506_v60, %v506_v60 }
 0x1e6   : > { %515 = vadd.xlane.f32.xlu0 %v514_v59 }
 0x1e7   : > { %v538_v0 = vsel %vm507_vm2, %v528_v63, 0.0 }
 0x1e8   : > { %536 = vadd.xlane.f32.xlu1 %v535_v61 }
 0x1ea   : > { %518 = vadd.xlane.f32.xlu0 %v517_v62 }
 0x1ee   : > { %539 = vadd.xlane.f32.xlu0 %v538_v0 }
 0x1ef   : > { %1066 = shalt.err (!%p1063_p2)
}
 0x1f0   : > { %s1067_s14 = scalar_lea.hbm %s1455_s7, 256  ;;  %s1071_s29 = scalar_lea.hbm %s1594_s3, 512 }
 0x1f1   : > { %p1068_p13 = scmp.ne.s32.totalorder %s1455_s7, %s1067_s14  ;;  %p1072_p4 = scmp.lt.u32.totalorder %s1455_s7, %s1594_s3 }
 0x1f2   : > { %p1073_p5 = scmp.lt.u32.totalorder %s1071_s29, %s1067_s14  ;;  %p1075_p11 = scmp.lt.u32.totalorder %s1067_s14, %s1455_s7 }
 0x1f3   : > { %p1069_p6 = pnand %p1068_p13, %p1610_p0 }
 0x1f4   : > { %p1074_p8 = por %p1073_p5, %p1072_p4 }
 0x1f5   : > { %p1070_p10 = pneg %p1069_p6 }
 0x1f6   : > { %p1076_p1 = por %p1075_p11, %p1074_p8 }
 0x1f8   : > { %p1077_p3 = pnand %p1076_p1, %p1070_p10 }
 0x1fa   : > { %1080 = shalt.err (!%p1077_p3)
}
 0x1fb   : > { %s1201_s9 = smov 64   ;;  %s1202_s11 = smov 4   ;;  %vm520_vm3 = vcmask 7168  }
 0x1fc   : > { %874 = dma.vmem_to_hbm [thread:$0]  (%p1610_p0), %s1449_s15, 256, %s1455_s7, %s567_s26, %s1201_s9, %s1201_s9, %s1202_s11  }
 0x1fd   : > { %s788_s28 = sshll.u32 %s1412_s8, 5  ;;  %s571_s8 = sand.u32 1, %s1258_s22  }
 0x1fe   : > { %s280_s13 = scalar_lea.vmem [#allocation9], %s788_s28  ;;  %s1484_s24 = scalar_lea.vmem [#allocation11], %s788_s28 }
 0x1ff   : > { %s606_s15 = sshll.u32 %s280_s13, 4  ;;  %s822_s7 = sshll.u32 %s1258_s22, 9  ;;  %s1492_s15 = int_to_ptr.vmem [resolvable:$true] %s606_s15 }
 0x200   : > { %s1500_s10 = scalar_lea.hbm %s1595_s4, %s822_s7  ;;  %s622_s12 = sshll.u32 %s1484_s24, 4  ;;  %s1535_s12 = int_to_ptr.vmem [resolvable:$true] %s622_s12 }
 0x201   : > { %s1506_s29 = scalar_lea.sflag [#allocation10], %s571_s8  ;;  %s1081_s17 = scalar_lea.vmem %s1492_s15, 512 }
 0x202   : > { %p1082_p7 = scmp.ne.s32.totalorder %s1492_s15, %s1081_s17  ;;  %s1203_s6 = smov [#allocation9]  }
 0x203   : > { %s1085_s9 = sshll.u32 %s1203_s6, 4  ;;  %s1086_s9 = int_to_ptr.vmem [resolvable:$false] %s1085_s9 }
 0x204   : > { %p1083_p9 = pnand %p1082_p7, %p1610_p0  ;;  %s1087_s11 = scalar_lea.vmem %s1086_s9, 1024 }
 0x205   : > { %p1088_p2 = scmp.lt.s32.totalorder %s1492_s15, %s1086_s9  ;;  %p1089_p13 = scmp.lt.s32.totalorder %s1087_s11, %s1081_s17 }
 0x206   : > { %p1084_p12 = pneg %p1083_p9 }
 0x207   : > { %p1090_p6 = por %p1089_p13, %p1088_p2 }
 0x209   : > { %p1091_p10 = pnand %p1090_p6, %p1084_p12 }
 0x26b   : > { %v510_v1 = vpop.xlane.xlu0 %509 }
 0x26c   : > { %521 = vst.msk [vmem:[%s280_s13] sm:$0xff] %vm520_vm3, %v510_v1 }
 0x26d   : > { %v513_v2 = vpop.xlane.xlu1 %512 }
 0x26e   : > { %522 = vst.msk [vmem:[%s280_s13 + $0x8] sm:$0xff] %vm520_vm3, %v513_v2 }
 0x26f   : > { %v534_v3 = vpop.xlane.xlu0 %533 }
 0x270   : > { %542 = vst.msk [vmem:[%s1484_s24 + $0x8] sm:$0xff] %vm520_vm3, %v534_v3 }
 0x271   : > { %v531_v4 = vpop.xlane.xlu1 %530 }
 0x272   : > { %541 = vst.msk [vmem:[%s1484_s24] sm:$0xff] %vm520_vm3, %v531_v4 }
 0x273   : > { %v516_v5 = vpop.xlane.xlu0 %515 }
 0x274   : > { %523 = vst.msk [vmem:[%s280_s13 + $0x10] sm:$0xff] %vm520_vm3, %v516_v5 }
 0x275   : > { %v537_v6 = vpop.xlane.xlu1 %536 }
 0x276   : > { %543 = vst.msk [vmem:[%s1484_s24 + $0x10] sm:$0xff] %vm520_vm3, %v537_v6 }
 0x277   : > { %v519_v7 = vpop.xlane.xlu0 %518 }
 0x278   : > { %524 = vst.msk [vmem:[%s280_s13 + $0x18] sm:$0xff] %vm520_vm3, %v519_v7 }
 0x279   : > { %1094 = shalt.err (!%p1091_p10)
}
 0x27a   : > { %s1095_s28 = scalar_lea.hbm %s1500_s10, 512  ;;  %s1099_s26 = scalar_lea.hbm %s1595_s4, 1024 }
 0x27b   : > { %p1096_p4 = scmp.ne.s32.totalorder %s1500_s10, %s1095_s28  ;;  %p1100_p11 = scmp.lt.u32.totalorder %s1500_s10, %s1595_s4 }
 0x27c   : > { %p1101_p1 = scmp.lt.u32.totalorder %s1099_s26, %s1095_s28  ;;  %p1103_p7 = scmp.lt.u32.totalorder %s1095_s28, %s1500_s10 }
 0x27d   : > { %p1097_p5 = pnand %p1096_p4, %p1610_p0 }
 0x27e   : > { %p1102_p3 = por %p1101_p1, %p1100_p11 }
 0x27f   : > { %p1098_p8 = pneg %p1097_p5 }
 0x280   : > { %p1104_p9 = por %p1103_p7, %p1102_p3 }
 0x282   : > { %p1105_p12 = pnand %p1104_p9, %p1098_p8 }
 0x284   : > { %1108 = shalt.err (!%p1105_p12)
}
 0x285   : > { %s1204_s17 = smov 128   ;;  %s1205_s9 = smov 8   ;;  %v540_v8 = vpop.xlane.xlu0 %539 }
 0x286   : > { %875 = dma.vmem_to_hbm [thread:$0]  (%p1610_p0), %s1492_s15, 512, %s1500_s10, %s1506_s29, %s1204_s17, %s1204_s17, %s1205_s9  }
 0x287   : > { %s1542_s13 = scalar_lea.hbm %s1596_s5, %s822_s7  ;;  %544 = vst.msk [vmem:[%s1484_s24 + $0x18] sm:$0xff] %vm520_vm3, %v540_v8  ;;  %s1109_s8 = scalar_lea.vmem %s1535_s12, 512 }
 0x288   : > { %p1110_p2 = scmp.ne.s32.totalorder %s1535_s12, %s1109_s8  ;;  %s1206_s15 = smov [#allocation11]  }
 0x289   : > { %s1113_s10 = sshll.u32 %s1206_s15, 4  ;;  %s1114_s10 = int_to_ptr.vmem [resolvable:$false] %s1113_s10 }
 0x28a   : > { %p1111_p13 = pnand %p1110_p2, %p1610_p0  ;;  %s1115_s22 = scalar_lea.vmem %s1114_s10, 1024 }
 0x28b   : > { %p1116_p10 = scmp.lt.s32.totalorder %s1535_s12, %s1114_s10  ;;  %p1117_p4 = scmp.lt.s32.totalorder %s1115_s22, %s1109_s8 }
 0x28c   : > { %p1112_p6 = pneg %p1111_p13 }
 0x28d   : > { %p1118_p5 = por %p1117_p4, %p1116_p10 }
 0x28f   : > { %p1119_p8 = pnand %p1118_p5, %p1112_p6 }
 0x291   : > { %1122 = shalt.err (!%p1119_p8)
}
 0x292   : > { %s1123_s24 = scalar_lea.hbm %s1542_s13, 512  ;;  %s1127_s14 = scalar_lea.hbm %s1596_s5, 1024 }
 0x293   : > { %p1124_p11 = scmp.ne.s32.totalorder %s1542_s13, %s1123_s24  ;;  %p1128_p7 = scmp.lt.u32.totalorder %s1542_s13, %s1596_s5 }
 0x294   : > { %p1129_p9 = scmp.lt.u32.totalorder %s1127_s14, %s1123_s24  ;;  %p1131_p2 = scmp.lt.u32.totalorder %s1123_s24, %s1542_s13 }
 0x295   : > { %p1125_p1 = pnand %p1124_p11, %p1610_p0 }
 0x296   : > { %p1130_p12 = por %p1129_p9, %p1128_p7 }
 0x297   : > { %p1126_p3 = pneg %p1125_p1 }
 0x298   : > { %p1132_p13 = por %p1131_p2, %p1130_p12 }
 0x29a   : > { %p1133_p6 = pnand %p1132_p13, %p1126_p3 }
 0x29c   : > { %1136 = shalt.err (!%p1133_p6)
}
 0x29d   : > { %876 = dma.vmem_to_hbm [thread:$0]  (%p1610_p0), %s1535_s12, 512, %s1542_s13, %s1506_s29, %s1204_s17, %s1204_s17, %s1205_s9  }
 0x29e PF: > { %s637_s28 = sand.u32 1, %s1171_s18   ;;  %p1611_p10 = scmp.ne.s32.totalorder %s1601_s25, 0 }
 0x29f   : > { %p1612_p4 = scmp.ge.s32.totalorder %s1183_s21, 2  ;;  %s638_s8 = scalar_lea.sflag [#allocation4], %s637_s28 }
 0x2a1   : > { %p892_p5 = pnand %p1612_p4, %p1611_p10 }
 0x2a3   : > { %1162 = dma.done.wait (!%p892_p5), %s638_s8, 256  }
 0x2a4   : > { %1164 = vsyncadd (!%p892_p5), %s638_s8, 4294967040  ;;  %s646_s27 = sand.u32 1, %s775_s23  }
 0x2a5   : > { %s647_s15 = scalar_lea.sflag [#allocation10], %s646_s27 }
 0x2a6   : > { %1166 = dma.done.wait (!%p892_p5), %s647_s15, 1024  }
 0x2a7   : > { %1168 = vsyncadd (!%p892_p5), %s647_s15, 4294966272  ;;  %p23_p0 = scmp.ge.s32.totalorder %s1350_s16, 4   ;;  %s1613_s18 = smov %s1175_s19 }
 0x2a8   : > { %s1614_s19 = smov %s1179_s20  ;;  %s1615_s20 = smov %s1366_s30 }
 0x2a9   : > { %s1616_s21 = smov %s1350_s16  ;;  %25 = sbr.rel (!%p23_p0) target bundleno = 8 (0x8), region = 117 }
 0x2b0   :  { %661 = vsyncpa [#allocation3], 1 }
 0x2b1   :  { %663 = vsyncpa [#allocation3 + $0x1], 1 }
 0x2b2   :  { %664 = vsyncpa [#allocation6], 1 }
 0x2b3   :  { %665 = vsyncpa [#allocation4], 1 }
 0x2b4   :  { %667 = vsyncpa [#allocation4 + $0x1], 1 }
 0x2b5   :  { %668 = vsyncpa [#allocation10], 1 }
 0x2b6   :  { %670 = vsyncpa [#allocation10 + $0x1], 1 }

// kernel: generative_chimney_forward.45
= control target key start
LH: loop header
LB: loop body
LE: loop exit
PB: predicated region body
PF: predicated region fallthrough
CT: control target
= control target key end

     0   :  { %8 = vsyncpa [#allocation3], 0  ;;  %s965_s0 = inlined_call_operand.hbm [shape: bf16[2,32,24], index: 0, kind: input, shape index: {}]   ;;  %s966_s1 = inlined_call_operand.hbm [shape: f32[32,1], index: 1, kind: input, shape index: {}]   ;;  %s967_s2 = inlined_call_operand.hbm [shape: f32[32,1], index: 2, kind: input, shape index: {}]   ;;  %s968_s3 = inlined_call_operand.hbm [shape: bf16[2,32,24], index: 3, kind: output, shape index: {}]  }
   0x1   :  { %10 = vsyncpa [#allocation3 + $0x1], 0 }
   0x2   :  { %11 = vsyncpa [#allocation6], 0 }
   0x3   :  { %12 = vsyncpa [#allocation4], 0 }
   0x4   :  { %14 = vsyncpa [#allocation4 + $0x1], 0  ;;  %s723_s12 = smov 0   ;;  %s725_s13 = smov 0  }
   0x5   :  { %s727_s14 = smov 0   ;;  %s729_s15 = smov 0  }
   0x6 LB: > { %s744_s16 = sadd.s32 4294967295, %s690_s15   ;;  %s421_s17 = sadd.s32 4294967294, %s690_s15   ;;  %s690_s15 = sphi %s729_s15, %s988_s15   ;;  %s686_s14 = sphi %s727_s14, %s987_s14   ;;  %s682_s13 = sphi %s725_s13, %s986_s13   ;;  %s678_s12 = sphi %s723_s12, %s985_s12  }
   0x7   : > { %p40_p0 = scmp.ne.s32.totalorder %s682_s13, %s678_s12  ;;  %p969_p1 = scmp.eq.s32.totalorder %s744_s16, 0 }
   0x8   : > { %p112_p3 = scmp.eq.s32.totalorder %s421_s17, 1  ;;  %p422_p5 = scmp.ge.s32.totalorder %s690_s15, 1 }
   0x9   : > { %p753_p4 = por %p969_p1, %p40_p0  ;;  %p119_p7 = scmp.lt.s32.totalorder %s690_s15, 3 }
   0xa   : > { %p758_p6 = por %p112_p3, %p40_p0  ;;  %s692_s21 = smov [#allocation5]  }
   0xb   : > { %s972_s18 = scalar_select %p753_p4, 1, 0 }
   0xc   : > { %s973_s19 = scalar_select %p758_p6, 1, 0 }
   0xd   : > { %p763_p8 = pnand %p422_p5, %p119_p7  ;;  %s131_s22 = sshll.u32 %s692_s21, 4  ;;  %s767_s22 = int_to_ptr.vmem [resolvable:$true] %s131_s22 }
   0xe   : > { %s693_s24 = smov [#allocation7]   ;;  %s534_s28 = scalar_lea.hbm %s966_s1, 512 }
   0xf   : > { %p470_p9 = pneg %p763_p8  ;;  %s144_s25 = sshll.u32 %s693_s24, 4  ;;  %s778_s25 = int_to_ptr.vmem [resolvable:$true] %s144_s25 }
  0x10   : > { %p535_p12 = scmp.ne.s32.totalorder %s966_s1, %s534_s28  ;;  %p541_p5 = scmp.lt.u32.totalorder %s534_s28, %s966_s1 }
  0x11   : > { %p774_p11 = pnand %p470_p9, %p969_p1 }
  0x13   : > { %p536_p13 = pneg %p774_p11 }
  0x15   : > { %p537_p0 = pnand %p536_p13, %p535_p12 }
  0x17   : > { %p538_p3 = pneg %p537_p0 }
  0x19   : > { %p543_p7 = pnand %p541_p5, %p538_p3 }
  0x1b   : > { %546 = shalt.err (!%p543_p7)
}
  0x1c   : > { %s547_s6 = scalar_lea.vmem %s767_s22, 512  ;;  %p555_p2 = scmp.lt.s32.totalorder %s767_s22, %s767_s22 }
  0x1d   : > { %p548_p9 = scmp.ne.s32.totalorder %s767_s22, %s547_s6  ;;  %p556_p12 = scmp.lt.s32.totalorder %s547_s6, %s547_s6 }
  0x1f   : > { %p550_p10 = pnand %p548_p9, %p536_p13  ;;  %p557_p0 = por %p556_p12, %p555_p2 }
  0x21   : > { %p551_p1 = pneg %p550_p10 }
  0x23   : > { %p558_p6 = pnand %p557_p0, %p551_p1 }
  0x25   : > { %561 = shalt.err (!%p558_p6)
}
  0x26   : > { %s694_s7 = smov 128   ;;  %s695_s8 = smov 8  }
  0x27   : > { %473 = dma.hbm_to_vmem [thread:$0]  (!%p774_p11), %s966_s1, 512, %s767_s22, [#allocation6], %s694_s7, %s694_s7, %s695_s8  }
  0x28   : > { %s562_s21 = scalar_lea.hbm %s967_s2, 512 }
  0x29   : > { %p563_p2 = scmp.ne.s32.totalorder %s967_s2, %s562_s21  ;;  %p569_p10 = scmp.lt.u32.totalorder %s562_s21, %s967_s2 }
  0x2b   : > { %p565_p1 = pnand %p563_p2, %p536_p13 }
  0x2d   : > { %p566_p6 = pneg %p565_p1 }
  0x2f   : > { %p571_p3 = pnand %p569_p10, %p566_p6 }
  0x31   : > { %574 = shalt.err (!%p571_p3)
}
  0x32   : > { %s575_s22 = scalar_lea.vmem %s778_s25, 512  ;;  %p583_p12 = scmp.lt.s32.totalorder %s778_s25, %s778_s25 }
  0x33   : > { %p576_p5 = scmp.ne.s32.totalorder %s778_s25, %s575_s22  ;;  %p584_p0 = scmp.lt.s32.totalorder %s575_s22, %s575_s22 }
  0x35   : > { %p578_p7 = pnand %p576_p5, %p536_p13  ;;  %p585_p2 = por %p584_p0, %p583_p12 }
  0x37   : > { %p579_p9 = pneg %p578_p7 }
  0x39   : > { %p586_p1 = pnand %p585_p2, %p579_p9 }
  0x3b   : > { %589 = shalt.err (!%p586_p1)
}
  0x3c   : > { %476 = dma.hbm_to_vmem [thread:$0]  (!%p774_p11), %s967_s2, 512, %s778_s25, [#allocation6], %s694_s7, %s694_s7, %s695_s8  }
  0x3d   : > { %s833_s4 = sadd.s32 1, %s690_s15   ;;  %s27_s23 = sadd.s32 1, %s686_s14 }
  0x3e   : > { %s24_s5 = ssub.s32 %s690_s15, %s833_s4  ;;  %p34_p13 = scmp.ne.s32.totalorder %s686_s14, %s682_s13 }
  0x3f   : > { %p25_p6 = scmp.eq.s32.totalorder %s24_s5, 0  ;;  %p35_p10 = scmp.eq.s32.totalorder %s690_s15, 0 }
  0x40   : > { %p976_p3 = scmp.eq.s32.totalorder %s744_s16, 1  ;;  %p487_p7 = scmp.lt.s32.totalorder %s690_s15, 2 }
  0x41   : > { %s849_s9 = scalar_select %p25_p6, %s686_s14, %s27_s23  }
  0x42   : > { %p843_p5 = por %p976_p3, %p34_p13  ;;  %p36_p9 = por %p35_p10, %p34_p13 }
  0x43   : > { %s158_s10 = sand.u32 1, %s686_s14   ;;  %s443_s25 = sshll.u32 %s690_s15, 8 }
  0x44   : > { %s977_s6 = scalar_select %p843_p5, 1, 0 }
  0x45   : > { %s426_s11 = sshll.u32 %s158_s10, 4  ;;  %s856_s17 = scalar_lea.hbm %s965_s0, %s443_s25 }
  0x46   : > { %s162_s21 = scalar_lea.vmem [#allocation2], %s426_s11  ;;  %p860_p11 = pnand %p487_p7, %p36_p9 }
  0x47   : > { %s169_s24 = sshll.u32 %s162_s21, 4  ;;  %s864_s27 = scalar_lea.sflag [#allocation3], %s158_s10  ;;  %s858_s24 = int_to_ptr.vmem [resolvable:$true] %s169_s24 }
  0x48   : > { %s590_s28 = scalar_lea.hbm %s856_s17, 256  ;;  %p592_p0 = pneg %p860_p11 }
  0x49   : > { %p591_p12 = scmp.ne.s32.totalorder %s856_s17, %s590_s28  ;;  %s595_s30 = scalar_lea.hbm %s965_s0, 512 }
  0x4a   : > { %p596_p13 = scmp.lt.u32.totalorder %s856_s17, %s965_s0  ;;  %p597_p6 = scmp.lt.u32.totalorder %s595_s30, %s590_s28 }
  0x4b   : > { %p593_p2 = pnand %p592_p0, %p591_p12  ;;  %p599_p3 = scmp.lt.u32.totalorder %s590_s28, %s856_s17 }
  0x4c   : > { %p598_p10 = por %p597_p6, %p596_p13 }
  0x4d   : > { %p594_p1 = pneg %p593_p2 }
  0x4e   : > { %p600_p7 = por %p599_p3, %p598_p10 }
  0x50   : > { %p601_p9 = pnand %p600_p7, %p594_p1 }
  0x52   : > { %604 = shalt.err (!%p601_p9)
}
  0x53   : > { %s605_s10 = scalar_lea.vmem %s858_s24, 256  ;;  %s696_s11 = smov [#allocation2]  }
  0x54   : > { %p606_p12 = scmp.ne.s32.totalorder %s858_s24, %s605_s10  ;;  %s610_s25 = sshll.u32 %s696_s11, 4  ;;  %s611_s25 = int_to_ptr.vmem [resolvable:$false] %s610_s25 }
  0x55   : > { %s612_s7 = scalar_lea.vmem %s611_s25, 512  ;;  %p613_p4 = scmp.lt.s32.totalorder %s858_s24, %s611_s25 }
  0x56   : > { %p608_p2 = pnand %p606_p12, %p592_p0  ;;  %p614_p13 = scmp.lt.s32.totalorder %s612_s7, %s605_s10 }
  0x58   : > { %p609_p5 = pneg %p608_p2  ;;  %p615_p6 = por %p614_p13, %p613_p4 }
  0x5a   : > { %p616_p10 = pnand %p615_p6, %p609_p5 }
  0x5c   : > { %619 = shalt.err (!%p616_p10)
}
  0x5d   : > { %s697_s8 = smov 64   ;;  %s698_s21 = smov 4  }
  0x5e   : > { %480 = dma.hbm_to_vmem [thread:$0]  (!%p860_p11), %s856_s17, 256, %s858_s24, %s864_s27, %s697_s8, %s697_s8, %s698_s21  }
  0x5f   : > { %181 = sbr.rel (%p763_p8) target bundleno = 270 (0x10e), region = 32  ;;  %s895_s28 = sand.u32 (!%p763_p8), 1, %s682_s13  }
  0x60   : > { %s430_s22 = sshll.u32 (!%p763_p8), %s895_s28, 4  ;;  %s184_s29 = scalar_lea.sflag (!%p763_p8), [#allocation3], %s895_s28 }
  0x61   : > { %s187_s30 = scalar_lea.vmem (!%p763_p8), [#allocation2], %s430_s22  ;;  %p979_p4 = scmp.ne.s32.totalorder (!%p763_p8), %s972_s18, 0 }
  0x66   : > { %665 = dma.done.wait (%p979_p4), %s184_s29, 256  }
  0x67   : > { %667 = vsyncadd (%p979_p4), %s184_s29, 4294967040  ;;  %p980_p5 = scmp.eq.s32.totalorder %s744_s16, 0 }
  0x69   : > { %669 = dma.done.wait (%p980_p5), [#allocation6], 1024   ;;  %p981_p8 = pmov %p980_p5 }
  0x6a   : > { %v699_v0 = vmov 0   ;;  %v228_v1 = vld [vmem:[#allocation5 + $0x10] sm:$0xff]  ;;  %v226_v2 = vld [vmem:[#allocation5] sm:$0xff]  ;;  %v229_v3 = vld [vmem:[#allocation5 + $0x18] sm:$0xff]  ;;  %vm310_vm2 = vcmask 191488   ;;  %s448_s18 = sshll.u32 %s744_s16, 8 }
  0x6b   : > { %671 = vsyncadd (%p981_p8), [#allocation6], 4294966272  ;;  %533 = vset.pattern.permute.xlu1 %v699_v0  ;;  %532 = vset.pattern.permute.xlu0 %v699_v0  ;;  %v227_v4 = vld [vmem:[#allocation5 + $0x8] sm:$0xff]  ;;  %v254_v6 = vld [vmem:[#allocation7] sm:$0xff]  ;;  %s217_s20 = scalar_lea.vmem [#allocation8], %s430_s22  ;;  %s917_s27 = scalar_lea.hbm %s968_s3, %s448_s18 }
  0x6c   : > { %242 = vperm.xlu1 %533, %v228_v1   ;;  %232 = vperm.xlu0 %532, %v226_v2   ;;  %v255_v5 = vld [vmem:[#allocation7 + $0x8] sm:$0xff]  ;;  %v257_v7 = vld [vmem:[#allocation7 + $0x18] sm:$0xff]  ;;  %v256_v8 = vld [vmem:[#allocation7 + $0x10] sm:$0xff]  ;;  %s329_s17 = sshll.u32 %s217_s20, 4  ;;  %s316_s16 = scalar_lea.sflag [#allocation4], %s895_s28  ;;  %s919_s17 = int_to_ptr.vmem [resolvable:$true] %s329_s17 }
  0x6d   : > { %v450_v11 = vld [vmem:[%s187_s30] sm:$0xff]   ;;  %v457_v12 = vld [vmem:[%s187_s30 + $0x8] sm:$0xff]   ;;  %s620_s23 = scalar_lea.vmem %s919_s17, 256  ;;  %p982_p0 = scmp.ne.s32.totalorder %s977_s6, 0 }
  0x6e   : > { %v451_v13 = vunpack.c.l.bf16 %v450_v11  ;;  %v452_v14 = vunpack.c.h.bf16 %v450_v11  ;;  %v455_v17 = vunpack.c.l.bf16 %v457_v12  ;;  %v456_v18 = vunpack.c.h.bf16 %v457_v12  ;;  %p621_p11 = scmp.ne.s32.totalorder %s919_s17, %s620_s23  ;;  %s700_s5 = smov [#allocation8]  }
  0x6f   : > { %s624_s10 = sshll.u32 %s700_s5, 4  ;;  %s625_s10 = int_to_ptr.vmem [resolvable:$false] %s624_s10 }
  0x70   : > { %247 = vperm.xlu1 %533, %v229_v3   ;;  %237 = vperm.xlu0 %532, %v227_v4   ;;  %p622_p1 = pnand %p621_p11, %p982_p0  ;;  %s626_s11 = scalar_lea.vmem %s625_s10, 512 }
  0x71   : > { %p627_p7 = scmp.lt.s32.totalorder %s919_s17, %s625_s10  ;;  %p628_p9 = scmp.lt.s32.totalorder %s626_s11, %s620_s23 }
  0x72   : > { %p623_p3 = pneg %p622_p1 }
  0x73   : > { %p629_p12 = por %p628_p9, %p627_p7 }
  0x74   : > { %265 = vperm.xlu1 %533, %v255_v5   ;;  %260 = vperm.xlu0 %532, %v254_v6  }
  0x75   : > { %p630_p2 = pnand %p629_p12, %p623_p3 }
  0x78   : > { %275 = vperm.xlu1 %533, %v257_v7   ;;  %270 = vperm.xlu0 %532, %v256_v8  }
  0xeb   : > { %v243_v9 = vpop.permute.xlu1 %242  ;;  %v233_v10 = vpop.permute.xlu0 %232 }
  0xec   : > { %v250_v19 = vmul.f32 %v451_v13, %v233_v10  ;;  %v252_v25 = vmul.f32 %v455_v17, %v243_v9 }
  0xef   : > { %v248_v15 = vpop.permute.xlu1 %247  ;;  %v238_v16 = vpop.permute.xlu0 %237 }
  0xf0   : > { %v251_v20 = vmul.f32 %v452_v14, %v238_v16  ;;  %v253_v26 = vmul.f32 %v456_v18, %v248_v15 }
  0xf3   : > { %v266_v21 = vpop.permute.xlu1 %265  ;;  %v261_v22 = vpop.permute.xlu0 %260 }
  0xf4   : > { %v279_v23 = vadd.f32 %v266_v21, %v251_v20  ;;  %v278_v24 = vadd.f32 %v261_v22, %v250_v19 }
  0xf6   : > { %vm283_vm0 = vcmp.ge.f32.partialorder %v279_v23, 0.0  ;;  %v287_v27 = vmul.f32 0.01, %v279_v23  ;;  %vm282_vm1 = vcmp.ge.f32.partialorder %v278_v24, 0.0  ;;  %v286_v28 = vmul.f32 0.01, %v278_v24 }
  0xf7   : > { %v276_v29 = vpop.permute.xlu1 %275  ;;  %v271_v30 = vpop.permute.xlu0 %270 }
  0xf8   : > { %v291_v31 = vsel %vm283_vm0, %v279_v23, %v287_v27  ;;  %v290_v32 = vsel %vm282_vm1, %v278_v24, %v286_v28  ;;  %v281_v33 = vadd.f32 %v276_v29, %v253_v26  ;;  %v280_v34 = vadd.f32 %v271_v30, %v252_v25 }
  0xf9   : > { %v445_v35 = vpack.c.bf16 %v291_v31, %v291_v31  ;;  %v444_v36 = vpack.c.bf16 %v290_v32, %v290_v32 }
  0xfa   : > { %vm285_vm3 = vcmp.ge.f32.partialorder %v281_v33, 0.0  ;;  %v289_v37 = vmul.f32 0.01, %v281_v33  ;;  %vm284_vm4 = vcmp.ge.f32.partialorder %v280_v34, 0.0  ;;  %v288_v38 = vmul.f32 0.01, %v280_v34 }
  0xfb   : > { %312 = vst.msk [vmem:[%s217_s20 + $0x4] sm:$0xf] %vm310_vm2, %v445_v35  ;;  %311 = vst.msk [vmem:[%s217_s20] sm:$0xf] %vm310_vm2, %v444_v36 }
  0xfc   : > { %v293_v39 = vsel %vm285_vm3, %v281_v33, %v289_v37  ;;  %v292_v40 = vsel %vm284_vm4, %v280_v34, %v288_v38 }
  0xfd   : > { %v447_v41 = vpack.c.bf16 %v293_v39, %v293_v39  ;;  %v446_v42 = vpack.c.bf16 %v292_v40, %v292_v40 }
  0xff   : > { %314 = vst.msk [vmem:[%s217_s20 + $0xc] sm:$0xf] %vm310_vm2, %v447_v41  ;;  %313 = vst.msk [vmem:[%s217_s20 + $0x8] sm:$0xf] %vm310_vm2, %v446_v42 }
 0x100   : > { %633 = shalt.err (!%p630_p2)
}
 0x101   : > { %s634_s25 = scalar_lea.hbm %s917_s27, 256  ;;  %s638_s21 = scalar_lea.hbm %s968_s3, 512 }
 0x102   : > { %p635_p13 = scmp.ne.s32.totalorder %s917_s27, %s634_s25  ;;  %p639_p4 = scmp.lt.u32.totalorder %s917_s27, %s968_s3 }
 0x103   : > { %p640_p5 = scmp.lt.u32.totalorder %s638_s21, %s634_s25  ;;  %p642_p11 = scmp.lt.u32.totalorder %s634_s25, %s917_s27 }
 0x104   : > { %p636_p6 = pnand %p635_p13, %p982_p0 }
 0x105   : > { %p641_p8 = por %p640_p5, %p639_p4 }
 0x106   : > { %p637_p10 = pneg %p636_p6 }
 0x107   : > { %p643_p1 = por %p642_p11, %p641_p8 }
 0x109   : > { %p644_p3 = pnand %p643_p1, %p637_p10 }
 0x10b   : > { %647 = shalt.err (!%p644_p3)
}
 0x10c   : > { %s701_s30 = smov 64   ;;  %s702_s18 = smov 4  }
 0x10d   : > { %468 = dma.vmem_to_hbm [thread:$0]  (%p982_p0), %s919_s17, 256, %s917_s27, %s316_s16, %s701_s30, %s701_s30, %s702_s18  }
 0x10e PF: > { %s344_s20 = sand.u32 1, %s678_s12   ;;  %p983_p7 = scmp.ne.s32.totalorder %s973_s19, 0 }
 0x10f   : > { %p984_p9 = scmp.ge.s32.totalorder %s690_s15, 2  ;;  %s345_s24 = scalar_lea.sflag [#allocation4], %s344_s20 }
 0x111   : > { %p482_p12 = pnand %p984_p9, %p983_p7 }
 0x113   : > { %673 = dma.done.wait (!%p482_p12), %s345_s24, 256  }
 0x114   : > { %675 = vsyncadd (!%p482_p12), %s345_s24, 4294967040  ;;  %p17_p2 = scmp.ge.s32.totalorder %s833_s4, 4   ;;  %s985_s12 = smov %s682_s13 }
 0x115   : > { %s986_s13 = smov %s686_s14  ;;  %s987_s14 = smov %s849_s9 }
 0x116   : > { %s988_s15 = smov %s833_s4  ;;  %19 = sbr.rel (!%p17_p2) target bundleno = 6 (0x6), region = 85 }
 0x11d   :  { %350 = vsyncpa [#allocation3], 1 }
 0x11e   :  { %352 = vsyncpa [#allocation3 + $0x1], 1 }
 0x11f   :  { %353 = vsyncpa [#allocation6], 1 }
 0x120   :  { %354 = vsyncpa [#allocation4], 1 }
 0x121   :  { %356 = vsyncpa [#allocation4 + $0x1], 1 }

// kernel: generative_chimney_forward.66
= control target key start
LH: loop header
LB: loop body
LE: loop exit
PB: predicated region body
PF: predicated region fallthrough
CT: control target
= control target key end

     0   :  { %7 = vsyncpa [#allocation3], 0  ;;  %s1377_s0 = inlined_call_operand.hbm [shape: bf16[2,32,384], index: 0, kind: input, shape index: {}]   ;;  %s1378_s1 = inlined_call_operand.hbm [shape: bf16[16,288], index: 1, kind: input, shape index: {}]   ;;  %s1379_s2 = inlined_call_operand.hbm [shape: bf16[2,16,288], index: 2, kind: output, shape index: {}]  }
   0x1   :  { %9 = vsyncpa [#allocation3 + $0x1], 0 }
   0x2   :  { %10 = vsyncpa [#allocation6], 0 }
   0x3   :  { %11 = vsyncpa [#allocation4], 0 }
   0x4   :  { %13 = vsyncpa [#allocation4 + $0x1], 0  ;;  %s1051_s9 = smov 0   ;;  %s1053_s10 = smov 0  }
   0x5   :  { %s1055_s11 = smov 0   ;;  %s1057_s12 = smov 0  }
   0x6 LB: > { %s1072_s13 = sadd.s32 4294967295, %s1016_s12   ;;  %s733_s14 = sadd.s32 4294967294, %s1016_s12   ;;  %s1016_s12 = sphi %s1057_s12, %s1399_s12   ;;  %s1012_s11 = sphi %s1055_s11, %s1398_s11   ;;  %s1008_s10 = sphi %s1053_s10, %s1397_s10   ;;  %s1004_s9 = sphi %s1051_s9, %s1396_s9  }
   0x7   : > { %p39_p0 = scmp.ne.s32.totalorder %s1008_s10, %s1004_s9  ;;  %p1380_p1 = scmp.eq.s32.totalorder %s1072_s13, 0 }
   0x8   : > { %p90_p3 = scmp.eq.s32.totalorder %s733_s14, 1  ;;  %p734_p5 = scmp.ge.s32.totalorder %s1016_s12, 1 }
   0x9   : > { %p1081_p4 = por %p1380_p1, %p39_p0  ;;  %p97_p7 = scmp.lt.s32.totalorder %s1016_s12, 3 }
   0xa   : > { %p1086_p6 = por %p90_p3, %p39_p0  ;;  %s1018_s18 = smov [#allocation5]  }
   0xb   : > { %s1383_s15 = scalar_select %p1081_p4, 1, 0 }
   0xc   : > { %s1384_s16 = scalar_select %p1086_p6, 1, 0 }
   0xd   : > { %p1091_p8 = pnand %p734_p5, %p97_p7  ;;  %s109_s19 = sshll.u32 %s1018_s18, 4  ;;  %s1095_s19 = int_to_ptr.vmem [resolvable:$true] %s109_s19 }
   0xe   : > { %s1107_s21 = sadd.s32 1, %s1016_s12   ;;  %s26_s22 = sadd.s32 1, %s1012_s11 }
   0xf   : > { %s1385_s17 = scalar_select %p1091_p8, 1, 0 }
  0x10   : > { %p812_p9 = pneg %p1091_p8  ;;  %s23_s23 = ssub.s32 %s1016_s12, %s1107_s21 }
  0x11   : > { %s888_s26 = scalar_lea.hbm %s1378_s1, 384 }
  0x12   : > { %p1102_p11 = pnand %p812_p9, %p1380_p1  ;;  %p889_p12 = scmp.ne.s32.totalorder %s1378_s1, %s888_s26 }
  0x13   : > { %p895_p5 = scmp.lt.u32.totalorder %s888_s26, %s1378_s1 }
  0x14   : > { %p890_p13 = pneg %p1102_p11 }
  0x16   : > { %p891_p0 = pnand %p890_p13, %p889_p12 }
  0x18   : > { %p892_p3 = pneg %p891_p0 }
  0x1a   : > { %p897_p7 = pnand %p895_p5, %p892_p3 }
  0x1c   : > { %900 = shalt.err (!%p897_p7)
}
  0x1d   : > { %s901_s3 = scalar_lea.vmem %s1095_s19, 384  ;;  %p909_p2 = scmp.lt.s32.totalorder %s1095_s19, %s1095_s19 }
  0x1e   : > { %p902_p9 = scmp.ne.s32.totalorder %s1095_s19, %s901_s3  ;;  %p910_p6 = scmp.lt.s32.totalorder %s901_s3, %s901_s3 }
  0x20   : > { %p904_p10 = pnand %p902_p9, %p890_p13  ;;  %p911_p4 = por %p910_p6, %p909_p2 }
  0x22   : > { %p905_p1 = pneg %p904_p10 }
  0x24   : > { %p912_p8 = pnand %p911_p4, %p905_p1 }
  0x26   : > { %915 = shalt.err (!%p912_p8)
}
  0x27   : > { %s1019_s4 = smov 192   ;;  %s1020_s5 = smov 12  }
  0x28   : > { %815 = dma.hbm_to_vmem [thread:$0]  (!%p1102_p11), %s1378_s1, 384, %s1095_s19, [#allocation6], %s1019_s4, %s1019_s4, %s1020_s5  }
  0x29   : > { %p24_p1 = scmp.eq.s32.totalorder %s23_s23, 0  ;;  %p33_p2 = scmp.ne.s32.totalorder %s1012_s11, %s1008_s10 }
  0x2a   : > { %p34_p4 = scmp.eq.s32.totalorder %s1016_s12, 0  ;;  %p825_p6 = scmp.lt.s32.totalorder %s1016_s12, 2 }
  0x2b   : > { %s1141_s8 = scalar_select %p24_p1, %s1012_s11, %s26_s22  }
  0x2c   : > { %p35_p8 = por %p34_p4, %p33_p2  ;;  %p1387_p10 = scmp.eq.s32.totalorder %s1072_s13, 1 }
  0x2d   : > { %s123_s18 = sand.u32 1, %s1012_s11   ;;  %s800_s20 = smul.u32 768, %s1016_s12 }
  0x2e   : > { %p1145_p12 = por %p1387_p10, %p33_p2  ;;  %s799_s24 = smul.u32 48, %s123_s18 }
  0x2f   : > { %p1151_p13 = pnand %p825_p6, %p35_p8  ;;  %s1158_s22 = scalar_lea.hbm %s1377_s0, %s800_s20 }
  0x30   : > { %s127_s26 = scalar_lea.vmem [#allocation2], %s799_s24  ;;  %s1162_s28 = scalar_lea.sflag [#allocation3], %s123_s18 }
  0x31   : > { %s134_s27 = sshll.u32 %s127_s26, 4  ;;  %s916_s29 = scalar_lea.hbm %s1158_s22, 768  ;;  %s1160_s27 = int_to_ptr.vmem [resolvable:$true] %s134_s27 }
  0x32   : > { %p917_p11 = scmp.ne.s32.totalorder %s1158_s22, %s916_s29  ;;  %p918_p0 = pneg %p1151_p13 }
  0x33   : > { %s921_s6 = scalar_lea.hbm %s1377_s0, 1536  ;;  %p922_p7 = scmp.lt.u32.totalorder %s1158_s22, %s1377_s0 }
  0x34   : > { %p919_p3 = pnand %p918_p0, %p917_p11  ;;  %p923_p9 = scmp.lt.u32.totalorder %s921_s6, %s916_s29 }
  0x35   : > { %p925_p2 = scmp.lt.u32.totalorder %s916_s29, %s1158_s22 }
  0x36   : > { %p920_p5 = pneg %p919_p3  ;;  %p924_p1 = por %p923_p9, %p922_p7 }
  0x38   : > { %p926_p4 = por %p925_p2, %p924_p1 }
  0x3a   : > { %p927_p6 = pnand %p926_p4, %p920_p5 }
  0x3c   : > { %930 = shalt.err (!%p927_p6)
}
  0x3d   : > { %s931_s18 = scalar_lea.vmem %s1160_s27, 768  ;;  %s1021_s24 = smov [#allocation2]  }
  0x3e   : > { %p932_p8 = scmp.ne.s32.totalorder %s1160_s27, %s931_s18  ;;  %s936_s19 = sshll.u32 %s1021_s24, 4  ;;  %s937_s19 = int_to_ptr.vmem [resolvable:$false] %s936_s19 }
  0x3f   : > { %s938_s23 = scalar_lea.vmem %s937_s19, 1536  ;;  %p939_p3 = scmp.lt.s32.totalorder %s1160_s27, %s937_s19 }
  0x40   : > { %p934_p10 = pnand %p932_p8, %p918_p0  ;;  %p940_p7 = scmp.lt.s32.totalorder %s938_s23, %s931_s18 }
  0x42   : > { %p935_p11 = pneg %p934_p10  ;;  %p941_p9 = por %p940_p7, %p939_p3 }
  0x44   : > { %p942_p1 = pnand %p941_p9, %p935_p11 }
  0x46   : > { %945 = shalt.err (!%p942_p1)
}
  0x47   : > { %819 = dma.hbm_to_vmem [thread:$0]  (!%p1151_p13), %s1158_s22, 768, %s1160_s27, %s1162_s28, %s1019_s4, %s1019_s4, %s1020_s5  }
  0x48   : > { %p1390_p0 = scmp.ne.s32.totalorder %s1385_s17, 0 }
  0x49   : > { %s1196_s26 = sand.u32 (!%p1390_p0), 1, %s1008_s10   ;;  %p1391_p5 = scmp.ne.s32.totalorder (!%p1390_p0), %s1383_s15, 0 }
  0x4a   : > { %146 = sbr.rel (%p1390_p0) target bundleno = 537 (0x219), region = 28  ;;  %s149_s30 = scalar_lea.sflag (!%p1390_p0), [#allocation3], %s1196_s26 }
  0x4b   : > { %s801_s29 = smul.u32 (!%p1390_p0), 48, %s1196_s26 }
  0x4d   : > { %s152_s3 = scalar_lea.vmem (!%p1390_p0), [#allocation2], %s801_s29 }
  0x51   : > { %991 = dma.done.wait (%p1391_p5), %s149_s30, 768  }
  0x52   : > { %993 = vsyncadd (%p1391_p5), %s149_s30, 4294966528  ;;  %p1392_p2 = scmp.eq.s32.totalorder %s1072_s13, 0 }
  0x54   : > { %995 = dma.done.wait (%p1392_p2), [#allocation6], 384   ;;  %p1393_p13 = pmov %p1392_p2 }
  0x55   : > { %v1208_v0 = vld [vmem:[%s152_s3 + $0x4] ss:$12 sps:$4 sm:$0xff]   ;;  %v1210_v1 = vld [vmem:[%s152_s3] ss:$12 sps:$4 sm:$0xff]   ;;  %s1022_s17 = smov 127   ;;  %s1023_s15 = smov 126  }
  0x56   : > { %997 = vsyncadd (%p1393_p13), [#allocation6], 4294966912  ;;  %220 = vrot.lane.b32.xlu0 %v1208_v0, %s1022_s17  ;;  %v1213_v2 = vld [vmem:[%s152_s3 + $0x8] ss:$12 sps:$4 sm:$0xff]   ;;  %425 = vmatprep.subr.bf16.mxu0 %v1208_v0  ;;  %v883_v4 = vld [vmem:[%s152_s3 + $0x18] ss:$12 sps:$4 sm:$0xff]  }
  0x57   : > { %218 = vrot.lane.b32.xlu1 %v1210_v1, %s1022_s17  ;;  %v880_v3 = vld [vmem:[%s152_s3 + $0x1c] ss:$12 sps:$4 sm:$0xff]   ;;  %426 = vmatpush1.bf16.msra.mxu0 %v1210_v1  ;;  %v1219_v5 = vld [vmem:[%s152_s3 + $0x20] ss:$12 sps:$4 sm:$0xff]   ;;  %s1024_s4 = smov 90   ;;  %v1025_v6 = vmov 0  }
  0x58   : > { %427 = vmatprep.subr.bf16.mxu0 %v880_v3  ;;  %500 = vmatprep.mubr.bf16.mxu1 %v1025_v6  ;;  %s1026_s5 = smov 110   ;;  %s1027_s25 = smov 109   ;;  %v1244_v7 = vld [vmem:[#allocation5 + $0x4] ss:$12 sps:$4 sm:$0xff]   ;;  %vm230_vm0 = vcmask 1039360   ;;  %vm253_vm1 = vcmask 1031168  }
  0x59   : > { %s1028_s22 = smov 108   ;;  %s1029_s27 = smov 92   ;;  %457 = vmatprep.mubr.bf16.mxu0 %v1244_v7  ;;  %vm391_vm2 = vcmask 736256   ;;  %v1279_v38 = vld [vmem:[#allocation5 + $0x8] ss:$12 sps:$4 sm:$0xff]   ;;  %vm276_vm3 = vcmask 900096  }
  0x5a   : > { %222 = vrot.lane.b32.xlu0 %v1213_v2, %s1022_s17  ;;  %s1030_s28 = smov 91   ;;  %vm421_vm4 = vcmask 261120   ;;  %vm299_vm5 = vcmask 891904   ;;  %vm322_vm6 = vcmask 883712   ;;  %vm345_vm7 = vcmask 752640   ;;  %s802_s6 = smul.u32 24, %s1196_s26 }
  0x5b   : > { %226 = vrot.lane.b32.xlu1 %v880_v3, %s1022_s17  ;;  %428 = vmatpush1.bf16.msra.mxu0 %v883_v4  ;;  %vm368_vm8 = vcmask 744448   ;;  %vm1032_vm9 = vmmov 0   ;;  %vm632_vm13 = vcmask 257024   ;;  %s803_s7 = smul.u32 384, %s1072_s13  ;;  %s637_s23 = scalar_lea.sflag [#allocation4], %s1196_s26 }
  0x5c   : > { %s176_s20 = scalar_lea.vmem [#allocation7], %s802_s6  ;;  %s1033_s30 = smov [#allocation7]  }
  0x5d   : > { %s650_s18 = sshll.u32 %s176_s20, 4  ;;  %s1330_s13 = scalar_lea.hbm %s1379_s2, %s803_s7  ;;  %s1332_s18 = int_to_ptr.vmem [resolvable:$true] %s650_s18 }
  0x5e   : > { %228 = vrot.lane.b32.xlu0 %v1219_v5, %s1022_s17  ;;  %s946_s29 = scalar_lea.vmem %s1332_s18, 384  ;;  %s950_s3 = sshll.u32 %s1033_s30, 4  ;;  %s951_s3 = int_to_ptr.vmem [resolvable:$false] %s950_s3 }
  0x5f   : > { %224 = vrot.lane.b32.xlu1 %v883_v4, %s1022_s17  ;;  %p947_p4 = scmp.ne.s32.totalorder %s1332_s18, %s946_s29  ;;  %s952_s17 = scalar_lea.vmem %s951_s3, 768 }
  0x60   : > { %p953_p10 = scmp.lt.s32.totalorder %s1332_s18, %s951_s3  ;;  %p954_p11 = scmp.lt.s32.totalorder %s952_s17, %s946_s29 }
  0x61   : > { %p948_p6 = pnand %p947_p4, %p1145_p12 }
  0x62   : > { %243 = vrot.lane.b32.xlu0 %v1208_v0, %s1023_s15  ;;  %p955_p3 = por %p954_p11, %p953_p10 }
  0x63   : > { %245 = vrot.lane.b32.xlu1 %v1213_v2, %s1023_s15  ;;  %p949_p8 = pneg %p948_p6 }
  0x65   : > { %p956_p7 = pnand %p955_p3, %p949_p8 }
  0x66   : > { %241 = vrot.lane.b32.xlu0 %v1210_v1, %s1023_s15 }
  0x67   : > { %381 = vrot.lane.b32.xlu1 %v1208_v0, %s1024_s4 }
  0x6a   : > { %383 = vrot.lane.b32.xlu0 %v1213_v2, %s1024_s4 }
  0x6b   : > { %379 = vrot.lane.b32.xlu1 %v1210_v1, %s1024_s4 }
  0x6e   : > { %249 = vrot.lane.b32.xlu0 %v880_v3, %s1023_s15 }
  0x6f   : > { %251 = vrot.lane.b32.xlu1 %v1219_v5, %s1023_s15 }
  0x72   : > { %247 = vrot.lane.b32.xlu0 %v883_v4, %s1023_s15 }
  0x73   : > { %387 = vrot.lane.b32.xlu1 %v880_v3, %s1024_s4 }
  0x76   : > { %389 = vrot.lane.b32.xlu0 %v1219_v5, %s1024_s4 }
  0x77   : > { %385 = vrot.lane.b32.xlu1 %v883_v4, %s1024_s4 }
  0x7a   : > { %266 = vrot.lane.b32.xlu0 %v1208_v0, %s1026_s5 }
  0x7b   : > { %268 = vrot.lane.b32.xlu1 %v1213_v2, %s1026_s5 }
  0x7e   : > { %264 = vrot.lane.b32.xlu0 %v1210_v1, %s1026_s5 }
  0x7f   : > { %291 = vrot.lane.b32.xlu1 %v1213_v2, %s1027_s25 }
  0x82   : > { %272 = vrot.lane.b32.xlu0 %v880_v3, %s1026_s5 }
  0x83   : > { %274 = vrot.lane.b32.xlu1 %v1219_v5, %s1026_s5 }
  0x86   : > { %270 = vrot.lane.b32.xlu0 %v883_v4, %s1026_s5 }
  0x87   : > { %297 = vrot.lane.b32.xlu1 %v1219_v5, %s1027_s25 }
  0x8a   : > { %289 = vrot.lane.b32.xlu0 %v1208_v0, %s1027_s25 }
  0x8b   : > { %287 = vrot.lane.b32.xlu1 %v1210_v1, %s1027_s25 }
  0x8e   : > { %314 = vrot.lane.b32.xlu0 %v1213_v2, %s1028_s22 }
  0x8f   : > { %295 = vrot.lane.b32.xlu1 %v880_v3, %s1027_s25 }
  0x92   : > { %293 = vrot.lane.b32.xlu0 %v883_v4, %s1027_s25 }
  0x93   : > { %320 = vrot.lane.b32.xlu1 %v1219_v5, %s1028_s22 }
  0x96   : > { %312 = vrot.lane.b32.xlu0 %v1208_v0, %s1028_s22 }
  0x97   : > { %310 = vrot.lane.b32.xlu1 %v1210_v1, %s1028_s22 }
  0x9a   : > { %337 = vrot.lane.b32.xlu0 %v1213_v2, %s1029_s27 }
  0x9b   : > { %318 = vrot.lane.b32.xlu1 %v880_v3, %s1028_s22 }
  0x9e   : > { %316 = vrot.lane.b32.xlu0 %v883_v4, %s1028_s22 }
  0x9f   : > { %343 = vrot.lane.b32.xlu1 %v1219_v5, %s1029_s27 }
  0xa2   : > { %335 = vrot.lane.b32.xlu0 %v1208_v0, %s1029_s27 }
  0xa3   : > { %333 = vrot.lane.b32.xlu1 %v1210_v1, %s1029_s27 }
  0xa6   : > { %360 = vrot.lane.b32.xlu0 %v1213_v2, %s1030_s28 }
  0xa7   : > { %341 = vrot.lane.b32.xlu1 %v880_v3, %s1029_s27 }
  0xaa   : > { %339 = vrot.lane.b32.xlu0 %v883_v4, %s1029_s27 }
  0xab   : > { %366 = vrot.lane.b32.xlu1 %v1219_v5, %s1030_s28 }
  0xae   : > { %358 = vrot.lane.b32.xlu0 %v1208_v0, %s1030_s28 }
  0xaf   : > { %356 = vrot.lane.b32.xlu1 %v1210_v1, %s1030_s28 }
  0xb2   : > { %364 = vrot.lane.b32.xlu0 %v880_v3, %s1030_s28 }
  0xb3   : > { %362 = vrot.lane.b32.xlu1 %v883_v4, %s1030_s28 }
  0xc8   : > { %v221_v8 = vpop.permute.xlu0 %220 }
  0xc9   : > { %v219_v9 = vpop.permute.xlu1 %218 }
  0xca   : > { %v231_v13 = vsel %vm230_vm0, %v219_v9, %v221_v8 }
  0xcc   : > { %v1253_v10 = vpop.permute.xlu0 %222 }
  0xcd   : > { %v227_v11 = vpop.permute.xlu1 %226  ;;  %v232_v12 = vsel %vm230_vm0, %v221_v8, %v1253_v10 }
  0xce   : > { %429 = vmatprep.subr.bf16.mxu0 %v232_v12 }
  0xcf   : > { %430 = vmatpush1.bf16.msra.mxu0 %v231_v13 }
  0xd0   : > { %v1256_v14 = vpop.permute.xlu0 %228 }
  0xd1   : > { %v225_v15 = vpop.permute.xlu1 %224  ;;  %v234_v16 = vsel %vm230_vm0, %v227_v11, %v1256_v14 }
  0xd2   : > { %431 = vmatprep.subr.bf16.mxu0 %v234_v16  ;;  %v233_v17 = vsel %vm230_vm0, %v225_v15, %v227_v11 }
  0xd3   : > { %432 = vmatpush1.bf16.msra.mxu0 %v233_v17  ;;  %v885_v17 = vld [vmem:[#allocation5] ss:$12 sps:$4 sm:$0xff]  }
  0xd4   : > { %v244_v18 = vpop.permute.xlu0 %243 }
  0xd5   : > { %v1259_v19 = vpop.permute.xlu1 %245 }
  0xd6   : > { %v255_v20 = vsel %vm253_vm1, %v244_v18, %v1259_v19 }
  0xd7   : > { %433 = vmatprep.subr.bf16.mxu0 %v255_v20 }
  0xd8   : > { %v242_v21 = vpop.permute.xlu0 %241 }
  0xd9   : > { %v382_v22 = vpop.permute.xlu1 %381  ;;  %v254_v23 = vsel %vm253_vm1, %v242_v21, %v244_v18 }
  0xda   : > { %434 = vmatpush1.bf16.msra.mxu0 %v254_v23 }
  0xdc   : > { %v1264_v24 = vpop.permute.xlu0 %383 }
  0xdd   : > { %v380_v25 = vpop.permute.xlu1 %379  ;;  %v393_v26 = vsel %vm391_vm2, %v382_v22, %v1264_v24 }
  0xde   : > { %468 = vmatprep.subr.bf16.mxu1 %v393_v26  ;;  %v392_v27 = vsel %vm391_vm2, %v380_v25, %v382_v22 }
  0xdf   : > { %469 = vmatpush1.bf16.msra.mxu1 %v392_v27 }
  0xe0   : > { %v250_v28 = vpop.permute.xlu0 %249 }
  0xe1   : > { %v1269_v29 = vpop.permute.xlu1 %251 }
  0xe2   : > { %v257_v30 = vsel %vm253_vm1, %v250_v28, %v1269_v29 }
  0xe3   : > { %435 = vmatprep.subr.bf16.mxu0 %v257_v30 }
  0xe4   : > { %v248_v31 = vpop.permute.xlu0 %247 }
  0xe5   : > { %v388_v32 = vpop.permute.xlu1 %387  ;;  %v256_v33 = vsel %vm253_vm1, %v248_v31, %v250_v28 }
  0xe6   : > { %436 = vmatpush1.bf16.msra.mxu0 %v256_v33 }
  0xe8   : > { %v1274_v34 = vpop.permute.xlu0 %389 }
  0xe9   : > { %v386_v35 = vpop.permute.xlu1 %385  ;;  %v395_v36 = vsel %vm391_vm2, %v388_v32, %v1274_v34 }
  0xea   : > { %470 = vmatprep.subr.bf16.mxu1 %v395_v36  ;;  %v394_v37 = vsel %vm391_vm2, %v386_v35, %v388_v32 }
  0xeb   : > { %471 = vmatpush1.bf16.msra.mxu1 %v394_v37 }
  0xec   : > { %v267_v39 = vpop.permute.xlu0 %266 }
  0xed   : > { %v1281_v40 = vpop.permute.xlu1 %268 }
  0xee   : > { %v278_v41 = vsel %vm276_vm3, %v267_v39, %v1281_v40  ;;  %749 = vmatmul.mubr.msk.bf16.vlgmr.msra.gmra.mrb[0].mxu1 %vm421_vm4, %v1279_v38 }
  0xef   : > { %437 = vmatprep.subr.bf16.mxu0 %v278_v41  ;;  %543 = vmatprep.mubr.bf16.mxu1 %v1244_v7 }
  0xf0   : > { %v265_v42 = vpop.permute.xlu0 %264 }
  0xf1   : > { %v292_v43 = vpop.permute.xlu1 %291  ;;  %v277_v44 = vsel %vm276_vm3, %v265_v42, %v267_v39 }
  0xf2   : > { %438 = vmatpush1.bf16.msra.mxu0 %v277_v44  ;;  %762 = vmatprep.subr.bf16.mxu1 %v292_v43 }
  0xf3   : > { %763 = vmatpush3.bf16.msra.mxu1 %v1213_v2 }
  0xf4   : > { %v273_v45 = vpop.permute.xlu0 %272 }
  0xf5   : > { %v1290_v46 = vpop.permute.xlu1 %274 }
  0xf6   : > { %v280_v47 = vsel %vm276_vm3, %v273_v45, %v1290_v46 }
  0xf7   : > { %439 = vmatprep.subr.bf16.mxu0 %v280_v47 }
  0xf8   : > { %v271_v48 = vpop.permute.xlu0 %270 }
  0xf9   : > { %v298_v49 = vpop.permute.xlu1 %297  ;;  %v279_v50 = vsel %vm276_vm3, %v271_v48, %v273_v45 }
  0xfa   : > { %440 = vmatpush1.bf16.msra.mxu0 %v279_v50  ;;  %764 = vmatprep.subr.bf16.mxu1 %v298_v49 }
  0xfb   : > { %765 = vmatpush3.bf16.msra.mxu1 %v1219_v5 }
  0xfc   : > { %v290_v51 = vpop.permute.xlu0 %289 }
  0xfd   : > { %v288_v52 = vpop.permute.xlu1 %287  ;;  %v301_v53 = vsel %vm299_vm5, %v290_v51, %v292_v43 }
  0xfe   : > { %441 = vmatprep.subr.bf16.mxu0 %v301_v53  ;;  %v300_v54 = vsel %vm299_vm5, %v288_v52, %v290_v51 }
  0xff   : > { %442 = vmatpush1.bf16.msra.mxu0 %v300_v54 }
 0x100   : > { %v315_v55 = vpop.permute.xlu0 %314 }
 0x101   : > { %v296_v56 = vpop.permute.xlu1 %295  ;;  %766 = vmatprep.subr.bf16.mxu1 %v315_v55 }
 0x102   : > { %v303_v57 = vsel %vm299_vm5, %v296_v56, %v298_v49  ;;  %767 = vmatpush3.bf16.msra.mxu1 %v1253_v10 }
 0x103   : > { %443 = vmatprep.subr.bf16.mxu0 %v303_v57 }
 0x104   : > { %v294_v58 = vpop.permute.xlu0 %293 }
 0x105   : > { %v321_v59 = vpop.permute.xlu1 %320  ;;  %v302_v60 = vsel %vm299_vm5, %v294_v58, %v296_v56 }
 0x106   : > { %768 = vmatprep.subr.bf16.mxu1 %v321_v59  ;;  %444 = vmatpush1.bf16.msra.mxu0 %v302_v60 }
 0x107   : > { %769 = vmatpush3.bf16.msra.mxu1 %v1256_v14 }
 0x108   : > { %v313_v61 = vpop.permute.xlu0 %312 }
 0x109   : > { %v311_v62 = vpop.permute.xlu1 %310  ;;  %v324_v63 = vsel %vm322_vm6, %v313_v61, %v315_v55 }
 0x10a   : > { %445 = vmatprep.subr.bf16.mxu0 %v324_v63  ;;  %v323_v0 = vsel %vm322_vm6, %v311_v62, %v313_v61 }
 0x10b   : > { %446 = vmatpush1.bf16.msra.mxu0 %v323_v0 }
 0x10c   : > { %v338_v1 = vpop.permute.xlu0 %337 }
 0x10d   : > { %v319_v2 = vpop.permute.xlu1 %318  ;;  %770 = vmatprep.subr.bf16.mxu1 %v338_v1 }
 0x10e   : > { %v326_v3 = vsel %vm322_vm6, %v319_v2, %v321_v59  ;;  %771 = vmatpush3.bf16.msra.mxu1 %v1259_v19  ;;  %v1031_v19 = vmov 0.0  }
 0x10f   : > { %447 = vmatprep.subr.bf16.mxu0 %v326_v3 }
 0x110   : > { %v317_v4 = vpop.permute.xlu0 %316 }
 0x111   : > { %v344_v5 = vpop.permute.xlu1 %343  ;;  %v325_v6 = vsel %vm322_vm6, %v317_v4, %v319_v2 }
 0x112   : > { %772 = vmatprep.subr.bf16.mxu1 %v344_v5  ;;  %448 = vmatpush1.bf16.msra.mxu0 %v325_v6 }
 0x113   : > { %773 = vmatpush3.bf16.msra.mxu1 %v1269_v29 }
 0x114   : > { %v336_v7 = vpop.permute.xlu0 %335 }
 0x115   : > { %v334_v8 = vpop.permute.xlu1 %333  ;;  %v347_v9 = vsel %vm345_vm7, %v336_v7, %v338_v1 }
 0x116   : > { %449 = vmatprep.subr.bf16.mxu0 %v347_v9  ;;  %v346_v10 = vsel %vm345_vm7, %v334_v8, %v336_v7 }
 0x117   : > { %450 = vmatpush1.bf16.msra.mxu0 %v346_v10 }
 0x118   : > { %v361_v11 = vpop.permute.xlu0 %360 }
 0x119   : > { %v342_v12 = vpop.permute.xlu1 %341  ;;  %774 = vmatprep.subr.bf16.mxu1 %v361_v11 }
 0x11a   : > { %v349_v13 = vsel %vm345_vm7, %v342_v12, %v344_v5  ;;  %775 = vmatpush3.bf16.msra.mxu1 %v1281_v40 }
 0x11b   : > { %451 = vmatprep.subr.bf16.mxu0 %v349_v13 }
 0x11c   : > { %v340_v14 = vpop.permute.xlu0 %339 }
 0x11d   : > { %v367_v15 = vpop.permute.xlu1 %366  ;;  %v348_v16 = vsel %vm345_vm7, %v340_v14, %v342_v12 }
 0x11e   : > { %776 = vmatprep.subr.bf16.mxu1 %v367_v15  ;;  %452 = vmatpush1.bf16.msra.mxu0 %v348_v16 }
 0x11f   : > { %777 = vmatpush3.bf16.msra.mxu1 %v1290_v46 }
 0x120   : > { %v359_v18 = vpop.permute.xlu0 %358  ;;  %787 = vmatprep.subr.bf16.mxu1 %v1031_v19 }
 0x121   : > { %v357_v20 = vpop.permute.xlu1 %356  ;;  %v370_v21 = vsel %vm368_vm8, %v359_v18, %v361_v11 }
 0x122   : > { %544 = vmatmul.mubr.bf16.vlgmr.msra.gmra.mrb[4].mxu1 %v885_v17  ;;  %453 = vmatprep.subr.bf16.mxu0 %v370_v21  ;;  %v369_v22 = vsel %vm368_vm8, %v357_v20, %v359_v18 }
 0x123   : > { %788 = vmatpush3.bf16.msra.mxu1 %v1264_v24  ;;  %454 = vmatpush1.bf16.msra.mxu0 %v369_v22 }
 0x124   : > { %v365_v23 = vpop.permute.xlu0 %364  ;;  %789 = vmatprep.subr.bf16.mxu1 %v1031_v19  ;;  %791 = vmatprep.mubr.msk.bf16.mxu1 %vm1032_vm9, %v1031_v19 }
 0x125   : > { %v363_v25 = vpop.permute.xlu1 %362  ;;  %v372_v26 = vsel %vm368_vm8, %v365_v23, %v367_v15 }
 0x126   : > { %455 = vmatprep.subr.bf16.mxu0 %v372_v26  ;;  %v371_v27 = vsel %vm368_vm8, %v363_v25, %v365_v23 }
 0x127   : > { %790 = vmatpush3.bf16.msra.mxu1 %v1274_v34  ;;  %456 = vmatpush1.bf16.msra.mxu0 %v371_v27 }
 0x12a   : > { %792 = vmatmul.mubr.msk.bf16.vlgmr.msra.gmra.mrb[8].mxu1 %vm421_vm4, %v1279_v38  ;;  %458 = vmatmul.mubr.bf16.vlgmr.msra.gmra.mrb[0].mxu0 %v885_v17 }
 0x1c1   : > { %v502_v24 = vpop.f32.mrb[0].mxu1 }
 0x1c2   : > { %v504_v28 = vpop.f32.mrb[1].mxu1 }
 0x1c3   : > { %v506_v29 = vpop.f32.mrb[2].mxu1 }
 0x1c4   : > { %v508_v30 = vpop.f32.mrb[3].mxu1 }
 0x1f5   : > { %v778_v31 = vpop.f32.mrb[4].mxu1 }
 0x1f6   : > { %v779_v32 = vpop.f32.mrb[5].mxu1 }
 0x1f7   : > { %v780_v33 = vadd.f32 %v779_v32, %v778_v31  ;;  %v781_v35 = vpop.f32.mrb[6].mxu1 }
 0x1f8   : > { %v782_v36 = vpop.f32.mrb[7].mxu1 }
 0x1f9   : > { %v783_v37 = vadd.f32 %v782_v36, %v781_v35 }
 0x1fd   : > { %v586_v39 = vpop.f32.mrb[8].mxu1  ;;  %v459_v40 = vpop.f32.mrb[0].mxu0 }
 0x1fe   : > { %v587_v34 = vadd.f32 %v780_v33, %v586_v39  ;;  %v503_v41 = vadd.f32 %v502_v24, %v459_v40  ;;  %v793_v42 = vpop.f32.mrb[9].mxu1  ;;  %v461_v43 = vpop.f32.mrb[1].mxu0 }
 0x1ff   : > { %v505_v44 = vadd.f32 %v504_v28, %v461_v43  ;;  %v589_v38 = vpop.f32.mrb[10].mxu1  ;;  %v463_v45 = vpop.f32.mrb[2].mxu0 }
 0x200   : > { %vm595_vm10 = vcmp.ge.f32.partialorder %v587_v34, 0.0  ;;  %v601_v46 = vmul.f32 0.01, %v587_v34  ;;  %vm593_vm11 = vcmp.ge.f32.partialorder %v503_v41, 0.0  ;;  %v599_v47 = vmul.f32 0.01, %v503_v41 }
 0x201   : > { %vm594_vm12 = vcmp.ge.f32.partialorder %v505_v44, 0.0  ;;  %v600_v48 = vmul.f32 0.01, %v505_v44  ;;  %v590_v49 = vadd.f32 %v783_v37, %v589_v38  ;;  %v507_v50 = vadd.f32 %v506_v29, %v463_v45  ;;  %v794_v51 = vpop.f32.mrb[11].mxu1  ;;  %v465_v52 = vpop.f32.mrb[3].mxu0 }
 0x202   : > { %v607_v53 = vsel %vm595_vm10, %v587_v34, %v601_v46  ;;  %v605_v54 = vsel %vm593_vm11, %v503_v41, %v599_v47  ;;  %v509_v55 = vadd.f32 %v508_v30, %v465_v52 }
 0x203   : > { %v759_v56 = vpack.c.bf16 %v607_v53, %v607_v53  ;;  %v606_v57 = vsel %vm594_vm12, %v505_v44, %v600_v48  ;;  %vm598_vm14 = vcmp.ge.f32.partialorder %v590_v49, 0.0  ;;  %v604_v58 = vmul.f32 0.01, %v590_v49 }
 0x204   : > { %v758_v59 = vpack.c.bf16 %v606_v57, %v605_v54  ;;  %vm596_vm15 = vcmp.ge.f32.partialorder %v507_v50, 0.0  ;;  %v602_v60 = vmul.f32 0.01, %v507_v50  ;;  %vm597_vm0 = vcmp.ge.f32.partialorder %v509_v55, 0.0 }
 0x205   : > { %633 = vst.msk [vmem:[%s176_s20 + $0x8] sm:$0xf] %vm632_vm13, %v759_v56  ;;  %v610_v61 = vsel %vm598_vm14, %v590_v49, %v604_v58  ;;  %v603_v62 = vmul.f32 0.01, %v509_v55 }
 0x206   : > { %631 = vst [vmem:[%s176_s20] sm:$0xff] %v758_v59  ;;  %v761_v63 = vpack.c.bf16 %v610_v61, %v610_v61  ;;  %v608_v0 = vsel %vm596_vm15, %v507_v50, %v602_v60 }
 0x207   : > { %v609_v1 = vsel %vm597_vm0, %v509_v55, %v603_v62 }
 0x208   : > { %635 = vst.msk [vmem:[%s176_s20 + $0x14] sm:$0xf] %vm632_vm13, %v761_v63  ;;  %v760_v2 = vpack.c.bf16 %v609_v1, %v608_v0 }
 0x20a   : > { %634 = vst [vmem:[%s176_s20 + $0xc] sm:$0xff] %v760_v2 }
 0x20b   : > { %959 = shalt.err (!%p956_p7)
}
 0x20c   : > { %s960_s15 = scalar_lea.hbm %s1330_s13, 384  ;;  %s964_s25 = scalar_lea.hbm %s1379_s2, 768 }
 0x20d   : > { %p961_p9 = scmp.ne.s32.totalorder %s1330_s13, %s960_s15  ;;  %p965_p5 = scmp.lt.u32.totalorder %s1330_s13, %s1379_s2 }
 0x20e   : > { %p966_p2 = scmp.lt.u32.totalorder %s964_s25, %s960_s15  ;;  %p968_p4 = scmp.lt.u32.totalorder %s960_s15, %s1330_s13 }
 0x20f   : > { %p962_p1 = pnand %p961_p9, %p1145_p12 }
 0x210   : > { %p967_p13 = por %p966_p2, %p965_p5 }
 0x211   : > { %p963_p0 = pneg %p962_p1 }
 0x212   : > { %p969_p6 = por %p968_p4, %p967_p13 }
 0x214   : > { %p970_p8 = pnand %p969_p6, %p963_p0 }
 0x216   : > { %973 = shalt.err (!%p970_p8)
}
 0x217   : > { %s1034_s28 = smov 192   ;;  %s1035_s6 = smov 12  }
 0x218   : > { %810 = dma.vmem_to_hbm [thread:$0]  (%p1145_p12), %s1332_s18, 384, %s1330_s13, %s637_s23, %s1034_s28, %s1034_s28, %s1035_s6  }
 0x219 PF: > { %s665_s7 = sand.u32 1, %s1004_s9   ;;  %p1394_p10 = scmp.ne.s32.totalorder %s1384_s16, 0 }
 0x21a   : > { %p1395_p11 = scmp.ge.s32.totalorder %s1016_s12, 2  ;;  %s666_s20 = scalar_lea.sflag [#allocation4], %s665_s7 }
 0x21c   : > { %p821_p3 = pnand %p1395_p11, %p1394_p10 }
 0x21e   : > { %999 = dma.done.wait (!%p821_p3), %s666_s20, 384  }
 0x21f   : > { %1001 = vsyncadd (!%p821_p3), %s666_s20, 4294966912  ;;  %p16_p7 = scmp.ge.s32.totalorder %s1107_s21, 4   ;;  %s1396_s9 = smov %s1008_s10 }
 0x220   : > { %s1397_s10 = smov %s1012_s11  ;;  %s1398_s11 = smov %s1141_s8 }
 0x221   : > { %s1399_s12 = smov %s1107_s21  ;;  %18 = sbr.rel (!%p16_p7) target bundleno = 6 (0x6), region = 77 }
 0x228   :  { %671 = vsyncpa [#allocation3], 1 }
 0x229   :  { %673 = vsyncpa [#allocation3 + $0x1], 1 }
 0x22a   :  { %674 = vsyncpa [#allocation6], 1 }
 0x22b   :  { %675 = vsyncpa [#allocation4], 1 }
 0x22c   :  { %677 = vsyncpa [#allocation4 + $0x1], 1 }

// kernel: generative_chimney_forward.69
= control target key start
LH: loop header
LB: loop body
LE: loop exit
PB: predicated region body
PF: predicated region fallthrough
CT: control target
= control target key end

     0   :  { %7 = vsyncpa [#allocation3], 0  ;;  %s778_s0 = inlined_call_operand.hbm [shape: bf16[2,16,256], index: 0, kind: input, shape index: {}]   ;;  %s779_s1 = inlined_call_operand.hbm [shape: bf16[3,16], index: 1, kind: input, shape index: {}]   ;;  %s780_s2 = inlined_call_operand.hbm [shape: f32[2,3,256], index: 2, kind: output, shape index: {}]  }
   0x1   :  { %9 = vsyncpa [#allocation3 + $0x1], 0 }
   0x2   :  { %10 = vsyncpa [#allocation6], 0 }
   0x3   :  { %11 = vsyncpa [#allocation4], 0 }
   0x4   :  { %13 = vsyncpa [#allocation4 + $0x1], 0  ;;  %s581_s9 = smov 0   ;;  %s583_s10 = smov 0  }
   0x5   :  { %s585_s11 = smov 0   ;;  %s587_s12 = smov 0  }
   0x6 LB: > { %s602_s13 = sadd.s32 4294967295, %s558_s12   ;;  %s342_s14 = sadd.s32 4294967294, %s558_s12   ;;  %s558_s12 = sphi %s587_s12, %s805_s12   ;;  %s554_s11 = sphi %s585_s11, %s804_s11   ;;  %s550_s10 = sphi %s583_s10, %s803_s10   ;;  %s546_s9 = sphi %s581_s9, %s802_s9  }
   0x7   : > { %s606_s15 = sadd.s32 1, %s558_s12   ;;  %s26_s16 = sadd.s32 1, %s554_s11 }
   0x8   : > { %s23_s17 = ssub.s32 %s558_s12, %s606_s15  ;;  %p33_p0 = scmp.ne.s32.totalorder %s554_s11, %s550_s10 }
   0x9   : > { %p24_p1 = scmp.eq.s32.totalorder %s23_s17, 0  ;;  %p34_p2 = scmp.eq.s32.totalorder %s558_s12, 0 }
   0xa   : > { %p39_p3 = scmp.ne.s32.totalorder %s550_s10, %s546_s9  ;;  %p781_p4 = scmp.eq.s32.totalorder %s602_s13, 0 }
   0xb   : > { %s618_s18 = scalar_select %p24_p1, %s554_s11, %s26_s16  }
   0xc   : > { %p620_p5 = por %p34_p2, %p33_p0  ;;  %p626_p6 = por %p781_p4, %p39_p3 }
   0xd   : > { %p84_p7 = scmp.eq.s32.totalorder %s602_s13, 1  ;;  %p90_p8 = scmp.eq.s32.totalorder %s342_s14, 1 }
   0xe   : > { %s787_s20 = scalar_select %p626_p6, 1, 0 }
   0xf   : > { %p343_p9 = scmp.ge.s32.totalorder %s558_s12, 1  ;;  %p97_p10 = scmp.lt.s32.totalorder %s558_s12, 3 }
  0x10   : > { %p633_p11 = por %p84_p7, %p33_p0  ;;  %p637_p12 = por %p90_p8, %p39_p3 }
  0x11   : > { %p641_p13 = pnand %p343_p9, %p97_p10  ;;  %s560_s24 = smov [#allocation5]  }
  0x12   : > { %s788_s21 = scalar_select %p633_p11, 1, 0 }
  0x13   : > { %s789_s22 = scalar_select %p637_p12, 1, 0 }
  0x14   : > { %s790_s23 = scalar_select %p641_p13, 1, 0 }
  0x15   : > { %p371_p2 = pneg %p641_p13  ;;  %s110_s25 = sshll.u32 %s560_s24, 4  ;;  %s111_s25 = int_to_ptr.vmem [resolvable:$true] %s110_s25 }
  0x16   : > { %p384_p4 = scmp.lt.s32.totalorder %s558_s12, 2  ;;  %p791_p0 = scmp.eq.s32.totalorder %s602_s13, 0 }
  0x17   : > { %s121_s27 = sand.u32 1, %s554_s11   ;;  %s430_s4 = scalar_lea.hbm %s779_s1, 32 }
  0x18   : > { %p651_p7 = pnand %p371_p2, %p791_p0  ;;  %p658_p3 = pnand %p384_p4, %p620_p5 }
  0x19   : > { %s346_s29 = sshll.u32 %s121_s27, 4  ;;  %p431_p8 = scmp.ne.s32.totalorder %s779_s1, %s430_s4 }
  0x1a   : > { %s793_s28 = scalar_select %p658_p3, 1, 0 }
  0x1b   : > { %p432_p9 = pneg %p651_p7  ;;  %p437_p4 = scmp.lt.u32.totalorder %s430_s4, %s779_s1 }
  0x1d   : > { %p433_p10 = pnand %p432_p9, %p431_p8 }
  0x1f   : > { %p434_p2 = pneg %p433_p10 }
  0x21   : > { %p439_p5 = pnand %p437_p4, %p434_p2 }
  0x23   : > { %442 = shalt.err (!%p439_p5)
}
  0x24   : > { %s443_s14 = scalar_lea.vmem %s111_s25, 32  ;;  %p451_p11 = scmp.lt.s32.totalorder %s111_s25, %s111_s25 }
  0x25   : > { %p444_p0 = scmp.ne.s32.totalorder %s111_s25, %s443_s14  ;;  %p452_p6 = scmp.lt.s32.totalorder %s443_s14, %s443_s14 }
  0x27   : > { %p446_p1 = pnand %p444_p0, %p432_p9  ;;  %p453_p13 = por %p452_p6, %p451_p11 }
  0x29   : > { %p447_p12 = pneg %p446_p1 }
  0x2b   : > { %p454_p3 = pnand %p453_p13, %p447_p12 }
  0x2d   : > { %457 = shalt.err (!%p454_p3)
}
  0x2e   : > { %374 = dma.hbm_to_vmem [thread:$0]  (!%p651_p7), %s779_s1, 32, %s111_s25, [#allocation6]  }
  0x2f   : > { %s361_s19 = sshll.u32 %s558_s12, 8  ;;  %s125_s24 = scalar_lea.vmem [#allocation2], %s346_s29 }
  0x30   : > { %s132_s30 = sshll.u32 %s125_s24, 4  ;;  %s682_s5 = scalar_lea.hbm %s778_s0, %s361_s19  ;;  %s684_s30 = int_to_ptr.vmem [resolvable:$true] %s132_s30 }
  0x31   : > { %s686_s26 = scalar_lea.sflag [#allocation3], %s121_s27  ;;  %s458_s6 = scalar_lea.hbm %s682_s5, 256 }
  0x32   : > { %p459_p6 = scmp.ne.s32.totalorder %s682_s5, %s458_s6  ;;  %p794_p11 = scmp.ne.s32.totalorder %s793_s28, 0 }
  0x33   : > { %s463_s7 = scalar_lea.hbm %s778_s0, 512  ;;  %p464_p7 = scmp.lt.u32.totalorder %s682_s5, %s778_s0 }
  0x34   : > { %p460_p12 = pneg %p794_p11  ;;  %p465_p3 = scmp.lt.u32.totalorder %s463_s7, %s458_s6 }
  0x35   : > { %p467_p9 = scmp.lt.u32.totalorder %s458_s6, %s682_s5 }
  0x36   : > { %p461_p13 = pnand %p460_p12, %p459_p6  ;;  %p466_p8 = por %p465_p3, %p464_p7 }
  0x38   : > { %p462_p1 = pneg %p461_p13  ;;  %p468_p10 = por %p467_p9, %p466_p8 }
  0x3a   : > { %p469_p2 = pnand %p468_p10, %p462_p1 }
  0x3c   : > { %472 = shalt.err (!%p469_p2)
}
  0x3d   : > { %s473_s27 = scalar_lea.vmem %s684_s30, 256  ;;  %s561_s16 = smov [#allocation2]  }
  0x3e   : > { %p474_p4 = scmp.ne.s32.totalorder %s684_s30, %s473_s27  ;;  %s478_s17 = sshll.u32 %s561_s16, 4  ;;  %s479_s17 = int_to_ptr.vmem [resolvable:$false] %s478_s17 }
  0x3f   : > { %s480_s19 = scalar_lea.vmem %s479_s17, 512  ;;  %p481_p6 = scmp.lt.s32.totalorder %s684_s30, %s479_s17 }
  0x40   : > { %p476_p5 = pnand %p474_p4, %p460_p12  ;;  %p482_p13 = scmp.lt.s32.totalorder %s480_s19, %s473_s27 }
  0x42   : > { %p477_p0 = pneg %p476_p5  ;;  %p483_p7 = por %p482_p13, %p481_p6 }
  0x44   : > { %p484_p3 = pnand %p483_p7, %p477_p0 }
  0x46   : > { %487 = shalt.err (!%p484_p3)
}
  0x47   : > { %s562_s24 = smov 128   ;;  %s563_s3 = smov 8  }
  0x48   : > { %378 = dma.hbm_to_vmem [thread:$0]  (!%p794_p11), %s682_s5, 256, %s684_s30, %s686_s26, %s562_s24, %s562_s24, %s563_s3  }
  0x49   : > { %p795_p12 = scmp.ne.s32.totalorder %s790_s23, 0 }
  0x4a   : > { %s717_s4 = sand.u32 (!%p795_p12), 1, %s550_s10   ;;  %p796_p1 = scmp.ne.s32.totalorder (!%p795_p12), %s787_s20, 0 }
  0x4b   : > { %144 = sbr.rel (%p795_p12) target bundleno = 337 (0x151), region = 28  ;;  %s350_s6 = sshll.u32 (!%p795_p12), %s717_s4, 4 }
  0x4c   : > { %s147_s25 = scalar_lea.sflag (!%p795_p12), [#allocation3], %s717_s4  ;;  %s150_s29 = scalar_lea.vmem (!%p795_p12), [#allocation2], %s350_s6 }
  0x52   : > { %533 = dma.done.wait (%p796_p1), %s147_s25, 256  }
  0x53   : > { %535 = vsyncadd (%p796_p1), %s147_s25, 4294967040  ;;  %p797_p8 = scmp.eq.s32.totalorder %s602_s13, 0 }
  0x55   : > { %537 = dma.done.wait (%p797_p8), [#allocation6], 32   ;;  %p798_p11 = pmov %p797_p8 }
  0x56   : > { %v564_v0 = vmov 0   ;;  %v423_v1 = vld [vmem:[%s150_s29 + $0x4] ss:$8 sps:$4 sm:$0xff]   ;;  %v425_v2 = vld [vmem:[%s150_s29] ss:$8 sps:$4 sm:$0xff]   ;;  %vm189_vm0 = vcmask 130048  }
  0x57   : > { %539 = vsyncadd (%p798_p11), [#allocation6], 4294967264  ;;  %225 = vmatprep.mubr.bf16.mxu0 %v564_v0  ;;  %193 = vmatprep.subr.bf16.mxu0 %v423_v1  ;;  %v178_v3 = vld [vmem:[#allocation5] sm:$0x3]  ;;  %s352_s20 = sshll.u32 %s717_s4, 3  ;;  %s362_s23 = sshll.u32 %s602_s13, 7 }
  0x58   : > { %194 = vmatpush1.bf16.msra.mxu0 %v425_v2  ;;  %s174_s28 = scalar_lea.vmem [#allocation7], %s352_s20  ;;  %s734_s7 = scalar_lea.hbm %s780_s2, %s362_s23 }
  0x59   : > { %s262_s30 = sshll.u32 %s174_s28, 4  ;;  %s248_s8 = scalar_lea.sflag [#allocation4], %s717_s4  ;;  %s736_s30 = int_to_ptr.vmem [resolvable:$true] %s262_s30 }
  0x5a   : > { %s488_s14 = scalar_lea.vmem %s736_s30, 128  ;;  %p799_p10 = scmp.ne.s32.totalorder %s788_s21, 0 }
  0x5b   : > { %355 = vmatmul.mubr.msk.bf16.vlgmr.msra.gmra.mrb[0].mxu0 %vm189_vm0, %v178_v3  ;;  %p489_p9 = scmp.ne.s32.totalorder %s736_s30, %s488_s14  ;;  %s565_s13 = smov [#allocation7]  }
  0x5c   : > { %s492_s27 = sshll.u32 %s565_s13, 4  ;;  %s493_s27 = int_to_ptr.vmem [resolvable:$false] %s492_s27 }
  0x5d   : > { %p490_p2 = pnand %p489_p9, %p799_p10  ;;  %s494_s16 = scalar_lea.vmem %s493_s27, 256 }
  0x5e   : > { %p495_p5 = scmp.lt.s32.totalorder %s736_s30, %s493_s27  ;;  %p496_p0 = scmp.lt.s32.totalorder %s494_s16, %s488_s14 }
  0x5f   : > { %p491_p4 = pneg %p490_p2 }
  0x60   : > { %p497_p6 = por %p496_p0, %p495_p5 }
  0x62   : > { %p498_p13 = pnand %p497_p6, %p491_p4 }
 0x12e   : > { %v227_v4 = vpop.f32.mrb[0].mxu0 }
 0x12f   : > { %v234_v5 = vmul.f32 0.5, %v227_v4  ;;  %v229_v6 = vpop.f32.mrb[1].mxu0 }
 0x130   : > { %v235_v7 = vmul.f32 0.5, %v229_v6  ;;  %v231_v8 = vpop.f32.mrb[2].mxu0 }
 0x131   : > { %426 = vtanh.f32 %v234_v5  ;;  %v232_v9 = vpop.f32.mrb[3].mxu0 }
 0x132   : > { %428 = vtanh.f32 %v235_v7 }
 0x13b   : > { %v427_v10 = vpop.eup %426 }
 0x13c   : > { %v429_v11 = vpop.eup %428  ;;  %v238_v12 = vadd.f32 1.0, %v427_v10 }
 0x13d   : > { %v239_v13 = vadd.f32 1.0, %v429_v11 }
 0x13e   : > { %v240_v14 = vmul.f32 0.5, %v238_v12 }
 0x13f   : > { %v241_v15 = vmul.f32 0.5, %v239_v13 }
 0x141   : > { %v244_v16 = vcombine.low %v240_v14, %v241_v15 }
 0x143   : > { %246 = vst [vmem:[%s174_s28] sm:$0x77] %v244_v16 }
 0x144   : > { %501 = shalt.err (!%p498_p13)
}
 0x145   : > { %s502_s17 = scalar_lea.hbm %s734_s7, 128  ;;  %s506_s3 = scalar_lea.hbm %s780_s2, 256 }
 0x146   : > { %p503_p7 = scmp.ne.s32.totalorder %s734_s7, %s502_s17  ;;  %p507_p1 = scmp.lt.u32.totalorder %s734_s7, %s780_s2 }
 0x147   : > { %p508_p8 = scmp.lt.u32.totalorder %s506_s3, %s502_s17  ;;  %p510_p9 = scmp.lt.u32.totalorder %s502_s17, %s734_s7 }
 0x148   : > { %p504_p3 = pnand %p503_p7, %p799_p10 }
 0x149   : > { %p509_p11 = por %p508_p8, %p507_p1 }
 0x14a   : > { %p505_p12 = pneg %p504_p3 }
 0x14b   : > { %p511_p2 = por %p510_p9, %p509_p11 }
 0x14d   : > { %p512_p4 = pnand %p511_p2, %p505_p12 }
 0x14f   : > { %515 = shalt.err (!%p512_p4)
}
 0x150   : > { %369 = dma.vmem_to_hbm [thread:$0]  (%p799_p10), %s736_s30, 128, %s734_s7, %s248_s8  }
 0x151 PF: > { %s274_s25 = sand.u32 1, %s546_s9   ;;  %p800_p5 = scmp.ne.s32.totalorder %s789_s22, 0 }
 0x152   : > { %p801_p0 = scmp.ge.s32.totalorder %s558_s12, 2  ;;  %s275_s29 = scalar_lea.sflag [#allocation4], %s274_s25 }
 0x154   : > { %p380_p6 = pnand %p801_p0, %p800_p5 }
 0x156   : > { %541 = dma.done.wait (!%p380_p6), %s275_s29, 128  }
 0x157   : > { %543 = vsyncadd (!%p380_p6), %s275_s29, 4294967168  ;;  %p16_p13 = scmp.ge.s32.totalorder %s606_s15, 4   ;;  %s802_s9 = smov %s550_s10 }
 0x158   : > { %s803_s10 = smov %s554_s11  ;;  %s804_s11 = smov %s618_s18 }
 0x159   : > { %s805_s12 = smov %s606_s15  ;;  %18 = sbr.rel (!%p16_p13) target bundleno = 6 (0x6), region = 77 }
 0x160   :  { %280 = vsyncpa [#allocation3], 1 }
 0x161   :  { %282 = vsyncpa [#allocation3 + $0x1], 1 }
 0x162   :  { %283 = vsyncpa [#allocation6], 1 }
 0x163   :  { %284 = vsyncpa [#allocation4], 1 }
 0x164   :  { %286 = vsyncpa [#allocation4 + $0x1], 1 }

// kernel: generative_chimney_forward.68
= control target key start
LH: loop header
LB: loop body
LE: loop exit
PB: predicated region body
PF: predicated region fallthrough
CT: control target
= control target key end

     0   :  { %8 = vsyncpa [#allocation3], 0  ;;  %s942_s0 = inlined_call_operand.hbm [shape: bf16[2,16,288], index: 0, kind: input, shape index: {}]   ;;  %s943_s1 = inlined_call_operand.hbm [shape: f32[16,1], index: 1, kind: input, shape index: {}]   ;;  %s944_s2 = inlined_call_operand.hbm [shape: f32[16,1], index: 2, kind: input, shape index: {}]   ;;  %s945_s3 = inlined_call_operand.hbm [shape: bf16[2,16,288], index: 3, kind: output, shape index: {}]  }
   0x1   :  { %10 = vsyncpa [#allocation3 + $0x1], 0 }
   0x2   :  { %11 = vsyncpa [#allocation6], 0 }
   0x3   :  { %12 = vsyncpa [#allocation4], 0 }
   0x4   :  { %14 = vsyncpa [#allocation4 + $0x1], 0  ;;  %s702_s12 = smov 0   ;;  %s704_s13 = smov 0  }
   0x5   :  { %s706_s14 = smov 0   ;;  %s708_s15 = smov 0  }
   0x6 LB: > { %s723_s16 = sadd.s32 4294967295, %s669_s15   ;;  %s413_s17 = sadd.s32 4294967294, %s669_s15   ;;  %s669_s15 = sphi %s708_s15, %s965_s15   ;;  %s665_s14 = sphi %s706_s14, %s964_s14   ;;  %s661_s13 = sphi %s704_s13, %s963_s13   ;;  %s657_s12 = sphi %s702_s12, %s962_s12  }
   0x7   : > { %p40_p0 = scmp.ne.s32.totalorder %s661_s13, %s657_s12  ;;  %p946_p1 = scmp.eq.s32.totalorder %s723_s16, 0 }
   0x8   : > { %p112_p3 = scmp.eq.s32.totalorder %s413_s17, 1  ;;  %p414_p5 = scmp.ge.s32.totalorder %s669_s15, 1 }
   0x9   : > { %p732_p4 = por %p946_p1, %p40_p0  ;;  %p119_p7 = scmp.lt.s32.totalorder %s669_s15, 3 }
   0xa   : > { %p737_p6 = por %p112_p3, %p40_p0  ;;  %s671_s21 = smov [#allocation5]  }
   0xb   : > { %s949_s18 = scalar_select %p732_p4, 1, 0 }
   0xc   : > { %s950_s19 = scalar_select %p737_p6, 1, 0 }
   0xd   : > { %p742_p8 = pnand %p414_p5, %p119_p7  ;;  %s131_s22 = sshll.u32 %s671_s21, 4  ;;  %s746_s22 = int_to_ptr.vmem [resolvable:$true] %s131_s22 }
   0xe   : > { %s672_s24 = smov [#allocation7]   ;;  %s513_s28 = scalar_lea.hbm %s943_s1, 256 }
   0xf   : > { %p449_p9 = pneg %p742_p8  ;;  %s144_s25 = sshll.u32 %s672_s24, 4  ;;  %s757_s25 = int_to_ptr.vmem [resolvable:$true] %s144_s25 }
  0x10   : > { %p514_p12 = scmp.ne.s32.totalorder %s943_s1, %s513_s28  ;;  %p520_p5 = scmp.lt.u32.totalorder %s513_s28, %s943_s1 }
  0x11   : > { %p753_p11 = pnand %p449_p9, %p946_p1 }
  0x13   : > { %p515_p13 = pneg %p753_p11 }
  0x15   : > { %p516_p0 = pnand %p515_p13, %p514_p12 }
  0x17   : > { %p517_p3 = pneg %p516_p0 }
  0x19   : > { %p522_p7 = pnand %p520_p5, %p517_p3 }
  0x1b   : > { %525 = shalt.err (!%p522_p7)
}
  0x1c   : > { %s526_s6 = scalar_lea.vmem %s746_s22, 256  ;;  %p534_p2 = scmp.lt.s32.totalorder %s746_s22, %s746_s22 }
  0x1d   : > { %p527_p9 = scmp.ne.s32.totalorder %s746_s22, %s526_s6  ;;  %p535_p12 = scmp.lt.s32.totalorder %s526_s6, %s526_s6 }
  0x1f   : > { %p529_p10 = pnand %p527_p9, %p515_p13  ;;  %p536_p0 = por %p535_p12, %p534_p2 }
  0x21   : > { %p530_p1 = pneg %p529_p10 }
  0x23   : > { %p537_p6 = pnand %p536_p0, %p530_p1 }
  0x25   : > { %540 = shalt.err (!%p537_p6)
}
  0x26   : > { %s673_s7 = smov 128   ;;  %s674_s8 = smov 8  }
  0x27   : > { %452 = dma.hbm_to_vmem [thread:$0]  (!%p753_p11), %s943_s1, 256, %s746_s22, [#allocation6], %s673_s7, %s673_s7, %s674_s8  }
  0x28   : > { %s541_s21 = scalar_lea.hbm %s944_s2, 256 }
  0x29   : > { %p542_p2 = scmp.ne.s32.totalorder %s944_s2, %s541_s21  ;;  %p548_p10 = scmp.lt.u32.totalorder %s541_s21, %s944_s2 }
  0x2b   : > { %p544_p1 = pnand %p542_p2, %p515_p13 }
  0x2d   : > { %p545_p6 = pneg %p544_p1 }
  0x2f   : > { %p550_p3 = pnand %p548_p10, %p545_p6 }
  0x31   : > { %553 = shalt.err (!%p550_p3)
}
  0x32   : > { %s554_s22 = scalar_lea.vmem %s757_s25, 256  ;;  %p562_p12 = scmp.lt.s32.totalorder %s757_s25, %s757_s25 }
  0x33   : > { %p555_p5 = scmp.ne.s32.totalorder %s757_s25, %s554_s22  ;;  %p563_p0 = scmp.lt.s32.totalorder %s554_s22, %s554_s22 }
  0x35   : > { %p557_p7 = pnand %p555_p5, %p515_p13  ;;  %p564_p2 = por %p563_p0, %p562_p12 }
  0x37   : > { %p558_p9 = pneg %p557_p7 }
  0x39   : > { %p565_p1 = pnand %p564_p2, %p558_p9 }
  0x3b   : > { %568 = shalt.err (!%p565_p1)
}
  0x3c   : > { %455 = dma.hbm_to_vmem [thread:$0]  (!%p753_p11), %s944_s2, 256, %s757_s25, [#allocation6], %s673_s7, %s673_s7, %s674_s8  }
  0x3d   : > { %s812_s4 = sadd.s32 1, %s669_s15   ;;  %s27_s23 = sadd.s32 1, %s665_s14 }
  0x3e   : > { %s24_s5 = ssub.s32 %s669_s15, %s812_s4  ;;  %p34_p13 = scmp.ne.s32.totalorder %s665_s14, %s661_s13 }
  0x3f   : > { %p25_p6 = scmp.eq.s32.totalorder %s24_s5, 0  ;;  %p35_p10 = scmp.eq.s32.totalorder %s669_s15, 0 }
  0x40   : > { %p953_p3 = scmp.eq.s32.totalorder %s723_s16, 1  ;;  %p466_p7 = scmp.lt.s32.totalorder %s669_s15, 2 }
  0x41   : > { %s828_s9 = scalar_select %p25_p6, %s665_s14, %s27_s23  }
  0x42   : > { %p822_p5 = por %p953_p3, %p34_p13  ;;  %p36_p9 = por %p35_p10, %p34_p13 }
  0x43   : > { %s158_s10 = sand.u32 1, %s665_s14   ;;  %s434_s25 = smul.u32 384, %s669_s15 }
  0x44   : > { %s954_s6 = scalar_select %p822_p5, 1, 0 }
  0x45   : > { %s433_s11 = smul.u32 24, %s158_s10  ;;  %p832_p11 = pnand %p466_p7, %p36_p9 }
  0x46   : > { %s839_s21 = scalar_lea.hbm %s942_s0, %s434_s25  ;;  %s843_s27 = scalar_lea.sflag [#allocation3], %s158_s10 }
  0x47   : > { %s162_s24 = scalar_lea.vmem [#allocation2], %s433_s11  ;;  %s569_s28 = scalar_lea.hbm %s839_s21, 384 }
  0x48   : > { %s169_s26 = sshll.u32 %s162_s24, 4  ;;  %p570_p12 = scmp.ne.s32.totalorder %s839_s21, %s569_s28  ;;  %s841_s26 = int_to_ptr.vmem [resolvable:$true] %s169_s26 }
  0x49   : > { %p571_p0 = pneg %p832_p11  ;;  %s574_s30 = scalar_lea.hbm %s942_s0, 768 }
  0x4a   : > { %p575_p13 = scmp.lt.u32.totalorder %s839_s21, %s942_s0  ;;  %p576_p6 = scmp.lt.u32.totalorder %s574_s30, %s569_s28 }
  0x4b   : > { %p572_p2 = pnand %p571_p0, %p570_p12  ;;  %p578_p3 = scmp.lt.u32.totalorder %s569_s28, %s839_s21 }
  0x4c   : > { %p577_p10 = por %p576_p6, %p575_p13 }
  0x4d   : > { %p573_p1 = pneg %p572_p2 }
  0x4e   : > { %p579_p7 = por %p578_p3, %p577_p10 }
  0x50   : > { %p580_p9 = pnand %p579_p7, %p573_p1 }
  0x52   : > { %583 = shalt.err (!%p580_p9)
}
  0x53   : > { %s584_s10 = scalar_lea.vmem %s841_s26, 384  ;;  %s675_s11 = smov [#allocation2]  }
  0x54   : > { %p585_p12 = scmp.ne.s32.totalorder %s841_s26, %s584_s10  ;;  %s589_s25 = sshll.u32 %s675_s11, 4  ;;  %s590_s25 = int_to_ptr.vmem [resolvable:$false] %s589_s25 }
  0x55   : > { %s591_s8 = scalar_lea.vmem %s590_s25, 768  ;;  %p592_p4 = scmp.lt.s32.totalorder %s841_s26, %s590_s25 }
  0x56   : > { %p587_p2 = pnand %p585_p12, %p571_p0  ;;  %p593_p13 = scmp.lt.s32.totalorder %s591_s8, %s584_s10 }
  0x58   : > { %p588_p5 = pneg %p587_p2  ;;  %p594_p6 = por %p593_p13, %p592_p4 }
  0x5a   : > { %p595_p10 = pnand %p594_p6, %p588_p5 }
  0x5c   : > { %598 = shalt.err (!%p595_p10)
}
  0x5d   : > { %s676_s17 = smov 192   ;;  %s677_s24 = smov 12  }
  0x5e   : > { %459 = dma.hbm_to_vmem [thread:$0]  (!%p832_p11), %s839_s21, 384, %s841_s26, %s843_s27, %s676_s17, %s676_s17, %s677_s24  }
  0x5f   : > { %181 = sbr.rel (%p742_p8) target bundleno = 266 (0x10a), region = 32  ;;  %s874_s28 = sand.u32 (!%p742_p8), 1, %s661_s13  }
  0x60   : > { %s435_s22 = smul.u32 (!%p742_p8), 24, %s874_s28  ;;  %s184_s29 = scalar_lea.sflag (!%p742_p8), [#allocation3], %s874_s28 }
  0x61   : > { %p956_p4 = scmp.ne.s32.totalorder (!%p742_p8), %s949_s18, 0 }
  0x62   : > { %s187_s30 = scalar_lea.vmem (!%p742_p8), [#allocation2], %s435_s22 }
  0x66   : > { %644 = dma.done.wait (%p956_p4), %s184_s29, 384  }
  0x67   : > { %646 = vsyncadd (%p956_p4), %s184_s29, 4294966912  ;;  %p957_p5 = scmp.eq.s32.totalorder %s723_s16, 0 }
  0x69   : > { %648 = dma.done.wait (%p957_p5), [#allocation6], 512   ;;  %p958_p8 = pmov %p957_p5 }
  0x6a   : > { %v678_v0 = vmov 0   ;;  %v246_v1 = vld [vmem:[#allocation7] sm:$0xff]  ;;  %v228_v2 = vld [vmem:[#allocation5] sm:$0xff]  ;;  %v247_v3 = vld [vmem:[#allocation7 + $0x8] sm:$0xff]  ;;  %vm303_vm3 = vcmask 257024   ;;  %s436_s18 = smul.u32 384, %s723_s16 }
  0x6b   : > { %650 = vsyncadd (%p958_p8), [#allocation6], 4294966784  ;;  %512 = vset.pattern.permute.xlu1 %v678_v0  ;;  %511 = vset.pattern.permute.xlu0 %v678_v0  ;;  %v229_v4 = vld [vmem:[#allocation5 + $0x8] sm:$0xff]  ;;  %v219_v6 = vld [vmem:[%s187_s30 + $0x8] ss:$12 sps:$4 sm:$0xff]   ;;  %s217_s20 = scalar_lea.vmem [#allocation8], %s435_s22 }
  0x6c   : > { %250 = vperm.xlu1 %512, %v246_v1   ;;  %232 = vperm.xlu0 %511, %v228_v2   ;;  %v218_v5 = vld [vmem:[%s187_s30] sm:$0xff]  ;;  %v224_v9 = vunpack.c.l.bf16 %v219_v6  ;;  %v220_v10 = vld [vmem:[%s187_s30 + $0xc] sm:$0xff]  ;;  %v227_v21 = vunpack.c.h.bf16 %v219_v6  ;;  %s321_s7 = sshll.u32 %s217_s20, 4  ;;  %s895_s26 = scalar_lea.hbm %s945_s3, %s436_s18  ;;  %s897_s7 = int_to_ptr.vmem [resolvable:$true] %s321_s7 }
  0x6d   : > { %v222_v7 = vunpack.c.l.bf16 %v218_v5  ;;  %v223_v8 = vunpack.c.h.bf16 %v218_v5  ;;  %v225_v16 = vunpack.c.l.bf16 %v220_v10  ;;  %v226_v17 = vunpack.c.h.bf16 %v220_v10  ;;  %s308_s27 = scalar_lea.sflag [#allocation4], %s874_s28  ;;  %s599_s23 = scalar_lea.vmem %s897_s7, 384 }
  0x6e   : > { %p600_p11 = scmp.ne.s32.totalorder %s897_s7, %s599_s23  ;;  %p959_p0 = scmp.ne.s32.totalorder %s954_s6, 0 }
  0x6f   : > { %s679_s5 = smov [#allocation8]  }
  0x70   : > { %255 = vperm.xlu1 %512, %v247_v3   ;;  %237 = vperm.xlu0 %511, %v229_v4   ;;  %p601_p1 = pnand %p600_p11, %p959_p0  ;;  %s603_s10 = sshll.u32 %s679_s5, 4  ;;  %s604_s10 = int_to_ptr.vmem [resolvable:$false] %s603_s10 }
  0x71   : > { %s605_s11 = scalar_lea.vmem %s604_s10, 768  ;;  %p606_p7 = scmp.lt.s32.totalorder %s897_s7, %s604_s10 }
  0x72   : > { %p602_p3 = pneg %p601_p1  ;;  %p607_p9 = scmp.lt.s32.totalorder %s605_s11, %s599_s23 }
  0x74   : > { %p608_p12 = por %p607_p9, %p606_p7 }
  0x76   : > { %p609_p2 = pnand %p608_p12, %p602_p3 }
  0xeb   : > { %v233_v11 = vpop.permute.xlu0 %232  ;;  %v251_v12 = vpop.permute.xlu1 %250 }
  0xec   : > { %v240_v13 = vmul.f32 %v233_v11, %v222_v7  ;;  %v241_v14 = vmul.f32 %v233_v11, %v223_v8  ;;  %v242_v15 = vmul.f32 %v233_v11, %v224_v9 }
  0xee   : > { %v258_v18 = vadd.f32 %v251_v12, %v240_v13  ;;  %v259_v19 = vadd.f32 %v251_v12, %v241_v14  ;;  %v260_v20 = vadd.f32 %v251_v12, %v242_v15 }
  0xef   : > { %v238_v22 = vpop.permute.xlu0 %237  ;;  %v256_v29 = vpop.permute.xlu1 %255 }
  0xf0   : > { %vm264_vm0 = vcmp.ge.f32.partialorder %v258_v18, 0.0  ;;  %vm265_vm1 = vcmp.ge.f32.partialorder %v259_v19, 0.0  ;;  %vm266_vm2 = vcmp.ge.f32.partialorder %v260_v20, 0.0  ;;  %v270_v23 = vmul.f32 0.01, %v258_v18 }
  0xf1   : > { %v271_v24 = vmul.f32 0.01, %v259_v19  ;;  %v272_v25 = vmul.f32 0.01, %v260_v20  ;;  %v243_v26 = vmul.f32 %v238_v22, %v225_v16  ;;  %v244_v27 = vmul.f32 %v238_v22, %v226_v17 }
  0xf2   : > { %v276_v28 = vsel %vm264_vm0, %v258_v18, %v270_v23  ;;  %v245_v30 = vmul.f32 %v238_v22, %v227_v21 }
  0xf3   : > { %v277_v31 = vsel %vm265_vm1, %v259_v19, %v271_v24  ;;  %v278_v32 = vsel %vm266_vm2, %v260_v20, %v272_v25  ;;  %v261_v33 = vadd.f32 %v256_v29, %v243_v26  ;;  %v262_v34 = vadd.f32 %v256_v29, %v244_v27 }
  0xf4   : > { %v429_v35 = vpack.c.bf16 %v277_v31, %v276_v28  ;;  %v430_v36 = vpack.c.bf16 %v278_v32, %v278_v32  ;;  %v263_v37 = vadd.f32 %v256_v29, %v245_v30 }
  0xf5   : > { %vm267_vm4 = vcmp.ge.f32.partialorder %v261_v33, 0.0  ;;  %vm268_vm5 = vcmp.ge.f32.partialorder %v262_v34, 0.0  ;;  %v273_v38 = vmul.f32 0.01, %v261_v33  ;;  %v274_v39 = vmul.f32 0.01, %v262_v34 }
  0xf6   : > { %302 = vst [vmem:[%s217_s20] sm:$0xff] %v429_v35  ;;  %304 = vst.msk [vmem:[%s217_s20 + $0x8] sm:$0xf] %vm303_vm3, %v430_v36  ;;  %vm269_vm6 = vcmp.ge.f32.partialorder %v263_v37, 0.0  ;;  %v275_v40 = vmul.f32 0.01, %v263_v37 }
  0xf7   : > { %v279_v41 = vsel %vm267_vm4, %v261_v33, %v273_v38  ;;  %v280_v42 = vsel %vm268_vm5, %v262_v34, %v274_v39 }
  0xf8   : > { %v281_v43 = vsel %vm269_vm6, %v263_v37, %v275_v40  ;;  %v431_v44 = vpack.c.bf16 %v280_v42, %v279_v41 }
  0xf9   : > { %v432_v45 = vpack.c.bf16 %v281_v43, %v281_v43 }
  0xfa   : > { %305 = vst [vmem:[%s217_s20 + $0xc] sm:$0xff] %v431_v44 }
  0xfb   : > { %306 = vst.msk [vmem:[%s217_s20 + $0x14] sm:$0xf] %vm303_vm3, %v432_v45 }
  0xfc   : > { %612 = shalt.err (!%p609_p2)
}
  0xfd   : > { %s613_s25 = scalar_lea.hbm %s895_s26, 384  ;;  %s617_s24 = scalar_lea.hbm %s945_s3, 768 }
  0xfe   : > { %p614_p13 = scmp.ne.s32.totalorder %s895_s26, %s613_s25  ;;  %p618_p4 = scmp.lt.u32.totalorder %s895_s26, %s945_s3 }
  0xff   : > { %p619_p5 = scmp.lt.u32.totalorder %s617_s24, %s613_s25  ;;  %p621_p11 = scmp.lt.u32.totalorder %s613_s25, %s895_s26 }
 0x100   : > { %p615_p6 = pnand %p614_p13, %p959_p0 }
 0x101   : > { %p620_p8 = por %p619_p5, %p618_p4 }
 0x102   : > { %p616_p10 = pneg %p615_p6 }
 0x103   : > { %p622_p1 = por %p621_p11, %p620_p8 }
 0x105   : > { %p623_p3 = pnand %p622_p1, %p616_p10 }
 0x107   : > { %626 = shalt.err (!%p623_p3)
}
 0x108   : > { %s680_s30 = smov 192   ;;  %s681_s18 = smov 12  }
 0x109   : > { %447 = dma.vmem_to_hbm [thread:$0]  (%p959_p0), %s897_s7, 384, %s895_s26, %s308_s27, %s680_s30, %s680_s30, %s681_s18  }
 0x10a PF: > { %s336_s20 = sand.u32 1, %s657_s12   ;;  %p960_p7 = scmp.ne.s32.totalorder %s950_s19, 0 }
 0x10b   : > { %p961_p9 = scmp.ge.s32.totalorder %s669_s15, 2  ;;  %s337_s21 = scalar_lea.sflag [#allocation4], %s336_s20 }
 0x10d   : > { %p461_p12 = pnand %p961_p9, %p960_p7 }
 0x10f   : > { %652 = dma.done.wait (!%p461_p12), %s337_s21, 384  }
 0x110   : > { %654 = vsyncadd (!%p461_p12), %s337_s21, 4294966912  ;;  %p17_p2 = scmp.ge.s32.totalorder %s812_s4, 4   ;;  %s962_s12 = smov %s661_s13 }
 0x111   : > { %s963_s13 = smov %s665_s14  ;;  %s964_s14 = smov %s828_s9 }
 0x112   : > { %s965_s15 = smov %s812_s4  ;;  %19 = sbr.rel (!%p17_p2) target bundleno = 6 (0x6), region = 85 }
 0x119   :  { %342 = vsyncpa [#allocation3], 1 }
 0x11a   :  { %344 = vsyncpa [#allocation3 + $0x1], 1 }
 0x11b   :  { %345 = vsyncpa [#allocation6], 1 }
 0x11c   :  { %346 = vsyncpa [#allocation4], 1 }
 0x11d   :  { %348 = vsyncpa [#allocation4 + $0x1], 1 }

// kernel: generative_chimney_forward.67
= control target key start
LH: loop header
LB: loop body
LE: loop exit
PB: predicated region body
PF: predicated region fallthrough
CT: control target
= control target key end

     0   :  { %11 = vsyncpa [#allocation3], 0  ;;  %s1555_s0 = inlined_call_operand.hbm [shape: bf16[2,16,384], index: 0, kind: input, shape index: {}]   ;;  %s1556_s1 = inlined_call_operand.hbm [shape: bf16[16,144], index: 1, kind: input, shape index: {}]   ;;  %s1557_s2 = inlined_call_operand.hbm [shape: f32[1,288], index: 2, kind: input, shape index: {}]   ;;  %s1558_s3 = inlined_call_operand.hbm [shape: bf16[2,16,288], index: 3, kind: output, shape index: {0}]   ;;  %s1559_s4 = inlined_call_operand.hbm [shape: f32[2,16,1], index: 4, kind: output, shape index: {1}]   ;;  %s1560_s5 = inlined_call_operand.hbm [shape: f32[2,16,1], index: 5, kind: output, shape index: {2}]  }
   0x1   :  { %13 = vsyncpa [#allocation3 + $0x1], 0 }
   0x2   :  { %14 = vsyncpa [#allocation6], 0 }
   0x3   :  { %15 = vsyncpa [#allocation4], 0 }
   0x4   :  { %17 = vsyncpa [#allocation4 + $0x1], 0 }
   0x5   :  { %18 = vsyncpa [#allocation10], 0 }
   0x6   :  { %20 = vsyncpa [#allocation10 + $0x1], 0  ;;  %s1206_s18 = smov 0   ;;  %s1208_s19 = smov 0  }
   0x7   :  { %s1210_s20 = smov 0   ;;  %s1212_s21 = smov 0  }
   0x8 LB: > { %s1227_s22 = sadd.s32 4294967295, %s1151_s21   ;;  %s793_s23 = sadd.s32 4294967294, %s1151_s21   ;;  %s1151_s21 = sphi %s1212_s21, %s1580_s21   ;;  %s1147_s20 = sphi %s1210_s20, %s1579_s20   ;;  %s1143_s19 = sphi %s1208_s19, %s1578_s19   ;;  %s1139_s18 = sphi %s1206_s18, %s1577_s18  }
   0x9   : > { %p46_p0 = scmp.ne.s32.totalorder %s1143_s19, %s1139_s18  ;;  %p1561_p1 = scmp.eq.s32.totalorder %s1227_s22, 0 }
   0xa   : > { %p118_p3 = scmp.eq.s32.totalorder %s793_s23, 1  ;;  %p794_p5 = scmp.ge.s32.totalorder %s1151_s21, 1 }
   0xb   : > { %p1238_p4 = por %p1561_p1, %p46_p0  ;;  %p177_p7 = scmp.lt.s32.totalorder %s1151_s21, 3 }
   0xc   : > { %p1243_p6 = por %p118_p3, %p46_p0  ;;  %s1153_s27 = smov [#allocation5]  }
   0xd   : > { %s1564_s24 = scalar_select %p1238_p4, 1, 0 }
   0xe   : > { %s1565_s25 = scalar_select %p1243_p6, 1, 0 }
   0xf   : > { %p1248_p8 = pnand %p794_p5, %p177_p7  ;;  %s189_s28 = sshll.u32 %s1153_s27, 4  ;;  %s1252_s28 = int_to_ptr.vmem [resolvable:$true] %s189_s28 }
  0x10   : > { %s1154_s30 = smov [#allocation7]   ;;  %s935_s9 = scalar_lea.hbm %s1556_s1, 256 }
  0x11   : > { %p850_p9 = pneg %p1248_p8  ;;  %s203_s6 = sshll.u32 %s1154_s30, 4  ;;  %s1263_s6 = int_to_ptr.vmem [resolvable:$true] %s203_s6 }
  0x12   : > { %p936_p12 = scmp.ne.s32.totalorder %s1556_s1, %s935_s9  ;;  %p942_p5 = scmp.lt.u32.totalorder %s935_s9, %s1556_s1 }
  0x13   : > { %p1259_p11 = pnand %p850_p9, %p1561_p1 }
  0x15   : > { %p937_p13 = pneg %p1259_p11 }
  0x17   : > { %p938_p0 = pnand %p937_p13, %p936_p12 }
  0x19   : > { %p939_p3 = pneg %p938_p0 }
  0x1b   : > { %p944_p7 = pnand %p942_p5, %p939_p3 }
  0x1d   : > { %947 = shalt.err (!%p944_p7)
}
  0x1e   : > { %s948_s14 = scalar_lea.vmem %s1252_s28, 256  ;;  %p956_p2 = scmp.lt.s32.totalorder %s1252_s28, %s1252_s28 }
  0x1f   : > { %p949_p9 = scmp.ne.s32.totalorder %s1252_s28, %s948_s14  ;;  %p957_p12 = scmp.lt.s32.totalorder %s948_s14, %s948_s14 }
  0x21   : > { %p951_p10 = pnand %p949_p9, %p937_p13  ;;  %p958_p0 = por %p957_p12, %p956_p2 }
  0x23   : > { %p952_p1 = pneg %p951_p10 }
  0x25   : > { %p959_p6 = pnand %p958_p0, %p952_p1 }
  0x27   : > { %962 = shalt.err (!%p959_p6)
}
  0x28   : > { %s1155_s15 = smov 128   ;;  %s1156_s16 = smov 8  }
  0x29   : > { %853 = dma.hbm_to_vmem [thread:$0]  (!%p1259_p11), %s1556_s1, 256, %s1252_s28, [#allocation6], %s1155_s15, %s1155_s15, %s1156_s16  }
  0x2a   : > { %s963_s8 = scalar_lea.hbm %s1557_s2, 48 }
  0x2b   : > { %p964_p2 = scmp.ne.s32.totalorder %s1557_s2, %s963_s8  ;;  %p970_p10 = scmp.lt.u32.totalorder %s963_s8, %s1557_s2 }
  0x2d   : > { %p966_p1 = pnand %p964_p2, %p937_p13 }
  0x2f   : > { %p967_p6 = pneg %p966_p1 }
  0x31   : > { %p972_p3 = pnand %p970_p10, %p967_p6 }
  0x33   : > { %975 = shalt.err (!%p972_p3)
}
  0x34   : > { %s976_s28 = scalar_lea.vmem %s1263_s6, 48  ;;  %s983_s13 = scalar_lea.vmem %s1263_s6, 64 }
  0x35   : > { %p977_p5 = scmp.ne.s32.totalorder %s1263_s6, %s976_s28  ;;  %p984_p12 = scmp.lt.s32.totalorder %s1263_s6, %s1263_s6 }
  0x36   : > { %p985_p0 = scmp.lt.s32.totalorder %s983_s13, %s976_s28 }
  0x37   : > { %p979_p7 = pnand %p977_p5, %p937_p13 }
  0x38   : > { %p986_p2 = por %p985_p0, %p984_p12 }
  0x39   : > { %p980_p9 = pneg %p979_p7 }
  0x3b   : > { %p987_p1 = pnand %p986_p2, %p980_p9 }
  0x3d   : > { %990 = shalt.err (!%p987_p1)
}
  0x3e   : > { %856 = dma.hbm_to_vmem [thread:$0]  (!%p1259_p11), %s1557_s2, 48, %s1263_s6, [#allocation6]  }
  0x3f   : > { %s1319_s16 = sadd.s32 1, %s1151_s21   ;;  %s33_s29 = sadd.s32 1, %s1147_s20 }
  0x40   : > { %s30_s17 = ssub.s32 %s1151_s21, %s1319_s16  ;;  %p40_p13 = scmp.ne.s32.totalorder %s1147_s20, %s1143_s19 }
  0x41   : > { %p31_p6 = scmp.eq.s32.totalorder %s30_s17, 0  ;;  %p41_p10 = scmp.eq.s32.totalorder %s1151_s21, 0 }
  0x42   : > { %p1568_p3 = scmp.eq.s32.totalorder %s1227_s22, 1  ;;  %p873_p7 = scmp.lt.s32.totalorder %s1151_s21, 2 }
  0x43   : > { %s1335_s30 = scalar_select %p31_p6, %s1147_s20, %s33_s29  }
  0x44   : > { %p1329_p5 = por %p1568_p3, %p40_p13  ;;  %p42_p9 = por %p41_p10, %p40_p13 }
  0x45   : > { %s214_s7 = sand.u32 1, %s1147_s20   ;;  %s831_s6 = smul.u32 384, %s1151_s21 }
  0x46   : > { %s1569_s27 = scalar_select %p1329_p5, 1, 0 }
  0x47   : > { %s830_s8 = smul.u32 24, %s214_s7  ;;  %p1339_p11 = pnand %p873_p7, %p42_p9 }
  0x48   : > { %s1346_s12 = scalar_lea.hbm %s1555_s0, %s831_s6  ;;  %s1350_s14 = scalar_lea.sflag [#allocation3], %s214_s7 }
  0x49   : > { %s218_s28 = scalar_lea.vmem [#allocation2], %s830_s8  ;;  %s991_s15 = scalar_lea.hbm %s1346_s12, 384 }
  0x4a   : > { %s225_s13 = sshll.u32 %s218_s28, 4  ;;  %p992_p12 = scmp.ne.s32.totalorder %s1346_s12, %s991_s15  ;;  %s1348_s13 = int_to_ptr.vmem [resolvable:$true] %s225_s13 }
  0x4b   : > { %p993_p0 = pneg %p1339_p11  ;;  %s996_s6 = scalar_lea.hbm %s1555_s0, 768 }
  0x4c   : > { %p997_p13 = scmp.lt.u32.totalorder %s1346_s12, %s1555_s0  ;;  %p998_p6 = scmp.lt.u32.totalorder %s996_s6, %s991_s15 }
  0x4d   : > { %p994_p2 = pnand %p993_p0, %p992_p12  ;;  %p1000_p3 = scmp.lt.u32.totalorder %s991_s15, %s1346_s12 }
  0x4e   : > { %p999_p10 = por %p998_p6, %p997_p13 }
  0x4f   : > { %p995_p1 = pneg %p994_p2 }
  0x50   : > { %p1001_p7 = por %p1000_p3, %p999_p10 }
  0x52   : > { %p1002_p9 = pnand %p1001_p7, %p995_p1 }
  0x54   : > { %1005 = shalt.err (!%p1002_p9)
}
  0x55   : > { %s1006_s7 = scalar_lea.vmem %s1348_s13, 384  ;;  %s1157_s8 = smov [#allocation2]  }
  0x56   : > { %p1007_p12 = scmp.ne.s32.totalorder %s1348_s13, %s1006_s7  ;;  %s1011_s28 = sshll.u32 %s1157_s8, 4  ;;  %s1012_s28 = int_to_ptr.vmem [resolvable:$false] %s1011_s28 }
  0x57   : > { %s1013_s29 = scalar_lea.vmem %s1012_s28, 768  ;;  %p1014_p4 = scmp.lt.s32.totalorder %s1348_s13, %s1012_s28 }
  0x58   : > { %p1009_p2 = pnand %p1007_p12, %p993_p0  ;;  %p1015_p13 = scmp.lt.s32.totalorder %s1013_s29, %s1006_s7 }
  0x5a   : > { %p1010_p5 = pneg %p1009_p2  ;;  %p1016_p6 = por %p1015_p13, %p1014_p4 }
  0x5c   : > { %p1017_p10 = pnand %p1016_p6, %p1010_p5 }
  0x5e   : > { %1020 = shalt.err (!%p1017_p10)
}
  0x5f   : > { %s1158_s15 = smov 192   ;;  %s1159_s17 = smov 12  }
  0x60   : > { %860 = dma.hbm_to_vmem [thread:$0]  (!%p1339_p11), %s1346_s12, 384, %s1348_s13, %s1350_s14, %s1158_s15, %s1158_s15, %s1159_s17  }
  0x61   : > { %237 = sbr.rel (%p1248_p8) target bundleno = 675 (0x2a3), region = 32  ;;  %s1381_s6 = sand.u32 (!%p1248_p8), 1, %s1143_s19  }
  0x62   : > { %s832_s10 = smul.u32 (!%p1248_p8), 24, %s1381_s6  ;;  %s240_s11 = scalar_lea.sflag (!%p1248_p8), [#allocation3], %s1381_s6 }
  0x63   : > { %p1571_p4 = scmp.ne.s32.totalorder (!%p1248_p8), %s1564_s24, 0 }
  0x64   : > { %s243_s7 = scalar_lea.vmem (!%p1248_p8), [#allocation2], %s832_s10 }
  0x68   : > { %1122 = dma.done.wait (%p1571_p4), %s240_s11, 384  }
  0x69   : > { %1124 = vsyncadd (%p1571_p4), %s240_s11, 4294966912  ;;  %p1572_p5 = scmp.eq.s32.totalorder %s1227_s22, 0 }
  0x6b   : > { %1126 = dma.done.wait (%p1572_p5), [#allocation6], 304   ;;  %p1573_p8 = pmov %p1572_p5 }
  0x6c   : > { %v1160_v0 = vmov 0   ;;  %v928_v1 = vld [vmem:[%s243_s7 + $0x4] ss:$12 sps:$4 sm:$0xff]   ;;  %v930_v2 = vld [vmem:[%s243_s7] ss:$12 sps:$4 sm:$0xff]   ;;  %s1161_s26 = smov 127   ;;  %v506_v46 = vlaneseq }
  0x6d   : > { %1128 = vsyncadd (%p1573_p8), [#allocation6], 4294966992  ;;  %463 = vmatprep.subr.bf16.mxu1 %v1160_v0  ;;  %311 = vrot.lane.b32.xlu0 %v928_v1, %s1161_s26  ;;  %v931_v3 = vld [vmem:[%s243_s7 + $0x8] ss:$12 sps:$4 sm:$0xff]   ;;  %s1162_s24 = smov 126   ;;  %s1163_s9 = smov 110  }
  0x6e   : > { %420 = vmatprep.subr.bf16.mxu0 %v928_v1  ;;  %309 = vrot.lane.b32.xlu1 %v930_v2, %s1161_s26  ;;  %s1164_s12 = smov 109   ;;  %s1165_s13 = smov 108   ;;  %v934_v4 = vld [vmem:[#allocation5 + $0x4] ss:$8 sps:$4 sm:$0xff]   ;;  %vm416_vm0 = vcmask 130048   ;;  %vm315_vm1 = vcmask 1039360  }
  0x6f   : > { %421 = vmatpush1.bf16.msra.mxu0 %v930_v2  ;;  %464 = vmatpush1.bf16.msra.mxu1 %v931_v3  ;;  %s1166_s14 = smov 92   ;;  %s1167_s8 = smov 91   ;;  %vm327_vm2 = vcmask 1031168   ;;  %vm339_vm3 = vcmask 900096   ;;  %vm351_vm4 = vcmask 891904   ;;  %vm363_vm5 = vcmask 883712  }
  0x70   : > { %465 = vmatprep.subr.bf16.mxu1 %v1160_v0  ;;  %810 = vmatprep.mubr.msk.bf16.mxu1 %vm416_vm0, %v934_v4  ;;  %s1168_s28 = smov 90   ;;  %vm375_vm6 = vcmask 752640   ;;  %vm387_vm7 = vcmask 744448   ;;  %vm399_vm8 = vcmask 736256   ;;  %v932_v42 = vld [vmem:[#allocation5] ss:$8 sps:$4 sm:$0xff]  }
  0x71   : > { %313 = vrot.lane.b32.xlu0 %v931_v3, %s1161_s26  ;;  %809 = vmatprep.mubr.msk.bf16.mxu0 %vm416_vm0, %v934_v4  ;;  %v507_v47 = vshrl.u32 %v506_v46, 7  ;;  %v504_v50 = vld [vmem:[#allocation7] sm:$0x7]  ;;  %vm580_vm9 = vcmask 257024   ;;  %vm528_vm10 = vcmask 261120   ;;  %s1406_s29 = scalar_lea.vmem [#allocation8], %s832_s10 }
  0x72   : > { %323 = vrot.lane.b32.xlu1 %v928_v1, %s1162_s24  ;;  %s608_s15 = sshll.u32 %s1406_s29, 4  ;;  %s833_s17 = smul.u32 384, %s1227_s22  ;;  %s1419_s15 = int_to_ptr.vmem [resolvable:$true] %s608_s15 }
  0x73   : > { %v516_v48 = vsub.s32 2, %v507_v47  ;;  %v508_v49 = vsub.s32 0, %v507_v47  ;;  %v512_v51 = vsub.s32 1, %v507_v47  ;;  %s585_s26 = scalar_lea.sflag [#allocation4], %s1381_s6  ;;  %p1574_p0 = scmp.ne.s32.totalorder %s1569_s27, 0 }
  0x74   : > { %s1425_s7 = scalar_lea.hbm %s1558_s3, %s833_s17 }
  0x75   : > { %325 = vrot.lane.b32.xlu0 %v931_v3, %s1162_s24  ;;  %v517_v52 = vrot.slane %v504_v50, %v516_v48  ;;  %v509_v53 = vrot.slane %v504_v50, %v508_v49  ;;  %v513_v55 = vrot.slane %v504_v50, %v512_v51 }
  0x76   : > { %321 = vrot.lane.b32.xlu1 %v930_v2, %s1162_s24  ;;  %s1021_s24 = scalar_lea.vmem %s1419_s15, 384 }
  0x77   : > { %p1022_p11 = scmp.ne.s32.totalorder %s1419_s15, %s1021_s24 }
  0x79   : > { %335 = vrot.lane.b32.xlu0 %v928_v1, %s1163_s9  ;;  %p1023_p1 = pnand %p1022_p11, %p1574_p0 }
  0x7a   : > { %337 = vrot.lane.b32.xlu1 %v931_v3, %s1163_s9 }
  0x7b   : > { %p1024_p3 = pneg %p1023_p1 }
  0x7d   : > { %333 = vrot.lane.b32.xlu0 %v930_v2, %s1163_s9  ;;  %s1169_s9 = smov [#allocation8]  }
  0x7e   : > { %347 = vrot.lane.b32.xlu1 %v928_v1, %s1164_s12 }
  0x81   : > { %349 = vrot.lane.b32.xlu0 %v931_v3, %s1164_s12 }
  0x82   : > { %345 = vrot.lane.b32.xlu1 %v930_v2, %s1164_s12  ;;  %s1025_s12 = sshll.u32 %s1169_s9, 4  ;;  %s1026_s12 = int_to_ptr.vmem [resolvable:$false] %s1025_s12 }
  0x83   : > { %p1028_p7 = scmp.lt.s32.totalorder %s1419_s15, %s1026_s12 }
  0x85   : > { %359 = vrot.lane.b32.xlu0 %v928_v1, %s1165_s13 }
  0x86   : > { %361 = vrot.lane.b32.xlu1 %v931_v3, %s1165_s13 }
  0x89   : > { %357 = vrot.lane.b32.xlu0 %v930_v2, %s1165_s13  ;;  %s1027_s13 = scalar_lea.vmem %s1026_s12, 768 }
  0x8a   : > { %371 = vrot.lane.b32.xlu1 %v928_v1, %s1166_s14  ;;  %p1029_p9 = scmp.lt.s32.totalorder %s1027_s13, %s1021_s24 }
  0x8c   : > { %p1030_p12 = por %p1029_p9, %p1028_p7 }
  0x8d   : > { %373 = vrot.lane.b32.xlu0 %v931_v3, %s1166_s14 }
  0x8e   : > { %369 = vrot.lane.b32.xlu1 %v930_v2, %s1166_s14  ;;  %p1031_p2 = pnand %p1030_p12, %p1024_p3 }
  0x91   : > { %383 = vrot.lane.b32.xlu0 %v928_v1, %s1167_s8 }
  0x92   : > { %385 = vrot.lane.b32.xlu1 %v931_v3, %s1167_s8 }
  0x95   : > { %381 = vrot.lane.b32.xlu0 %v930_v2, %s1167_s8 }
  0x96   : > { %395 = vrot.lane.b32.xlu1 %v928_v1, %s1168_s28 }
  0x99   : > { %397 = vrot.lane.b32.xlu0 %v931_v3, %s1168_s28 }
  0x9a   : > { %393 = vrot.lane.b32.xlu1 %v930_v2, %s1168_s28 }
  0xdf   : > { %v312_v5 = vpop.permute.xlu0 %311 }
  0xe0   : > { %v310_v6 = vpop.permute.xlu1 %309 }
  0xe1   : > { %v316_v10 = vsel %vm315_vm1, %v310_v6, %v312_v5 }
  0xe3   : > { %v314_v7 = vpop.permute.xlu0 %313 }
  0xe4   : > { %v324_v8 = vpop.permute.xlu1 %323  ;;  %466 = vmatpush1.bf16.msra.mxu1 %v314_v7  ;;  %v317_v9 = vsel %vm315_vm1, %v312_v5, %v314_v7 }
  0xe5   : > { %422 = vmatprep.subr.bf16.mxu0 %v317_v9  ;;  %467 = vmatprep.subr.bf16.mxu1 %v1160_v0 }
  0xe6   : > { %423 = vmatpush1.bf16.msra.mxu0 %v316_v10 }
  0xe7   : > { %v326_v11 = vpop.permute.xlu0 %325 }
  0xe8   : > { %v322_v12 = vpop.permute.xlu1 %321  ;;  %468 = vmatpush1.bf16.msra.mxu1 %v326_v11  ;;  %v329_v13 = vsel %vm327_vm2, %v324_v8, %v326_v11 }
  0xe9   : > { %424 = vmatprep.subr.bf16.mxu0 %v329_v13  ;;  %v328_v14 = vsel %vm327_vm2, %v322_v12, %v324_v8  ;;  %469 = vmatprep.subr.bf16.mxu1 %v1160_v0 }
  0xea   : > { %425 = vmatpush1.bf16.msra.mxu0 %v328_v14 }
  0xeb   : > { %v336_v15 = vpop.permute.xlu0 %335 }
  0xec   : > { %v338_v16 = vpop.permute.xlu1 %337 }
  0xed   : > { %v341_v17 = vsel %vm339_vm3, %v336_v15, %v338_v16  ;;  %470 = vmatpush1.bf16.msra.mxu1 %v338_v16 }
  0xee   : > { %426 = vmatprep.subr.bf16.mxu0 %v341_v17  ;;  %471 = vmatprep.subr.bf16.mxu1 %v1160_v0 }
  0xef   : > { %v334_v18 = vpop.permute.xlu0 %333 }
  0xf0   : > { %v348_v19 = vpop.permute.xlu1 %347  ;;  %v340_v20 = vsel %vm339_vm3, %v334_v18, %v336_v15 }
  0xf1   : > { %427 = vmatpush1.bf16.msra.mxu0 %v340_v20 }
  0xf3   : > { %v350_v21 = vpop.permute.xlu0 %349 }
  0xf4   : > { %v346_v22 = vpop.permute.xlu1 %345  ;;  %472 = vmatpush1.bf16.msra.mxu1 %v350_v21  ;;  %v353_v23 = vsel %vm351_vm4, %v348_v19, %v350_v21 }
  0xf5   : > { %428 = vmatprep.subr.bf16.mxu0 %v353_v23  ;;  %v352_v24 = vsel %vm351_vm4, %v346_v22, %v348_v19  ;;  %473 = vmatprep.subr.bf16.mxu1 %v1160_v0 }
  0xf6   : > { %429 = vmatpush1.bf16.msra.mxu0 %v352_v24 }
  0xf7   : > { %v360_v25 = vpop.permute.xlu0 %359 }
  0xf8   : > { %v362_v26 = vpop.permute.xlu1 %361 }
  0xf9   : > { %v365_v27 = vsel %vm363_vm5, %v360_v25, %v362_v26  ;;  %474 = vmatpush1.bf16.msra.mxu1 %v362_v26 }
  0xfa   : > { %430 = vmatprep.subr.bf16.mxu0 %v365_v27  ;;  %475 = vmatprep.subr.bf16.mxu1 %v1160_v0 }
  0xfb   : > { %v358_v28 = vpop.permute.xlu0 %357 }
  0xfc   : > { %v372_v29 = vpop.permute.xlu1 %371  ;;  %v364_v30 = vsel %vm363_vm5, %v358_v28, %v360_v25 }
  0xfd   : > { %431 = vmatpush1.bf16.msra.mxu0 %v364_v30 }
  0xff   : > { %v374_v31 = vpop.permute.xlu0 %373 }
 0x100   : > { %v370_v32 = vpop.permute.xlu1 %369  ;;  %476 = vmatpush1.bf16.msra.mxu1 %v374_v31  ;;  %v377_v33 = vsel %vm375_vm6, %v372_v29, %v374_v31 }
 0x101   : > { %432 = vmatprep.subr.bf16.mxu0 %v377_v33  ;;  %v376_v34 = vsel %vm375_vm6, %v370_v32, %v372_v29  ;;  %477 = vmatprep.subr.bf16.mxu1 %v1160_v0 }
 0x102   : > { %433 = vmatpush1.bf16.msra.mxu0 %v376_v34 }
 0x103   : > { %v384_v35 = vpop.permute.xlu0 %383 }
 0x104   : > { %v386_v36 = vpop.permute.xlu1 %385 }
 0x105   : > { %v389_v37 = vsel %vm387_vm7, %v384_v35, %v386_v36  ;;  %478 = vmatpush1.bf16.msra.mxu1 %v386_v36 }
 0x106   : > { %434 = vmatprep.subr.bf16.mxu0 %v389_v37  ;;  %479 = vmatprep.subr.bf16.mxu1 %v1160_v0 }
 0x107   : > { %v382_v38 = vpop.permute.xlu0 %381 }
 0x108   : > { %v396_v39 = vpop.permute.xlu1 %395  ;;  %v388_v40 = vsel %vm387_vm7, %v382_v38, %v384_v35 }
 0x109   : > { %435 = vmatpush1.bf16.msra.mxu0 %v388_v40 }
 0x10b   : > { %v398_v41 = vpop.permute.xlu0 %397 }
 0x10c   : > { %v394_v43 = vpop.permute.xlu1 %393  ;;  %480 = vmatpush1.bf16.msra.mxu1 %v398_v41  ;;  %v401_v44 = vsel %vm399_vm8, %v396_v39, %v398_v41 }
 0x10d   : > { %436 = vmatprep.subr.bf16.mxu0 %v401_v44  ;;  %v400_v45 = vsel %vm399_vm8, %v394_v43, %v396_v39 }
 0x10e   : > { %437 = vmatpush1.bf16.msra.mxu0 %v400_v45 }
 0x10f   : > { %496 = vmatmul.mubr.bf16.vlgmr.msra.gmra.mrb[0].mxu1 %v932_v42 }
 0x111   : > { %453 = vmatmul.mubr.bf16.vlgmr.msra.gmra.mrb[0].mxu0 %v932_v42 }
 0x1e2   : > { %v497_v54 = vpop.f32.mrb[0].mxu1 }
 0x1e3   : > { %v523_v56 = vmul.f32 %v517_v52, %v497_v54  ;;  %v825_v57 = vpack.c.bf16 %v497_v54, %v497_v54  ;;  %v499_v58 = vpop.f32.mrb[1].mxu1 }
 0x1e4   : > { %v454_v59 = vpop.f32.mrb[0].mxu0  ;;  %v500_v60 = vpop.f32.mrb[2].mxu1 }
 0x1e5   : > { %v543_v61 = vmul.f32 %v523_v56, %v523_v56  ;;  %581 = vst.msk [vmem:[%s1406_s29 + $0x8] sm:$0xf] %vm580_vm9, %v825_v57  ;;  %v521_v62 = vmul.f32 %v509_v53, %v454_v59  ;;  %v456_v63 = vpop.f32.mrb[1].mxu0  ;;  %v526_v0 = vmul.f32 %v517_v52, %v500_v60  ;;  %v827_v1 = vpack.c.bf16 %v500_v60, %v500_v60  ;;  %v502_v2 = vpop.f32.mrb[3].mxu1 }
 0x1e6   : > { %v522_v3 = vmul.f32 %v513_v55, %v456_v63  ;;  %v824_v4 = vpack.c.bf16 %v456_v63, %v454_v59  ;;  %v458_v5 = vpop.f32.mrb[2].mxu0  ;;  %v529_v9 = vsel %vm528_vm10, %v523_v56, 0.0 }
 0x1e7   : > { %v541_v6 = vmul.f32 %v521_v62, %v521_v62  ;;  %583 = vst.msk [vmem:[%s1406_s29 + $0x14] sm:$0xf] %vm580_vm9, %v827_v1  ;;  %v524_v7 = vmul.f32 %v509_v53, %v458_v5  ;;  %v460_v8 = vpop.f32.mrb[3].mxu0  ;;  %v546_v14 = vmul.f32 %v526_v0, %v526_v0  ;;  %v548_v16 = vsel %vm528_vm10, %v543_v61, 0.0 }
 0x1e8   : > { %v542_v10 = vmul.f32 %v522_v3, %v522_v3  ;;  %579 = vst [vmem:[%s1406_s29] sm:$0xff] %v824_v4  ;;  %v525_v11 = vmul.f32 %v513_v55, %v460_v8  ;;  %v826_v12 = vpack.c.bf16 %v460_v8, %v458_v5  ;;  %v527_v13 = vadd.f32 %v522_v3, %v521_v62 }
 0x1e9   : > { %v544_v15 = vmul.f32 %v524_v7, %v524_v7  ;;  %v534_v21 = vsel %vm528_vm10, %v526_v0, 0.0  ;;  %v553_v25 = vsel %vm528_vm10, %v546_v14, 0.0 }
 0x1ea   : > { %v533_v17 = vadd.f32 %v525_v11, %v524_v7  ;;  %v545_v18 = vmul.f32 %v525_v11, %v525_v11  ;;  %582 = vst [vmem:[%s1406_s29 + $0xc] sm:$0xff] %v826_v12  ;;  %v530_v19 = vadd.f32 %v529_v9, %v527_v13  ;;  %v547_v20 = vadd.f32 %v542_v10, %v541_v6 }
 0x1ec   : > { %531 = vadd.xlane.f32.xlu0 %v530_v19  ;;  %v535_v22 = vadd.f32 %v534_v21, %v533_v17  ;;  %v549_v23 = vadd.f32 %v548_v16, %v547_v20  ;;  %v552_v24 = vadd.f32 %v545_v18, %v544_v15 }
 0x1ee   : > { %536 = vadd.xlane.f32.xlu1 %v535_v22  ;;  %v554_v26 = vadd.f32 %v553_v25, %v552_v24 }
 0x1f0   : > { %550 = vadd.xlane.f32.xlu0 %v549_v23 }
 0x1f4   : > { %555 = vadd.xlane.f32.xlu0 %v554_v26 }
 0x1f5   : > { %1034 = shalt.err (!%p1031_p2)
}
 0x1f6   : > { %s1035_s14 = scalar_lea.hbm %s1425_s7, 384  ;;  %s1039_s29 = scalar_lea.hbm %s1558_s3, 768 }
 0x1f7   : > { %p1036_p13 = scmp.ne.s32.totalorder %s1425_s7, %s1035_s14  ;;  %p1040_p4 = scmp.lt.u32.totalorder %s1425_s7, %s1558_s3 }
 0x1f8   : > { %p1041_p5 = scmp.lt.u32.totalorder %s1039_s29, %s1035_s14  ;;  %p1043_p11 = scmp.lt.u32.totalorder %s1035_s14, %s1425_s7 }
 0x1f9   : > { %p1037_p6 = pnand %p1036_p13, %p1574_p0 }
 0x1fa   : > { %p1042_p8 = por %p1041_p5, %p1040_p4 }
 0x1fb   : > { %p1038_p10 = pneg %p1037_p6 }
 0x1fc   : > { %p1044_p1 = por %p1043_p11, %p1042_p8 }
 0x1fe   : > { %p1045_p3 = pnand %p1044_p1, %p1038_p10 }
 0x200   : > { %1048 = shalt.err (!%p1045_p3)
}
 0x201   : > { %s1170_s11 = smov 192   ;;  %s1171_s24 = smov 12   ;;  %vm538_vm11 = vcmask 7168  }
 0x202   : > { %844 = dma.vmem_to_hbm [thread:$0]  (%p1574_p0), %s1419_s15, 384, %s1425_s7, %s585_s26, %s1170_s11, %s1170_s11, %s1171_s24  }
 0x203   : > { %s802_s9 = sshll.u32 %s1381_s6, 4  ;;  %s589_s14 = sand.u32 1, %s1227_s22  }
 0x204   : > { %s280_s12 = scalar_lea.vmem [#allocation9], %s802_s9  ;;  %s828_s8 = sshll.u32 %s1227_s22, 8 }
 0x205   : > { %s624_s13 = sshll.u32 %s280_s12, 4  ;;  %s1461_s17 = scalar_lea.hbm %s1559_s4, %s828_s8  ;;  %s1454_s13 = int_to_ptr.vmem [resolvable:$true] %s624_s13 }
 0x206   : > { %s1465_s6 = scalar_lea.vmem [#allocation11], %s802_s9  ;;  %s1468_s7 = scalar_lea.sflag [#allocation10], %s589_s14 }
 0x207   : > { %s640_s15 = sshll.u32 %s1465_s6, 4  ;;  %s1049_s26 = scalar_lea.vmem %s1454_s13, 256  ;;  %s1499_s15 = int_to_ptr.vmem [resolvable:$true] %s640_s15 }
 0x208   : > { %p1050_p7 = scmp.ne.s32.totalorder %s1454_s13, %s1049_s26  ;;  %s1172_s10 = smov [#allocation9]  }
 0x209   : > { %s1053_s11 = sshll.u32 %s1172_s10, 4  ;;  %s1054_s11 = int_to_ptr.vmem [resolvable:$false] %s1053_s11 }
 0x20a   : > { %p1051_p9 = pnand %p1050_p7, %p1574_p0  ;;  %s1055_s24 = scalar_lea.vmem %s1054_s11, 512 }
 0x20b   : > { %p1056_p2 = scmp.lt.s32.totalorder %s1454_s13, %s1054_s11  ;;  %p1057_p13 = scmp.lt.s32.totalorder %s1055_s24, %s1049_s26 }
 0x20c   : > { %p1052_p12 = pneg %p1051_p9 }
 0x20d   : > { %p1058_p6 = por %p1057_p13, %p1056_p2 }
 0x20f   : > { %p1059_p10 = pnand %p1058_p6, %p1052_p12 }
 0x279   : > { %v532_v27 = vpop.xlane.xlu0 %531 }
 0x27a   : > { %539 = vst.msk [vmem:[%s280_s12] sm:$0xff] %vm538_vm11, %v532_v27 }
 0x27b   : > { %v537_v28 = vpop.xlane.xlu1 %536 }
 0x27c   : > { %540 = vst.msk [vmem:[%s280_s12 + $0x8] sm:$0xff] %vm538_vm11, %v537_v28 }
 0x27d   : > { %v551_v29 = vpop.xlane.xlu0 %550 }
 0x27e   : > { %1062 = shalt.err (!%p1059_p10)
}
 0x27f   : > { %s1063_s9 = scalar_lea.hbm %s1461_s17, 256  ;;  %s1067_s28 = scalar_lea.hbm %s1559_s4, 512 }
 0x280   : > { %p1064_p4 = scmp.ne.s32.totalorder %s1461_s17, %s1063_s9  ;;  %p1068_p11 = scmp.lt.u32.totalorder %s1461_s17, %s1559_s4 }
 0x281   : > { %p1069_p1 = scmp.lt.u32.totalorder %s1067_s28, %s1063_s9  ;;  %p1071_p7 = scmp.lt.u32.totalorder %s1063_s9, %s1461_s17 }
 0x282   : > { %p1065_p5 = pnand %p1064_p4, %p1574_p0 }
 0x283   : > { %p1070_p3 = por %p1069_p1, %p1068_p11 }
 0x284   : > { %p1066_p8 = pneg %p1065_p5 }
 0x285   : > { %p1072_p9 = por %p1071_p7, %p1070_p3 }
 0x287   : > { %p1073_p12 = pnand %p1072_p9, %p1066_p8 }
 0x289   : > { %1076 = shalt.err (!%p1073_p12)
}
 0x28a   : > { %s1173_s26 = smov 128   ;;  %s1174_s11 = smov 8   ;;  %557 = vst.msk [vmem:[%s1465_s6] sm:$0xff] %vm538_vm11, %v551_v29  ;;  %v556_v30 = vpop.xlane.xlu0 %555 }
 0x28b   : > { %845 = dma.vmem_to_hbm [thread:$0]  (%p1574_p0), %s1454_s13, 256, %s1461_s17, %s1468_s7, %s1173_s26, %s1173_s26, %s1174_s11  }
 0x28c   : > { %s1506_s12 = scalar_lea.hbm %s1560_s5, %s828_s8  ;;  %558 = vst.msk [vmem:[%s1465_s6 + $0x8] sm:$0xff] %vm538_vm11, %v556_v30  ;;  %s1077_s14 = scalar_lea.vmem %s1499_s15, 256 }
 0x28d   : > { %p1078_p2 = scmp.ne.s32.totalorder %s1499_s15, %s1077_s14  ;;  %s1175_s13 = smov [#allocation11]  }
 0x28e   : > { %s1081_s17 = sshll.u32 %s1175_s13, 4  ;;  %s1082_s17 = int_to_ptr.vmem [resolvable:$false] %s1081_s17 }
 0x28f   : > { %p1079_p13 = pnand %p1078_p2, %p1574_p0  ;;  %s1083_s22 = scalar_lea.vmem %s1082_s17, 512 }
 0x290   : > { %p1084_p10 = scmp.lt.s32.totalorder %s1499_s15, %s1082_s17  ;;  %p1085_p4 = scmp.lt.s32.totalorder %s1083_s22, %s1077_s14 }
 0x291   : > { %p1080_p6 = pneg %p1079_p13 }
 0x292   : > { %p1086_p5 = por %p1085_p4, %p1084_p10 }
 0x294   : > { %p1087_p8 = pnand %p1086_p5, %p1080_p6 }
 0x296   : > { %1090 = shalt.err (!%p1087_p8)
}
 0x297   : > { %s1091_s8 = scalar_lea.hbm %s1506_s12, 256  ;;  %s1095_s29 = scalar_lea.hbm %s1560_s5, 512 }
 0x298   : > { %p1092_p11 = scmp.ne.s32.totalorder %s1506_s12, %s1091_s8  ;;  %p1096_p7 = scmp.lt.u32.totalorder %s1506_s12, %s1560_s5 }
 0x299   : > { %p1097_p9 = scmp.lt.u32.totalorder %s1095_s29, %s1091_s8  ;;  %p1099_p2 = scmp.lt.u32.totalorder %s1091_s8, %s1506_s12 }
 0x29a   : > { %p1093_p1 = pnand %p1092_p11, %p1574_p0 }
 0x29b   : > { %p1098_p12 = por %p1097_p9, %p1096_p7 }
 0x29c   : > { %p1094_p3 = pneg %p1093_p1 }
 0x29d   : > { %p1100_p13 = por %p1099_p2, %p1098_p12 }
 0x29f   : > { %p1101_p6 = pnand %p1100_p13, %p1094_p3 }
 0x2a1   : > { %1104 = shalt.err (!%p1101_p6)
}
 0x2a2   : > { %846 = dma.vmem_to_hbm [thread:$0]  (%p1574_p0), %s1499_s15, 256, %s1506_s12, %s1468_s7, %s1173_s26, %s1173_s26, %s1174_s11  }
 0x2a3 PF: > { %s655_s9 = sand.u32 1, %s1139_s18   ;;  %p1575_p10 = scmp.ne.s32.totalorder %s1565_s25, 0 }
 0x2a4   : > { %p1576_p4 = scmp.ge.s32.totalorder %s1151_s21, 2  ;;  %s656_s14 = scalar_lea.sflag [#allocation4], %s655_s9 }
 0x2a6   : > { %p862_p5 = pnand %p1576_p4, %p1575_p10 }
 0x2a8   : > { %1130 = dma.done.wait (!%p862_p5), %s656_s14, 384  }
 0x2a9   : > { %1132 = vsyncadd (!%p862_p5), %s656_s14, 4294966912  ;;  %s664_s27 = sand.u32 1, %s793_s23  }
 0x2aa   : > { %s665_s13 = scalar_lea.sflag [#allocation10], %s664_s27 }
 0x2ab   : > { %1134 = dma.done.wait (!%p862_p5), %s665_s13, 512  }
 0x2ac   : > { %1136 = vsyncadd (!%p862_p5), %s665_s13, 4294966784  ;;  %p23_p0 = scmp.ge.s32.totalorder %s1319_s16, 4   ;;  %s1577_s18 = smov %s1143_s19 }
 0x2ad   : > { %s1578_s19 = smov %s1147_s20  ;;  %s1579_s20 = smov %s1335_s30 }
 0x2ae   : > { %s1580_s21 = smov %s1319_s16  ;;  %25 = sbr.rel (!%p23_p0) target bundleno = 8 (0x8), region = 117 }
 0x2b5   :  { %679 = vsyncpa [#allocation3], 1 }
 0x2b6   :  { %681 = vsyncpa [#allocation3 + $0x1], 1 }
 0x2b7   :  { %682 = vsyncpa [#allocation6], 1 }
 0x2b8   :  { %683 = vsyncpa [#allocation4], 1 }
 0x2b9   :  { %685 = vsyncpa [#allocation4 + $0x1], 1 }
 0x2ba   :  { %686 = vsyncpa [#allocation10], 1 }
 0x2bb   :  { %688 = vsyncpa [#allocation10 + $0x1], 1 }

</bundles_post_ra>
